<compile_context>
chip_gen: v5e
topology: v5e:2x2
jax: 0.10.0
libtpu: 0.0.40
codegen_flags: <defaults>
</compile_context>

<pallas_src>
import functools

import jax
import jax.numpy as jnp
from jax.experimental import pallas as pl
from jax.experimental.pallas import tpu as pltpu

CP = 128  # lane-padded channel width used for every weight / activation channel axis


# ---------------------------------------------------------------------------
# Parameter construction (mirrors the PyTorch module) and one-time weight prep
# ---------------------------------------------------------------------------
def init_params(key, state_size, action_size):
    ks = jax.random.split(key, 8)

    def u(k, shape, fan_in):
        bound = 1.0 / float(fan_in) ** 0.5
        return jax.random.uniform(k, shape, jnp.float32, -bound, bound)

    c1 = state_size * action_size
    c2 = 2 * action_size * state_size
    fin = c2 * 4 * 4
    w1 = u(ks[0], (c1, state_size, 3, 3), state_size * 9)
    b1 = u(ks[1], (c1,), state_size * 9)
    w2 = u(ks[2], (c2, c1, 3, 3), c1 * 9)
    b2 = u(ks[3], (c2,), c1 * 9)
    fw1 = u(ks[4], (32, fin), fin)
    fb1 = u(ks[5], (32,), fin)
    fw2 = u(ks[6], (action_size, 32), 32)
    fb2 = u(ks[7], (action_size,), 32)
    return w1, b1, w2, b2, fw1, fb1, fw2, fb2


def prepare_params(params):
    """One-time weight layout transforms + zero-padding of channel axes to 128 lanes."""
    w1, b1, w2, b2, fw1, fb1, fw2, fb2 = params
    c1, s = w1.shape[0], w1.shape[1]
    c2 = w2.shape[0]
    a = fw2.shape[0]
    h1 = fw1.shape[0]  # 32 fc1 units

    def padc(m):
        return jnp.pad(m, ((0, 0), (0, CP - m.shape[1])))

    # conv1: (co, ci, kh, kw) -> (kh*kw*ci, co), pad co -> 128
    w1p = padc(jnp.transpose(w1, (2, 3, 1, 0)).reshape(9 * s, c1))        # (9s, 128)
    b1p = padc(b1.reshape(1, c1))                                         # (1, 128)

    # conv2: per-tap (ci, co) matrices, pad both ci and co -> 128
    w2t = jnp.transpose(w2, (2, 3, 1, 0))                                 # (3,3,c1,c2)
    w2t = jnp.pad(w2t, ((0, 0), (0, 0), (0, CP - c1), (0, CP - c2)))
    w2p = w2t.reshape(9, CP, CP)                                          # (9,128,128)
    b2p = padc(b2.reshape(1, c2))

    # fc1: torch flattens (c2, 4, 4) in (c,h,w) order; the kernel flattens (h,w,c_padded)
    fw1t = fw1.reshape(h1, c2, 4, 4).transpose(2, 3, 1, 0)                # (4,4,c2,32)
    fw1t = jnp.pad(fw1t, ((0, 0), (0, 0), (0, CP - c2), (0, 0)))          # (4,4,128,32)
    fw1p = padc(fw1t.reshape(16 * CP, h1))                                # (2048, 128)
    fb1p = padc(fb1.reshape(1, h1))

    # fc2: (a, 32) -> (32, a), pad rows 32->128 and cols a->128
    fw2p = jnp.pad(fw2.T, ((0, CP - h1), (0, CP - a)))                    # (128, 128)
    fb2p = padc(fb2.reshape(1, a))
    return (w1p, b1p, w2p, b2p, fw1p, fb1p, fw2p, fb2p)


# ---------------------------------------------------------------------------
# conv1 im2col (wrapper side; stride-4 patches are smaller than the raw input)
# ---------------------------------------------------------------------------
def _im2col_pooled(x_nhwc, ksize, stride, pooled):
    """Patches ordered (batch, pool_window(4), pooled_pos, kh*kw*c)."""
    n, _, _, c = x_nhwc.shape
    step = 2 * stride
    wins = []
    for dh in (0, 1):
        for dw in (0, 1):
            taps = []
            for kh in range(ksize):
                for kw in range(ksize):
                    r0 = stride * dh + kh
                    c0 = stride * dw + kw
                    taps.append(
                        x_nhwc[:, r0:r0 + step * (pooled - 1) + 1:step,
                                  c0:c0 + step * (pooled - 1) + 1:step, :])  # (n,p,p,c)
            t = jnp.stack(taps, axis=-2)                                     # (n,p,p,9,c)
            wins.append(t.reshape(n, pooled * pooled, ksize * ksize * c))
    return jnp.stack(wins, axis=1)                                           # (n,4,p*p,9c)


# ---------------------------------------------------------------------------
# Fully fused forward: one pallas_call
# ---------------------------------------------------------------------------
def qnetwork_forward(x_nchw, prep, action_size, batch_block=8):
    w1p, b1p, w2p, b2p, fw1p, fb1p, fw2p, fb2p = prep
    n, s, hh, ww = x_nchw.shape
    assert hh == 84 and ww == 84, "fc1 size hard-codes an 84x84 input (trunk ends at 4x4)"
    k1 = 9 * s

    x = x_nchw.astype(jnp.float32).transpose(0, 2, 3, 1)       # NCHW -> NHWC
    p1 = _im2col_pooled(x, 3, 4, 10)                            # (n, 4, 100, k1)

    nb = max(1, min(batch_block, n))                            # batch elems per grid step
    g = -(-n // nb)
    npad = g * nb
    if npad != n:
        p1 = jnp.pad(p1, ((0, npad - n), (0, 0), (0, 0), (0, 0)))
    m1 = nb * 100
    # (g, 4, nb*100, k1): window axis outermost inside a block so the kernel can fold the
    # batch block and the 4 pool windows into one large-M matmul.
    p1b = p1.reshape(g, nb, 4, 100, k1).transpose(0, 2, 1, 3, 4).reshape(g, 4, m1, k1)

    def kernel(p_ref, w1_ref, b1_ref, w2_ref, b2_ref,
               fw1_ref, fb1_ref, fw2_ref, fb2_ref, o_ref):
        # ---- conv1 + 2x2/2 max-pool: single (4*nb*100, k1) @ (k1, 128) MXU matmul ----
        z = jnp.dot(p_ref[...].reshape(4 * m1, k1), w1_ref[...],
                    preferred_element_type=jnp.float32)          # (4*m1, 128)
        z = jnp.max(z.reshape(4, m1, CP), axis=0)                # max over pool windows
        a1 = jnp.maximum(z + b1_ref[...], 0.0)                   # bias+ReLU hoisted after max
        a1 = a1.reshape(nb, 10, 10, CP)

        # ---- conv2 (3x3, stride 1) as a 9-tap matmul sum on the VMEM-resident map ----
        def tap(t):
            kh, kw = divmod(t, 3)
            slab = a1[:, kh:kh + 8, kw:kw + 8, :].reshape(nb * 64, CP)
            return jnp.dot(slab, w2_ref[t], preferred_element_type=jnp.float32)

        z2 = tap(0)
        for t in range(1, 9):
            z2 = z2 + tap(t)                                     # (nb*64, 128)

        # ---- 2x2/2 max-pool on the 8x8 map, then bias+ReLU (hoisted after the pool) ----
        z2 = jnp.max(z2.reshape(nb, 4, 2, 8, CP), axis=2)        # pool H -> (nb,4,8,128)
        z2 = jnp.max(z2.reshape(nb, 4, 4, 2, CP), axis=3)        # pool W -> (nb,4,4,128)
        a2 = jnp.maximum(z2 + b2_ref[...], 0.0)

        # ---- flatten (h, w, c_pad) + fc1 + ReLU + fc2 (lane-dense 128-wide store) ----
        flat = a2.reshape(nb, 16 * CP)                           # (nb, 2048)
        hid = jnp.maximum(
            jnp.dot(flat, fw1_ref[...], preferred_element_type=jnp.float32) + fb1_ref[...],
            0.0)
        # TODO(synk): training-mode dropout (p=0.4) not implemented; eval-mode identity used.
        o_ref[...] = jnp.dot(hid, fw2_ref[...],
                             preferred_element_type=jnp.float32) + fb2_ref[...]

    out = pl.pallas_call(
        kernel,
        out_shape=jax.ShapeDtypeStruct((g, nb, CP), jnp.float32),
        grid=(g,),
        in_specs=[
            pl.BlockSpec((None, 4, m1, k1), lambda i: (i, 0, 0, 0)),
            pl.BlockSpec((k1, CP), lambda i: (0, 0)),
            pl.BlockSpec((1, CP), lambda i: (0, 0)),
            pl.BlockSpec((9, CP, CP), lambda i: (0, 0, 0)),
            pl.BlockSpec((1, CP), lambda i: (0, 0)),
            pl.BlockSpec((16 * CP, CP), lambda i: (0, 0)),
            pl.BlockSpec((1, CP), lambda i: (0, 0)),
            pl.BlockSpec((CP, CP), lambda i: (0, 0)),
            pl.BlockSpec((1, CP), lambda i: (0, 0)),
        ],
        out_specs=pl.BlockSpec((None, nb, CP), lambda i: (i, 0, 0)),
        compiler_params=pltpu.CompilerParams(dimension_semantics=("parallel",)),
    )(p1b, w1p, b1p, w2p, b2p, fw1p, fb1p, fw2p, fb2p)

    return out.reshape(npad, CP)[:n, :action_size]


# ---------------------------------------------------------------------------
# Pure-JAX reference (mirrors the PyTorch forward, NCHW) for a sanity check
# ---------------------------------------------------------------------------
def reference_forward(x, params):
    w1, b1, w2, b2, fw1, fb1, fw2, fb2 = params
    x = x.astype(jnp.float32)

    def conv(y, w, stride):
        dn = jax.lax.conv_dimension_numbers(y.shape, w.shape, ('NCHW', 'OIHW', 'NCHW'))
        return jax.lax.conv_general_dilated(y, w, (stride, stride), 'VALID',
                                            dimension_numbers=dn)

    def pool(y):
        return jax.lax.reduce_window(y, -jnp.inf, jax.lax.max,
                                     (1, 1, 2, 2), (1, 1, 2, 2), 'VALID')

    y = pool(jnp.maximum(conv(x, w1, 4) + b1[None, :, None, None], 0.0))
    y = pool(jnp.maximum(conv(y, w2, 1) + b2[None, :, None, None], 0.0))
    y = y.reshape(y.shape[0], -1)
    y = jnp.maximum(y @ fw1.T + fb1, 0.0)
    return y @ fw2.T + fb2


if __name__ == "__main__":
    key = jax.random.PRNGKey(0)
    kx, kp = jax.random.split(key)
    state_size, action_size = 4, 4
    # Spatial size must be 84 (Atari-style): the module hard-codes fc1's input dim as
    # 2*action_size*state_size*4*4, which requires the conv/pool trunk to end at 4x4.
    x = jax.random.uniform(kx, (2, state_size, 84, 84), jnp.float32)
    params = init_params(kp, state_size, action_size)

    # Weight permutation / lane padding hoisted out of the per-step forward.
    prep = prepare_params(params)

    fwd = jax.jit(functools.partial(qnetwork_forward, action_size=action_size))
    out = jax.block_until_ready(fwd(x, prep))
    assert out.shape == (2, action_size), out.shape

    ref = reference_forward(x, params)
    max_err = float(jnp.max(jnp.abs(out - ref)))
    assert max_err < 5e-2, f"mismatch vs reference: max abs err = {max_err}"

    print("KERNEL_OK")
</pallas_src>

<mosaic_0001>
module attributes {stable_mosaic.version = 11 : i64} {
  func.func @kernel(%arg0: i32, %arg1: memref<1x4x200x36xf32, #tpu.memory_space<vmem>>, %arg2: memref<36x128xf32, #tpu.memory_space<vmem>>, %arg3: memref<1x128xf32, #tpu.memory_space<vmem>>, %arg4: memref<9x128x128xf32, #tpu.memory_space<vmem>>, %arg5: memref<1x128xf32, #tpu.memory_space<vmem>>, %arg6: memref<2048x128xf32, #tpu.memory_space<vmem>>, %arg7: memref<1x128xf32, #tpu.memory_space<vmem>>, %arg8: memref<128x128xf32, #tpu.memory_space<vmem>>, %arg9: memref<1x128xf32, #tpu.memory_space<vmem>>, %arg10: memref<1x2x128xf32, #tpu.memory_space<vmem>>) attributes {dimension_semantics = [#tpu.dimension_semantics<parallel>], iteration_bounds = array<i64: 1>, scalar_prefetch = 0 : i64, scratch_operands = 0 : i64, tpu.core_type = #tpu.core_type<tc>, window_params = [{transform_indices = @transform_0, window_bounds = array<i64: 1, 4, 200, 36>}, {pipeline_mode = #tpu.pipeline_mode<synchronous>, transform_indices = @transform_1, window_bounds = array<i64: 36, 128>}, {pipeline_mode = #tpu.pipeline_mode<synchronous>, transform_indices = @transform_2, window_bounds = array<i64: 1, 128>}, {pipeline_mode = #tpu.pipeline_mode<synchronous>, transform_indices = @transform_3, window_bounds = array<i64: 9, 128, 128>}, {pipeline_mode = #tpu.pipeline_mode<synchronous>, transform_indices = @transform_4, window_bounds = array<i64: 1, 128>}, {pipeline_mode = #tpu.pipeline_mode<synchronous>, transform_indices = @transform_5, window_bounds = array<i64: 2048, 128>}, {pipeline_mode = #tpu.pipeline_mode<synchronous>, transform_indices = @transform_6, window_bounds = array<i64: 1, 128>}, {pipeline_mode = #tpu.pipeline_mode<synchronous>, transform_indices = @transform_7, window_bounds = array<i64: 128, 128>}, {pipeline_mode = #tpu.pipeline_mode<synchronous>, transform_indices = @transform_8, window_bounds = array<i64: 1, 128>}, {transform_indices = @transform_9, window_bounds = array<i64: 1, 2, 128>}]} {
    %c0 = arith.constant 0 : index
    %c0_0 = arith.constant 0 : index
    %c0_1 = arith.constant 0 : index
    %c0_2 = arith.constant 0 : index
    %0 = vector.load %arg1[%c0, %c0_0, %c0_1, %c0_2] : memref<1x4x200x36xf32, #tpu.memory_space<vmem>>, vector<1x4x200x36xf32>
    %1 = vector.shape_cast %0 : vector<1x4x200x36xf32> to vector<4x200x36xf32>
    %2 = vector.shape_cast %1 : vector<4x200x36xf32> to vector<800x36xf32>
    %c0_3 = arith.constant 0 : index
    %c0_4 = arith.constant 0 : index
    %3 = vector.load %arg2[%c0_3, %c0_4] : memref<36x128xf32, #tpu.memory_space<vmem>>, vector<36x128xf32>
    %cst = arith.constant dense<0.000000e+00> : vector<800x128xf32>
    %4 = tpu.matmul %2, %3, %cst {dimension_numbers = #tpu.dot_dimension_numbers<[1], [0], [0], [1], [0, 0, 1, 1], [], []>} : vector<800x36xf32>, vector<36x128xf32>, vector<800x128xf32> -> vector<800x128xf32>
    %5 = vector.shape_cast %4 : vector<800x128xf32> to vector<4x200x128xf32>
    %cst_5 = arith.constant dense<0xFF800000> : vector<200x128xf32>
    %6 = vector.multi_reduction <maximumf>, %5, %cst_5 [0] : vector<4x200x128xf32> to vector<200x128xf32>
    %c0_6 = arith.constant 0 : index
    %c0_7 = arith.constant 0 : index
    %7 = vector.load %arg3[%c0_6, %c0_7] : memref<1x128xf32, #tpu.memory_space<vmem>>, vector<1x128xf32>
    %8 = vector.broadcast %7 : vector<1x128xf32> to vector<200x128xf32>
    %9 = arith.addf %6, %8 : vector<200x128xf32>
    %cst_8 = arith.constant 0.000000e+00 : f32
    %10 = vector.broadcast %cst_8 : f32 to vector<200x128xf32>
    %11 = arith.maximumf %9, %10 : vector<200x128xf32>
    %12 = vector.shape_cast %11 : vector<200x128xf32> to vector<2x10x10x128xf32>
    %13 = vector.extract_strided_slice %12 {offsets = [0, 0, 0, 0], sizes = [2, 8, 8, 128], strides = [1, 1, 1, 1]} : vector<2x10x10x128xf32> to vector<2x8x8x128xf32>
    %14 = vector.shape_cast %13 : vector<2x8x8x128xf32> to vector<128x128xf32>
    %c0_9 = arith.constant 0 : index
    %c0_10 = arith.constant 0 : index
    %c0_11 = arith.constant 0 : index
    %15 = vector.load %arg4[%c0_9, %c0_10, %c0_11] : memref<9x128x128xf32, #tpu.memory_space<vmem>>, vector<1x128x128xf32>
    %16 = vector.shape_cast %15 : vector<1x128x128xf32> to vector<128x128xf32>
    %cst_12 = arith.constant dense<0.000000e+00> : vector<128x128xf32>
    %17 = tpu.matmul %14, %16, %cst_12 {dimension_numbers = #tpu.dot_dimension_numbers<[1], [0], [0], [1], [0, 0, 1, 1], [], []>} : vector<128x128xf32>, vector<128x128xf32>, vector<128x128xf32> -> vector<128x128xf32>
    %18 = vector.extract_strided_slice %12 {offsets = [0, 0, 1, 0], sizes = [2, 8, 8, 128], strides = [1, 1, 1, 1]} : vector<2x10x10x128xf32> to vector<2x8x8x128xf32>
    %19 = vector.shape_cast %18 : vector<2x8x8x128xf32> to vector<128x128xf32>
    %c1 = arith.constant 1 : index
    %c0_13 = arith.constant 0 : index
    %c0_14 = arith.constant 0 : index
    %20 = vector.load %arg4[%c1, %c0_13, %c0_14] : memref<9x128x128xf32, #tpu.memory_space<vmem>>, vector<1x128x128xf32>
    %21 = vector.shape_cast %20 : vector<1x128x128xf32> to vector<128x128xf32>
    %cst_15 = arith.constant dense<0.000000e+00> : vector<128x128xf32>
    %22 = tpu.matmul %19, %21, %cst_15 {dimension_numbers = #tpu.dot_dimension_numbers<[1], [0], [0], [1], [0, 0, 1, 1], [], []>} : vector<128x128xf32>, vector<128x128xf32>, vector<128x128xf32> -> vector<128x128xf32>
    %23 = arith.addf %17, %22 : vector<128x128xf32>
    %24 = vector.extract_strided_slice %12 {offsets = [0, 0, 2, 0], sizes = [2, 8, 8, 128], strides = [1, 1, 1, 1]} : vector<2x10x10x128xf32> to vector<2x8x8x128xf32>
    %25 = vector.shape_cast %24 : vector<2x8x8x128xf32> to vector<128x128xf32>
    %c2 = arith.constant 2 : index
    %c0_16 = arith.constant 0 : index
    %c0_17 = arith.constant 0 : index
    %26 = vector.load %arg4[%c2, %c0_16, %c0_17] : memref<9x128x128xf32, #tpu.memory_space<vmem>>, vector<1x128x128xf32>
    %27 = vector.shape_cast %26 : vector<1x128x128xf32> to vector<128x128xf32>
    %cst_18 = arith.constant dense<0.000000e+00> : vector<128x128xf32>
    %28 = tpu.matmul %25, %27, %cst_18 {dimension_numbers = #tpu.dot_dimension_numbers<[1], [0], [0], [1], [0, 0, 1, 1], [], []>} : vector<128x128xf32>, vector<128x128xf32>, vector<128x128xf32> -> vector<128x128xf32>
    %29 = arith.addf %23, %28 : vector<128x128xf32>
    %30 = vector.extract_strided_slice %12 {offsets = [0, 1, 0, 0], sizes = [2, 8, 8, 128], strides = [1, 1, 1, 1]} : vector<2x10x10x128xf32> to vector<2x8x8x128xf32>
    %31 = vector.shape_cast %30 : vector<2x8x8x128xf32> to vector<128x128xf32>
    %c3 = arith.constant 3 : index
    %c0_19 = arith.constant 0 : index
    %c0_20 = arith.constant 0 : index
    %32 = vector.load %arg4[%c3, %c0_19, %c0_20] : memref<9x128x128xf32, #tpu.memory_space<vmem>>, vector<1x128x128xf32>
    %33 = vector.shape_cast %32 : vector<1x128x128xf32> to vector<128x128xf32>
    %cst_21 = arith.constant dense<0.000000e+00> : vector<128x128xf32>
    %34 = tpu.matmul %31, %33, %cst_21 {dimension_numbers = #tpu.dot_dimension_numbers<[1], [0], [0], [1], [0, 0, 1, 1], [], []>} : vector<128x128xf32>, vector<128x128xf32>, vector<128x128xf32> -> vector<128x128xf32>
    %35 = arith.addf %29, %34 : vector<128x128xf32>
    %36 = vector.extract_strided_slice %12 {offsets = [0, 1, 1, 0], sizes = [2, 8, 8, 128], strides = [1, 1, 1, 1]} : vector<2x10x10x128xf32> to vector<2x8x8x128xf32>
    %37 = vector.shape_cast %36 : vector<2x8x8x128xf32> to vector<128x128xf32>
    %c4 = arith.constant 4 : index
    %c0_22 = arith.constant 0 : index
    %c0_23 = arith.constant 0 : index
    %38 = vector.load %arg4[%c4, %c0_22, %c0_23] : memref<9x128x128xf32, #tpu.memory_space<vmem>>, vector<1x128x128xf32>
    %39 = vector.shape_cast %38 : vector<1x128x128xf32> to vector<128x128xf32>
    %cst_24 = arith.constant dense<0.000000e+00> : vector<128x128xf32>
    %40 = tpu.matmul %37, %39, %cst_24 {dimension_numbers = #tpu.dot_dimension_numbers<[1], [0], [0], [1], [0, 0, 1, 1], [], []>} : vector<128x128xf32>, vector<128x128xf32>, vector<128x128xf32> -> vector<128x128xf32>
    %41 = arith.addf %35, %40 : vector<128x128xf32>
    %42 = vector.extract_strided_slice %12 {offsets = [0, 1, 2, 0], sizes = [2, 8, 8, 128], strides = [1, 1, 1, 1]} : vector<2x10x10x128xf32> to vector<2x8x8x128xf32>
    %43 = vector.shape_cast %42 : vector<2x8x8x128xf32> to vector<128x128xf32>
    %c5 = arith.constant 5 : index
    %c0_25 = arith.constant 0 : index
    %c0_26 = arith.constant 0 : index
    %44 = vector.load %arg4[%c5, %c0_25, %c0_26] : memref<9x128x128xf32, #tpu.memory_space<vmem>>, vector<1x128x128xf32>
    %45 = vector.shape_cast %44 : vector<1x128x128xf32> to vector<128x128xf32>
    %cst_27 = arith.constant dense<0.000000e+00> : vector<128x128xf32>
    %46 = tpu.matmul %43, %45, %cst_27 {dimension_numbers = #tpu.dot_dimension_numbers<[1], [0], [0], [1], [0, 0, 1, 1], [], []>} : vector<128x128xf32>, vector<128x128xf32>, vector<128x128xf32> -> vector<128x128xf32>
    %47 = arith.addf %41, %46 : vector<128x128xf32>
    %48 = vector.extract_strided_slice %12 {offsets = [0, 2, 0, 0], sizes = [2, 8, 8, 128], strides = [1, 1, 1, 1]} : vector<2x10x10x128xf32> to vector<2x8x8x128xf32>
    %49 = vector.shape_cast %48 : vector<2x8x8x128xf32> to vector<128x128xf32>
    %c6 = arith.constant 6 : index
    %c0_28 = arith.constant 0 : index
    %c0_29 = arith.constant 0 : index
    %50 = vector.load %arg4[%c6, %c0_28, %c0_29] : memref<9x128x128xf32, #tpu.memory_space<vmem>>, vector<1x128x128xf32>
    %51 = vector.shape_cast %50 : vector<1x128x128xf32> to vector<128x128xf32>
    %cst_30 = arith.constant dense<0.000000e+00> : vector<128x128xf32>
    %52 = tpu.matmul %49, %51, %cst_30 {dimension_numbers = #tpu.dot_dimension_numbers<[1], [0], [0], [1], [0, 0, 1, 1], [], []>} : vector<128x128xf32>, vector<128x128xf32>, vector<128x128xf32> -> vector<128x128xf32>
    %53 = arith.addf %47, %52 : vector<128x128xf32>
    %54 = vector.extract_strided_slice %12 {offsets = [0, 2, 1, 0], sizes = [2, 8, 8, 128], strides = [1, 1, 1, 1]} : vector<2x10x10x128xf32> to vector<2x8x8x128xf32>
    %55 = vector.shape_cast %54 : vector<2x8x8x128xf32> to vector<128x128xf32>
    %c7 = arith.constant 7 : index
    %c0_31 = arith.constant 0 : index
    %c0_32 = arith.constant 0 : index
    %56 = vector.load %arg4[%c7, %c0_31, %c0_32] : memref<9x128x128xf32, #tpu.memory_space<vmem>>, vector<1x128x128xf32>
    %57 = vector.shape_cast %56 : vector<1x128x128xf32> to vector<128x128xf32>
    %cst_33 = arith.constant dense<0.000000e+00> : vector<128x128xf32>
    %58 = tpu.matmul %55, %57, %cst_33 {dimension_numbers = #tpu.dot_dimension_numbers<[1], [0], [0], [1], [0, 0, 1, 1], [], []>} : vector<128x128xf32>, vector<128x128xf32>, vector<128x128xf32> -> vector<128x128xf32>
    %59 = arith.addf %53, %58 : vector<128x128xf32>
    %60 = vector.extract_strided_slice %12 {offsets = [0, 2, 2, 0], sizes = [2, 8, 8, 128], strides = [1, 1, 1, 1]} : vector<2x10x10x128xf32> to vector<2x8x8x128xf32>
    %61 = vector.shape_cast %60 : vector<2x8x8x128xf32> to vector<128x128xf32>
    %c8 = arith.constant 8 : index
    %c0_34 = arith.constant 0 : index
    %c0_35 = arith.constant 0 : index
    %62 = vector.load %arg4[%c8, %c0_34, %c0_35] : memref<9x128x128xf32, #tpu.memory_space<vmem>>, vector<1x128x128xf32>
    %63 = vector.shape_cast %62 : vector<1x128x128xf32> to vector<128x128xf32>
    %cst_36 = arith.constant dense<0.000000e+00> : vector<128x128xf32>
    %64 = tpu.matmul %61, %63, %cst_36 {dimension_numbers = #tpu.dot_dimension_numbers<[1], [0], [0], [1], [0, 0, 1, 1], [], []>} : vector<128x128xf32>, vector<128x128xf32>, vector<128x128xf32> -> vector<128x128xf32>
    %65 = arith.addf %59, %64 : vector<128x128xf32>
    %66 = vector.shape_cast %65 : vector<128x128xf32> to vector<2x4x2x8x128xf32>
    %cst_37 = arith.constant dense<0xFF800000> : vector<2x4x8x128xf32>
    %67 = vector.multi_reduction <maximumf>, %66, %cst_37 [2] : vector<2x4x2x8x128xf32> to vector<2x4x8x128xf32>
    %68 = vector.shape_cast %67 : vector<2x4x8x128xf32> to vector<2x4x4x2x128xf32>
    %cst_38 = arith.constant dense<0xFF800000> : vector<2x4x4x128xf32>
    %69 = vector.multi_reduction <maximumf>, %68, %cst_38 [3] : vector<2x4x4x2x128xf32> to vector<2x4x4x128xf32>
    %c0_39 = arith.constant 0 : index
    %c0_40 = arith.constant 0 : index
    %70 = vector.load %arg5[%c0_39, %c0_40] : memref<1x128xf32, #tpu.memory_space<vmem>>, vector<1x128xf32>
    %71 = vector.shape_cast %70 : vector<1x128xf32> to vector<1x1x1x128xf32>
    %72 = vector.broadcast %71 : vector<1x1x1x128xf32> to vector<2x4x4x128xf32>
    %73 = arith.addf %69, %72 : vector<2x4x4x128xf32>
    %cst_41 = arith.constant 0.000000e+00 : f32
    %74 = vector.broadcast %cst_41 : f32 to vector<2x4x4x128xf32>
    %75 = arith.maximumf %73, %74 : vector<2x4x4x128xf32>
    %76 = vector.shape_cast %75 : vector<2x4x4x128xf32> to vector<2x2048xf32>
    %c0_42 = arith.constant 0 : index
    %c0_43 = arith.constant 0 : index
    %77 = vector.load %arg6[%c0_42, %c0_43] : memref<2048x128xf32, #tpu.memory_space<vmem>>, vector<2048x128xf32>
    %cst_44 = arith.constant dense<0.000000e+00> : vector<2x128xf32>
    %78 = tpu.matmul %76, %77, %cst_44 {dimension_numbers = #tpu.dot_dimension_numbers<[1], [0], [0], [1], [0, 0, 1, 1], [], []>} : vector<2x2048xf32>, vector<2048x128xf32>, vector<2x128xf32> -> vector<2x128xf32>
    %c0_45 = arith.constant 0 : index
    %c0_46 = arith.constant 0 : index
    %79 = vector.load %arg7[%c0_45, %c0_46] : memref<1x128xf32, #tpu.memory_space<vmem>>, vector<1x128xf32>
    %80 = vector.broadcast %79 : vector<1x128xf32> to vector<2x128xf32>
    %81 = arith.addf %78, %80 : vector<2x128xf32>
    %cst_47 = arith.constant 0.000000e+00 : f32
    %82 = vector.broadcast %cst_47 : f32 to vector<2x128xf32>
    %83 = arith.maximumf %81, %82 : vector<2x128xf32>
    %c0_48 = arith.constant 0 : index
    %c0_49 = arith.constant 0 : index
    %84 = vector.load %arg8[%c0_48, %c0_49] : memref<128x128xf32, #tpu.memory_space<vmem>>, vector<128x128xf32>
    %cst_50 = arith.constant dense<0.000000e+00> : vector<2x128xf32>
    %85 = tpu.matmul %83, %84, %cst_50 {dimension_numbers = #tpu.dot_dimension_numbers<[1], [0], [0], [1], [0, 0, 1, 1], [], []>} : vector<2x128xf32>, vector<128x128xf32>, vector<2x128xf32> -> vector<2x128xf32>
    %c0_51 = arith.constant 0 : index
    %c0_52 = arith.constant 0 : index
    %86 = vector.load %arg9[%c0_51, %c0_52] : memref<1x128xf32, #tpu.memory_space<vmem>>, vector<1x128xf32>
    %87 = vector.broadcast %86 : vector<1x128xf32> to vector<2x128xf32>
    %88 = arith.addf %85, %87 : vector<2x128xf32>
    %c0_53 = arith.constant 0 : index
    %c0_54 = arith.constant 0 : index
    %c0_55 = arith.constant 0 : index
    %89 = vector.load %arg10[%c0_53, %c0_54, %c0_55] : memref<1x2x128xf32, #tpu.memory_space<vmem>>, vector<1x2x128xf32>
    %90 = vector.shape_cast %89 : vector<1x2x128xf32> to vector<2x128xf32>
    %91 = vector.shape_cast %88 : vector<2x128xf32> to vector<1x2x128xf32>
    tpu.vector_store %arg10[%c0_53, %c0_54, %c0_55], %91 {strides = array<i32>} : memref<1x2x128xf32, #tpu.memory_space<vmem>>, vector<1x2x128xf32>,
    return
  }
  func.func @transform_0(%arg0: i32) -> (i32, i32, i32, i32) {
    %c0_i32 = arith.constant 0 : i32
    %c0_i32_0 = arith.constant 0 : i32
    %c0_i32_1 = arith.constant 0 : i32
    %c0_i32_2 = arith.constant 0 : i32
    return %arg0, %c0_i32, %c0_i32_0, %c0_i32_1 : i32, i32, i32, i32
  }
  func.func @transform_1(%arg0: i32) -> (i32, i32) {
    %c0_i32 = arith.constant 0 : i32
    %c0_i32_0 = arith.constant 0 : i32
    %c0_i32_1 = arith.constant 0 : i32
    return %c0_i32, %c0_i32_0 : i32, i32
  }
  func.func @transform_2(%arg0: i32) -> (i32, i32) {
    %c0_i32 = arith.constant 0 : i32
    %c0_i32_0 = arith.constant 0 : i32
    %c0_i32_1 = arith.constant 0 : i32
    return %c0_i32, %c0_i32_0 : i32, i32
  }
  func.func @transform_3(%arg0: i32) -> (i32, i32, i32) {
    %c0_i32 = arith.constant 0 : i32
    %c0_i32_0 = arith.constant 0 : i32
    %c0_i32_1 = arith.constant 0 : i32
    %c0_i32_2 = arith.constant 0 : i32
    return %c0_i32, %c0_i32_0, %c0_i32_1 : i32, i32, i32
  }
  func.func @transform_4(%arg0: i32) -> (i32, i32) {
    %c0_i32 = arith.constant 0 : i32
    %c0_i32_0 = arith.constant 0 : i32
    %c0_i32_1 = arith.constant 0 : i32
    return %c0_i32, %c0_i32_0 : i32, i32
  }
  func.func @transform_5(%arg0: i32) -> (i32, i32) {
    %c0_i32 = arith.constant 0 : i32
    %c0_i32_0 = arith.constant 0 : i32
    %c0_i32_1 = arith.constant 0 : i32
    return %c0_i32, %c0_i32_0 : i32, i32
  }
  func.func @transform_6(%arg0: i32) -> (i32, i32) {
    %c0_i32 = arith.constant 0 : i32
    %c0_i32_0 = arith.constant 0 : i32
    %c0_i32_1 = arith.constant 0 : i32
    return %c0_i32, %c0_i32_0 : i32, i32
  }
  func.func @transform_7(%arg0: i32) -> (i32, i32) {
    %c0_i32 = arith.constant 0 : i32
    %c0_i32_0 = arith.constant 0 : i32
    %c0_i32_1 = arith.constant 0 : i32
    return %c0_i32, %c0_i32_0 : i32, i32
  }
  func.func @transform_8(%arg0: i32) -> (i32, i32) {
    %c0_i32 = arith.constant 0 : i32
    %c0_i32_0 = arith.constant 0 : i32
    %c0_i32_1 = arith.constant 0 : i32
    return %c0_i32, %c0_i32_0 : i32, i32
  }
  func.func @transform_9(%arg0: i32) -> (i32, i32, i32) {
    %c0_i32 = arith.constant 0 : i32
    %c0_i32_0 = arith.constant 0 : i32
    %c0_i32_1 = arith.constant 0 : i32
    return %arg0, %c0_i32, %c0_i32_0 : i32, i32, i32
  }
}

</mosaic_0001>

<bundles_post_ra>
// kernel: qnetwork_forward.1
= control target key start
LH: loop header
LB: loop body
LE: loop exit
PB: predicated region body
PF: predicated region fallthrough
CT: control target
= control target key end

     0   :  { %vm439_vm0 = vcmask 1043456   ;;  %s8717_s0 = inlined_call_operand.vmem [shape: f32[1,4,200,36], index: 0, kind: input, shape index: {}]   ;;  %s8718_s1 = inlined_call_operand.vmem [shape: f32[36,128], index: 1, kind: input, shape index: {}]   ;;  %s8719_s2 = inlined_call_operand.vmem [shape: f32[1,128], index: 2, kind: input, shape index: {}]   ;;  %s8720_s3 = inlined_call_operand.vmem [shape: f32[9,128,128], index: 3, kind: input, shape index: {}]   ;;  %s8721_s4 = inlined_call_operand.vmem [shape: f32[1,128], index: 4, kind: input, shape index: {}]   ;;  %s8722_s5 = inlined_call_operand.vmem [shape: f32[2048,128], index: 5, kind: input, shape index: {}]   ;;  %s8723_s6 = inlined_call_operand.vmem [shape: f32[1,128], index: 6, kind: input, shape index: {}]   ;;  %s8724_s7 = inlined_call_operand.vmem [shape: f32[128,128], index: 7, kind: input, shape index: {}]   ;;  %s8725_s8 = inlined_call_operand.vmem [shape: f32[1,128], index: 8, kind: input, shape index: {}]   ;;  %s8726_s9 = inlined_call_operand.hbm [shape: f32[1,2,128], index: 9, kind: output, shape index: {}]  }
   0x1   :  { %v137_v0 = vld [vmem:[%s8718_s1 + $0x20] sm:$0xf]  ;;  %v136_v1 = vld [vmem:[%s8718_s1 + $0x18] sm:$0xff]  ;;  %v135_v2 = vld [vmem:[%s8718_s1 + $0x10] sm:$0xff] }
   0x2   :  { %4173 = vmatpush.msk.msra.mxu0 %vm439_vm0, %v137_v0  ;;  %4422 = vmatpush.msk.msra.mxu1 %vm439_vm0, %v137_v0  ;;  %v134_v3 = vld [vmem:[%s8718_s1 + $0x8] sm:$0xff] }
   0x3   :  { %4423 = vmatpush.msk.msra.mxu2 %vm439_vm0, %v137_v0  ;;  %4424 = vmatpush.msk.msra.mxu3 %vm439_vm0, %v137_v0 }
   0x4   :  { %455 = vmatpush.msra.mxu0 %v136_v1  ;;  %4425 = vmatpush.msra.mxu1 %v136_v1 }
   0x5   :  { %4426 = vmatpush.msra.mxu2 %v136_v1  ;;  %4427 = vmatpush.msra.mxu3 %v136_v1 }
   0x6   :  { %14 = vsyncpa [#allocation3], 0  ;;  %456 = vmatpush.msra.mxu0 %v135_v2  ;;  %4428 = vmatpush.msra.mxu1 %v135_v2  ;;  %v133_v4 = vld [vmem:[%s8718_s1] sm:$0xff]  ;;  %vm138_vm1 = vcmask 293888   ;;  %v34_v6 = vld [vmem:[%s8717_s0 + $0x8] sm:$0xff]  ;;  %vm1005_vm2 = vcmask 1040384  }
   0x7   :  { %4429 = vmatpush.msra.mxu2 %v135_v2  ;;  %4430 = vmatpush.msra.mxu3 %v135_v2  ;;  %v33_v5 = vld [vmem:[%s8717_s0] sm:$0xff]  ;;  %v35_v7 = vld [vmem:[%s8717_s0 + $0x10] sm:$0xff]  ;;  %v36_v8 = vld [vmem:[%s8717_s0 + $0x18] sm:$0xff]  ;;  %vm1006_vm3 = vcmask 1042434   ;;  %vm1008_vm5 = vcmask 1044484   ;;  %vm1010_vm6 = vcmask 1046534  }
   0x8   :  { %457 = vmatpush.msra.mxu0 %v134_v3  ;;  %4431 = vmatpush.msra.mxu1 %v134_v3  ;;  %v37_v9 = vld [vmem:[%s8717_s0 + $0x20] sm:$0xff]  ;;  %v38_v10 = vld [vmem:[%s8717_s0 + $0x28] sm:$0xff]  ;;  %v39_v11 = vld [vmem:[%s8717_s0 + $0x30] sm:$0xff]  ;;  %vm3096_vm9 = vcmask 1041408   ;;  %vm3422_vm10 = vcmask 1041409   ;;  %vm3427_vm11 = vcmask 1043459  }
   0x9   :  { %4432 = vmatpush.msra.mxu2 %v134_v3  ;;  %4433 = vmatpush.msra.mxu3 %v134_v3  ;;  %v40_v12 = vld [vmem:[%s8717_s0 + $0x38] sm:$0xff]  ;;  %v41_v13 = vld [vmem:[%s8717_s0 + $0x40] sm:$0xff]  ;;  %v42_v14 = vld [vmem:[%s8717_s0 + $0x48] sm:$0xff] }
   0xa   :  { %458 = vmatpush.msra.mxu0 %v133_v4  ;;  %4434 = vmatpush.msra.mxu1 %v133_v4  ;;  %v43_v15 = vld [vmem:[%s8717_s0 + $0x50] sm:$0xff]  ;;  %v44_v16 = vld [vmem:[%s8717_s0 + $0x58] sm:$0xff]  ;;  %v45_v17 = vld [vmem:[%s8717_s0 + $0x60] sm:$0xff] }
   0xb   :  { %4174 = vmatmul.msk.f32.vlgmr.msra.gmra.mxu0 %vm138_vm1, %v33_v5  ;;  %4435 = vmatpush.msra.mxu2 %v133_v4  ;;  %v46_v18 = vld [vmem:[%s8717_s0 + $0x68] sm:$0xff]  ;;  %v47_v19 = vld [vmem:[%s8717_s0 + $0x70] sm:$0xff]  ;;  %v48_v20 = vld [vmem:[%s8717_s0 + $0x78] sm:$0xff] }
   0xc   :  { %4436 = vmatpush.msra.mxu3 %v133_v4  ;;  %v49_v22 = vld [vmem:[%s8717_s0 + $0x80] sm:$0xff]  ;;  %v50_v24 = vld [vmem:[%s8717_s0 + $0x88] sm:$0xff]  ;;  %v51_v26 = vld [vmem:[%s8717_s0 + $0x90] sm:$0xff] }
   0xd   :  { %v52_v28 = vld [vmem:[%s8717_s0 + $0x98] sm:$0xff]  ;;  %v53_v30 = vld [vmem:[%s8717_s0 + $0xa0] sm:$0xff]  ;;  %v54_v32 = vld [vmem:[%s8717_s0 + $0xa8] sm:$0xff] }
   0xe   :  { %v55_v34 = vld [vmem:[%s8717_s0 + $0xb0] sm:$0xff]  ;;  %v56_v36 = vld [vmem:[%s8717_s0 + $0xb8] sm:$0xff]  ;;  %v57_v38 = vld [vmem:[%s8717_s0 + $0xc0] sm:$0xff] }
   0xf   :  { %v58_v40 = vld [vmem:[%s8717_s0 + $0xc8] sm:$0xff]  ;;  %v59_v42 = vld [vmem:[%s8717_s0 + $0xd0] sm:$0xff]  ;;  %v60_v44 = vld [vmem:[%s8717_s0 + $0xd8] sm:$0xff] }
  0x10   :  { %v61_v46 = vld [vmem:[%s8717_s0 + $0xe0] sm:$0xff]  ;;  %v62_v48 = vld [vmem:[%s8717_s0 + $0xe8] sm:$0xff]  ;;  %v63_v50 = vld [vmem:[%s8717_s0 + $0xf0] sm:$0xff] }
  0x11   :  { %v64_v52 = vld [vmem:[%s8717_s0 + $0xf8] sm:$0xff]  ;;  %v65_v54 = vld [vmem:[%s8717_s0 + $0x100] sm:$0xff]  ;;  %v66_v56 = vld [vmem:[%s8717_s0 + $0x108] sm:$0xff] }
  0x12   :  { %v67_v58 = vld [vmem:[%s8717_s0 + $0x110] sm:$0xff]  ;;  %v68_v60 = vld [vmem:[%s8717_s0 + $0x118] sm:$0xff]  ;;  %v69_v62 = vld [vmem:[%s8717_s0 + $0x120] sm:$0xff] }
  0x13   :  { %4175 = vmatmul.msk.f32.gmra.mxu0 %vm138_vm1, %v34_v6  ;;  %v70_v0 = vld [vmem:[%s8717_s0 + $0x128] sm:$0xff]  ;;  %v71_v2 = vld [vmem:[%s8717_s0 + $0x130] sm:$0xff]  ;;  %v72_v4 = vld [vmem:[%s8717_s0 + $0x138] sm:$0xff] }
  0x14   :  { %v73_v6 = vld [vmem:[%s8717_s0 + $0x140] sm:$0xff]  ;;  %vm1007_vm4 = vmor %vm1005_vm2, %vm1006_vm3 }
  0x15   :  { %vm1009_vm7 = vmor %vm1007_vm4, %vm1008_vm5 }
  0x16   :  { %vm5171_vm8 = vmor %vm1009_vm7, %vm1010_vm6 }
  0x1b   :  { %4176 = vmatmul.msk.f32.gmra.mxu0 %vm138_vm1, %v35_v7 }
  0x23   :  { %4177 = vmatmul.msk.f32.gmra.mxu0 %vm138_vm1, %v36_v8  ;;  %v74_v8 = vld [vmem:[%s8717_s0 + $0x148] sm:$0xff] }
  0x2b   :  { %4178 = vmatmul.msk.f32.gmra.mxu0 %vm138_vm1, %v37_v9 }
  0x33   :  { %4179 = vmatmul.msk.f32.gmra.mxu0 %vm138_vm1, %v38_v10  ;;  %v75_v10 = vld [vmem:[%s8717_s0 + $0x150] sm:$0xff] }
  0x3b   :  { %4180 = vmatmul.msk.f32.gmra.mxu0 %vm138_vm1, %v39_v11 }
  0x43   :  { %4181 = vmatmul.msk.f32.gmra.mxu0 %vm138_vm1, %v40_v12  ;;  %v76_v12 = vld [vmem:[%s8717_s0 + $0x158] sm:$0xff] }
  0x4b   :  { %4182 = vmatmul.msk.f32.gmra.mxu0 %vm138_vm1, %v41_v13 }
  0x53   :  { %4183 = vmatmul.msk.f32.gmra.mxu0 %vm138_vm1, %v42_v14  ;;  %v77_v14 = vld [vmem:[%s8717_s0 + $0x160] sm:$0xff] }
  0x5b   :  { %4184 = vmatmul.msk.f32.gmra.mxu0 %vm138_vm1, %v43_v15 }
  0x63   :  { %4185 = vmatmul.msk.f32.gmra.mxu0 %vm138_vm1, %v44_v16  ;;  %v78_v16 = vld [vmem:[%s8717_s0 + $0x168] sm:$0xff] }
  0x6b   :  { %4186 = vmatmul.msk.f32.gmra.mxu0 %vm138_vm1, %v45_v17 }
  0x73   :  { %4187 = vmatmul.msk.f32.gmra.mxu0 %vm138_vm1, %v46_v18  ;;  %v79_v18 = vld [vmem:[%s8717_s0 + $0x170] sm:$0xff] }
  0x7b   :  { %4188 = vmatmul.msk.f32.gmra.mxu0 %vm138_vm1, %v47_v19 }
  0x83   :  { %4189 = vmatmul.msk.f32.gmra.mxu0 %vm138_vm1, %v48_v20  ;;  %v80_v20 = vld [vmem:[%s8717_s0 + $0x178] sm:$0xff] }
  0x88   :  { %v4601_v21 = vpop.f32.mrf.mxu0 }
  0x8b   :  { %4190 = vmatmul.msk.f32.gmra.mxu0 %vm138_vm1, %v49_v22 }
  0x90   :  { %v4607_v23 = vpop.f32.mrf.mxu0 }
  0x93   :  { %4191 = vmatmul.msk.f32.gmra.mxu0 %vm138_vm1, %v50_v24  ;;  %v81_v24 = vld [vmem:[%s8717_s0 + $0x180] sm:$0xff] }
  0x98   :  { %v4613_v25 = vpop.f32.mrf.mxu0 }
  0x9b   :  { %4192 = vmatmul.msk.f32.gmra.mxu0 %vm138_vm1, %v51_v26 }
  0xa0   :  { %v4619_v27 = vpop.f32.mrf.mxu0 }
  0xa3   :  { %4193 = vmatmul.msk.f32.gmra.mxu0 %vm138_vm1, %v52_v28  ;;  %v82_v28 = vld [vmem:[%s8717_s0 + $0x188] sm:$0xff] }
  0xa8   :  { %v4625_v29 = vpop.f32.mrf.mxu0 }
  0xab   :  { %4194 = vmatmul.msk.f32.gmra.mxu0 %vm138_vm1, %v53_v30  ;;  %v111_v30 = vld [vmem:[%s8717_s0 + $0x270] sm:$0xff] }
  0xac   :  { %4252 = vmatmul.msk.f32.vlgmr.msra.gmra.mxu1 %vm138_vm1, %v111_v30  ;;  %v92_v30 = vld [vmem:[%s8717_s0 + $0x1d8] sm:$0xff] }
  0xb0   :  { %v4631_v31 = vpop.f32.mrf.mxu0 }
  0xb3   :  { %4195 = vmatmul.msk.f32.gmra.mxu0 %vm138_vm1, %v54_v32 }
  0xb8   :  { %v4637_v33 = vpop.f32.mrf.mxu0 }
  0xbb   :  { %4196 = vmatmul.msk.f32.gmra.mxu0 %vm138_vm1, %v55_v34  ;;  %v83_v34 = vld [vmem:[%s8717_s0 + $0x190] sm:$0xff] }
  0xc0   :  { %v4643_v35 = vpop.f32.mrf.mxu0 }
  0xc3   :  { %4197 = vmatmul.msk.f32.gmra.mxu0 %vm138_vm1, %v56_v36  ;;  %v112_v36 = vld [vmem:[%s8717_s0 + $0x278] sm:$0xff] }
  0xc4   :  { %4253 = vmatmul.msk.f32.gmra.mxu1 %vm138_vm1, %v112_v36 }
  0xc8   :  { %v4649_v37 = vpop.f32.mrf.mxu0 }
  0xcb   :  { %4198 = vmatmul.msk.f32.gmra.mxu0 %vm138_vm1, %v57_v38 }
  0xd0   :  { %v4655_v39 = vpop.f32.mrf.mxu0 }
  0xd3   :  { %4199 = vmatmul.msk.f32.gmra.mxu0 %vm138_vm1, %v58_v40  ;;  %v84_v40 = vld [vmem:[%s8717_s0 + $0x198] sm:$0xff] }
  0xd8   :  { %v4661_v41 = vpop.f32.mrf.mxu0 }
  0xd9   :  { %8977 = vst [vmem:[#allocation5_spill] sm:$0xff] %v4661_v41  ;;  %v4304_v41 = vld [vmem:[%s8720_s3 + $0xf0] sm:$0xff] }
  0xdb   :  { %4200 = vmatmul.msk.f32.gmra.mxu0 %vm138_vm1, %v59_v42  ;;  %v113_v42 = vld [vmem:[%s8717_s0 + $0x280] sm:$0xff] }
  0xdc   :  { %4254 = vmatmul.msk.f32.gmra.mxu1 %vm138_vm1, %v113_v42  ;;  %v123_v42 = vld [vmem:[%s8717_s0 + $0x2d0] sm:$0xff] }
  0xe0   :  { %v4667_v43 = vpop.f32.mrf.mxu0 }
  0xe1   :  { %8978 = vst [vmem:[#allocation6_spill] sm:$0xff] %v4667_v43 }
  0xe3   :  { %4201 = vmatmul.msk.f32.gmra.mxu0 %vm138_vm1, %v60_v44 }
  0xe8   :  { %v4673_v45 = vpop.f32.mrf.mxu0 }
  0xeb   :  { %4202 = vmatmul.msk.f32.gmra.mxu0 %vm138_vm1, %v61_v46  ;;  %v85_v46 = vld [vmem:[%s8717_s0 + $0x1a0] sm:$0xff] }
  0xf0   :  { %v4679_v47 = vpop.f32.mrf.mxu0 }
  0xf3   :  { %4203 = vmatmul.msk.f32.gmra.mxu0 %vm138_vm1, %v62_v48  ;;  %v114_v48 = vld [vmem:[%s8717_s0 + $0x288] sm:$0xff] }
  0xf4   :  { %4255 = vmatmul.msk.f32.gmra.mxu1 %vm138_vm1, %v114_v48  ;;  %v94_v48 = vld [vmem:[%s8717_s0 + $0x1e8] sm:$0xff] }
  0xf8   :  { %v4685_v49 = vpop.f32.mrf.mxu0 }
  0xfb   :  { %4204 = vmatmul.msk.f32.gmra.mxu0 %vm138_vm1, %v63_v50  ;;  %v115_v50 = vld [vmem:[%s8717_s0 + $0x290] sm:$0xff] }
  0xfc   :  { %4256 = vmatmul.msk.f32.vlgmr.msra.gmra.mxu2 %vm138_vm1, %v115_v50  ;;  %v124_v50 = vld [vmem:[%s8717_s0 + $0x2d8] sm:$0xff] }
 0x100   :  { %v4691_v51 = vpop.f32.mrf.mxu0 }
 0x103   :  { %4205 = vmatmul.msk.f32.gmra.mxu0 %vm138_vm1, %v64_v52 }
 0x108   :  { %v4697_v53 = vpop.f32.mrf.mxu0 }
 0x10b   :  { %4206 = vmatmul.msk.f32.gmra.mxu0 %vm138_vm1, %v65_v54  ;;  %v86_v54 = vld [vmem:[%s8717_s0 + $0x1a8] sm:$0xff] }
 0x110   :  { %v4703_v55 = vpop.f32.mrf.mxu0 }
 0x113   :  { %4207 = vmatmul.msk.f32.gmra.mxu0 %vm138_vm1, %v66_v56  ;;  %v116_v56 = vld [vmem:[%s8717_s0 + $0x298] sm:$0xff] }
 0x114   :  { %4257 = vmatmul.msk.f32.gmra.mxu2 %vm138_vm1, %v116_v56  ;;  %v95_v56 = vld [vmem:[%s8717_s0 + $0x1f0] sm:$0xff] }
 0x118   :  { %v4709_v57 = vpop.f32.mrf.mxu0 }
 0x11b   :  { %4208 = vmatmul.msk.f32.gmra.mxu0 %vm138_vm1, %v67_v58 }
 0x120   :  { %v4715_v59 = vpop.f32.mrf.mxu0 }
 0x121   :  { %8979 = vst [vmem:[#allocation7_spill] sm:$0xff] %v4715_v59 }
 0x123   :  { %4209 = vmatmul.msk.f32.gmra.mxu0 %vm138_vm1, %v68_v60  ;;  %v87_v60 = vld [vmem:[%s8717_s0 + $0x1b0] sm:$0xff] }
 0x128   :  { %v4721_v61 = vpop.f32.mrf.mxu0 }
 0x129   :  { %8980 = vst [vmem:[#allocation8_spill] sm:$0xff] %v4721_v61 }
 0x12b   :  { %4210 = vmatmul.msk.f32.gmra.mxu0 %vm138_vm1, %v69_v62  ;;  %v117_v62 = vld [vmem:[%s8717_s0 + $0x2a0] sm:$0xff] }
 0x12c   :  { %4258 = vmatmul.msk.f32.gmra.mxu2 %vm138_vm1, %v117_v62 }
 0x130   :  { %v4727_v63 = vpop.f32.mrf.mxu0 }
 0x131   :  { %8981 = vst [vmem:[#allocation9_spill] sm:$0xff] %v4727_v63 }
 0x133   :  { %4211 = vmatmul.msk.f32.gmra.mxu0 %vm138_vm1, %v70_v0 }
 0x138   :  { %v4733_v1 = vpop.f32.mrf.mxu0 }
 0x139   :  { %8982 = vst [vmem:[#allocation10_spill] sm:$0xff] %v4733_v1  ;;  %v4303_v1 = vld [vmem:[%s8720_s3 + $0xe8] sm:$0xff] }
 0x13b   :  { %4212 = vmatmul.msk.f32.gmra.mxu0 %vm138_vm1, %v71_v2  ;;  %v88_v2 = vld [vmem:[%s8717_s0 + $0x1b8] sm:$0xff] }
 0x140   :  { %v4739_v3 = vpop.f32.mrf.mxu0 }
 0x141   :  { %8983 = vst [vmem:[#allocation11_spill] sm:$0xff] %v4739_v3 }
 0x143   :  { %4213 = vmatmul.msk.f32.gmra.mxu0 %vm138_vm1, %v72_v4  ;;  %v118_v4 = vld [vmem:[%s8717_s0 + $0x2a8] sm:$0xff] }
 0x144   :  { %4259 = vmatmul.msk.f32.gmra.mxu2 %vm138_vm1, %v118_v4  ;;  %v126_v4 = vld [vmem:[%s8717_s0 + $0x2e8] sm:$0xff] }
 0x148   :  { %v4745_v5 = vpop.f32.mrf.mxu0 }
 0x149   :  { %8984 = vst [vmem:[#allocation12_spill] sm:$0xff] %v4745_v5 }
 0x14b   :  { %4214 = vmatmul.msk.f32.gmra.mxu0 %vm138_vm1, %v73_v6 }
 0x150   :  { %v4751_v7 = vpop.f32.mrf.mxu0 }
 0x153   :  { %4215 = vmatmul.msk.f32.gmra.mxu0 %vm138_vm1, %v74_v8  ;;  %v89_v8 = vld [vmem:[%s8717_s0 + $0x1c0] sm:$0xff] }
 0x158   :  { %v4757_v9 = vpop.f32.mrf.mxu0 }
 0x15b   :  { %4216 = vmatmul.msk.f32.gmra.mxu0 %vm138_vm1, %v75_v10  ;;  %v119_v10 = vld [vmem:[%s8717_s0 + $0x2b0] sm:$0xff] }
 0x15c   :  { %4260 = vmatmul.msk.f32.gmra.mxu2 %vm138_vm1, %v119_v10  ;;  %v97_v10 = vld [vmem:[%s8717_s0 + $0x200] sm:$0xff] }
 0x160   :  { %v4763_v11 = vpop.f32.mrf.mxu0 }
 0x163   :  { %4217 = vmatmul.msk.f32.gmra.mxu0 %vm138_vm1, %v76_v12 }
 0x168   :  { %v4769_v13 = vpop.f32.mrf.mxu0 }
 0x16b   :  { %4218 = vmatmul.msk.f32.gmra.mxu0 %vm138_vm1, %v77_v14  ;;  %v90_v14 = vld [vmem:[%s8717_s0 + $0x1c8] sm:$0xff] }
 0x170   :  { %v4775_v15 = vpop.f32.mrf.mxu0 }
 0x173   :  { %4219 = vmatmul.msk.f32.gmra.mxu0 %vm138_vm1, %v78_v16  ;;  %v120_v16 = vld [vmem:[%s8717_s0 + $0x2b8] sm:$0xff] }
 0x174   :  { %4261 = vmatmul.msk.f32.gmra.mxu2 %vm138_vm1, %v120_v16 }
 0x178   :  { %v4781_v17 = vpop.f32.mrf.mxu0 }
 0x17b   :  { %4220 = vmatmul.msk.f32.gmra.mxu0 %vm138_vm1, %v79_v18 }
 0x180   :  { %v4787_v19 = vpop.f32.mrf.mxu0 }
 0x183   :  { %4221 = vmatmul.msk.f32.gmra.mxu0 %vm138_vm1, %v80_v20  ;;  %v91_v20 = vld [vmem:[%s8717_s0 + $0x1d0] sm:$0xff] }
 0x188   :  { %v4793_v22 = vpop.f32.mrf.mxu0 }
 0x18b   :  { %4222 = vmatmul.msk.f32.gmra.mxu0 %vm138_vm1, %v81_v24  ;;  %v121_v24 = vld [vmem:[%s8717_s0 + $0x2c0] sm:$0xff] }
 0x18c   :  { %4262 = vmatmul.msk.f32.vlgmr.msra.gmra.mxu3 %vm138_vm1, %v121_v24  ;;  %v128_v24 = vld [vmem:[%s8717_s0 + $0x2f8] sm:$0xff] }
 0x190   :  { %v4799_v26 = vpop.f32.mrf.mxu0 }
 0x193   :  { %4223 = vmatmul.msk.f32.gmra.mxu0 %vm138_vm1, %v82_v28 }
 0x198   :  { %v4809_v32 = vpop.f32.mrf.mxu0 }
 0x19b   :  { %4224 = vmatmul.msk.f32.gmra.mxu0 %vm138_vm1, %v83_v34  ;;  %v122_v34 = vld [vmem:[%s8717_s0 + $0x2c8] sm:$0xff] }
 0x19c   :  { %4263 = vmatmul.msk.f32.gmra.mxu3 %vm138_vm1, %v122_v34  ;;  %v99_v34 = vld [vmem:[%s8717_s0 + $0x210] sm:$0xff] }
 0x1a0   :  { %v4819_v38 = vpop.f32.mrf.mxu0 }
 0x1a1   :  { %8985 = vst [vmem:[#allocation13_spill] sm:$0xff] %v4819_v38 }
 0x1a3   :  { %4225 = vmatmul.msk.f32.gmra.mxu0 %vm138_vm1, %v84_v40  ;;  %v93_v40 = vld [vmem:[%s8717_s0 + $0x1e0] sm:$0xff] }
 0x1a4   :  { %4264 = vmatmul.msk.f32.gmra.mxu3 %vm138_vm1, %v123_v42 }
 0x1a8   :  { %v4829_v44 = vpop.f32.mrf.mxu0 }
 0x1a9   :  { %8986 = vst [vmem:[#allocation14_spill] sm:$0xff] %v4829_v44 }
 0x1ab   :  { %4226 = vmatmul.msk.f32.gmra.mxu0 %vm138_vm1, %v85_v46 }
 0x1ac   :  { %4265 = vmatmul.msk.f32.gmra.mxu3 %vm138_vm1, %v124_v50  ;;  %v130_v50 = vld [vmem:[%s8717_s0 + $0x308] sm:$0xff] }
 0x1b0   :  { %v4843_v52 = vpop.f32.mrf.mxu0 }
 0x1b3   :  { %4227 = vmatmul.msk.f32.gmra.mxu0 %vm138_vm1, %v86_v54 }
 0x1b8   :  { %v4853_v58 = vpop.f32.mrf.mxu0 }
 0x1bb   :  { %4228 = vmatmul.msk.f32.gmra.mxu0 %vm138_vm1, %v87_v60  ;;  %v125_v60 = vld [vmem:[%s8717_s0 + $0x2e0] sm:$0xff] }
 0x1bc   :  { %4266 = vmatmul.msk.f32.gmra.mxu3 %vm138_vm1, %v125_v60  ;;  %v101_v60 = vld [vmem:[%s8717_s0 + $0x220] sm:$0xff] }
 0x1c0   :  { %v4863_v0 = vpop.f32.mrf.mxu0 }
 0x1c3   :  { %4229 = vmatmul.msk.f32.gmra.mxu0 %vm138_vm1, %v88_v2  ;;  %v96_v2 = vld [vmem:[%s8717_s0 + $0x1f8] sm:$0xff] }
 0x1c4   :  { %4267 = vmatmul.msk.f32.gmra.mxu3 %vm138_vm1, %v126_v4 }
 0x1c8   :  { %v4873_v6 = vpop.f32.mrf.mxu0 }
 0x1cb   :  { %4230 = vmatmul.msk.f32.gmra.mxu0 %vm138_vm1, %v89_v8 }
 0x1d0   :  { %v4883_v12 = vpop.f32.mrf.mxu0 }
 0x1d3   :  { %4231 = vmatmul.msk.f32.gmra.mxu0 %vm138_vm1, %v90_v14  ;;  %v127_v14 = vld [vmem:[%s8717_s0 + $0x2f0] sm:$0xff] }
 0x1d4   :  { %4268 = vmatmul.msk.f32.gmra.mxu3 %vm138_vm1, %v127_v14  ;;  %v132_v14 = vld [vmem:[%s8717_s0 + $0x318] sm:$0xff] }
 0x1d8   :  { %v4893_v18 = vpop.f32.mrf.mxu0 }
 0x1db   :  { %4232 = vmatmul.msk.f32.gmra.mxu0 %vm138_vm1, %v91_v20  ;;  %v98_v20 = vld [vmem:[%s8717_s0 + $0x208] sm:$0xff] }
 0x1dc   :  { %4269 = vmatmul.msk.f32.gmra.mxu3 %vm138_vm1, %v128_v24  ;;  %v103_v24 = vld [vmem:[%s8717_s0 + $0x230] sm:$0xff] }
 0x1e0   :  { %v4903_v28 = vpop.f32.mrf.mxu0 }
 0x1e3   :  { %4233 = vmatmul.msk.f32.gmra.mxu0 %vm138_vm1, %v92_v30 }
 0x1e8   :  { %v4913_v36 = vpop.f32.mrf.mxu0 }
 0x1e9   :  { %8987 = vst [vmem:[#allocation15_spill] sm:$0xff] %v4913_v36 }
 0x1eb   :  { %4234 = vmatmul.msk.f32.gmra.mxu0 %vm138_vm1, %v93_v40  ;;  %v129_v40 = vld [vmem:[%s8717_s0 + $0x300] sm:$0xff] }
 0x1ec   :  { %4270 = vmatmul.msk.f32.gmra.mxu3 %vm138_vm1, %v129_v40  ;;  %v104_v40 = vld [vmem:[%s8717_s0 + $0x238] sm:$0xff] }
 0x1f0   :  { %v4923_v46 = vpop.f32.mrf.mxu0 }
 0x1f1   :  { %8988 = vst [vmem:[#allocation16_spill] sm:$0xff] %v4923_v46  ;;  %v5135_v46 = vld [vmem:[%s8719_s2] ss:$0 sm:$0xff] }
 0x1f3   :  { %4235 = vmatmul.msk.f32.gmra.mxu0 %vm138_vm1, %v94_v48  ;;  %v100_v48 = vld [vmem:[%s8717_s0 + $0x218] sm:$0xff] }
 0x1f4   :  { %4271 = vmatmul.msk.f32.gmra.mxu3 %vm138_vm1, %v130_v50  ;;  %v105_v50 = vld [vmem:[%s8717_s0 + $0x240] sm:$0xff] }
 0x1f8   :  { %v4933_v54 = vpop.f32.mrf.mxu0 }
 0x1f9   :  { %8989 = vst [vmem:[#allocation17_spill] sm:$0xff] %v4933_v54 }
 0x1fb   :  { %4236 = vmatmul.msk.f32.gmra.mxu0 %vm138_vm1, %v95_v56 }
 0x200   :  { %v4943_v62 = vpop.f32.mrf.mxu0 }
 0x201   :  { %8990 = vst [vmem:[#allocation18_spill] sm:$0xff] %v4943_v62  ;;  %v4302_v62 = vld [vmem:[%s8720_s3 + $0xe0] sm:$0xff] }
 0x203   :  { %4237 = vmatmul.msk.f32.gmra.mxu0 %vm138_vm1, %v96_v2  ;;  %v131_v2 = vld [vmem:[%s8717_s0 + $0x310] sm:$0xff] }
 0x204   :  { %4272 = vmatmul.msk.f32.gmra.mxu3 %vm138_vm1, %v131_v2  ;;  %v106_v2 = vld [vmem:[%s8717_s0 + $0x248] sm:$0xff] }
 0x208   :  { %v4953_v8 = vpop.f32.mrf.mxu0 }
 0x209   :  { %8991 = vst [vmem:[#allocation19_spill] sm:$0xff] %v4953_v8 }
 0x20b   :  { %4238 = vmatmul.msk.f32.gmra.mxu0 %vm138_vm1, %v97_v10  ;;  %v102_v10 = vld [vmem:[%s8717_s0 + $0x228] sm:$0xff] }
 0x20c   :  { %4273 = vmatmul.msk.f32.gmra.mxu3 %vm138_vm1, %v132_v14  ;;  %v107_v14 = vld [vmem:[%s8717_s0 + $0x250] sm:$0xff] }
 0x20f   :  { %v5120_v63 = vpop.f32.mrf.mxu3 }
 0x210   :  { %v4963_v16 = vpop.f32.mrf.mxu0 }
 0x211   :  { %8992 = vst [vmem:[#allocation20_spill] sm:$0xff] %v4963_v16 }
 0x213   :  { %4239 = vmatmul.msk.f32.gmra.mxu0 %vm138_vm1, %v98_v20 }
 0x218   :  { %v4973_v30 = vpop.f32.mrf.mxu0 }
 0x21b   :  { %4240 = vmatmul.msk.f32.gmra.mxu0 %vm138_vm1, %v99_v34 }
 0x220   :  { %v4983_v42 = vpop.f32.mrf.mxu0 }
 0x223   :  { %4241 = vmatmul.msk.f32.gmra.mxu0 %vm138_vm1, %v100_v48 }
 0x228   :  { %v4993_v56 = vpop.f32.mrf.mxu0 }
 0x22b   :  { %4242 = vmatmul.msk.f32.gmra.mxu0 %vm138_vm1, %v101_v60 }
 0x230   :  { %v5002_v4 = vpop.f32.mrf.mxu0 }
 0x233   :  { %4243 = vmatmul.msk.f32.gmra.mxu0 %vm138_vm1, %v102_v10 }
 0x238   :  { %v5012_v20 = vpop.f32.mrf.mxu0 }
 0x23b   :  { %4244 = vmatmul.msk.f32.gmra.mxu0 %vm138_vm1, %v103_v24 }
 0x240   :  { %v5019_v34 = vpop.f32.mrf.mxu0 }
 0x243   :  { %4245 = vmatmul.msk.f32.gmra.mxu0 %vm138_vm1, %v104_v40  ;;  %v108_v40 = vld [vmem:[%s8717_s0 + $0x258] sm:$0xff] }
 0x248   :  { %v5025_v48 = vpop.f32.mrf.mxu0 }
 0x24b   :  { %4246 = vmatmul.msk.f32.gmra.mxu0 %vm138_vm1, %v105_v50 }
 0x250   :  { %v5031_v60 = vpop.f32.mrf.mxu0 }
 0x253   :  { %4247 = vmatmul.msk.f32.gmra.mxu0 %vm138_vm1, %v106_v2  ;;  %v109_v2 = vld [vmem:[%s8717_s0 + $0x260] sm:$0xff] }
 0x258   :  { %v5037_v10 = vpop.f32.mrf.mxu0 }
 0x25b   :  { %4248 = vmatmul.msk.f32.gmra.mxu0 %vm138_vm1, %v107_v14  ;;  %v110_v14 = vld [vmem:[%s8717_s0 + $0x268] sm:$0xff] }
 0x260   :  { %v5043_v24 = vpop.f32.mrf.mxu0 }
 0x263   :  { %4249 = vmatmul.msk.f32.gmra.mxu0 %vm138_vm1, %v108_v40 }
 0x268   :  { %v5049_v50 = vpop.f32.mrf.mxu0 }
 0x269   :  { %8993 = vst [vmem:[#allocation21_spill] sm:$0xff] %v5049_v50 }
 0x26b   :  { %4250 = vmatmul.msk.f32.gmra.mxu0 %vm138_vm1, %v109_v2 }
 0x270   :  { %v5055_v5 = vpop.f32.mrf.mxu0 }
 0x271   :  { %8994 = vst [vmem:[#allocation22_spill] sm:$0xff] %v5055_v5 }
 0x273   :  { %4251 = vmatmul.msk.f32.gmra.mxu0 %vm138_vm1, %v110_v14  ;;  %v4305_v14 = vld [vmem:[%s8720_s3 + $0xf8] sm:$0xff] }
 0x274   :  { %1340 = vmatpush.msrb.mxu1 %v4305_v14  ;;  %v4301_v14 = vld [vmem:[%s8720_s3 + $0xd8] sm:$0xff] }
 0x276   :  { %1341 = vmatpush.msrb.mxu1 %v4304_v41  ;;  %v4300_v41 = vld [vmem:[%s8720_s3 + $0xd0] sm:$0xff] }
 0x278   :  { %v5061_v16 = vpop.f32.mrf.mxu0  ;;  %1342 = vmatpush.msrb.mxu1 %v4303_v1  ;;  %v4299_v1 = vld [vmem:[%s8720_s3 + $0xc8] sm:$0xff] }
 0x27a   :  { %1343 = vmatpush.msrb.mxu1 %v4302_v62  ;;  %v4298_v62 = vld [vmem:[%s8720_s3 + $0xc0] sm:$0xff] }
 0x27c   :  { %1344 = vmatpush.msrb.mxu1 %v4301_v14  ;;  %v4297_v14 = vld [vmem:[%s8720_s3 + $0xb8] sm:$0xff] }
 0x27e   :  { %1345 = vmatpush.msrb.mxu1 %v4300_v41  ;;  %v4296_v41 = vld [vmem:[%s8720_s3 + $0xb0] sm:$0xff] }
 0x280   :  { %v5063_v43 = vpop.f32.mrf.mxu0  ;;  %1346 = vmatpush.msrb.mxu1 %v4299_v1  ;;  %v4295_v1 = vld [vmem:[%s8720_s3 + $0xa8] sm:$0xff] }
 0x282   :  { %1347 = vmatpush.msrb.mxu1 %v4298_v62  ;;  %v694_v62 = vpop.f32.mrf.mxu1 }
 0x284   :  { %1348 = vmatpush.msrb.mxu1 %v4297_v14  ;;  %v769_v14 = vmax.f32 %v4619_v27, %v4769_v13  ;;  %v5137_v27 = vpop.f32.mrf.mxu3 }
 0x286   :  { %1349 = vmatpush.msrb.mxu1 %v4296_v41 }
 0x288   :  { %v5065_v40 = vpop.f32.mrf.mxu0  ;;  %1350 = vmatpush.msrb.mxu1 %v4295_v1 }
 0x28a   :  { %v697_v59 = vpop.f32.mrf.mxu1 }
 0x290   :  { %v5067_v44 = vpop.f32.mrf.mxu0 }
 0x298   :  { %v5069_v3 = vpop.f32.mrf.mxu0 }
 0x2a0   :  { %v5071_v8 = vpop.f32.mrf.mxu0 }
 0x2a8   :  { %v5073_v2 = vpop.f32.mrf.mxu0 }
 0x2a9   :  { %8995 = vst [vmem:[#allocation23_spill] sm:$0xff] %v5073_v2 }
 0x2b0   :  { %v5075_v5 = vpop.f32.mrf.mxu0 }
 0x2b1   :  { %8996 = vst [vmem:[#allocation24_spill] sm:$0xff] %v5075_v5  ;;  %v770_v5 = vmax.f32 %v769_v14, %v5002_v4  ;;  %v772_v4 = vmax.f32 %v4625_v29, %v4775_v15 }
 0x2b3   :  { %v771_v1 = vmax.f32 %v770_v5, %v694_v62  ;;  %v763_v5 = vmax.f32 %v4607_v23, %v4757_v9 }
 0x2b8   :  { %v5077_v50 = vpop.f32.mrf.mxu0 }
 0x2b9   :  { %8997 = vst [vmem:[#allocation25_spill] sm:$0xff] %v5077_v50  ;;  %v5118_v50 = vpop.f32.mrf.mxu2 }
 0x2c0   :  { %v5085_v38 = vpop.f32.mrf.mxu0 }
 0x2c1   :  { %8998 = vst [vmem:[#allocation26_spill] sm:$0xff] %v5085_v38  ;;  %v5127_v41 = vpop.f32.mrf.mxu2 }
 0x2c8   :  { %v5099_v38 = vpop.f32.mrf.mxu0 }
 0x2c9   :  { %8999 = vst [vmem:[#allocation27_spill] sm:$0xff] %v5099_v38 }
 0x2d0   :  { %v5113_v38 = vpop.f32.mrf.mxu0 }
 0x2d1   :  { %9000 = vst [vmem:[#allocation28_spill] sm:$0xff] %v5113_v38  ;;  %v760_v38 = vmax.f32 %v4601_v21, %v4751_v7  ;;  %v842_v21 = vadd.f32 %v5135_v46, %v771_v1  ;;  %v700_v1 = vpop.f32.mrf.mxu1 }
 0x2d3   :  { %v761_v61 = vmax.f32 %v760_v38, %v4973_v30  ;;  %v773_v38 = vmax.f32 %v772_v4, %v5012_v20  ;;  %v5148_v30 = vpop.f32.mrf.mxu2  ;;  %v5153_v29 = vmax.f32 %v842_v21, 0.0 }
 0x2d5   :  { %v774_v20 = vmax.f32 %v773_v38, %v697_v59  ;;  %v5177_v38 = vrot.slane %v5153_v29, 2 }
 0x2d7   :  { %9009 = vst [vmem:[#allocation35_spill] sm:$0xff] %v5177_v38 }
 0x2d8   :  { %v5122_v54 = vpop.f32.mrf.mxu0 }
 0x2d9   :  { %9001 = vst [vmem:[#allocation29_spill] sm:$0xff] %v5122_v54 }
 0x2e0   :  { %v685_v54 = vpop.f32.mrf.mxu0 }
 0x2e1   :  { %v762_v13 = vmax.f32 %v761_v61, %v685_v54  ;;  %v764_v61 = vmax.f32 %v763_v5, %v4983_v42  ;;  %v9006_v5 = vmov 0 }
 0x2e2   :  { %v9007_v5 = vsel %vm5171_vm8, 4294967295, %v9006_v5 }
 0x2e3   :  { %v839_v7 = vadd.f32 %v5135_v46, %v762_v13  ;;  %9008 = vst [vmem:[#allocation34_spill] sm:$0xff] %v9007_v5 }
 0x2e5   :  { %v5150_v62 = vmax.f32 %v839_v7, 0.0  ;;  %v775_v7 = vmax.f32 %v4631_v31, %v4781_v17  ;;  %v766_v31 = vmax.f32 %v4613_v25, %v4763_v11 }
 0x2e7   :  { %9002 = vst [vmem:[#allocation30_spill] sm:$0xff] %v5150_v62  ;;  %v5156_v15 = vrot.slane %v5150_v62, 2  ;;  %v5159_v23 = vrot.slane %v5150_v62, 4  ;;  %v5162_v9 = vrot.slane %v5150_v62, 6  ;;  %v4274_v13 = vrot.slane %v5150_v62, 9 }
 0x2e8   :  { %v688_v54 = vpop.f32.mrf.mxu0  ;;  %v776_v17 = vmax.f32 %v775_v7, %v5019_v34 }
 0x2e9   :  { %9003 = vst [vmem:[#allocation31_spill] sm:$0xff] %v5156_v15  ;;  %v765_v14 = vmax.f32 %v764_v61, %v688_v54  ;;  %v1014_v42 = vrot.slane %v5156_v15, 7  ;;  %v1017_v4 = vrot.slane %v5159_v23, 7  ;;  %v1020_v21 = vrot.slane %v5162_v9, 7  ;;  %v5179_v61 = vpop.f32.mrf.mxu3 }
 0x2ea   :  { %9004 = vst [vmem:[#allocation32_spill] sm:$0xff] %v5159_v23 }
 0x2eb   :  { %9005 = vst [vmem:[#allocation33_spill] sm:$0xff] %v5162_v9  ;;  %v840_v59 = vadd.f32 %v5135_v46, %v765_v14  ;;  %v1015_v54 = vsel %vm5171_vm8, %v4274_v13, %v1014_v42  ;;  %v1016_v23 = vrot.slane %v1014_v42, 2  ;;  %v1019_v9 = vrot.slane %v1017_v4, 2  ;;  %v5206_v42 = vpop.f32.mrf.mxu2 }
 0x2ec   :  { %1237 = vst [vmem:[#allocation1] ss:$4 sm:$0xff] %v1015_v54  ;;  %v843_v14 = vadd.f32 %v5135_v46, %v774_v20  ;;  %v1022_v2 = vrot.slane %v1020_v21, 2  ;;  %v778_v20 = vmax.f32 %v4637_v33, %v4787_v19  ;;  %v5217_v33 = vrot.slane %v5153_v29, 4 }
 0x2ed   :  { %v5186_v15 = vmax.f32 %v840_v59, 0.0  ;;  %v1018_v62 = vsel %vm5171_vm8, %v1016_v23, %v1017_v4  ;;  %v1021_v36 = vsel %vm5171_vm8, %v1019_v9, %v1020_v21  ;;  %v767_v23 = vmax.f32 %v766_v31, %v4993_v56  ;;  %9012 = vst [vmem:[#allocation38_spill] sm:$0xff] %v5206_v42 }
 0x2ee   :  { %1239 = vst [vmem:[#allocation1 + $0x1] ss:$4 sm:$0xff] %v1018_v62  ;;  %v8735_v62 = vrot.slane %v5153_v29, 7  ;;  %v1046_v9 = vrot.slane %v5177_v38, 7  ;;  %v777_v21 = vmax.f32 %v776_v17, %v700_v1  ;;  %v779_v56 = vmax.f32 %v778_v20, %v5025_v48 }
 0x2ef   :  { %9010 = vst [vmem:[#allocation36_spill] sm:$0xff] %v5186_v15  ;;  %v5194_v13 = vrot.slane %v5186_v15, 2  ;;  %v5197_v25 = vrot.slane %v5186_v15, 4  ;;  %v5200_v11 = vrot.slane %v5186_v15, 6  ;;  %v1023_v34 = vrot.slane %v5186_v15, 7 }
 0x2f0   :  { %1241 = vst [vmem:[#allocation1 + $0x2] ss:$4 sm:$0xff] %v1021_v36  ;;  %v691_v4 = vpop.f32.mrf.mxu0  ;;  %v5214_v15 = vmax.f32 %v843_v14, 0.0  ;;  %v781_v31 = vmax.f32 %v4643_v35, %v4793_v22  ;;  %v784_v17 = vmax.f32 %v4649_v37, %v4799_v26  ;;  %v787_v14 = vmax.f32 %v4655_v39, %v4809_v32 }
 0x2f1   :  { %9011 = vst [vmem:[#allocation37_spill] sm:$0xff] %v5194_v13  ;;  %v1024_v7 = vsel %vm5171_vm8, %v1022_v2, %v1023_v34  ;;  %v4275_v59 = vrot.slane %v5194_v13, 9  ;;  %v1027_v54 = vrot.slane %v5197_v25, 7  ;;  %v768_v19 = vmax.f32 %v767_v23, %v691_v4  ;;  %v703_v34 = vpop.f32.mrf.mxu1  ;;  %v5244_v22 = vpop.f32.mrf.mxu3 }
 0x2f2   :  { %9013 = vst [vmem:[#allocation39_spill] sm:$0xff] %v5217_v33  ;;  %v1030_v2 = vrot.slane %v5200_v11, 7  ;;  %v844_v20 = vadd.f32 %v5135_v46, %v777_v21  ;;  %v1045_v23 = vrot.slane %v8735_v62, 2  ;;  %v1048_v35 = vrot.slane %v1046_v9, 2 }
 0x2f3   :  { %1243 = vst [vmem:[#allocation1 + $0x3] ss:$4 sm:$0xff] %v1024_v7  ;;  %v5222_v36 = vsel %vm5171_vm8, %v4275_v59, %v1027_v54  ;;  %v1029_v1 = vrot.slane %v1027_v54, 2  ;;  %v841_v48 = vadd.f32 %v5135_v46, %v768_v19  ;;  %v1049_v26 = vrot.slane %v5217_v33, 7 }
 0x2f4   :  { %9014 = vst [vmem:[#allocation40_spill] sm:$0xff] %v5222_v36  ;;  %v5251_v21 = vrot.slane %v5214_v15, 2  ;;  %v780_v7 = vmax.f32 %v779_v56, %v703_v34  ;;  %v782_v59 = vmax.f32 %v781_v31, %v5031_v60  ;;  %v1032_v54 = vrot.slane %v1030_v2, 2  ;;  %v5277_v31 = vpop.f32.mrf.mxu2 }
 0x2f5   :  { %1245 = vst [vmem:[#allocation1 + $0x20] ss:$4 sm:$0xff] %v5222_v36  ;;  %v5238_v4 = vsel %vm5171_vm8, %v1029_v1, %v1030_v2  ;;  %v5248_v32 = vmax.f32 %v841_v48, 0.0  ;;  %v5264_v48 = vmax.f32 %v844_v20, 0.0  ;;  %v785_v62 = vmax.f32 %v784_v17, %v5037_v10 }
 0x2f6   :  { %9015 = vst [vmem:[#allocation41_spill] sm:$0xff] %v5238_v4  ;;  %v5269_v56 = vsel %vm5171_vm8, %v1045_v23, %v1046_v9  ;;  %v5273_v60 = vsel %vm5171_vm8, %v1048_v35, %v1049_v26  ;;  %v5287_v17 = vrot.slane %v5214_v15, 4  ;;  %v845_v23 = vadd.f32 %v5135_v46, %v780_v7 }
 0x2f7   :  { %1247 = vst [vmem:[#allocation1 + $0x21] ss:$4 sm:$0xff] %v5238_v4  ;;  %v5255_v19 = vrot.slane %v5248_v32, 2  ;;  %v5258_v1 = vrot.slane %v5248_v32, 4  ;;  %v5261_v39 = vrot.slane %v5248_v32, 6  ;;  %v1033_v37 = vrot.slane %v5248_v32, 7 }
 0x2f8   :  { %9016 = vst [vmem:[#allocation42_spill] sm:$0xff] %v5251_v21  ;;  %v1053_v35 = vrot.slane %v5214_v15, 7  ;;  %v5304_v7 = vrot.slane %v5264_v48, 2  ;;  %v802_v4 = vmax.f32 %v4685_v49, %v4863_v0  ;;  %v5322_v36 = vmax.f32 %v845_v23, 0.0 }
 0x2f9   :  { %9017 = vst [vmem:[#allocation43_spill] sm:$0xff] %v5255_v19  ;;  %v5282_v34 = vsel %vm5171_vm8, %v1032_v54, %v1033_v37  ;;  %v1035_v20 = vrot.slane %v1033_v37, 2  ;;  %v1036_v10 = vrot.slane %v5255_v19, 7  ;;  %v4276_v9 = vrot.slane %v5258_v1, 9 }
 0x2fa   :  { %9018 = vst [vmem:[#allocation44_spill] sm:$0xff] %v5258_v1  ;;  %v5275_v2 = vld.sshfl [vmem:[#allocation1] sm:$0xff pattern:$0x73625140]  ;;  %v1040_v26 = vrot.slane %v5261_v39, 7  ;;  %v5295_v54 = vrot.slane %v5153_v29, 6  ;;  %v9036_v23 = vmax.f32 %v4673_v45, %v4843_v52 }
 0x2fb   :  { %9019 = vst [vmem:[#allocation45_spill] sm:$0xff] %v5264_v48  ;;  %v1056_v37 = vrot.slane %v5251_v21, 7  ;;  %v1055_v42 = vrot.slane %v1053_v35, 2  ;;  %v1059_v49 = vrot.slane %v5287_v17, 7  ;;  %v5353_v33 = vrot.slane %v5322_v36, 4 }
 0x2fc   :  { %9020 = vst [vmem:[#allocation46_spill] sm:$0xff] %v5269_v56  ;;  %v797_v19 = vmax.f32 %v9036_v23, %v5061_v16  ;;  %v5377_v16 = vrot.slane %v5322_v36, 6 }
 0x2fd   :  { %9021 = vst [vmem:[#allocation47_spill] sm:$0xff] %v5273_v60  ;;  %v1079_v23 = vrot.slane %v5353_v33, 7 }
 0x2fe   :  { %9022 = vst [vmem:[#allocation48_spill] sm:$0xff] %v5275_v2  ;;  %v5361_v2 = vsel %vm5171_vm8, %v1055_v42, %v1056_v37 }
 0x2ff   :  { %9023 = vst [vmem:[#allocation49_spill] sm:$0xff] %v5277_v31  ;;  %v783_v31 = vmax.f32 %v782_v59, %v5118_v50  ;;  %v5311_v50 = vsel %vm5171_vm8, %v4276_v9, %v1040_v26  ;;  %v1042_v59 = vrot.slane %v1040_v26, 2  ;;  %v9032_v9 = vrot.slane %v5153_v29, 7 }
 0x300   :  { %1257 = vst [vmem:[#allocation1 + $0x3] ss:$4 sm:$0xff] %v5273_v60  ;;  %v5300_v60 = vsel %vm5171_vm8, %v1035_v20, %v1036_v10  ;;  %v5317_v20 = vrot.slane %v5214_v15, 6  ;;  %v786_v10 = vmax.f32 %v785_v62, %v5127_v41  ;;  %v5334_v62 = vpop.f32.mrf.mxu3 }
 0x301   :  { %9024 = vst [vmem:[#allocation50_spill] sm:$0xff] %v5282_v34  ;;  %v5328_v26 = vsel %vm5171_vm8, %v1042_v59, %v9032_v9  ;;  %v846_v41 = vadd.f32 %v5135_v46, %v783_v31  ;;  %v5341_v59 = vrot.slane %v5264_v48, 6  ;;  %v1066_v9 = vrot.slane %v5304_v7, 7 }
 0x302   :  { %9025 = vst [vmem:[#allocation51_spill] sm:$0xff] %v5287_v17  ;;  %v847_v0 = vadd.f32 %v5135_v46, %v786_v10  ;;  %v1061_v10 = vrot.slane %v1059_v49, 2 }
 0x303   :  { %1256 = vst [vmem:[#allocation1 + $0x2] ss:$4 sm:$0xff] %v5269_v56  ;;  %v5307_v56 = vrot.slane %v5264_v48, 4  ;;  %v1068_v52 = vrot.slane %v1066_v9, 2 }
 0x304   :  { %9026 = vst [vmem:[#allocation52_spill] sm:$0xff] %v5295_v54 }
 0x305   :  { %9027 = vst [vmem:[#allocation53_spill] sm:$0xff] %v5300_v60 }
 0x306   :  { %1249 = vst [vmem:[#allocation1 + $0x22] ss:$4 sm:$0xff] %v5282_v34  ;;  %v788_v34 = vmax.f32 %v787_v14, %v5043_v24  ;;  %v4277_v24 = vrot.slane %v5295_v54, 9  ;;  %v1058_v14 = vrot.slane %v1056_v37, 2  ;;  %v1072_v37 = vrot.slane %v5341_v59, 7 }
 0x307   :  { %9028 = vst [vmem:[#allocation54_spill] sm:$0xff] %v5307_v56 }
 0x308   :  { %9029 = vst [vmem:[#allocation55_spill] sm:$0xff] %v5311_v50  ;;  %v789_v31 = vmax.f32 %v788_v34, %v5148_v30  ;;  %v4278_v30 = vrot.slane %v5264_v48, 9  ;;  %v5364_v34 = vmax.f32 %v846_v41, 0.0  ;;  %v5382_v41 = vrot.slane %v5322_v36, 2 }
 0x309   :  { %1251 = vst [vmem:[#allocation1 + $0x23] ss:$4 sm:$0xff] %v5300_v60  ;;  %v5349_v60 = vsel %vm5171_vm8, %v4277_v24, %v1053_v35  ;;  %v721_v35 = vpop.f32.mrf.mxu2  ;;  %v9038_v24 = vmax.f32 %v4679_v47, %v4853_v58  ;;  %v5385_v47 = vmax.f32 %v847_v0, 0.0 }
 0x30a   :  { %9030 = vst [vmem:[#allocation56_spill] sm:$0xff] %v5317_v20  ;;  %v848_v58 = vadd.f32 %v5135_v46, %v789_v31  ;;  %v5402_v0 = vrot.slane %v5364_v34, 2  ;;  %v5405_v31 = vrot.slane %v5364_v34, 6 }
 0x30b   :  { %1254 = vst [vmem:[#allocation1] ss:$4 sm:$0xff] %v5311_v50  ;;  %v1069_v50 = vrot.slane %v5307_v56, 7  ;;  %v5372_v56 = vsel %vm5171_vm8, %v1058_v14, %v1059_v49  ;;  %v5391_v49 = vsel %vm5171_vm8, %v4278_v30, %v1066_v9  ;;  %v798_v14 = vmax.f32 %v797_v19, %v721_v35 }
 0x30c   :  { %9031 = vst [vmem:[#allocation57_spill] sm:$0xff] %v5322_v36  ;;  %v1085_v9 = vrot.slane %v5364_v34, 7  ;;  %v803_v30 = vmax.f32 %v802_v4, %v5065_v40  ;;  %v1082_v35 = vrot.slane %v5377_v16, 7  ;;  %v5431_v4 = vrot.slane %v5364_v34, 4 }
 0x30d   :  { %9033 = vst [vmem:[#allocation58_spill] sm:$0xff] %v5328_v26  ;;  %v1071_v42 = vrot.slane %v1069_v50, 2 }
 0x30e   :  { %1255 = vst [vmem:[#allocation1 + $0x1] ss:$4 sm:$0xff] %v5328_v26  ;;  %v1062_v26 = vrot.slane %v5317_v20, 7  ;;  %v800_v20 = vmax.f32 %v9038_v24, %v5063_v43  ;;  %v1075_v43 = vrot.slane %v5322_v36, 7  ;;  %v5421_v36 = vmax.f32 %v848_v58, 0.0 }
 0x30f   :  { %9034 = vst [vmem:[#allocation59_spill] sm:$0xff] %v5341_v59  ;;  %v5427_v40 = vsel %vm5171_vm8, %v1071_v42, %v1072_v37  ;;  %v1087_v58 = vrot.slane %v1085_v9, 2  ;;  %v1092_v42 = vrot.slane %v5405_v31, 7 }
 0x310   :  { %9035 = vst [vmem:[#allocation60_spill] sm:$0xff] %v5349_v60  ;;  %v5374_v45 = vld.sshfl [vmem:[#allocation1 + $0x20] sm:$0xff pattern:$0x73625140]  ;;  %v5396_v24 = vsel %vm5171_vm8, %v1061_v10, %v1062_v26  ;;  %v801_v19 = vmax.f32 %v800_v20, %v5120_v63  ;;  %v5413_v26 = vsel %vm5171_vm8, %v1068_v52, %v1069_v50  ;;  %v1074_v10 = vrot.slane %v1072_v37, 2  ;;  %v5423_v63 = vpop.f32.mrf.mxu3 }
 0x311   :  { %9037 = vst [vmem:[#allocation61_spill] sm:$0xff] %v5361_v2  ;;  %v851_v50 = vadd.f32 %v5135_v46, %v798_v14  ;;  %v1081_v52 = vrot.slane %v1079_v23, 2  ;;  %v1088_v37 = vrot.slane %v5402_v0, 7  ;;  %v9051_v14 = vmax.f32 %v4691_v51, %v4873_v6 }
 0x312   :  { %9039 = vst [vmem:[#allocation62_spill] sm:$0xff] %v5372_v56  ;;  %v5436_v20 = vsel %vm5171_vm8, %v1074_v10, %v1075_v43  ;;  %v1095_v10 = vrot.slane %v5385_v47, 7 }
 0x313   :  { %9040 = vst [vmem:[#allocation63_spill] sm:$0xff] %v5374_v45  ;;  %v806_v43 = vmax.f32 %v9051_v14, %v5067_v44  ;;  %v5465_v51 = vsel %vm5171_vm8, %v1081_v52, %v1082_v35  ;;  %v1105_v52 = vrot.slane %v5421_v36, 7 }
 0x314   :  { %1258 = vst [vmem:[#allocation1 + $0x20] ss:$4 sm:$0xff] %v5349_v60 }
 0x315   :  { %9041 = vst [vmem:[#allocation64_spill] sm:$0xff] %v5382_v41  ;;  %v5399_v60 = vld.sshfl [vmem:[#allocation1] sm:$0xff pattern:$0x73625140] }
 0x316   :  { %1259 = vst [vmem:[#allocation1 + $0x21] ss:$4 sm:$0xff] %v5361_v2  ;;  %v5419_v2 = vrot.slane %v5385_v47, 2 }
 0x317   :  { %9042 = vst [vmem:[#allocation65_spill] sm:$0xff] %v5391_v49 }
 0x318   :  { %9043 = vst [vmem:[#allocation66_spill] sm:$0xff] %v5396_v24 }
 0x319   :  { %1260 = vst [vmem:[#allocation1 + $0x22] ss:$4 sm:$0xff] %v5372_v56  ;;  %v4279_v56 = vrot.slane %v5382_v41, 9 }
 0x31a   :  { %9044 = vst [vmem:[#allocation67_spill] sm:$0xff] %v5399_v60  ;;  %v1094_v60 = vrot.slane %v1092_v42, 2 }
 0x31b   :  { %9045 = vst [vmem:[#allocation68_spill] sm:$0xff] %v5402_v0  ;;  %v1098_v0 = vrot.slane %v5419_v2, 7 }
 0x31c   :  { %1261 = vst [vmem:[#allocation1 + $0x23] ss:$4 sm:$0xff] %v5396_v24  ;;  %v1084_v24 = vrot.slane %v1082_v35, 2  ;;  %v5484_v35 = vrot.slane %v5385_v47, 6 }
 0x31d   :  { %9046 = vst [vmem:[#allocation69_spill] sm:$0xff] %v5413_v26 }
 0x31e   :  { %1264 = vst [vmem:[#allocation1] ss:$4 sm:$0xff] %v5391_v49  ;;  %v852_v49 = vadd.f32 %v5135_v46, %v801_v19  ;;  %v5453_v19 = vrot.slane %v5421_v36, 4  ;;  %v5469_v44 = vsel %vm5171_vm8, %v1084_v24, %v1085_v9  ;;  %v807_v9 = vmax.f32 %v806_v43, %v5179_v61 }
 0x31f   :  { %9047 = vst [vmem:[#allocation70_spill] sm:$0xff] %v5421_v36  ;;  %v5502_v61 = vsel %vm5171_vm8, %v1094_v60, %v1095_v10 }
 0x320   :  { %9048 = vst [vmem:[#allocation71_spill] sm:$0xff] %v5427_v40  ;;  %v5473_v14 = vmax.f32 %v852_v49, 0.0  ;;  %v1100_v49 = vrot.slane %v1098_v0, 2 }
 0x321   :  { %1265 = vst [vmem:[#allocation1 + $0x1] ss:$4 sm:$0xff] %v5413_v26  ;;  %v804_v26 = vmax.f32 %v803_v30, %v5137_v27  ;;  %v4280_v27 = vrot.slane %v5431_v4, 9  ;;  %v5461_v30 = vmax.f32 %v851_v50, 0.0  ;;  %v1097_v50 = vrot.slane %v1095_v10, 2 }
 0x322   :  { %9049 = vst [vmem:[#allocation72_spill] sm:$0xff] %v5431_v4  ;;  %v811_v10 = vmax.f32 %v4703_v55, %v4893_v18  ;;  %v814_v55 = vmax.f32 %v4709_v57, %v4903_v28 }
 0x323   :  { %9050 = vst [vmem:[#allocation73_spill] sm:$0xff] %v5436_v20  ;;  %v5471_v6 = vld.sshfl [vmem:[#allocation1 + $0x20] sm:$0xff pattern:$0x73625140]  ;;  %v853_v24 = vadd.f32 %v5135_v46, %v804_v26  ;;  %v5498_v26 = vsel %vm5171_vm8, %v4280_v27, %v1092_v42  ;;  %v5517_v27 = vpop.f32.mrf.mxu3  ;;  %v5528_v45 = vsel %vm5171_vm8, %v1097_v50, %v1098_v0  ;;  %v4281_v0 = vrot.slane %v5484_v35, 9 }
 0x324   :  { %1266 = vst [vmem:[#allocation1 + $0x2] ss:$4 sm:$0xff] %v5427_v40  ;;  %v5450_v40 = vrot.slane %v5421_v36, 2  ;;  %v1121_v50 = vrot.slane %v5473_v14, 7  ;;  %v9165_v5 = vrot.slane %v5461_v30, 4 }
 0x325   :  { %1267 = vst [vmem:[#allocation1 + $0x3] ss:$4 sm:$0xff] %v5436_v20  ;;  %v5458_v20 = vsel %vm5171_vm8, %v4279_v56, %v1079_v23  ;;  %v5476_v56 = vrot.slane %v5385_v47, 4  ;;  %v5480_v23 = vsel %vm5171_vm8, %v1087_v58, %v1088_v37  ;;  %v1111_v58 = vrot.slane %v5453_v19, 7 }
 0x326   :  { %9052 = vst [vmem:[#allocation74_spill] sm:$0xff] %v5450_v40  ;;  %v5494_v37 = vrot.slane %v5461_v30, 6  ;;  %v5554_v28 = vsel %vm5171_vm8, %v4281_v0, %v1105_v52 }
 0x327   :  { %9053 = vst [vmem:[#allocation75_spill] sm:$0xff] %v5453_v19  ;;  %v1101_v60 = vrot.slane %v5476_v56, 7 }
 0x328   :  { %9054 = vst [vmem:[#allocation76_spill] sm:$0xff] %v5458_v20  ;;  %v1118_v18 = vrot.slane %v5494_v37, 7 }
 0x329   :  { %9055 = vst [vmem:[#allocation77_spill] sm:$0xff] %v5461_v30 }
 0x32a   :  { %9056 = vst [vmem:[#allocation78_spill] sm:$0xff] %v5465_v51 }
 0x32b   :  { %9057 = vst [vmem:[#allocation79_spill] sm:$0xff] %v5469_v44 }
 0x32c   :  { %9058 = vst [vmem:[#allocation80_spill] sm:$0xff] %v5471_v6  ;;  %v1108_v6 = vrot.slane %v5450_v40, 7  ;;  %v5505_v43 = vld.sshfl [vmem:[#allocation1] sm:$0xff pattern:$0x73625140] }
 0x32d   :  { %9059 = vst [vmem:[#allocation81_spill] sm:$0xff] %v5473_v14 }
 0x32e   :  { %9060 = vst [vmem:[#allocation82_spill] sm:$0xff] %v5476_v56 }
 0x32f   :  { %9061 = vst [vmem:[#allocation83_spill] sm:$0xff] %v5480_v23 }
 0x330   :  { %1268 = vst [vmem:[#allocation1 + $0x20] ss:$4 sm:$0xff] %v5458_v20  ;;  %v9068_v20 = vmax.f32 %v4697_v53, %v4883_v12  ;;  %v1107_v12 = vrot.slane %v1105_v52, 2  ;;  %v5570_v53 = vrot.slane %v5473_v14, 6  ;;  %v9080_v52 = vld [vmem:[#allocation23_spill] sm:$0xff] }
 0x331   :  { %9062 = vst [vmem:[#allocation84_spill] sm:$0xff] %v5484_v35  ;;  %v815_v0 = vmax.f32 %v814_v55, %v9080_v52 }
 0x332   :  { %1269 = vst [vmem:[#allocation1 + $0x21] ss:$4 sm:$0xff] %v5465_v51  ;;  %v5508_v51 = vrot.slane %v5421_v36, 6  ;;  %v809_v42 = vmax.f32 %v9068_v20, %v5069_v3  ;;  %v5534_v3 = vsel %vm5171_vm8, %v1100_v49, %v1101_v60  ;;  %v1110_v20 = vrot.slane %v1108_v6, 2 }
 0x333   :  { %1270 = vst [vmem:[#allocation1 + $0x22] ss:$4 sm:$0xff] %v5469_v44  ;;  %v5511_v44 = vrot.slane %v5473_v14, 2 }
 0x334   :  { %9063 = vst [vmem:[#allocation85_spill] sm:$0xff] %v5498_v26  ;;  %v810_v60 = vmax.f32 %v809_v42, %v5244_v22  ;;  %v5565_v22 = vsel %vm5171_vm8, %v1110_v20, %v1111_v58 }
 0x335   :  { %9064 = vst [vmem:[#allocation86_spill] sm:$0xff] %v5502_v61  ;;  %v1124_v49 = vrot.slane %v5511_v44, 7 }
 0x336   :  { %1271 = vst [vmem:[#allocation1 + $0x23] ss:$4 sm:$0xff] %v5480_v23  ;;  %v5523_v23 = vmax.f32 %v853_v24, 0.0  ;;  %v1113_v24 = vrot.slane %v1111_v58, 2  ;;  %v855_v58 = vadd.f32 %v5135_v46, %v810_v60 }
 0x337   :  { %9065 = vst [vmem:[#allocation87_spill] sm:$0xff] %v5505_v43  ;;  %v854_v43 = vadd.f32 %v5135_v46, %v807_v9  ;;  %v1114_v9 = vrot.slane %v5508_v51, 7 }
 0x338   :  { %9066 = vst [vmem:[#allocation88_spill] sm:$0xff] %v5508_v51  ;;  %v5561_v51 = vsel %vm5171_vm8, %v1107_v12, %v1108_v6  ;;  %v1126_v6 = vrot.slane %v1124_v49, 2  ;;  %v9083_v12 = vrot.slane %v5473_v14, 4  ;;  %v1131_v55 = vrot.slane %v5523_v23, 7  ;;  %v9090_v14 = vld [vmem:[#allocation8_spill] sm:$0xff] }
 0x339   :  { %9067 = vst [vmem:[#allocation89_spill] sm:$0xff] %v5511_v44  ;;  %v5550_v57 = vmax.f32 %v854_v43, 0.0  ;;  %v1120_v43 = vrot.slane %v1118_v18, 2  ;;  %v9089_v44 = vld [vmem:[#allocation16_spill] sm:$0xff] }
 0x33a   :  { %1274 = vst [vmem:[#allocation1] ss:$4 sm:$0xff] %v5498_v26  ;;  %v812_v26 = vmax.f32 %v811_v10, %v5071_v8  ;;  %v1123_v8 = vrot.slane %v1121_v50, 2  ;;  %v5579_v10 = vrot.slane %v5523_v23, 4  ;;  %v1127_v20 = vrot.slane %v9083_v12, 7 }
 0x33b   :  { %9069 = vst [vmem:[#allocation90_spill] sm:$0xff] %v5523_v23 }
 0x33c   :  { %9070 = vst [vmem:[#allocation91_spill] sm:$0xff] %v5528_v45  ;;  %v813_v12 = vmax.f32 %v812_v26, %v5334_v62  ;;  %v1125_v62 = vsel %vm5171_vm8, %v1123_v8, %v1124_v49  ;;  %v1128_v26 = vsel %vm5171_vm8, %v1126_v6, %v1127_v20  ;;  %v1133_v49 = vrot.slane %v1131_v55, 2  ;;  %v9096_v20 = vld [vmem:[#allocation9_spill] sm:$0xff] }
 0x33d   :  { %1275 = vst [vmem:[#allocation1 + $0x1] ss:$4 sm:$0xff] %v5502_v61  ;;  %v5567_v42 = vld.sshfl [vmem:[#allocation1 + $0x20] sm:$0xff pattern:$0x73625140] }
 0x33e   :  { %9071 = vst [vmem:[#allocation92_spill] sm:$0xff] %v5534_v3  ;;  %v856_v6 = vadd.f32 %v5135_v46, %v813_v12 }
 0x33f   :  { %1276 = vst [vmem:[#allocation1 + $0x2] ss:$4 sm:$0xff] %v5528_v45  ;;  %v5548_v45 = vrot.slane %v5523_v23, 2 }
 0x340   :  { %1277 = vst [vmem:[#allocation1 + $0x3] ss:$4 sm:$0xff] %v5534_v3  ;;  %v9075_v3 = vrot.slane %v5461_v30, 4  ;;  %v4293_v30 = vld [vmem:[%s8720_s3 + $0x98] sm:$0xff] }
 0x341   :  { %9072 = vst [vmem:[#allocation93_spill] sm:$0xff] %v5548_v45  ;;  %v1134_v52 = vrot.slane %v5548_v45, 7 }
 0x342   :  { %9073 = vst [vmem:[#allocation94_spill] sm:$0xff] %v5550_v57  ;;  %v4282_v61 = vrot.slane %v9075_v3, 9  ;;  %v5575_v3 = vsel %vm5171_vm8, %v1113_v24, %v1114_v9  ;;  %v5588_v24 = vrot.slane %v5550_v57, 2  ;;  %v9085_v9 = vld [vmem:[#allocation15_spill] sm:$0xff] }
 0x343   :  { %9074 = vst [vmem:[#allocation95_spill] sm:$0xff] %v5554_v28 }
 0x344   :  { %9076 = vst [vmem:[#allocation96_spill] sm:$0xff] %v5561_v51  ;;  %v1119_v60 = vsel %vm5171_vm8, %v4282_v61, %v1118_v18  ;;  %v816_v61 = vmax.f32 %v815_v0, %v5423_v63  ;;  %v1137_v18 = vrot.slane %v5579_v10, 7  ;;  %v1144_v63 = vrot.slane %v5588_v24, 7 }
 0x345   :  { %9077 = vst [vmem:[#allocation97_spill] sm:$0xff] %v5565_v22  ;;  %v1136_v0 = vrot.slane %v1134_v52, 2 }
 0x346   :  { %9078 = vst [vmem:[#allocation98_spill] sm:$0xff] %v5567_v42  ;;  %v5599_v42 = vpop.f32.mrf.mxu3 }
 0x347   :  { %9079 = vst [vmem:[#allocation99_spill] sm:$0xff] %v5570_v53  ;;  %v5602_v45 = vld.sshfl [vmem:[#allocation1] sm:$0xff pattern:$0x73625140] }
 0x348   :  { %9081 = vst [vmem:[#allocation23_spill] sm:$0xff] %v5575_v3 }
 0x349   :  { %1278 = vst [vmem:[#allocation1 + $0x20] ss:$4 sm:$0xff] %v5554_v28  ;;  %v9086_v28 = vld [vmem:[#allocation7_spill] sm:$0xff] }
 0x34a   :  { %9082 = vst [vmem:[#allocation100_spill] sm:$0xff] %v5579_v10  ;;  %v817_v56 = vmax.f32 %v9086_v28, %v9085_v9  ;;  %v1122_v28 = vsel %vm5171_vm8, %v1120_v43, %v1121_v50  ;;  %v4283_v9 = vrot.slane %v5570_v53, 9  ;;  %v9094_v50 = vld [vmem:[#allocation24_spill] sm:$0xff]  ;;  %v1146_v10 = vrot.slane %v1144_v63, 2 }
 0x34b   :  { %1279 = vst [vmem:[#allocation1 + $0x21] ss:$4 sm:$0xff] %v5561_v51  ;;  %v5596_v51 = vrot.slane %v5550_v57, 4 }
 0x34c   :  { %9084 = vst [vmem:[#allocation101_spill] sm:$0xff] %v5588_v24  ;;  %v818_v43 = vmax.f32 %v817_v56, %v9094_v50  ;;  %v1139_v24 = vrot.slane %v1137_v18, 2 }
 0x34d   :  { %1280 = vst [vmem:[#allocation1 + $0x22] ss:$4 sm:$0xff] %v5565_v22  ;;  %v820_v22 = vmax.f32 %v9090_v14, %v9089_v44  ;;  %v5618_v44 = vrot.slane %v5523_v23, 6  ;;  %v5621_v14 = vrot.slane %v5550_v57, 6  ;;  %v1147_v8 = vrot.slane %v5596_v51, 7 }
 0x34e   :  { %9087 = vst [vmem:[#allocation15_spill] sm:$0xff] %v5596_v51 }
 0x34f   :  { %1281 = vst [vmem:[#allocation1 + $0x23] ss:$4 sm:$0xff] %v5575_v3  ;;  %v5615_v3 = vmax.f32 %v855_v58, 0.0  ;;  %v9095_v58 = vld [vmem:[#allocation17_spill] sm:$0xff]  ;;  %v1140_v51 = vrot.slane %v5618_v44, 7  ;;  %v1150_v12 = vrot.slane %v5621_v14, 7 }
 0x350   :  { %9088 = vst [vmem:[#allocation7_spill] sm:$0xff] %v5602_v45  ;;  %v5632_v45 = vsel %vm5171_vm8, %v4283_v9, %v1131_v55  ;;  %v5649_v55 = vsel %vm5171_vm8, %v1136_v0, %v1137_v18  ;;  %v1149_v9 = vrot.slane %v1147_v8, 2 }
 0x351   :  { %1284 = vst [vmem:[#allocation1] ss:$4 sm:$0xff] %v1119_v60  ;;  %v823_v60 = vmax.f32 %v9096_v20, %v9095_v58  ;;  %v5635_v56 = vrot.slane %v5615_v3, 4  ;;  %v5651_v20 = vmax.f32 %v856_v6, 0.0  ;;  %v5667_v18 = vrot.slane %v5615_v3, 2  ;;  %v748_v6 = vpop.f32.mrf.mxu3 }
 0x352   :  { %9091 = vst [vmem:[#allocation16_spill] sm:$0xff] %v5615_v3 }
 0x353   :  { %1285 = vst [vmem:[#allocation1 + $0x1] ss:$4 sm:$0xff] %v1122_v28  ;;  %v857_v28 = vadd.f32 %v5135_v46, %v816_v61  ;;  %v5645_v61 = vsel %vm5171_vm8, %v1133_v49, %v1134_v52  ;;  %v5664_v52 = vsel %vm5171_vm8, %v1139_v24, %v1140_v51  ;;  %v1157_v49 = vrot.slane %v5635_v56, 7 }
 0x354   :  { %9092 = vst [vmem:[#allocation8_spill] sm:$0xff] %v5618_v44  ;;  %v1152_v51 = vrot.slane %v1150_v12, 2 }
 0x355   :  { %9093 = vst [vmem:[#allocation102_spill] sm:$0xff] %v5621_v14 }
 0x356   :  { %1286 = vst [vmem:[#allocation1 + $0x2] ss:$4 sm:$0xff] %v1125_v62  ;;  %v9098_v62 = vld [vmem:[#allocation25_spill] sm:$0xff]  ;;  %v5641_v58 = vld.sshfl [vmem:[#allocation1 + $0x20] sm:$0xff pattern:$0x73625140] }
 0x357   :  { %1287 = vst [vmem:[#allocation1 + $0x3] ss:$4 sm:$0xff] %v1128_v26  ;;  %v821_v50 = vmax.f32 %v820_v22, %v9098_v62  ;;  %v819_v26 = vmax.f32 %v818_v43, %v5517_v27  ;;  %v4284_v22 = vrot.slane %v5550_v57, 9  ;;  %v5656_v62 = vrot.slane %v5615_v3, 6 }
 0x358   :  { %9097 = vst [vmem:[#allocation24_spill] sm:$0xff] %v5632_v45  ;;  %v1153_v27 = vrot.slane %v5615_v3, 7  ;;  %v5659_v43 = vmax.f32 %v857_v28, 0.0  ;;  %v5708_v3 = vrot.slane %v5651_v20, 4 }
 0x359   :  { %9099 = vst [vmem:[#allocation17_spill] sm:$0xff] %v5641_v58  ;;  %v822_v0 = vmax.f32 %v821_v50, %v5599_v42  ;;  %v5674_v28 = vsel %vm5171_vm8, %v4284_v22, %v1144_v63  ;;  %v858_v24 = vadd.f32 %v5135_v46, %v819_v26  ;;  %v5686_v42 = vsel %vm5171_vm8, %v1149_v9, %v1150_v12  ;;  %v9115_v12 = vld [vmem:[#allocation26_spill] sm:$0xff] }
 0x35a   :  { %9100 = vst [vmem:[#allocation9_spill] sm:$0xff] %v5645_v61  ;;  %v5689_v50 = vrot.slane %v5651_v20, 2  ;;  %v5692_v63 = vrot.slane %v5651_v20, 6  ;;  %v1160_v26 = vrot.slane %v5656_v62, 7  ;;  %v5702_v22 = vrot.slane %v5659_v43, 2 }
 0x35b   :  { %9101 = vst [vmem:[#allocation25_spill] sm:$0xff] %v5649_v55  ;;  %v824_v9 = vmax.f32 %v823_v60, %v9115_v12  ;;  %v1173_v12 = vrot.slane %v5659_v43, 7 }
 0x35c   :  { %9102 = vst [vmem:[#allocation103_spill] sm:$0xff] %v5651_v20  ;;  %v1166_v44 = vrot.slane %v5689_v50, 7  ;;  %v1170_v60 = vrot.slane %v5692_v63, 7 }
 0x35d   :  { %1288 = vst [vmem:[#allocation1 + $0x20] ss:$4 sm:$0xff] %v5632_v45 }
 0x35e   :  { %9103 = vst [vmem:[#allocation104_spill] sm:$0xff] %v5656_v62  ;;  %v5682_v45 = vld.sshfl [vmem:[#allocation1] sm:$0xff pattern:$0x73625140]  ;;  %v1176_v62 = vrot.slane %v5702_v22, 7 }
 0x35f   :  { %9104 = vst [vmem:[#allocation105_spill] sm:$0xff] %v5659_v43 }
 0x360   :  { %1289 = vst [vmem:[#allocation1 + $0x21] ss:$4 sm:$0xff] %v5645_v61  ;;  %v5678_v61 = vsel %vm5171_vm8, %v1146_v10, %v1147_v8  ;;  %v1163_v10 = vrot.slane %v5651_v20, 7  ;;  %v5698_v8 = vsel %vm5171_vm8, %v1152_v51, %v1153_v27  ;;  %v5712_v27 = vmax.f32 %v858_v24, 0.0 }
 0x361   :  { %9105 = vst [vmem:[#allocation106_spill] sm:$0xff] %v5664_v52  ;;  %v1162_v20 = vrot.slane %v1160_v26, 2 }
 0x362   :  { %9106 = vst [vmem:[#allocation107_spill] sm:$0xff] %v5667_v18  ;;  %v1165_v51 = vrot.slane %v1163_v10, 2 }
 0x363   :  { %1290 = vst [vmem:[#allocation1 + $0x22] ss:$4 sm:$0xff] %v5649_v55  ;;  %v1159_v55 = vrot.slane %v1157_v49, 2 }
 0x364   :  { %9107 = vst [vmem:[#allocation108_spill] sm:$0xff] %v5674_v28 }
 0x365   :  { %9108 = vst [vmem:[#allocation109_spill] sm:$0xff] %v5678_v61 }
 0x366   :  { %1291 = vst [vmem:[#allocation1 + $0x23] ss:$4 sm:$0xff] %v5664_v52  ;;  %v4285_v52 = vrot.slane %v5667_v18, 9 }
 0x367   :  { %9109 = vst [vmem:[#allocation110_spill] sm:$0xff] %v5682_v45  ;;  %v9119_v45 = vld [vmem:[#allocation10_spill] sm:$0xff] }
 0x368   :  { %9110 = vst [vmem:[#allocation111_spill] sm:$0xff] %v5686_v42  ;;  %v5723_v24 = vsel %vm5171_vm8, %v4285_v52, %v1157_v49  ;;  %v5742_v52 = vrot.slane %v5712_v27, 2  ;;  %v9127_v49 = vld [vmem:[#allocation27_spill] sm:$0xff] }
 0x369   :  { %9111 = vst [vmem:[#allocation112_spill] sm:$0xff] %v5689_v50 }
 0x36a   :  { %9112 = vst [vmem:[#allocation113_spill] sm:$0xff] %v5692_v63 }
 0x36b   :  { %1294 = vst [vmem:[#allocation1] ss:$4 sm:$0xff] %v5674_v28  ;;  %v859_v28 = vadd.f32 %v5135_v46, %v822_v0  ;;  %v825_v0 = vmax.f32 %v824_v9, %v748_v6  ;;  %v5751_v9 = vrot.slane %v5712_v27, 4 }
 0x36c   :  { %9113 = vst [vmem:[#allocation114_spill] sm:$0xff] %v5698_v8 }
 0x36d   :  { %9114 = vst [vmem:[#allocation115_spill] sm:$0xff] %v5702_v22  ;;  %v5730_v50 = vmax.f32 %v859_v28, 0.0  ;;  %v5732_v63 = vld.sshfl [vmem:[#allocation1 + $0x20] sm:$0xff pattern:$0x73625140]  ;;  %v1172_v28 = vrot.slane %v1170_v60, 2 }
 0x36e   :  { %1295 = vst [vmem:[#allocation1 + $0x1] ss:$4 sm:$0xff] %v5678_v61  ;;  %v9118_v61 = vld [vmem:[#allocation18_spill] sm:$0xff] }
 0x36f   :  { %9116 = vst [vmem:[#allocation26_spill] sm:$0xff] %v5708_v3  ;;  %v826_v58 = vmax.f32 %v9119_v45, %v9118_v61  ;;  %v5736_v45 = vsel %vm5171_vm8, %v1162_v20, %v1163_v10  ;;  %v5739_v61 = vrot.slane %v5659_v43, 4  ;;  %v751_v20 = vpop.f32.mrf.mxu3  ;;  %v5755_v10 = vrot.slane %v5659_v43, 6 }
 0x370   :  { %1296 = vst [vmem:[#allocation1 + $0x2] ss:$4 sm:$0xff] %v5686_v42  ;;  %v4286_v42 = vrot.slane %v5708_v3, 9 }
 0x371   :  { %9117 = vst [vmem:[#allocation116_spill] sm:$0xff] %v5712_v27  ;;  %v827_v6 = vmax.f32 %v826_v58, %v9127_v49  ;;  %v1183_v58 = vrot.slane %v5712_v27, 7  ;;  %v860_v49 = vadd.f32 %v5135_v46, %v825_v0  ;;  %v1179_v22 = vrot.slane %v5739_v61, 7 }
 0x372   :  { %1297 = vst [vmem:[#allocation1 + $0x3] ss:$4 sm:$0xff] %v5698_v8  ;;  %v5727_v8 = vsel %vm5171_vm8, %v1159_v55, %v1160_v26  ;;  %v5748_v55 = vsel %vm5171_vm8, %v1165_v51, %v1166_v44  ;;  %v1175_v26 = vrot.slane %v1173_v12, 2  ;;  %v5762_v44 = vsel %vm5171_vm8, %v4286_v42, %v1170_v60 }
 0x373   :  { %9120 = vst [vmem:[#allocation18_spill] sm:$0xff] %v5723_v24  ;;  %v5766_v51 = vsel %vm5171_vm8, %v1172_v28, %v1173_v12  ;;  %v1186_v0 = vrot.slane %v5742_v52, 7  ;;  %v828_v42 = vmax.f32 %v827_v6, %v751_v20  ;;  %v1189_v12 = vrot.slane %v5751_v9, 7 }
 0x374   :  { %9121 = vst [vmem:[#allocation10_spill] sm:$0xff] %v5727_v8  ;;  %v5782_v60 = vsel %vm5171_vm8, %v1175_v26, %v1176_v62  ;;  %v5794_v6 = vrot.slane %v5712_v27, 6  ;;  %v1185_v20 = vrot.slane %v1183_v58, 2  ;;  %v4287_v26 = vrot.slane %v5755_v10, 9 }
 0x375   :  { %9122 = vst [vmem:[#allocation117_spill] sm:$0xff] %v5730_v50 }
 0x376   :  { %9123 = vst [vmem:[#allocation118_spill] sm:$0xff] %v5732_v63  ;;  %v1178_v63 = vrot.slane %v1176_v62, 2 }
 0x377   :  { %9124 = vst [vmem:[#allocation119_spill] sm:$0xff] %v5736_v45 }
 0x378   :  { %9125 = vst [vmem:[#allocation120_spill] sm:$0xff] %v5739_v61  ;;  %v5788_v28 = vsel %vm5171_vm8, %v1178_v63, %v1179_v22  ;;  %v861_v22 = vadd.f32 %v5135_v46, %v828_v42 }
 0x379   :  { %9126 = vst [vmem:[#allocation121_spill] sm:$0xff] %v5742_v52 }
 0x37a   :  { %1298 = vst [vmem:[#allocation1 + $0x20] ss:$4 sm:$0xff] %v5723_v24  ;;  %v5772_v24 = vld.sshfl [vmem:[#allocation1] sm:$0xff pattern:$0x73625140] }
 0x37b   :  { %9128 = vst [vmem:[#allocation27_spill] sm:$0xff] %v5748_v55 }
 0x37c   :  { %9129 = vst [vmem:[#allocation122_spill] sm:$0xff] %v5751_v9 }
 0x37d   :  { %1299 = vst [vmem:[#allocation1 + $0x21] ss:$4 sm:$0xff] %v5727_v8  ;;  %v5769_v8 = vrot.slane %v5730_v50, 2 }
 0x37e   :  { %9130 = vst [vmem:[#allocation123_spill] sm:$0xff] %v5755_v10 }
 0x37f   :  { %1300 = vst [vmem:[#allocation1 + $0x22] ss:$4 sm:$0xff] %v5736_v45  ;;  %v5777_v45 = vrot.slane %v5730_v50, 4  ;;  %v1196_v62 = vrot.slane %v5769_v8, 7 }
 0x380   :  { %9131 = vst [vmem:[#allocation124_spill] sm:$0xff] %v5762_v44 }
 0x381   :  { %9132 = vst [vmem:[#allocation125_spill] sm:$0xff] %v5766_v51  ;;  %v1199_v63 = vrot.slane %v5777_v45, 7  ;;  %v1198_v9 = vrot.slane %v1196_v62, 2 }
 0x382   :  { %9133 = vst [vmem:[#allocation126_spill] sm:$0xff] %v5769_v8  ;;  %v1192_v8 = vrot.slane %v5794_v6, 7 }
 0x383   :  { %1301 = vst [vmem:[#allocation1 + $0x23] ss:$4 sm:$0xff] %v5748_v55  ;;  %v5790_v55 = vmax.f32 %v860_v49, 0.0  ;;  %v1191_v49 = vrot.slane %v1189_v12, 2  ;;  %v1201_v42 = vrot.slane %v1199_v63, 2 }
 0x384   :  { %9134 = vst [vmem:[#allocation127_spill] sm:$0xff] %v5772_v24 }
 0x385   :  { %9135 = vst [vmem:[#allocation128_spill] sm:$0xff] %v5777_v45  ;;  %v5809_v61 = vrot.slane %v5790_v55, 4 }
 0x386   :  { %1304 = vst [vmem:[#allocation1] ss:$4 sm:$0xff] %v5762_v44  ;;  %v5797_v44 = vrot.slane %v5730_v50, 6 }
 0x387   :  { %9136 = vst [vmem:[#allocation129_spill] sm:$0xff] %v5782_v60 }
 0x388   :  { %1305 = vst [vmem:[#allocation1 + $0x1] ss:$4 sm:$0xff] %v5766_v51  ;;  %v1188_v51 = vrot.slane %v1186_v0, 2  ;;  %v1202_v45 = vrot.slane %v5797_v44, 7 }
 0x389   :  { %9137 = vst [vmem:[#allocation130_spill] sm:$0xff] %v5788_v28 }
 0x38a   :  { %9138 = vst [vmem:[#allocation131_spill] sm:$0xff] %v5790_v55  ;;  %v5811_v24 = vld.sshfl [vmem:[#allocation1 + $0x20] sm:$0xff pattern:$0x73625140]  ;;  %v5822_v46 = vsel %vm5171_vm8, %v1188_v51, %v1189_v12  ;;  %v1205_v51 = vrot.slane %v5790_v55, 7 }
 0x38b   :  { %1306 = vst [vmem:[#allocation1 + $0x2] ss:$4 sm:$0xff] %v5782_v60  ;;  %v5806_v60 = vsel %vm5171_vm8, %v4287_v26, %v1183_v58  ;;  %v4288_v58 = vrot.slane %v5730_v50, 9  ;;  %v5825_v26 = vmax.f32 %v861_v22, 0.0  ;;  %v1209_v22 = vrot.slane %v5809_v61, 7 }
 0x38c   :  { %9139 = vst [vmem:[#allocation132_spill] sm:$0xff] %v5794_v6 }
 0x38d   :  { %9140 = vst [vmem:[#allocation133_spill] sm:$0xff] %v5797_v44  ;;  %v5842_v12 = vsel %vm5171_vm8, %v4288_v58, %v1196_v62  ;;  %v5858_v62 = vrot.slane %v5825_v26, 2  ;;  %v1215_v58 = vrot.slane %v5825_v26, 7 }
 0x38e   :  { %1307 = vst [vmem:[#allocation1 + $0x3] ss:$4 sm:$0xff] %v5788_v28  ;;  %v5815_v28 = vsel %vm5171_vm8, %v1185_v20, %v1186_v0  ;;  %v5830_v0 = vsel %vm5171_vm8, %v1191_v49, %v1192_v8  ;;  %v5833_v20 = vrot.slane %v5790_v55, 2  ;;  %v5850_v49 = vsel %vm5171_vm8, %v1198_v9, %v1199_v63 }
 0x38f   :  { %9141 = vst [vmem:[#allocation134_spill] sm:$0xff] %v5806_v60 }
 0x390   :  { %9142 = vst [vmem:[#allocation135_spill] sm:$0xff] %v5809_v61  ;;  %v4289_v9 = vrot.slane %v5833_v20, 9 }
 0x391   :  { %9143 = vst [vmem:[#allocation136_spill] sm:$0xff] %v5815_v28 }
 0x392   :  { %1308 = vst [vmem:[#allocation1 + $0x20] ss:$4 sm:$0xff] %v5806_v60  ;;  %v5836_v60 = vrot.slane %v5790_v55, 6  ;;  %v5873_v55 = vsel %vm5171_vm8, %v4289_v9, %v1209_v22  ;;  %v9159_v9 = vld [vmem:[#allocation31_spill] sm:$0xff] }
 0x393   :  { %9144 = vst [vmem:[#allocation137_spill] sm:$0xff] %v5822_v46 }
 0x394   :  { %9145 = vst [vmem:[#allocation138_spill] sm:$0xff] %v5825_v26  ;;  %v1212_v63 = vrot.slane %v5836_v60, 7 }
 0x395   :  { %1309 = vst [vmem:[#allocation1 + $0x21] ss:$4 sm:$0xff] %v5815_v28  ;;  %v5846_v8 = vld.sshfl [vmem:[#allocation1] sm:$0xff pattern:$0x73625140]  ;;  %v1204_v28 = vrot.slane %v1202_v45, 2 }
 0x396   :  { %9146 = vst [vmem:[#allocation139_spill] sm:$0xff] %v5830_v0 }
 0x397   :  { %9147 = vst [vmem:[#allocation140_spill] sm:$0xff] %v5833_v20 }
 0x398   :  { %9148 = vst [vmem:[#allocation141_spill] sm:$0xff] %v5836_v60 }
 0x399   :  { %1310 = vst [vmem:[#allocation1 + $0x22] ss:$4 sm:$0xff] %v5822_v46  ;;  %v5855_v46 = vsel %vm5171_vm8, %v1201_v42, %v1202_v45  ;;  %v1217_v45 = vrot.slane %v1215_v58, 2  ;;  %v1218_v42 = vrot.slane %v5858_v62, 7 }
 0x39a   :  { %9149 = vst [vmem:[#allocation142_spill] sm:$0xff] %v5842_v12 }
 0x39b   :  { %1311 = vst [vmem:[#allocation1 + $0x23] ss:$4 sm:$0xff] %v5830_v0  ;;  %v5864_v0 = vsel %vm5171_vm8, %v1204_v28, %v1205_v51 }
 0x39c   :  { %9150 = vst [vmem:[#allocation143_spill] sm:$0xff] %v5850_v49 }
 0x39d   :  { %1314 = vst [vmem:[#allocation1] ss:$4 sm:$0xff] %v5842_v12  ;;  %v1211_v12 = vrot.slane %v1209_v22, 2 }
 0x39e   :  { %9151 = vst [vmem:[#allocation144_spill] sm:$0xff] %v5855_v46 }
 0x39f   :  { %9152 = vst [vmem:[#allocation145_spill] sm:$0xff] %v5858_v62  ;;  %v5879_v28 = vsel %vm5171_vm8, %v1211_v12, %v1212_v63  ;;  %v9158_v12 = vld [vmem:[#allocation30_spill] sm:$0xff]  ;;  %v9180_v62 = vld [vmem:[#allocation63_spill] sm:$0xff] }
 0x3a0   :  { %1315 = vst [vmem:[#allocation1 + $0x1] ss:$4 sm:$0xff] %v5850_v49  ;;  %v1214_v49 = vrot.slane %v1212_v63, 2  ;;  %v9160_v63 = vld [vmem:[#allocation32_spill] sm:$0xff] }
 0x3a1   :  { %9153 = vst [vmem:[#allocation146_spill] sm:$0xff] %v5864_v0 }
 0x3a2   :  { %1316 = vst [vmem:[#allocation1 + $0x2] ss:$4 sm:$0xff] %v5855_v46  ;;  %v5875_v6 = vld.sshfl [vmem:[#allocation1 + $0x20] sm:$0xff pattern:$0x73625140]  ;;  %v5884_v51 = vsel %vm5171_vm8, %v1214_v49, %v1215_v58  ;;  %v9161_v49 = vld [vmem:[#allocation33_spill] sm:$0xff] }
 0x3a3   :  { %1317 = vst [vmem:[#allocation1 + $0x3] ss:$4 sm:$0xff] %v5864_v0  ;;  %v5889_v0 = vsel %vm5171_vm8, %v1217_v45, %v1218_v42 }
 0x3a4   :  { %9154 = vst [vmem:[#allocation147_spill] sm:$0xff] %v5873_v55 }
 0x3a5   :  { %9155 = vst [vmem:[#allocation148_spill] sm:$0xff] %v5879_v28 }
 0x3a6   :  { %1318 = vst [vmem:[#allocation1 + $0x20] ss:$4 sm:$0xff] %v5873_v55 }
 0x3a7   :  { %9156 = vst [vmem:[#allocation149_spill] sm:$0xff] %v5884_v51 }
 0x3a8   :  { %1319 = vst [vmem:[#allocation1 + $0x21] ss:$4 sm:$0xff] %v5879_v28 }
 0x3a9   :  { %9157 = vst [vmem:[#allocation150_spill] sm:$0xff] %v5889_v0 }
 0x3aa   :  { %1320 = vst [vmem:[#allocation1 + $0x22] ss:$4 sm:$0xff] %v5884_v51  ;;  %v5893_v22 = vld.sshfl [vmem:[#allocation1] sm:$0xff pattern:$0x73625140] }
 0x3ab   :  { %1321 = vst [vmem:[#allocation1 + $0x23] ss:$4 sm:$0xff] %v5889_v0  ;;  %v9163_v0 = vld [vmem:[#allocation54_spill] sm:$0xff] }
 0x3ac   :  { %1405 = vst [vmem:[#allocation1] ss:$4 sm:$0xff] %v9158_v12 }
 0x3ad   :  { %1407 = vst [vmem:[#allocation1 + $0x1] ss:$4 sm:$0xff] %v9159_v9 }
 0x3ae   :  { %1409 = vst [vmem:[#allocation1 + $0x2] ss:$4 sm:$0xff] %v9160_v63 }
 0x3af   :  { %1411 = vst [vmem:[#allocation1 + $0x3] ss:$4 sm:$0xff] %v9161_v49 }
 0x3b2   :  { %v5899_v58 = vld.sshfl [vmem:[#allocation1 + $0x20] sm:$0xff pattern:$0x73625140] }
 0x3b3   :  { %9162 = vst [vmem:[#allocation30_spill] sm:$0xff] %v5899_v58 }
 0x3b4   :  { %1413 = vst [vmem:[#allocation1 + $0x20] ss:$4 sm:$0xff] %v5194_v13 }
 0x3b5   :  { %1415 = vst [vmem:[#allocation1 + $0x21] ss:$4 sm:$0xff] %v5197_v25 }
 0x3b6   :  { %1417 = vst [vmem:[#allocation1 + $0x22] ss:$4 sm:$0xff] %v5200_v11  ;;  %v5905_v45 = vld.sshfl [vmem:[#allocation1] sm:$0xff pattern:$0x73625140] }
 0x3b7   :  { %1419 = vst [vmem:[#allocation1 + $0x23] ss:$4 sm:$0xff] %v5248_v32 }
 0x3b8   :  { %1422 = vst [vmem:[#allocation1] ss:$4 sm:$0xff] %v5258_v1  ;;  %v9170_v1 = vld [vmem:[#allocation100_spill] sm:$0xff] }
 0x3b9   :  { %1423 = vst [vmem:[#allocation1 + $0x1] ss:$4 sm:$0xff] %v5261_v39 }
 0x3ba   :  { %1424 = vst [vmem:[#allocation1 + $0x2] ss:$4 sm:$0xff] %v5153_v29 }
 0x3bb   :  { %1425 = vst [vmem:[#allocation1 + $0x3] ss:$4 sm:$0xff] %v5177_v38 }
 0x3be   :  { %v5911_v42 = vld.sshfl [vmem:[#allocation1 + $0x20] sm:$0xff pattern:$0x73625140] }
 0x3bf   :  { %1426 = vst [vmem:[#allocation1 + $0x20] ss:$4 sm:$0xff] %v5295_v54  ;;  %v4292_v54 = vld [vmem:[%s8720_s3 + $0x90] sm:$0xff] }
 0x3c0   :  { %1427 = vst [vmem:[#allocation1 + $0x21] ss:$4 sm:$0xff] %v5214_v15 }
 0x3c1   :  { %1428 = vst [vmem:[#allocation1 + $0x22] ss:$4 sm:$0xff] %v5251_v21 }
 0x3c2   :  { %1429 = vst [vmem:[#allocation1 + $0x23] ss:$4 sm:$0xff] %v5287_v17  ;;  %v5917_v12 = vld.sshfl [vmem:[#allocation1] sm:$0xff pattern:$0x73625140] }
 0x3c3   :  { %1432 = vst [vmem:[#allocation1] ss:$4 sm:$0xff] %v5264_v48 }
 0x3c4   :  { %1433 = vst [vmem:[#allocation1 + $0x1] ss:$4 sm:$0xff] %v5304_v7 }
 0x3c5   :  { %1434 = vst [vmem:[#allocation1 + $0x2] ss:$4 sm:$0xff] %v9163_v0 }
 0x3c6   :  { %1435 = vst [vmem:[#allocation1 + $0x3] ss:$4 sm:$0xff] %v5341_v59 }
 0x3c9   :  { %v5923_v51 = vld.sshfl [vmem:[#allocation1 + $0x20] sm:$0xff pattern:$0x73625140] }
 0x3ca   :  { %1436 = vst [vmem:[#allocation1 + $0x20] ss:$4 sm:$0xff] %v5382_v41  ;;  %v9167_v41 = vld [vmem:[#allocation89_spill] sm:$0xff] }
 0x3cb   :  { %1437 = vst [vmem:[#allocation1 + $0x21] ss:$4 sm:$0xff] %v5353_v33 }
 0x3cc   :  { %1438 = vst [vmem:[#allocation1 + $0x22] ss:$4 sm:$0xff] %v5377_v16 }
 0x3cd   :  { %1439 = vst [vmem:[#allocation1 + $0x23] ss:$4 sm:$0xff] %v5364_v34  ;;  %v5929_v28 = vld.sshfl [vmem:[#allocation1] sm:$0xff pattern:$0x73625140] }
 0x3ce   :  { %1442 = vst [vmem:[#allocation1] ss:$4 sm:$0xff] %v5431_v4  ;;  %v9166_v4 = vld [vmem:[#allocation81_spill] sm:$0xff] }
 0x3cf   :  { %1443 = vst [vmem:[#allocation1 + $0x1] ss:$4 sm:$0xff] %v5405_v31 }
 0x3d0   :  { %1444 = vst [vmem:[#allocation1 + $0x2] ss:$4 sm:$0xff] %v5385_v47 }
 0x3d1   :  { %1445 = vst [vmem:[#allocation1 + $0x3] ss:$4 sm:$0xff] %v5419_v2 }
 0x3d4   :  { %v5935_v55 = vld.sshfl [vmem:[#allocation1 + $0x20] sm:$0xff pattern:$0x73625140] }
 0x3d5   :  { %1446 = vst [vmem:[#allocation1 + $0x20] ss:$4 sm:$0xff] %v5484_v35  ;;  %v4294_v35 = vld [vmem:[%s8720_s3 + $0xa0] sm:$0xff] }
 0x3d6   :  { %1447 = vst [vmem:[#allocation1 + $0x21] ss:$4 sm:$0xff] %v5421_v36  ;;  %1351 = vmatpush.msrb.mxu1 %v4294_v35  ;;  %v4291_v35 = vld [vmem:[%s8720_s3 + $0x88] sm:$0xff] }
 0x3d7   :  { %1448 = vst [vmem:[#allocation1 + $0x22] ss:$4 sm:$0xff] %v5450_v40 }
 0x3d8   :  { %1449 = vst [vmem:[#allocation1 + $0x23] ss:$4 sm:$0xff] %v5453_v19  ;;  %v5941_v46 = vld.sshfl [vmem:[#allocation1] sm:$0xff pattern:$0x73625140]  ;;  %1352 = vmatpush.msrb.mxu1 %v4293_v30 }
 0x3d9   :  { %9164 = vst [vmem:[#allocation31_spill] sm:$0xff] %v5941_v46  ;;  %v9173_v30 = vld [vmem:[#allocation15_spill] sm:$0xff]  ;;  %v9179_v46 = vld [vmem:[#allocation113_spill] sm:$0xff] }
 0x3da   :  { %1452 = vst [vmem:[#allocation1] ss:$4 sm:$0xff] %v9165_v5  ;;  %v9169_v5 = vld [vmem:[#allocation93_spill] sm:$0xff]  ;;  %1353 = vmatpush.msrb.mxu1 %v4292_v54 }
 0x3db   :  { %1453 = vst [vmem:[#allocation1 + $0x1] ss:$4 sm:$0xff] %v5494_v37 }
 0x3dc   :  { %1454 = vst [vmem:[#allocation1 + $0x2] ss:$4 sm:$0xff] %v9166_v4  ;;  %1354 = vmatpush.msrb.mxu1 %v4291_v35  ;;  %v9177_v35 = vld [vmem:[#allocation103_spill] sm:$0xff] }
 0x3dd   :  { %1455 = vst [vmem:[#allocation1 + $0x3] ss:$4 sm:$0xff] %v9167_v41 }
 0x3df   :  { %v5951_v48 = vld.sshfl [vmem:[#allocation1 + $0x20] sm:$0xff pattern:$0x73625140] }
 0x3e0   :  { %9168 = vst [vmem:[#allocation32_spill] sm:$0xff] %v5951_v48  ;;  %v4290_v48 = vld [vmem:[%s8720_s3 + $0x80] sm:$0xff] }
 0x3e1   :  { %1456 = vst [vmem:[#allocation1 + $0x20] ss:$4 sm:$0xff] %v5570_v53  ;;  %v9172_v53 = vld [vmem:[#allocation101_spill] sm:$0xff]  ;;  %1355 = vmatpush.msrb.mxu1 %v4290_v48  ;;  %v9181_v48 = vld [vmem:[#allocation115_spill] sm:$0xff] }
 0x3e2   :  { %1457 = vst [vmem:[#allocation1 + $0x21] ss:$4 sm:$0xff] %v5523_v23 }
 0x3e3   :  { %1458 = vst [vmem:[#allocation1 + $0x22] ss:$4 sm:$0xff] %v9169_v5 }
 0x3e4   :  { %1459 = vst [vmem:[#allocation1 + $0x23] ss:$4 sm:$0xff] %v9170_v1  ;;  %v5963_v58 = vld.sshfl [vmem:[#allocation1] sm:$0xff pattern:$0x73625140] }
 0x3e5   :  { %9171 = vst [vmem:[#allocation33_spill] sm:$0xff] %v5963_v58  ;;  %v9174_v58 = vld [vmem:[#allocation48_spill] sm:$0xff] }
 0x3e6   :  { %1462 = vst [vmem:[#allocation1] ss:$4 sm:$0xff] %v5550_v57  ;;  %1356 = vmatmul.f32.vlgmr.msrb.gmra.mxu1 %v9174_v58  ;;  %v9176_v57 = vld [vmem:[#allocation104_spill] sm:$0xff] }
 0x3e7   :  { %1463 = vst [vmem:[#allocation1 + $0x1] ss:$4 sm:$0xff] %v9172_v53 }
 0x3e8   :  { %1464 = vst [vmem:[#allocation1 + $0x2] ss:$4 sm:$0xff] %v9173_v30 }
 0x3e9   :  { %1465 = vst [vmem:[#allocation1 + $0x3] ss:$4 sm:$0xff] %v5621_v14 }
 0x3eb   :  { %v5976_v54 = vld.sshfl [vmem:[#allocation1 + $0x20] sm:$0xff pattern:$0x73625140] }
 0x3ec   :  { %9175 = vst [vmem:[#allocation54_spill] sm:$0xff] %v5976_v54  ;;  %v9187_v54 = vld [vmem:[#allocation128_spill] sm:$0xff] }
 0x3ed   :  { %1466 = vst [vmem:[#allocation1 + $0x20] ss:$4 sm:$0xff] %v5667_v18  ;;  %v9183_v18 = vld [vmem:[#allocation67_spill] sm:$0xff] }
 0x3ee   :  { %1467 = vst [vmem:[#allocation1 + $0x21] ss:$4 sm:$0xff] %v5635_v56  ;;  %1359 = vmatmul.f32.gmra.mxu1 %v9180_v62  ;;  %v9186_v62 = vld [vmem:[#allocation126_spill] sm:$0xff] }
 0x3ef   :  { %1468 = vst [vmem:[#allocation1 + $0x22] ss:$4 sm:$0xff] %v9176_v57 }
 0x3f0   :  { %1469 = vst [vmem:[#allocation1 + $0x23] ss:$4 sm:$0xff] %v9177_v35  ;;  %v5982_v13 = vld.sshfl [vmem:[#allocation1] sm:$0xff pattern:$0x73625140] }
 0x3f1   :  { %9178 = vst [vmem:[#allocation81_spill] sm:$0xff] %v5982_v13  ;;  %v9184_v13 = vld [vmem:[#allocation122_spill] sm:$0xff] }
 0x3f2   :  { %1472 = vst [vmem:[#allocation1] ss:$4 sm:$0xff] %v5708_v3 }
 0x3f3   :  { %1473 = vst [vmem:[#allocation1 + $0x1] ss:$4 sm:$0xff] %v9179_v46 }
 0x3f4   :  { %1474 = vst [vmem:[#allocation1 + $0x2] ss:$4 sm:$0xff] %v5659_v43 }
 0x3f5   :  { %1475 = vst [vmem:[#allocation1 + $0x3] ss:$4 sm:$0xff] %v9181_v48 }
 0x3f6   :  { %1362 = vmatmul.f32.gmra.mxu1 %v9183_v18 }
 0x3f7   :  { %v5989_v58 = vld.sshfl [vmem:[#allocation1 + $0x20] sm:$0xff pattern:$0x73625140] }
 0x3f8   :  { %9182 = vst [vmem:[#allocation89_spill] sm:$0xff] %v5989_v58 }
 0x3f9   :  { %1476 = vst [vmem:[#allocation1 + $0x20] ss:$4 sm:$0xff] %v5755_v10  ;;  %v9189_v10 = vld [vmem:[#allocation80_spill] sm:$0xff] }
 0x3fa   :  { %1477 = vst [vmem:[#allocation1 + $0x21] ss:$4 sm:$0xff] %v5712_v27 }
 0x3fb   :  { %1478 = vst [vmem:[#allocation1 + $0x22] ss:$4 sm:$0xff] %v5742_v52 }
 0x3fc   :  { %1479 = vst [vmem:[#allocation1 + $0x23] ss:$4 sm:$0xff] %v9184_v13  ;;  %v5996_v3 = vld.sshfl [vmem:[#allocation1] sm:$0xff pattern:$0x73625140] }
 0x3fd   :  { %9185 = vst [vmem:[#allocation93_spill] sm:$0xff] %v5996_v3 }
 0x3fe   :  { %1482 = vst [vmem:[#allocation1] ss:$4 sm:$0xff] %v5730_v50  ;;  %1365 = vmatmul.f32.gmra.mxu1 %v9189_v10  ;;  %v9191_v50 = vld [vmem:[#allocation36_spill] sm:$0xff] }
 0x3ff   :  { %1483 = vst [vmem:[#allocation1 + $0x1] ss:$4 sm:$0xff] %v9186_v62 }
 0x400   :  { %1484 = vst [vmem:[#allocation1 + $0x2] ss:$4 sm:$0xff] %v9187_v54 }
 0x401   :  { %1485 = vst [vmem:[#allocation1 + $0x3] ss:$4 sm:$0xff] %v5797_v44 }
 0x403   :  { %v6002_v58 = vld.sshfl [vmem:[#allocation1 + $0x20] sm:$0xff pattern:$0x73625140] }
 0x404   :  { %9188 = vst [vmem:[#allocation100_spill] sm:$0xff] %v6002_v58  ;;  %v9192_v58 = vld [vmem:[#allocation87_spill] sm:$0xff] }
 0x405   :  { %1486 = vst [vmem:[#allocation1 + $0x20] ss:$4 sm:$0xff] %v5833_v20  ;;  %v1004_v20 = vld [vmem:[%s8720_s3 + $0x78] sm:$0xff] }
 0x406   :  { %1487 = vst [vmem:[#allocation1 + $0x21] ss:$4 sm:$0xff] %v5809_v61  ;;  %1368 = vmatmul.f32.gmra.mxu1 %v9192_v58  ;;  %1508 = vmatpush.msrb.mxu2 %v1004_v20  ;;  %v9195_v58 = vld [vmem:[#allocation98_spill] sm:$0xff]  ;;  %v1001_v20 = vld [vmem:[%s8720_s3 + $0x60] sm:$0xff] }
 0x407   :  { %1488 = vst [vmem:[#allocation1 + $0x22] ss:$4 sm:$0xff] %v5836_v60 }
 0x408   :  { %1489 = vst [vmem:[#allocation1 + $0x23] ss:$4 sm:$0xff] %v5825_v26  ;;  %v6009_v18 = vld.sshfl [vmem:[#allocation1] sm:$0xff pattern:$0x73625140] }
 0x409   :  { %9190 = vst [vmem:[#allocation101_spill] sm:$0xff] %v6009_v18  ;;  %v997_v18 = vld [vmem:[%s8720_s3 + $0x40] sm:$0xff] }
 0x40a   :  { %1590 = vst [vmem:[#allocation1] ss:$4 sm:$0xff] %v9159_v9  ;;  %v1003_v9 = vld [vmem:[%s8720_s3 + $0x70] sm:$0xff] }
 0x40b   :  { %1592 = vst [vmem:[#allocation1 + $0x1] ss:$4 sm:$0xff] %v9160_v63  ;;  %1509 = vmatpush.msrb.mxu2 %v1003_v9  ;;  %v1000_v9 = vld [vmem:[%s8720_s3 + $0x58] sm:$0xff] }
 0x40c   :  { %1594 = vst [vmem:[#allocation1 + $0x2] ss:$4 sm:$0xff] %v9161_v49  ;;  %v1002_v49 = vld [vmem:[%s8720_s3 + $0x68] sm:$0xff] }
 0x40d   :  { %1596 = vst [vmem:[#allocation1 + $0x3] ss:$4 sm:$0xff] %v9191_v50  ;;  %v9194_v50 = vld [vmem:[#allocation43_spill] sm:$0xff]  ;;  %1510 = vmatpush.msrb.mxu2 %v1002_v49  ;;  %v999_v49 = vld [vmem:[%s8720_s3 + $0x50] sm:$0xff] }
 0x40e   :  { %1371 = vmatmul.f32.gmra.mxu1 %v9195_v58  ;;  %v998_v58 = vld [vmem:[%s8720_s3 + $0x48] sm:$0xff] }
 0x40f   :  { %v6016_v10 = vld.sshfl [vmem:[#allocation1 + $0x20] sm:$0xff pattern:$0x73625140]  ;;  %1511 = vmatpush.msrb.mxu2 %v1001_v20 }
 0x410   :  { %9193 = vst [vmem:[#allocation15_spill] sm:$0xff] %v6016_v10  ;;  %v9197_v20 = vld [vmem:[#allocation7_spill] sm:$0xff] }
 0x411   :  { %1598 = vst [vmem:[#allocation1 + $0x20] ss:$4 sm:$0xff] %v5197_v25  ;;  %1512 = vmatpush.msrb.mxu2 %v1000_v9  ;;  %v9198_v9 = vld [vmem:[#allocation56_spill] sm:$0xff] }
 0x412   :  { %1600 = vst [vmem:[#allocation1 + $0x21] ss:$4 sm:$0xff] %v5200_v11 }
 0x413   :  { %1602 = vst [vmem:[#allocation1 + $0x22] ss:$4 sm:$0xff] %v5248_v32  ;;  %1513 = vmatpush.msrb.mxu2 %v999_v49  ;;  %v996_v49 = vld [vmem:[%s8720_s3 + $0x38] sm:$0xff] }
 0x414   :  { %1604 = vst [vmem:[#allocation1 + $0x23] ss:$4 sm:$0xff] %v9194_v50  ;;  %v6028_v63 = vld.sshfl [vmem:[#allocation1] sm:$0xff pattern:$0x73625140] }
 0x415   :  { %1607 = vst [vmem:[#allocation1] ss:$4 sm:$0xff] %v5261_v39  ;;  %v9196_v50 = vld [vmem:[#allocation39_spill] sm:$0xff]  ;;  %1514 = vmatpush.msrb.mxu2 %v998_v58  ;;  %v9199_v58 = vld [vmem:[#allocation57_spill] sm:$0xff] }
 0x416   :  { %1608 = vst [vmem:[#allocation1 + $0x1] ss:$4 sm:$0xff] %v5153_v29  ;;  %1374 = vmatmul.f32.gmra.mxu1 %v9197_v20  ;;  %v995_v20 = vld [vmem:[%s8720_s3 + $0x30] sm:$0xff] }
 0x417   :  { %1609 = vst [vmem:[#allocation1 + $0x2] ss:$4 sm:$0xff] %v5177_v38  ;;  %1515 = vmatpush.msrb.mxu2 %v997_v18  ;;  %v994_v18 = vld [vmem:[%s8720_s3 + $0x28] sm:$0xff] }
 0x418   :  { %1610 = vst [vmem:[#allocation1 + $0x3] ss:$4 sm:$0xff] %v9196_v50 }
 0x419   :  { %1516 = vmatpush.msrb.mxu2 %v996_v49  ;;  %v993_v49 = vld [vmem:[%s8720_s3 + $0x20] sm:$0xff] }
 0x41b   :  { %v6044_v10 = vld.sshfl [vmem:[#allocation1 + $0x20] sm:$0xff pattern:$0x73625140]  ;;  %1517 = vmatpush.msrb.mxu2 %v995_v20  ;;  %v992_v20 = vld [vmem:[%s8720_s3 + $0x18] sm:$0xff] }
 0x41c   :  { %1611 = vst [vmem:[#allocation1 + $0x20] ss:$4 sm:$0xff] %v5214_v15 }
 0x41d   :  { %1612 = vst [vmem:[#allocation1 + $0x21] ss:$4 sm:$0xff] %v5251_v21  ;;  %1518 = vmatpush.msrb.mxu2 %v994_v18  ;;  %v991_v18 = vld [vmem:[%s8720_s3 + $0x10] sm:$0xff] }
 0x41e   :  { %1613 = vst [vmem:[#allocation1 + $0x22] ss:$4 sm:$0xff] %v5287_v17 }
 0x41f   :  { %1614 = vst [vmem:[#allocation1 + $0x23] ss:$4 sm:$0xff] %v9198_v9  ;;  %v6057_v50 = vld.sshfl [vmem:[#allocation1] sm:$0xff pattern:$0x73625140]  ;;  %v9200_v9 = vld [vmem:[#allocation17_spill] sm:$0xff]  ;;  %1519 = vmatpush.msrb.mxu2 %v993_v49 }
 0x420   :  { %1617 = vst [vmem:[#allocation1] ss:$4 sm:$0xff] %v5304_v7  ;;  %1377 = vmatmul.f32.gmra.mxu1 %v9200_v9  ;;  %v990_v49 = vld [vmem:[%s8720_s3 + $0x8] sm:$0xff] }
 0x421   :  { %1618 = vst [vmem:[#allocation1 + $0x1] ss:$4 sm:$0xff] %v9163_v0  ;;  %1520 = vmatpush.msrb.mxu2 %v992_v20  ;;  %v989_v20 = vld [vmem:[%s8720_s3] sm:$0xff] }
 0x422   :  { %1619 = vst [vmem:[#allocation1 + $0x2] ss:$4 sm:$0xff] %v5341_v59 }
 0x423   :  { %1620 = vst [vmem:[#allocation1 + $0x3] ss:$4 sm:$0xff] %v9199_v58  ;;  %v9202_v58 = vld [vmem:[#allocation68_spill] sm:$0xff]  ;;  %1521 = vmatpush.msrb.mxu2 %v991_v18 }
 0x424   :  { %v9206_v18 = vld [vmem:[#allocation88_spill] sm:$0xff] }
 0x425   :  { %1522 = vmatpush.msrb.mxu2 %v990_v49  ;;  %v9207_v49 = vld [vmem:[#allocation118_spill] sm:$0xff] }
 0x426   :  { %v6076_v3 = vld.sshfl [vmem:[#allocation1 + $0x20] sm:$0xff pattern:$0x73625140] }
 0x427   :  { %9201 = vst [vmem:[#allocation48_spill] sm:$0xff] %v6076_v3  ;;  %v9204_v3 = vld [vmem:[#allocation110_spill] sm:$0xff]  ;;  %1523 = vmatpush.msrb.mxu2 %v989_v20 }
 0x428   :  { %1621 = vst [vmem:[#allocation1 + $0x20] ss:$4 sm:$0xff] %v5353_v33  ;;  %1380 = vmatmul.f32.gmra.mxu1 %v9204_v3  ;;  %1524 = vmatmul.f32.vlgmr.msrb.gmra.mxu2 %v5905_v45  ;;  %v9208_v45 = vrot.slane %v9166_v4, 4 }
 0x429   :  { %1622 = vst [vmem:[#allocation1 + $0x21] ss:$4 sm:$0xff] %v5377_v16 }
 0x42a   :  { %1623 = vst [vmem:[#allocation1 + $0x22] ss:$4 sm:$0xff] %v5364_v34  ;;  %v6088_v9 = vld.sshfl [vmem:[#allocation1] sm:$0xff pattern:$0x73625140] }
 0x42b   :  { %1624 = vst [vmem:[#allocation1 + $0x23] ss:$4 sm:$0xff] %v9202_v58  ;;  %v9205_v58 = vld [vmem:[#allocation82_spill] sm:$0xff] }
 0x42c   :  { %9203 = vst [vmem:[#allocation104_spill] sm:$0xff] %v6088_v9 }
 0x42d   :  { %1627 = vst [vmem:[#allocation1] ss:$4 sm:$0xff] %v5405_v31 }
 0x42e   :  { %1628 = vst [vmem:[#allocation1 + $0x1] ss:$4 sm:$0xff] %v5385_v47 }
 0x42f   :  { %1629 = vst [vmem:[#allocation1 + $0x2] ss:$4 sm:$0xff] %v5419_v2 }
 0x430   :  { %1630 = vst [vmem:[#allocation1 + $0x3] ss:$4 sm:$0xff] %v9205_v58  ;;  %1383 = vmatmul.f32.gmra.mxu1 %v9207_v49  ;;  %1527 = vmatmul.f32.gmra.mxu2 %v5911_v42  ;;  %v9212_v42 = vld [vmem:[#allocation112_spill] sm:$0xff] }
 0x432   :  { %v6104_v9 = vld.sshfl [vmem:[#allocation1 + $0x20] sm:$0xff pattern:$0x73625140] }
 0x433   :  { %1631 = vst [vmem:[#allocation1 + $0x20] ss:$4 sm:$0xff] %v5421_v36 }
 0x434   :  { %1632 = vst [vmem:[#allocation1 + $0x21] ss:$4 sm:$0xff] %v5450_v40 }
 0x435   :  { %1633 = vst [vmem:[#allocation1 + $0x22] ss:$4 sm:$0xff] %v5453_v19 }
 0x436   :  { %1634 = vst [vmem:[#allocation1 + $0x23] ss:$4 sm:$0xff] %v9206_v18  ;;  %v9209_v18 = vld [vmem:[#allocation127_spill] sm:$0xff] }
 0x437   :  { %v6111_v3 = vld.sshfl [vmem:[#allocation1] sm:$0xff pattern:$0x73625140] }
 0x438   :  { %1637 = vst [vmem:[#allocation1] ss:$4 sm:$0xff] %v5494_v37  ;;  %1386 = vmatmul.f32.gmra.mxu1 %v9209_v18  ;;  %v9210_v37 = vld [vmem:[#allocation8_spill] sm:$0xff]  ;;  %1530 = vmatmul.f32.gmra.mxu2 %v5917_v12 }
 0x439   :  { %1638 = vst [vmem:[#allocation1 + $0x1] ss:$4 sm:$0xff] %v9166_v4 }
 0x43a   :  { %1639 = vst [vmem:[#allocation1 + $0x2] ss:$4 sm:$0xff] %v9167_v41  ;;  %v9211_v41 = vld [vmem:[#allocation16_spill] sm:$0xff] }
 0x43b   :  { %1640 = vst [vmem:[#allocation1 + $0x3] ss:$4 sm:$0xff] %v9208_v45  ;;  %v4320_v45 = vld [vmem:[%s8720_s3 + $0x170] sm:$0xff] }
 0x43d   :  { %v6120_v20 = vld.sshfl [vmem:[#allocation1 + $0x20] sm:$0xff pattern:$0x73625140] }
 0x43e   :  { %1641 = vst [vmem:[#allocation1 + $0x20] ss:$4 sm:$0xff] %v5523_v23 }
 0x43f   :  { %1642 = vst [vmem:[#allocation1 + $0x21] ss:$4 sm:$0xff] %v9169_v5 }
 0x440   :  { %1643 = vst [vmem:[#allocation1 + $0x22] ss:$4 sm:$0xff] %v9170_v1  ;;  %1389 = vmatmul.f32.gmra.mxu1 %v5811_v24  ;;  %1533 = vmatmul.f32.gmra.mxu2 %v5923_v51  ;;  %v9213_v24 = vld [vmem:[#allocation120_spill] sm:$0xff]  ;;  %v4321_v51 = vld [vmem:[%s8720_s3 + $0x178] sm:$0xff] }
 0x441   :  { %1644 = vst [vmem:[#allocation1 + $0x23] ss:$4 sm:$0xff] %v9210_v37  ;;  %1693 = vmatpush.msrb.mxu3 %v4321_v51  ;;  %v9226_v37 = vld [vmem:[#allocation5_spill] sm:$0xff] }
 0x442   :  { %v6127_v49 = vld.sshfl [vmem:[#allocation1] sm:$0xff pattern:$0x73625140] }
 0x443   :  { %1647 = vst [vmem:[#allocation1] ss:$4 sm:$0xff] %v9172_v53  ;;  %1694 = vmatpush.msrb.mxu3 %v4320_v45  ;;  %v9215_v45 = vld [vmem:[#allocation131_spill] sm:$0xff] }
 0x444   :  { %1648 = vst [vmem:[#allocation1 + $0x1] ss:$4 sm:$0xff] %v9173_v30 }
 0x445   :  { %1649 = vst [vmem:[#allocation1 + $0x2] ss:$4 sm:$0xff] %v5621_v14 }
 0x446   :  { %1650 = vst [vmem:[#allocation1 + $0x3] ss:$4 sm:$0xff] %v9211_v41  ;;  %v9221_v41 = vld [vmem:[#allocation32_spill] sm:$0xff] }
 0x448   :  { %v6135_v4 = vld.sshfl [vmem:[#allocation1 + $0x20] sm:$0xff pattern:$0x73625140]  ;;  %1392 = vmatmul.f32.gmra.mxu1 %v5846_v8  ;;  %1536 = vmatmul.f32.gmra.mxu2 %v5929_v28  ;;  %v4319_v8 = vld [vmem:[%s8720_s3 + $0x168] sm:$0xff] }
 0x449   :  { %1651 = vst [vmem:[#allocation1 + $0x20] ss:$4 sm:$0xff] %v5635_v56  ;;  %v9214_v28 = vld [vmem:[#allocation132_spill] sm:$0xff]  ;;  %1695 = vmatpush.msrb.mxu3 %v4319_v8  ;;  %v4316_v8 = vld [vmem:[%s8720_s3 + $0x150] sm:$0xff] }
 0x44a   :  { %1652 = vst [vmem:[#allocation1 + $0x21] ss:$4 sm:$0xff] %v9176_v57 }
 0x44b   :  { %1653 = vst [vmem:[#allocation1 + $0x22] ss:$4 sm:$0xff] %v9177_v35 }
 0x44c   :  { %1654 = vst [vmem:[#allocation1 + $0x23] ss:$4 sm:$0xff] %v9212_v42  ;;  %v4312_v42 = vld [vmem:[%s8720_s3 + $0x130] sm:$0xff] }
 0x44d   :  { %v6142_v12 = vld.sshfl [vmem:[#allocation1] sm:$0xff pattern:$0x73625140] }
 0x44e   :  { %1657 = vst [vmem:[#allocation1] ss:$4 sm:$0xff] %v9179_v46 }
 0x44f   :  { %1658 = vst [vmem:[#allocation1 + $0x1] ss:$4 sm:$0xff] %v5659_v43 }
 0x450   :  { %1659 = vst [vmem:[#allocation1 + $0x2] ss:$4 sm:$0xff] %v9181_v48  ;;  %1395 = vmatmul.f32.gmra.mxu1 %v5875_v6  ;;  %1539 = vmatmul.f32.gmra.mxu2 %v5935_v55  ;;  %v4317_v6 = vld [vmem:[%s8720_s3 + $0x158] sm:$0xff]  ;;  %v4314_v55 = vld [vmem:[%s8720_s3 + $0x140] sm:$0xff] }
 0x451   :  { %1660 = vst [vmem:[#allocation1 + $0x3] ss:$4 sm:$0xff] %v9213_v24  ;;  %v4318_v24 = vld [vmem:[%s8720_s3 + $0x160] sm:$0xff] }
 0x452   :  { %1696 = vmatpush.msrb.mxu3 %v4318_v24  ;;  %v4315_v24 = vld [vmem:[%s8720_s3 + $0x148] sm:$0xff] }
 0x453   :  { %v6153_v18 = vld.sshfl [vmem:[#allocation1 + $0x20] sm:$0xff pattern:$0x73625140] }
 0x454   :  { %1661 = vst [vmem:[#allocation1 + $0x20] ss:$4 sm:$0xff] %v5712_v27  ;;  %1697 = vmatpush.msrb.mxu3 %v4317_v6  ;;  %v9216_v6 = vld [vmem:[#allocation145_spill] sm:$0xff] }
 0x455   :  { %1662 = vst [vmem:[#allocation1 + $0x21] ss:$4 sm:$0xff] %v5742_v52 }
 0x456   :  { %1663 = vst [vmem:[#allocation1 + $0x22] ss:$4 sm:$0xff] %v9184_v13  ;;  %1698 = vmatpush.msrb.mxu3 %v4316_v8 }
 0x457   :  { %1664 = vst [vmem:[#allocation1 + $0x23] ss:$4 sm:$0xff] %v9214_v28 }
 0x458   :  { %v6166_v51 = vld.sshfl [vmem:[#allocation1] sm:$0xff pattern:$0x73625140]  ;;  %1398 = vmatmul.f32.gmra.mxu1 %v5893_v22  ;;  %1699 = vmatpush.msrb.mxu3 %v4315_v24  ;;  %v4313_v22 = vld [vmem:[%s8720_s3 + $0x138] sm:$0xff]  ;;  %v9218_v24 = vld [vmem:[#allocation37_spill] sm:$0xff] }
 0x459   :  { %1667 = vst [vmem:[#allocation1] ss:$4 sm:$0xff] %v9186_v62 }
 0x45a   :  { %1668 = vst [vmem:[#allocation1 + $0x1] ss:$4 sm:$0xff] %v9187_v54  ;;  %1700 = vmatpush.msrb.mxu3 %v4314_v55  ;;  %v9219_v55 = vld [vmem:[#allocation30_spill] sm:$0xff] }
 0x45b   :  { %1669 = vst [vmem:[#allocation1 + $0x2] ss:$4 sm:$0xff] %v5797_v44 }
 0x45c   :  { %1670 = vst [vmem:[#allocation1 + $0x3] ss:$4 sm:$0xff] %v9215_v45  ;;  %v9217_v45 = vld [vmem:[#allocation31_spill] sm:$0xff]  ;;  %1701 = vmatpush.msrb.mxu3 %v4313_v22 }
 0x45d   :  { %1542 = vmatmul.f32.gmra.mxu2 %v9217_v45  ;;  %v4311_v45 = vld [vmem:[%s8720_s3 + $0x128] sm:$0xff]  ;;  %v4310_v22 = vld [vmem:[%s8720_s3 + $0x120] sm:$0xff] }
 0x45e   :  { %v6182_v28 = vld.sshfl [vmem:[#allocation1 + $0x20] sm:$0xff pattern:$0x73625140]  ;;  %1702 = vmatpush.msrb.mxu3 %v4312_v42  ;;  %v4309_v42 = vld [vmem:[%s8720_s3 + $0x118] sm:$0xff] }
 0x45f   :  { %1671 = vst [vmem:[#allocation1 + $0x20] ss:$4 sm:$0xff] %v5809_v61 }
 0x460   :  { %1672 = vst [vmem:[#allocation1 + $0x21] ss:$4 sm:$0xff] %v5836_v60  ;;  %1401 = vmatmul.f32.gmra.mxu1 %v9219_v55  ;;  %1703 = vmatpush.msrb.mxu3 %v4311_v45  ;;  %v4308_v45 = vld [vmem:[%s8720_s3 + $0x110] sm:$0xff] }
 0x461   :  { %1673 = vst [vmem:[#allocation1 + $0x22] ss:$4 sm:$0xff] %v5825_v26 }
 0x462   :  { %1674 = vst [vmem:[#allocation1 + $0x23] ss:$4 sm:$0xff] %v9216_v6  ;;  %1704 = vmatpush.msrb.mxu3 %v4310_v22  ;;  %v9220_v6 = vld [vmem:[#allocation44_spill] sm:$0xff] }
 0x463   :  { %v6195_v8 = vld.sshfl [vmem:[#allocation1] sm:$0xff pattern:$0x73625140] }
 0x464   :  { %1791 = vst [vmem:[#allocation1] ss:$4 sm:$0xff] %v9218_v24  ;;  %1705 = vmatpush.msrb.mxu3 %v4309_v42  ;;  %v9222_v22 = vld [vmem:[#allocation52_spill] sm:$0xff] }
 0x465   :  { %1793 = vst [vmem:[#allocation1 + $0x1] ss:$4 sm:$0xff] %v5197_v25  ;;  %1545 = vmatmul.f32.gmra.mxu2 %v9221_v41  ;;  %v4307_v41 = vld [vmem:[%s8720_s3 + $0x108] sm:$0xff]  ;;  %v4306_v42 = vld [vmem:[%s8720_s3 + $0x100] sm:$0xff] }
 0x466   :  { %1795 = vst [vmem:[#allocation1 + $0x2] ss:$4 sm:$0xff] %v5200_v11  ;;  %1706 = vmatpush.msrb.mxu3 %v4308_v45 }
 0x467   :  { %1797 = vst [vmem:[#allocation1 + $0x3] ss:$4 sm:$0xff] %v5248_v32 }
 0x468   :  { %1707 = vmatpush.msrb.mxu3 %v4307_v41  ;;  %v9225_v41 = vld [vmem:[#allocation13_spill] sm:$0xff] }
 0x469   :  { %v6215_v24 = vld.sshfl [vmem:[#allocation1 + $0x20] sm:$0xff pattern:$0x73625140]  ;;  %v790_v58 = vmax.f32 %v9226_v37, %v9225_v41 }
 0x46a   :  { %1799 = vst [vmem:[#allocation1 + $0x20] ss:$4 sm:$0xff] %v9220_v6  ;;  %1708 = vmatpush.msrb.mxu3 %v4306_v42  ;;  %v9223_v6 = vld [vmem:[#allocation33_spill] sm:$0xff]  ;;  %v9227_v42 = vld [vmem:[#allocation64_spill] sm:$0xff] }
 0x46b   :  { %1801 = vst [vmem:[#allocation1 + $0x21] ss:$4 sm:$0xff] %v5261_v39  ;;  %1709 = vmatmul.f32.vlgmr.msrb.gmra.mxu3 %v6028_v63  ;;  %v9229_v63 = vld [vmem:[#allocation54_spill] sm:$0xff] }
 0x46c   :  { %1803 = vst [vmem:[#allocation1 + $0x22] ss:$4 sm:$0xff] %v5153_v29 }
 0x46d   :  { %1805 = vst [vmem:[#allocation1 + $0x23] ss:$4 sm:$0xff] %v5177_v38  ;;  %1548 = vmatmul.f32.gmra.mxu2 %v9223_v6  ;;  %v9228_v6 = vld [vmem:[#allocation21_spill] sm:$0xff] }
 0x46e   :  { %v6228_v55 = vld.sshfl [vmem:[#allocation1] sm:$0xff pattern:$0x73625140] }
 0x46f   :  { %1808 = vst [vmem:[#allocation1] ss:$4 sm:$0xff] %v9222_v22  ;;  %v9224_v22 = vld [vmem:[#allocation45_spill] sm:$0xff] }
 0x470   :  { %1809 = vst [vmem:[#allocation1 + $0x1] ss:$4 sm:$0xff] %v5214_v15 }
 0x471   :  { %1810 = vst [vmem:[#allocation1 + $0x2] ss:$4 sm:$0xff] %v5251_v21 }
 0x472   :  { %1811 = vst [vmem:[#allocation1 + $0x3] ss:$4 sm:$0xff] %v5287_v17  ;;  %v791_v17 = vmax.f32 %v790_v58, %v9228_v6  ;;  %v6267_v58 = vld [vmem:[%s8719_s2] ss:$0 sm:$0xff] }
 0x473   :  { %1712 = vmatmul.f32.gmra.mxu3 %v6044_v10  ;;  %v9232_v10 = vld [vmem:[#allocation81_spill] sm:$0xff] }
 0x474   :  { %v6242_v45 = vld.sshfl [vmem:[#allocation1 + $0x20] sm:$0xff pattern:$0x73625140] }
 0x475   :  { %1812 = vst [vmem:[#allocation1 + $0x20] ss:$4 sm:$0xff] %v9224_v22  ;;  %1551 = vmatmul.f32.gmra.mxu2 %v9229_v63  ;;  %v9230_v22 = vld [vmem:[#allocation38_spill] sm:$0xff] }
 0x476   :  { %1813 = vst [vmem:[#allocation1 + $0x21] ss:$4 sm:$0xff] %v5304_v7  ;;  %v792_v37 = vmax.f32 %v791_v17, %v9230_v22  ;;  %v9233_v22 = vld [vmem:[#allocation84_spill] sm:$0xff] }
 0x477   :  { %1814 = vst [vmem:[#allocation1 + $0x22] ss:$4 sm:$0xff] %v9163_v0 }
 0x478   :  { %1815 = vst [vmem:[#allocation1 + $0x23] ss:$4 sm:$0xff] %v5341_v59  ;;  %v9231_v59 = vld [vmem:[#allocation72_spill] sm:$0xff]  ;;  %v849_v6 = vadd.f32 %v6267_v58, %v792_v37 }
 0x479   :  { %v6250_v21 = vld.sshfl [vmem:[#allocation1] sm:$0xff pattern:$0x73625140] }
 0x47a   :  { %1818 = vst [vmem:[#allocation1] ss:$4 sm:$0xff] %v9227_v42  ;;  %v6278_v63 = vmax.f32 %v849_v6, 0.0 }
 0x47b   :  { %1819 = vst [vmem:[#allocation1 + $0x1] ss:$4 sm:$0xff] %v5353_v33  ;;  %1715 = vmatmul.f32.gmra.mxu3 %v6057_v50  ;;  %v9234_v50 = vld [vmem:[#allocation89_spill] sm:$0xff] }
 0x47c   :  { %1820 = vst [vmem:[#allocation1 + $0x2] ss:$4 sm:$0xff] %v5377_v16  ;;  %v6283_v37 = vrot.slane %v6278_v63, 2  ;;  %v6290_v42 = vrot.slane %v6278_v63, 4  ;;  %v6294_v6 = vrot.slane %v6278_v63, 6 }
 0x47d   :  { %1821 = vst [vmem:[#allocation1 + $0x3] ss:$4 sm:$0xff] %v5364_v34  ;;  %1554 = vmatmul.f32.gmra.mxu2 %v9232_v10 }
 0x47f   :  { %v6260_v41 = vld.sshfl [vmem:[#allocation1 + $0x20] sm:$0xff pattern:$0x73625140] }
 0x480   :  { %1822 = vst [vmem:[#allocation1 + $0x20] ss:$4 sm:$0xff] %v9231_v59  ;;  %v9235_v59 = vld [vmem:[#allocation48_spill] sm:$0xff] }
 0x481   :  { %1823 = vst [vmem:[#allocation1 + $0x21] ss:$4 sm:$0xff] %v5405_v31 }
 0x482   :  { %1824 = vst [vmem:[#allocation1 + $0x22] ss:$4 sm:$0xff] %v5385_v47 }
 0x483   :  { %1825 = vst [vmem:[#allocation1 + $0x23] ss:$4 sm:$0xff] %v5419_v2  ;;  %1718 = vmatmul.f32.gmra.mxu3 %v9235_v59  ;;  %v9237_v59 = vld [vmem:[#allocation93_spill] sm:$0xff] }
 0x484   :  { %v6274_v17 = vld.sshfl [vmem:[#allocation1] sm:$0xff pattern:$0x73625140] }
 0x485   :  { %1828 = vst [vmem:[#allocation1] ss:$4 sm:$0xff] %v9233_v22  ;;  %1557 = vmatmul.f32.gmra.mxu2 %v9234_v50  ;;  %v9238_v50 = vld [vmem:[#allocation104_spill] sm:$0xff] }
 0x486   :  { %1829 = vst [vmem:[#allocation1 + $0x1] ss:$4 sm:$0xff] %v5421_v36  ;;  %v4336_v36 = vld [vmem:[%s8720_s3 + $0x1f0] sm:$0xff] }
 0x487   :  { %1830 = vst [vmem:[#allocation1 + $0x2] ss:$4 sm:$0xff] %v5450_v40  ;;  %v4337_v40 = vld [vmem:[%s8720_s3 + $0x1f8] sm:$0xff] }
 0x488   :  { %1831 = vst [vmem:[#allocation1 + $0x3] ss:$4 sm:$0xff] %v5453_v19  ;;  %v9236_v19 = vld [vmem:[#allocation99_spill] sm:$0xff]  ;;  %1894 = vmatpush.msra.mxu1 %v4337_v40 }
 0x489   :  { %v4334_v40 = vld [vmem:[%s8720_s3 + $0x1e0] sm:$0xff] }
 0x48a   :  { %v6285_v10 = vld.sshfl [vmem:[#allocation1 + $0x20] sm:$0xff pattern:$0x73625140]  ;;  %1895 = vmatpush.msra.mxu1 %v4336_v36 }
 0x48b   :  { %1832 = vst [vmem:[#allocation1 + $0x20] ss:$4 sm:$0xff] %v6278_v63  ;;  %1721 = vmatmul.f32.gmra.mxu3 %v9238_v50  ;;  %v9240_v36 = vld [vmem:[#allocation107_spill] sm:$0xff] }
 0x48c   :  { %1833 = vst [vmem:[#allocation1 + $0x21] ss:$4 sm:$0xff] %v6283_v37 }
 0x48d   :  { %1834 = vst [vmem:[#allocation1 + $0x22] ss:$4 sm:$0xff] %v6290_v42  ;;  %1560 = vmatmul.f32.gmra.mxu2 %v9237_v59  ;;  %v4335_v59 = vld [vmem:[%s8720_s3 + $0x1e8] sm:$0xff] }
 0x48e   :  { %1835 = vst [vmem:[#allocation1 + $0x23] ss:$4 sm:$0xff] %v6294_v6  ;;  %1896 = vmatpush.msra.mxu1 %v4335_v59  ;;  %v4333_v59 = vld [vmem:[%s8720_s3 + $0x1d8] sm:$0xff] }
 0x48f   :  { %v6299_v22 = vld.sshfl [vmem:[#allocation1] sm:$0xff pattern:$0x73625140] }
 0x490   :  { %1838 = vst [vmem:[#allocation1] ss:$4 sm:$0xff] %v9236_v19  ;;  %1897 = vmatpush.msra.mxu1 %v4334_v40  ;;  %v4330_v40 = vld [vmem:[%s8720_s3 + $0x1c0] sm:$0xff] }
 0x491   :  { %1839 = vst [vmem:[#allocation1 + $0x1] ss:$4 sm:$0xff] %v5523_v23  ;;  %v9239_v23 = vld [vmem:[#allocation94_spill] sm:$0xff] }
 0x492   :  { %1840 = vst [vmem:[#allocation1 + $0x2] ss:$4 sm:$0xff] %v9169_v5  ;;  %1898 = vmatpush.msra.mxu1 %v4333_v59  ;;  %v9242_v59 = vld [vmem:[#allocation26_spill] sm:$0xff] }
 0x493   :  { %1841 = vst [vmem:[#allocation1 + $0x3] ss:$4 sm:$0xff] %v9170_v1  ;;  %1724 = vmatmul.f32.gmra.mxu3 %v6104_v9 }
 0x495   :  { %v6313_v19 = vld.sshfl [vmem:[#allocation1 + $0x20] sm:$0xff pattern:$0x73625140] }
 0x496   :  { %1842 = vst [vmem:[#allocation1 + $0x20] ss:$4 sm:$0xff] %v9239_v23  ;;  %v9241_v23 = vld [vmem:[#allocation100_spill] sm:$0xff] }
 0x497   :  { %1843 = vst [vmem:[#allocation1 + $0x21] ss:$4 sm:$0xff] %v9172_v53  ;;  %1563 = vmatmul.f32.gmra.mxu2 %v9241_v23  ;;  %v4331_v23 = vld [vmem:[%s8720_s3 + $0x1c8] sm:$0xff] }
 0x498   :  { %1844 = vst [vmem:[#allocation1 + $0x22] ss:$4 sm:$0xff] %v9173_v30 }
 0x499   :  { %1845 = vst [vmem:[#allocation1 + $0x23] ss:$4 sm:$0xff] %v5621_v14  ;;  %v4332_v14 = vld [vmem:[%s8720_s3 + $0x1d0] sm:$0xff] }
 0x49a   :  { %v6325_v50 = vld.sshfl [vmem:[#allocation1] sm:$0xff pattern:$0x73625140]  ;;  %1899 = vmatpush.msra.mxu1 %v4332_v14  ;;  %v4329_v14 = vld [vmem:[%s8720_s3 + $0x1b8] sm:$0xff] }
 0x49b   :  { %1848 = vst [vmem:[#allocation1] ss:$4 sm:$0xff] %v9240_v36  ;;  %v9243_v36 = vld [vmem:[#allocation101_spill] sm:$0xff]  ;;  %1727 = vmatmul.f32.gmra.mxu3 %v6111_v3  ;;  %v9246_v3 = vld [vmem:[#allocation11_spill] sm:$0xff] }
 0x49c   :  { %1849 = vst [vmem:[#allocation1 + $0x1] ss:$4 sm:$0xff] %v5635_v56  ;;  %1900 = vmatpush.msra.mxu1 %v4331_v23 }
 0x49d   :  { %1850 = vst [vmem:[#allocation1 + $0x2] ss:$4 sm:$0xff] %v9176_v57 }
 0x49e   :  { %1851 = vst [vmem:[#allocation1 + $0x3] ss:$4 sm:$0xff] %v9177_v35  ;;  %1901 = vmatpush.msra.mxu1 %v4330_v40  ;;  %v4328_v40 = vld [vmem:[%s8720_s3 + $0x1b0] sm:$0xff] }
 0x49f   :  { %1566 = vmatmul.f32.gmra.mxu2 %v9243_v36  ;;  %v9245_v36 = vld [vmem:[#allocation19_spill] sm:$0xff] }
 0x4a0   :  { %v6342_v9 = vld.sshfl [vmem:[#allocation1 + $0x20] sm:$0xff pattern:$0x73625140]  ;;  %1902 = vmatpush.msra.mxu1 %v4329_v14  ;;  %v4327_v14 = vld [vmem:[%s8720_s3 + $0x1a8] sm:$0xff] }
 0x4a1   :  { %1852 = vst [vmem:[#allocation1 + $0x20] ss:$4 sm:$0xff] %v9242_v59  ;;  %v9244_v59 = vld [vmem:[#allocation123_spill] sm:$0xff] }
 0x4a2   :  { %1853 = vst [vmem:[#allocation1 + $0x21] ss:$4 sm:$0xff] %v9179_v46  ;;  %1903 = vmatpush.msra.mxu1 %v4328_v40  ;;  %v829_v46 = vmax.f32 %v9246_v3, %v9245_v36  ;;  %v4326_v40 = vld [vmem:[%s8720_s3 + $0x1a0] sm:$0xff]  ;;  %v4325_v3 = vld [vmem:[%s8720_s3 + $0x198] sm:$0xff] }
 0x4a3   :  { %1854 = vst [vmem:[#allocation1 + $0x22] ss:$4 sm:$0xff] %v5659_v43  ;;  %v9248_v36 = vld [vmem:[#allocation15_spill] sm:$0xff]  ;;  %1730 = vmatmul.f32.gmra.mxu3 %v6120_v20  ;;  %v4323_v20 = vld [vmem:[%s8720_s3 + $0x188] sm:$0xff] }
 0x4a4   :  { %1855 = vst [vmem:[#allocation1 + $0x23] ss:$4 sm:$0xff] %v9181_v48  ;;  %1904 = vmatpush.msra.mxu1 %v4327_v14  ;;  %v9247_v48 = vld [vmem:[#allocation28_spill] sm:$0xff]  ;;  %v4324_v14 = vld [vmem:[%s8720_s3 + $0x190] sm:$0xff] }
 0x4a5   :  { %v6356_v23 = vld.sshfl [vmem:[#allocation1] sm:$0xff pattern:$0x73625140]  ;;  %v830_v43 = vmax.f32 %v829_v46, %v9247_v48  ;;  %v9249_v48 = vld [vmem:[#allocation117_spill] sm:$0xff] }
 0x4a6   :  { %1858 = vst [vmem:[#allocation1] ss:$4 sm:$0xff] %v9244_v59  ;;  %v754_v59 = vpop.f32.mrf.mxu3  ;;  %1905 = vmatpush.msra.mxu1 %v4326_v40 }
 0x4a7   :  { %1859 = vst [vmem:[#allocation1 + $0x1] ss:$4 sm:$0xff] %v5712_v27  ;;  %1569 = vmatmul.f32.gmra.mxu2 %v9248_v36  ;;  %v831_v46 = vmax.f32 %v830_v43, %v754_v59  ;;  %v9250_v59 = vld [vmem:[#allocation140_spill] sm:$0xff] }
 0x4a8   :  { %1860 = vst [vmem:[#allocation1 + $0x2] ss:$4 sm:$0xff] %v5742_v52  ;;  %1906 = vmatpush.msra.mxu1 %v4325_v3  ;;  %v4322_v36 = vld [vmem:[%s8720_s3 + $0x180] sm:$0xff] }
 0x4a9   :  { %1861 = vst [vmem:[#allocation1 + $0x3] ss:$4 sm:$0xff] %v9184_v13  ;;  %v862_v43 = vadd.f32 %v6267_v58, %v831_v46  ;;  %v6406_v46 = vrot.slane %v5825_v26, 4 }
 0x4aa   :  { %1907 = vmatpush.msra.mxu1 %v4324_v14  ;;  %v6409_v14 = vrot.slane %v5825_v26, 6 }
 0x4ab   :  { %v6379_v52 = vld.sshfl [vmem:[#allocation1 + $0x20] sm:$0xff pattern:$0x73625140]  ;;  %1733 = vmatmul.f32.gmra.mxu3 %v6127_v49  ;;  %v6403_v3 = vmax.f32 %v862_v43, 0.0  ;;  %v6418_v49 = vpop.f32.mrf.mxu1 }
 0x4ac   :  { %1862 = vst [vmem:[#allocation1 + $0x20] ss:$4 sm:$0xff] %v9249_v48  ;;  %1908 = vmatpush.msra.mxu1 %v4323_v20  ;;  %v9254_v43 = vld [vmem:[#allocation40_spill] sm:$0xff]  ;;  %v9256_v48 = vld [vmem:[#allocation50_spill] sm:$0xff] }
 0x4ad   :  { %1863 = vst [vmem:[#allocation1 + $0x21] ss:$4 sm:$0xff] %v9186_v62 }
 0x4ae   :  { %1864 = vst [vmem:[#allocation1 + $0x22] ss:$4 sm:$0xff] %v9187_v54  ;;  %1909 = vmatpush.msra.mxu1 %v4322_v36  ;;  %v6415_v36 = vrot.slane %v6403_v3, 2 }
 0x4af   :  { %1865 = vst [vmem:[#allocation1 + $0x23] ss:$4 sm:$0xff] %v5797_v44  ;;  %1910 = vmatmul.f32.vlgmr.msra.gmra.mxu1 %v6228_v55  ;;  %v9266_v44 = vld [vmem:[#allocation66_spill] sm:$0xff] }
 0x4b0   :  { %v6391_v40 = vld.sshfl [vmem:[#allocation1] sm:$0xff pattern:$0x73625140]  ;;  %9251 = vst [vmem:[#allocation103_spill] sm:$0xff] %v6409_v14 }
 0x4b1   :  { %1868 = vst [vmem:[#allocation1] ss:$4 sm:$0xff] %v9250_v59  ;;  %v9255_v59 = vld [vmem:[#allocation41_spill] sm:$0xff] }
 0x4b2   :  { %1869 = vst [vmem:[#allocation1 + $0x1] ss:$4 sm:$0xff] %v5809_v61  ;;  %v9259_v61 = vld [vmem:[#allocation55_spill] sm:$0xff] }
 0x4b3   :  { %1870 = vst [vmem:[#allocation1 + $0x2] ss:$4 sm:$0xff] %v5836_v60  ;;  %1736 = vmatmul.f32.gmra.mxu3 %v6135_v4  ;;  %v6430_v60 = vpop.f32.mrf.mxu1  ;;  %v9260_v4 = vld [vmem:[#allocation58_spill] sm:$0xff] }
 0x4b4   :  { %1871 = vst [vmem:[#allocation1 + $0x3] ss:$4 sm:$0xff] %v5825_v26  ;;  %v9257_v26 = vld [vmem:[#allocation53_spill] sm:$0xff] }
 0x4b5   :  { %9252 = vst [vmem:[#allocation63_spill] sm:$0xff] %v6415_v36 }
 0x4b6   :  { %v6411_v20 = vld.sshfl [vmem:[#allocation1 + $0x20] sm:$0xff pattern:$0x73625140]  ;;  %9253 = vst [vmem:[#allocation67_spill] sm:$0xff] %v6418_v49 }
 0x4b7   :  { %1872 = vst [vmem:[#allocation1 + $0x20] ss:$4 sm:$0xff] %v6406_v46  ;;  %1913 = vmatmul.f32.gmra.mxu1 %v6242_v45  ;;  %v9261_v45 = vld [vmem:[#allocation46_spill] sm:$0xff] }
 0x4b8   :  { %1873 = vst [vmem:[#allocation1 + $0x21] ss:$4 sm:$0xff] %v6409_v14 }
 0x4b9   :  { %1874 = vst [vmem:[#allocation1 + $0x22] ss:$4 sm:$0xff] %v6403_v3 }
 0x4ba   :  { %1875 = vst [vmem:[#allocation1 + $0x23] ss:$4 sm:$0xff] %v6415_v36 }
 0x4bb   :  { %v6422_v55 = vld.sshfl [vmem:[#allocation1] sm:$0xff pattern:$0x73625140]  ;;  %9258 = vst [vmem:[#allocation80_spill] sm:$0xff] %v6430_v60  ;;  %1739 = vmatmul.f32.gmra.mxu3 %v6142_v12  ;;  %v9265_v60 = vld [vmem:[#allocation62_spill] sm:$0xff]  ;;  %v9268_v12 = vld [vmem:[#allocation65_spill] sm:$0xff] }
 0x4bc   :  { %2018 = vst [vmem:[#allocation1] ss:$4 sm:$0xff] %v9254_v43  ;;  %v9262_v43 = vld [vmem:[#allocation47_spill] sm:$0xff] }
 0x4bd   :  { %2020 = vst [vmem:[#allocation1 + $0x1] ss:$4 sm:$0xff] %v9255_v59 }
 0x4be   :  { %2022 = vst [vmem:[#allocation1 + $0x2] ss:$4 sm:$0xff] %v9256_v48  ;;  %v9263_v48 = vld [vmem:[#allocation60_spill] sm:$0xff] }
 0x4bf   :  { %2024 = vst [vmem:[#allocation1 + $0x3] ss:$4 sm:$0xff] %v9257_v26  ;;  %1916 = vmatmul.f32.gmra.mxu1 %v6250_v21  ;;  %v9264_v26 = vld [vmem:[#allocation61_spill] sm:$0xff] }
 0x4c1   :  { %v6432_v49 = vld.sshfl [vmem:[#allocation1 + $0x20] sm:$0xff pattern:$0x73625140] }
 0x4c2   :  { %2026 = vst [vmem:[#allocation1 + $0x20] ss:$4 sm:$0xff] %v9259_v61  ;;  %v6446_v61 = vpop.f32.mrf.mxu1 }
 0x4c3   :  { %2028 = vst [vmem:[#allocation1 + $0x21] ss:$4 sm:$0xff] %v9260_v4  ;;  %1742 = vmatmul.f32.gmra.mxu3 %v6153_v18  ;;  %v9275_v18 = vld [vmem:[#allocation76_spill] sm:$0xff] }
 0x4c4   :  { %2030 = vst [vmem:[#allocation1 + $0x22] ss:$4 sm:$0xff] %v9261_v45  ;;  %v9270_v45 = vld [vmem:[#allocation14_spill] sm:$0xff] }
 0x4c5   :  { %2032 = vst [vmem:[#allocation1 + $0x23] ss:$4 sm:$0xff] %v9262_v43  ;;  %v9269_v43 = vld [vmem:[#allocation69_spill] sm:$0xff] }
 0x4c6   :  { %v6440_v59 = vld.sshfl [vmem:[#allocation1] sm:$0xff pattern:$0x73625140]  ;;  %9267 = vst [vmem:[#allocation36_spill] sm:$0xff] %v6446_v61  ;;  %v9274_v61 = vld [vmem:[#allocation22_spill] sm:$0xff] }
 0x4c7   :  { %2035 = vst [vmem:[#allocation1] ss:$4 sm:$0xff] %v9263_v48  ;;  %1919 = vmatmul.f32.gmra.mxu1 %v6260_v41  ;;  %v9271_v48 = vld [vmem:[#allocation6_spill] sm:$0xff] }
 0x4c8   :  { %2036 = vst [vmem:[#allocation1 + $0x1] ss:$4 sm:$0xff] %v9264_v26  ;;  %v793_v4 = vmax.f32 %v9271_v48, %v9270_v45  ;;  %v9272_v26 = vld [vmem:[#allocation71_spill] sm:$0xff]  ;;  %v9276_v41 = vld [vmem:[#allocation78_spill] sm:$0xff] }
 0x4c9   :  { %2037 = vst [vmem:[#allocation1 + $0x2] ss:$4 sm:$0xff] %v9265_v60  ;;  %v9273_v60 = vld [vmem:[#allocation73_spill] sm:$0xff]  ;;  %v4355_v45 = vld [vmem:[%s8720_s3 + $0x278] sm:$0xff] }
 0x4ca   :  { %2038 = vst [vmem:[#allocation1 + $0x3] ss:$4 sm:$0xff] %v9266_v44  ;;  %v794_v54 = vmax.f32 %v793_v4, %v9274_v61  ;;  %v9277_v48 = vld [vmem:[#allocation79_spill] sm:$0xff]  ;;  %2121 = vmatpush.msra.mxu2 %v4355_v45  ;;  %v4354_v61 = vld [vmem:[%s8720_s3 + $0x270] sm:$0xff] }
 0x4cb   :  { %1745 = vmatmul.f32.gmra.mxu3 %v6166_v51  ;;  %v9280_v4 = vld [vmem:[#allocation49_spill] sm:$0xff] }
 0x4cc   :  { %v6450_v21 = vld.sshfl [vmem:[#allocation1 + $0x20] sm:$0xff pattern:$0x73625140]  ;;  %2122 = vmatpush.msra.mxu2 %v4354_v61  ;;  %v4353_v51 = vld [vmem:[%s8720_s3 + $0x268] sm:$0xff]  ;;  %v4351_v61 = vld [vmem:[%s8720_s3 + $0x258] sm:$0xff] }
 0x4cd   :  { %2039 = vst [vmem:[#allocation1 + $0x20] ss:$4 sm:$0xff] %v9268_v12  ;;  %v9282_v45 = vld [vmem:[#allocation85_spill] sm:$0xff] }
 0x4ce   :  { %2040 = vst [vmem:[#allocation1 + $0x21] ss:$4 sm:$0xff] %v9269_v43  ;;  %2123 = vmatpush.msra.mxu2 %v4353_v51  ;;  %v9285_v51 = vld [vmem:[#allocation92_spill] sm:$0xff] }
 0x4cf   :  { %2041 = vst [vmem:[#allocation1 + $0x22] ss:$4 sm:$0xff] %v9272_v26  ;;  %1922 = vmatmul.f32.gmra.mxu1 %v6274_v17  ;;  %v6470_v26 = vpop.f32.mrf.mxu1 }
 0x4d0   :  { %2042 = vst [vmem:[#allocation1 + $0x23] ss:$4 sm:$0xff] %v9273_v60  ;;  %v9278_v60 = vld [vmem:[#allocation83_spill] sm:$0xff] }
 0x4d1   :  { %v6458_v44 = vld.sshfl [vmem:[#allocation1] sm:$0xff pattern:$0x73625140]  ;;  %9279 = vst [vmem:[#allocation87_spill] sm:$0xff] %v6470_v26 }
 0x4d2   :  { %2045 = vst [vmem:[#allocation1] ss:$4 sm:$0xff] %v9275_v18  ;;  %v6481_v18 = vpop.f32.mrf.mxu2  ;;  %v4352_v26 = vld [vmem:[%s8720_s3 + $0x260] sm:$0xff] }
 0x4d3   :  { %2046 = vst [vmem:[#allocation1 + $0x1] ss:$4 sm:$0xff] %v9276_v41  ;;  %v795_v41 = vmax.f32 %v794_v54, %v9280_v4  ;;  %2124 = vmatpush.msra.mxu2 %v4352_v26  ;;  %v9284_v54 = vld [vmem:[#allocation91_spill] sm:$0xff]  ;;  %1748 = vmatmul.f32.gmra.mxu3 %v6182_v28  ;;  %v1977_v4 = vrot.slane %v6283_v37, 7  ;;  %v4350_v28 = vld [vmem:[%s8720_s3 + $0x250] sm:$0xff] }
 0x4d4   :  { %2047 = vst [vmem:[#allocation1 + $0x2] ss:$4 sm:$0xff] %v9277_v48  ;;  %v9283_v48 = vld [vmem:[#allocation86_spill] sm:$0xff]  ;;  %v9286_v26 = vld [vmem:[#allocation95_spill] sm:$0xff] }
 0x4d5   :  { %2048 = vst [vmem:[#allocation1 + $0x3] ss:$4 sm:$0xff] %v9278_v60  ;;  %v850_v60 = vadd.f32 %v6267_v58, %v795_v41  ;;  %2125 = vmatpush.msra.mxu2 %v4351_v61  ;;  %v1980_v58 = vrot.slane %v6290_v42, 7  ;;  %v9287_v41 = vld [vmem:[#allocation96_spill] sm:$0xff] }
 0x4d6   :  { %9281 = vst [vmem:[#allocation98_spill] sm:$0xff] %v6481_v18  ;;  %v4349_v61 = vld [vmem:[%s8720_s3 + $0x248] sm:$0xff] }
 0x4d7   :  { %v6479_v17 = vld.sshfl [vmem:[#allocation1 + $0x20] sm:$0xff pattern:$0x73625140]  ;;  %1925 = vmatmul.f32.gmra.mxu1 %v6285_v10  ;;  %v6504_v10 = vmax.f32 %v850_v60, 0.0  ;;  %2126 = vmatpush.msra.mxu2 %v4350_v28  ;;  %v4338_v60 = vrot.slane %v6278_v63, 9  ;;  %v1982_v43 = vrot.slane %v1980_v58, 2 }
 0x4d8   :  { %2049 = vst [vmem:[#allocation1 + $0x20] ss:$4 sm:$0xff] %v9282_v45  ;;  %v9290_v45 = vld [vmem:[#allocation23_spill] sm:$0xff] }
 0x4d9   :  { %2050 = vst [vmem:[#allocation1 + $0x21] ss:$4 sm:$0xff] %v9283_v48  ;;  %v6508_v48 = vpop.f32.mrf.mxu1  ;;  %2127 = vmatpush.msra.mxu2 %v4349_v61  ;;  %v4348_v28 = vld [vmem:[%s8720_s3 + $0x240] sm:$0xff]  ;;  %v6524_v12 = vsel %vm5171_vm8, %v4338_v60, %v1977_v4  ;;  %v4347_v61 = vld [vmem:[%s8720_s3 + $0x238] sm:$0xff] }
 0x4da   :  { %2051 = vst [vmem:[#allocation1 + $0x22] ss:$4 sm:$0xff] %v9284_v54  ;;  %v9288_v54 = vld [vmem:[#allocation97_spill] sm:$0xff] }
 0x4db   :  { %2052 = vst [vmem:[#allocation1 + $0x23] ss:$4 sm:$0xff] %v9285_v51  ;;  %v1979_v51 = vrot.slane %v1977_v4, 2  ;;  %2128 = vmatpush.msra.mxu2 %v4348_v28  ;;  %1751 = vmatmul.f32.gmra.mxu3 %v6195_v8  ;;  %v4346_v8 = vld [vmem:[%s8720_s3 + $0x230] sm:$0xff] }
 0x4dc   :  { %v6497_v18 = vld.sshfl [vmem:[#allocation1] sm:$0xff pattern:$0x73625140]  ;;  %9289 = vst [vmem:[#allocation7_spill] sm:$0xff] %v6508_v48  ;;  %v6520_v48 = vpop.f32.mrf.mxu2  ;;  %v9299_v28 = vld [vmem:[#allocation106_spill] sm:$0xff] }
 0x4dd   :  { %2055 = vst [vmem:[#allocation1] ss:$4 sm:$0xff] %v9286_v26  ;;  %v1983_v26 = vrot.slane %v6294_v6, 7  ;;  %2129 = vmatpush.msra.mxu2 %v4347_v61  ;;  %v4343_v61 = vld [vmem:[%s8720_s3 + $0x218] sm:$0xff] }
 0x4de   :  { %2056 = vst [vmem:[#allocation1 + $0x1] ss:$4 sm:$0xff] %v9287_v41 }
 0x4df   :  { %2057 = vst [vmem:[#allocation1 + $0x2] ss:$4 sm:$0xff] %v9288_v54  ;;  %v1986_v54 = vrot.slane %v6504_v10, 7  ;;  %1928 = vmatmul.f32.gmra.mxu1 %v6299_v22  ;;  %v6540_v4 = vsel %vm5171_vm8, %v1982_v43, %v1983_v26  ;;  %2130 = vmatpush.msra.mxu2 %v4346_v8  ;;  %v4345_v43 = vld [vmem:[%s8720_s3 + $0x228] sm:$0xff] }
 0x4e0   :  { %2058 = vst [vmem:[#allocation1 + $0x3] ss:$4 sm:$0xff] %v9290_v45  ;;  %v6535_v45 = vsel %vm5171_vm8, %v1979_v51, %v1980_v58  ;;  %v9295_v58 = vld [vmem:[#allocation24_spill] sm:$0xff] }
 0x4e1   :  { %9291 = vst [vmem:[#allocation17_spill] sm:$0xff] %v6520_v48  ;;  %v1985_v48 = vrot.slane %v1983_v26, 2  ;;  %2131 = vmatpush.msra.mxu2 %v4345_v43  ;;  %v9296_v26 = vld [vmem:[#allocation9_spill] sm:$0xff]  ;;  %v6559_v60 = vpop.f32.mrf.mxu1 }
 0x4e2   :  { %v6526_v62 = vld.sshfl [vmem:[#allocation1 + $0x20] sm:$0xff pattern:$0x73625140]  ;;  %9293 = vst [vmem:[#allocation110_spill] sm:$0xff] %v6540_v4  ;;  %v4342_v43 = vld [vmem:[%s8720_s3 + $0x210] sm:$0xff] }
 0x4e3   :  { %2059 = vst [vmem:[#allocation1 + $0x20] ss:$4 sm:$0xff] %v6524_v12  ;;  %v6548_v22 = vsel %vm5171_vm8, %v1985_v48, %v1986_v54  ;;  %v4344_v48 = vld [vmem:[%s8720_s3 + $0x220] sm:$0xff]  ;;  %v9298_v54 = vld [vmem:[#allocation25_spill] sm:$0xff]  ;;  %1754 = vmatmul.f32.gmra.mxu3 %v6215_v24 }
 0x4e4   :  { %2060 = vst [vmem:[#allocation1 + $0x21] ss:$4 sm:$0xff] %v6535_v45  ;;  %2132 = vmatpush.msra.mxu2 %v4344_v48  ;;  %v6571_v8 = vpop.f32.mrf.mxu2  ;;  %v4341_v24 = vld [vmem:[%s8720_s3 + $0x208] sm:$0xff]  ;;  %v9303_v48 = vld [vmem:[#allocation111_spill] sm:$0xff] }
 0x4e5   :  { %9294 = vst [vmem:[#allocation118_spill] sm:$0xff] %v6548_v22 }
 0x4e6   :  { %2061 = vst [vmem:[#allocation1 + $0x22] ss:$4 sm:$0xff] %v6540_v4  ;;  %2133 = vmatpush.msra.mxu2 %v4343_v61 }
 0x4e7   :  { %2062 = vst [vmem:[#allocation1 + $0x23] ss:$4 sm:$0xff] %v6548_v22  ;;  %v6552_v51 = vld.sshfl [vmem:[#allocation1] sm:$0xff pattern:$0x73625140]  ;;  %1931 = vmatmul.f32.gmra.mxu1 %v6313_v19  ;;  %v9302_v19 = vld [vmem:[#allocation109_spill] sm:$0xff] }
 0x4e8   :  { %2065 = vst [vmem:[#allocation1] ss:$4 sm:$0xff] %v9295_v58  ;;  %2134 = vmatpush.msra.mxu2 %v4342_v43  ;;  %v9305_v43 = vld [vmem:[#allocation18_spill] sm:$0xff] }
 0x4e9   :  { %2066 = vst [vmem:[#allocation1 + $0x1] ss:$4 sm:$0xff] %v9296_v26  ;;  %v9301_v26 = vld [vmem:[#allocation108_spill] sm:$0xff] }
 0x4ea   :  { %9297 = vst [vmem:[#allocation127_spill] sm:$0xff] %v6559_v60  ;;  %2135 = vmatpush.msra.mxu2 %v4341_v24  ;;  %v6591_v60 = vpop.f32.mrf.mxu1  ;;  %v9307_v24 = vld [vmem:[#allocation10_spill] sm:$0xff] }
 0x4eb   :  { %2067 = vst [vmem:[#allocation1 + $0x2] ss:$4 sm:$0xff] %v9298_v54  ;;  %v4340_v54 = vld [vmem:[%s8720_s3 + $0x200] sm:$0xff] }
 0x4ec   :  { %2068 = vst [vmem:[#allocation1 + $0x3] ss:$4 sm:$0xff] %v9299_v28  ;;  %v9304_v28 = vld [vmem:[#allocation114_spill] sm:$0xff]  ;;  %2136 = vmatpush.msra.mxu2 %v4340_v54  ;;  %v9312_v54 = vld [vmem:[#allocation125_spill] sm:$0xff] }
 0x4ed   :  { %9300 = vst [vmem:[#allocation31_spill] sm:$0xff] %v6571_v8  ;;  %2137 = vmatmul.f32.vlgmr.msra.gmra.mxu2 %v6440_v59  ;;  %v9308_v8 = vld [vmem:[#allocation119_spill] sm:$0xff]  ;;  %v9314_v59 = vld [vmem:[#allocation130_spill] sm:$0xff] }
 0x4ee   :  { %v6576_v58 = vld.sshfl [vmem:[#allocation1 + $0x20] sm:$0xff pattern:$0x73625140]  ;;  %9306 = vst [vmem:[#allocation37_spill] sm:$0xff] %v6591_v60 }
 0x4ef   :  { %2069 = vst [vmem:[#allocation1 + $0x20] ss:$4 sm:$0xff] %v9301_v26  ;;  %1934 = vmatmul.f32.gmra.mxu1 %v6325_v50  ;;  %v9311_v26 = vld [vmem:[#allocation124_spill] sm:$0xff]  ;;  %v9313_v50 = vld [vmem:[#allocation129_spill] sm:$0xff] }
 0x4f0   :  { %2070 = vst [vmem:[#allocation1 + $0x21] ss:$4 sm:$0xff] %v9302_v19  ;;  %v6598_v19 = vpop.f32.mrf.mxu2 }
 0x4f1   :  { %2071 = vst [vmem:[#allocation1 + $0x22] ss:$4 sm:$0xff] %v9303_v48  ;;  %v9309_v48 = vld [vmem:[#allocation27_spill] sm:$0xff] }
 0x4f2   :  { %2072 = vst [vmem:[#allocation1 + $0x23] ss:$4 sm:$0xff] %v9304_v28 }
 0x4f3   :  { %v6588_v61 = vld.sshfl [vmem:[#allocation1] sm:$0xff pattern:$0x73625140]  ;;  %9310 = vst [vmem:[#allocation30_spill] sm:$0xff] %v6598_v19 }
 0x4f4   :  { %2075 = vst [vmem:[#allocation1] ss:$4 sm:$0xff] %v9305_v43  ;;  %v9317_v19 = vld [vmem:[#allocation136_spill] sm:$0xff] }
 0x4f5   :  { %2076 = vst [vmem:[#allocation1 + $0x1] ss:$4 sm:$0xff] %v9307_v24  ;;  %2140 = vmatmul.f32.gmra.mxu2 %v6450_v21  ;;  %v9318_v24 = vld [vmem:[#allocation137_spill] sm:$0xff]  ;;  %v9321_v21 = vld [vmem:[#allocation142_spill] sm:$0xff] }
 0x4f6   :  { %2077 = vst [vmem:[#allocation1 + $0x2] ss:$4 sm:$0xff] %v9308_v8  ;;  %v6610_v8 = vpop.f32.mrf.mxu1 }
 0x4f7   :  { %2078 = vst [vmem:[#allocation1 + $0x3] ss:$4 sm:$0xff] %v9309_v48  ;;  %1937 = vmatmul.f32.gmra.mxu1 %v6342_v9  ;;  %v9316_v48 = vld [vmem:[#allocation134_spill] sm:$0xff] }
 0x4f8   :  { %9315 = vst [vmem:[#allocation32_spill] sm:$0xff] %v6610_v8  ;;  %v9323_v8 = vld [vmem:[#allocation144_spill] sm:$0xff] }
 0x4f9   :  { %v6600_v28 = vld.sshfl [vmem:[#allocation1 + $0x20] sm:$0xff pattern:$0x73625140] }
 0x4fa   :  { %2079 = vst [vmem:[#allocation1 + $0x20] ss:$4 sm:$0xff] %v9311_v26  ;;  %v6615_v26 = vpop.f32.mrf.mxu2 }
 0x4fb   :  { %2080 = vst [vmem:[#allocation1 + $0x21] ss:$4 sm:$0xff] %v9312_v54  ;;  %v9320_v54 = vld [vmem:[#allocation139_spill] sm:$0xff] }
 0x4fc   :  { %2081 = vst [vmem:[#allocation1 + $0x22] ss:$4 sm:$0xff] %v9313_v50  ;;  %v9327_v50 = vld [vmem:[#allocation148_spill] sm:$0xff] }
 0x4fd   :  { %2082 = vst [vmem:[#allocation1 + $0x23] ss:$4 sm:$0xff] %v9314_v59  ;;  %2143 = vmatmul.f32.gmra.mxu2 %v6458_v44  ;;  %v9322_v59 = vld [vmem:[#allocation143_spill] sm:$0xff]  ;;  %v1990_v44 = vrot.slane %v6409_v14, 7 }
 0x4fe   :  { %v6608_v60 = vld.sshfl [vmem:[#allocation1] sm:$0xff pattern:$0x73625140]  ;;  %9319 = vst [vmem:[#allocation33_spill] sm:$0xff] %v6615_v26  ;;  %v1993_v26 = vrot.slane %v6403_v3, 7 }
 0x4ff   :  { %2085 = vst [vmem:[#allocation1] ss:$4 sm:$0xff] %v9316_v48  ;;  %1940 = vmatmul.f32.gmra.mxu1 %v6356_v23  ;;  %v6625_v48 = vpop.f32.mrf.mxu1  ;;  %v1996_v23 = vrot.slane %v6415_v36, 7  ;;  %v1992_v43 = vrot.slane %v1990_v44, 2 }
 0x500   :  { %2086 = vst [vmem:[#allocation1 + $0x1] ss:$4 sm:$0xff] %v9317_v19  ;;  %v9325_v19 = vld [vmem:[#allocation146_spill] sm:$0xff] }
 0x501   :  { %2087 = vst [vmem:[#allocation1 + $0x2] ss:$4 sm:$0xff] %v9318_v24  ;;  %v1998_v22 = vrot.slane %v1996_v23, 2 }
 0x502   :  { %2088 = vst [vmem:[#allocation1 + $0x3] ss:$4 sm:$0xff] %v9320_v54  ;;  %v9326_v54 = vld [vmem:[#allocation147_spill] sm:$0xff] }
 0x503   :  { %9324 = vst [vmem:[#allocation13_spill] sm:$0xff] %v6625_v48  ;;  %v6642_v48 = vrot.slane %v6403_v3, 4 }
 0x504   :  { %v6620_v9 = vld.sshfl [vmem:[#allocation1 + $0x20] sm:$0xff pattern:$0x73625140] }
 0x505   :  { %2089 = vst [vmem:[#allocation1 + $0x20] ss:$4 sm:$0xff] %v9321_v21  ;;  %v6635_v21 = vpop.f32.mrf.mxu2  ;;  %2146 = vmatmul.f32.gmra.mxu2 %v6479_v17 }
 0x506   :  { %2090 = vst [vmem:[#allocation1 + $0x21] ss:$4 sm:$0xff] %v9322_v59  ;;  %v9329_v59 = vld [vmem:[#allocation149_spill] sm:$0xff] }
 0x507   :  { %2091 = vst [vmem:[#allocation1 + $0x22] ss:$4 sm:$0xff] %v9323_v8  ;;  %v4339_v8 = vrot.slane %v6406_v46, 9  ;;  %1943 = vmatmul.f32.gmra.mxu1 %v6379_v52  ;;  %v1999_v52 = vrot.slane %v6642_v48, 7 }
 0x508   :  { %2092 = vst [vmem:[#allocation1 + $0x23] ss:$4 sm:$0xff] %v9325_v19  ;;  %v1995_v19 = vrot.slane %v1993_v26, 2 }
 0x509   :  { %v6628_v24 = vld.sshfl [vmem:[#allocation1] sm:$0xff pattern:$0x73625140]  ;;  %9328 = vst [vmem:[#allocation5_spill] sm:$0xff] %v6635_v21 }
 0x50a   :  { %2095 = vst [vmem:[#allocation1] ss:$4 sm:$0xff] %v9326_v54  ;;  %v9331_v54 = vld [vmem:[#allocation150_spill] sm:$0xff]  ;;  %v6659_v17 = vsel %vm5171_vm8, %v1995_v19, %v1996_v23 }
 0x50b   :  { %2096 = vst [vmem:[#allocation1 + $0x1] ss:$4 sm:$0xff] %v9327_v50  ;;  %v6647_v50 = vsel %vm5171_vm8, %v4339_v8, %v1990_v44  ;;  %v6666_v8 = vsel %vm5171_vm8, %v1998_v22, %v1999_v52  ;;  %v4371_v19 = vld [vmem:[%s8720_s3 + $0x2f8] sm:$0xff]  ;;  %v4370_v44 = vld [vmem:[%s8720_s3 + $0x2f0] sm:$0xff] }
 0x50c   :  { %2097 = vst [vmem:[#allocation1 + $0x2] ss:$4 sm:$0xff] %v9329_v59  ;;  %v6653_v59 = vsel %vm5171_vm8, %v1992_v43, %v1993_v26  ;;  %v6677_v43 = vpop.f32.mrf.mxu3  ;;  %2322 = vmatpush.msra.mxu3 %v4371_v19  ;;  %v4366_v19 = vld [vmem:[%s8720_s3 + $0x2d0] sm:$0xff] }
 0x50d   :  { %9330 = vst [vmem:[#allocation21_spill] sm:$0xff] %v6642_v48  ;;  %2149 = vmatmul.f32.gmra.mxu2 %v6497_v18  ;;  %v6680_v22 = vpop.f32.mrf.mxu2  ;;  %v4369_v18 = vld [vmem:[%s8720_s3 + $0x2e8] sm:$0xff] }
 0x50e   :  { %2098 = vst [vmem:[#allocation1 + $0x3] ss:$4 sm:$0xff] %v9331_v54  ;;  %v6662_v54 = vpop.f32.mrf.mxu1  ;;  %2323 = vmatpush.msra.mxu3 %v4370_v44  ;;  %v9341_v44 = vld [vmem:[#allocation39_spill] sm:$0xff] }
 0x50f   :  { %9332 = vst [vmem:[#allocation54_spill] sm:$0xff] %v6647_v50  ;;  %v6649_v21 = vld.sshfl [vmem:[#allocation1 + $0x20] sm:$0xff pattern:$0x73625140]  ;;  %1946 = vmatmul.f32.gmra.mxu1 %v6391_v40 }
 0x510   :  { %9333 = vst [vmem:[#allocation38_spill] sm:$0xff] %v6653_v59  ;;  %v9338_v40 = vld [vmem:[#allocation43_spill] sm:$0xff]  ;;  %2324 = vmatpush.msra.mxu3 %v4369_v18  ;;  %v9343_v18 = vld [vmem:[#allocation42_spill] sm:$0xff] }
 0x511   :  { %2099 = vst [vmem:[#allocation1 + $0x20] ss:$4 sm:$0xff] %v6647_v50  ;;  %v4380_v50 = vld [vmem:[%s8720_s3 + $0x340] sm:$0xff] }
 0x512   :  { %9334 = vst [vmem:[#allocation81_spill] sm:$0xff] %v6659_v17 }
 0x513   :  { %2100 = vst [vmem:[#allocation1 + $0x21] ss:$4 sm:$0xff] %v6653_v59  ;;  %v9387_v59 = vld [vmem:[#allocation135_spill] sm:$0xff] }
 0x514   :  { %9335 = vst [vmem:[#allocation89_spill] sm:$0xff] %v6662_v54  ;;  %v6705_v52 = vpop.f32.mrf.mxu3 }
 0x515   :  { %9336 = vst [vmem:[#allocation48_spill] sm:$0xff] %v6666_v8  ;;  %v6670_v26 = vld.sshfl [vmem:[#allocation1] sm:$0xff pattern:$0x73625140]  ;;  %2152 = vmatmul.f32.gmra.mxu2 %v6526_v62  ;;  %v4365_v62 = vld [vmem:[%s8720_s3 + $0x2c8] sm:$0xff] }
 0x516   :  { %2101 = vst [vmem:[#allocation1 + $0x22] ss:$4 sm:$0xff] %v6659_v17 }
 0x517   :  { %2102 = vst [vmem:[#allocation1 + $0x23] ss:$4 sm:$0xff] %v6666_v8  ;;  %1949 = vmatmul.f32.gmra.mxu1 %v6411_v20 }
 0x518   :  { %2219 = vst [vmem:[#allocation1] ss:$4 sm:$0xff] %v5197_v25  ;;  %v4368_v25 = vld [vmem:[%s8720_s3 + $0x2e0] sm:$0xff] }
 0x519   :  { %9337 = vst [vmem:[#allocation99_spill] sm:$0xff] %v6680_v22  ;;  %2325 = vmatpush.msra.mxu3 %v4368_v25  ;;  %v9344_v25 = vld [vmem:[#allocation51_spill] sm:$0xff] }
 0x51a   :  { %2221 = vst [vmem:[#allocation1 + $0x1] ss:$4 sm:$0xff] %v5200_v11  ;;  %v6697_v11 = vpop.f32.mrf.mxu1 }
 0x51b   :  { %2223 = vst [vmem:[#allocation1 + $0x2] ss:$4 sm:$0xff] %v5248_v32  ;;  %v4367_v32 = vld [vmem:[%s8720_s3 + $0x2d8] sm:$0xff] }
 0x51c   :  { %2225 = vst [vmem:[#allocation1 + $0x3] ss:$4 sm:$0xff] %v9338_v40  ;;  %2326 = vmatpush.msra.mxu3 %v4367_v32  ;;  %v6712_v40 = vpop.f32.mrf.mxu2  ;;  %v4364_v32 = vld [vmem:[%s8720_s3 + $0x2c0] sm:$0xff]  ;;  %v6735_v22 = vpop.f32.mrf.mxu3 }
 0x51d   :  { %9339 = vst [vmem:[#allocation93_spill] sm:$0xff] %v6697_v11  ;;  %v9345_v11 = vld [vmem:[#allocation56_spill] sm:$0xff]  ;;  %2155 = vmatmul.f32.gmra.mxu2 %v6552_v51  ;;  %v9348_v51 = vld [vmem:[#allocation59_spill] sm:$0xff] }
 0x51e   :  { %v6694_v23 = vld.sshfl [vmem:[#allocation1 + $0x20] sm:$0xff pattern:$0x73625140]  ;;  %9340 = vst [vmem:[#allocation104_spill] sm:$0xff] %v6705_v52  ;;  %2327 = vmatpush.msra.mxu3 %v4366_v19  ;;  %v4363_v19 = vld [vmem:[%s8720_s3 + $0x2b8] sm:$0xff] }
 0x51f   :  { %2227 = vst [vmem:[#allocation1 + $0x20] ss:$4 sm:$0xff] %v5261_v39  ;;  %1952 = vmatmul.f32.gmra.mxu1 %v6422_v55  ;;  %v4361_v55 = vld [vmem:[%s8720_s3 + $0x2a8] sm:$0xff]  ;;  %v4360_v52 = vld [vmem:[%s8720_s3 + $0x2a0] sm:$0xff] }
 0x520   :  { %2229 = vst [vmem:[#allocation1 + $0x21] ss:$4 sm:$0xff] %v5153_v29  ;;  %2328 = vmatpush.msra.mxu3 %v4365_v62 }
 0x521   :  { %2231 = vst [vmem:[#allocation1 + $0x22] ss:$4 sm:$0xff] %v5177_v38 }
 0x522   :  { %2233 = vst [vmem:[#allocation1 + $0x23] ss:$4 sm:$0xff] %v9341_v44  ;;  %2329 = vmatpush.msra.mxu3 %v4364_v32  ;;  %v6729_v62 = vpop.f32.mrf.mxu1 }
 0x523   :  { %v2234_v20 = vld.sshfl [vmem:[#allocation1] sm:$0xff pattern:$0x73625140]  ;;  %9342 = vst [vmem:[#allocation100_spill] sm:$0xff] %v6712_v40  ;;  %v4362_v40 = vld [vmem:[%s8720_s3 + $0x2b0] sm:$0xff] }
 0x524   :  { %2236 = vst [vmem:[#allocation1] ss:$4 sm:$0xff] %v5214_v15  ;;  %2330 = vmatpush.msra.mxu3 %v4363_v19  ;;  %v6742_v32 = vpop.f32.mrf.mxu2  ;;  %v9350_v19 = vld [vmem:[#allocation57_spill] sm:$0xff] }
 0x525   :  { %2237 = vst [vmem:[#allocation1 + $0x1] ss:$4 sm:$0xff] %v9343_v18  ;;  %2158 = vmatmul.f32.gmra.mxu2 %v6576_v58 }
 0x526   :  { %2238 = vst [vmem:[#allocation1 + $0x2] ss:$4 sm:$0xff] %v9344_v25  ;;  %2331 = vmatpush.msra.mxu3 %v4362_v40  ;;  %v4359_v40 = vld [vmem:[%s8720_s3 + $0x298] sm:$0xff] }
 0x527   :  { %2239 = vst [vmem:[#allocation1 + $0x3] ss:$4 sm:$0xff] %v9345_v11  ;;  %1955 = vmatmul.f32.gmra.mxu1 %v6432_v49  ;;  %v4357_v49 = vld [vmem:[%s8720_s3 + $0x288] sm:$0xff] }
 0x528   :  { %9346 = vst [vmem:[#allocation101_spill] sm:$0xff] %v6729_v62  ;;  %2332 = vmatpush.msra.mxu3 %v4361_v55  ;;  %v9351_v55 = vld [vmem:[#allocation68_spill] sm:$0xff] }
 0x529   :  { %v2235_v54 = vld.sshfl [vmem:[#allocation1 + $0x20] sm:$0xff pattern:$0x73625140]  ;;  %9347 = vst [vmem:[#allocation19_spill] sm:$0xff] %v6735_v22  ;;  %v6765_v22 = vpop.f32.mrf.mxu3 }
 0x52a   :  { %2240 = vst [vmem:[#allocation1 + $0x20] ss:$4 sm:$0xff] %v5304_v7  ;;  %2333 = vmatpush.msra.mxu3 %v4360_v52  ;;  %v6760_v52 = vpop.f32.mrf.mxu1  ;;  %v9359_v11 = vld [vmem:[#allocation88_spill] sm:$0xff] }
 0x52b   :  { %2241 = vst [vmem:[#allocation1 + $0x21] ss:$4 sm:$0xff] %v9163_v0 }
 0x52c   :  { %2242 = vst [vmem:[#allocation1 + $0x22] ss:$4 sm:$0xff] %v9348_v51  ;;  %2334 = vmatpush.msra.mxu3 %v4359_v40  ;;  %v4356_v40 = vld [vmem:[%s8720_s3 + $0x280] sm:$0xff] }
 0x52d   :  { %9349 = vst [vmem:[#allocation11_spill] sm:$0xff] %v6742_v32  ;;  %v4358_v32 = vld [vmem:[%s8720_s3 + $0x290] sm:$0xff]  ;;  %2161 = vmatmul.f32.gmra.mxu2 %v6588_v61 }
 0x52e   :  { %2243 = vst [vmem:[#allocation1 + $0x23] ss:$4 sm:$0xff] %v9350_v19  ;;  %v2244_v62 = vld.sshfl [vmem:[#allocation1] sm:$0xff pattern:$0x73625140]  ;;  %2335 = vmatpush.msra.mxu3 %v4358_v32  ;;  %v9355_v32 = vld [vmem:[#allocation82_spill] sm:$0xff] }
 0x52f   :  { %2246 = vst [vmem:[#allocation1] ss:$4 sm:$0xff] %v5353_v33  ;;  %v9358_v19 = vld [vmem:[#allocation75_spill] sm:$0xff] }
 0x530   :  { %2247 = vst [vmem:[#allocation1 + $0x1] ss:$4 sm:$0xff] %v5377_v16  ;;  %2336 = vmatpush.msra.mxu3 %v4357_v49  ;;  %v9356_v49 = vld [vmem:[#allocation70_spill] sm:$0xff] }
 0x531   :  { %2248 = vst [vmem:[#allocation1 + $0x2] ss:$4 sm:$0xff] %v5364_v34 }
 0x532   :  { %2249 = vst [vmem:[#allocation1 + $0x3] ss:$4 sm:$0xff] %v9351_v55  ;;  %v6772_v55 = vpop.f32.mrf.mxu2  ;;  %2337 = vmatpush.msra.mxu3 %v4356_v40  ;;  %v6781_v44 = vpop.f32.mrf.mxu1 }
 0x533   :  { %9352 = vst [vmem:[#allocation28_spill] sm:$0xff] %v6760_v52  ;;  %2338 = vmatmul.f32.vlgmr.msra.gmra.mxu3 %v2234_v20 }
 0x534   :  { %9353 = vst [vmem:[#allocation15_spill] sm:$0xff] %v6765_v22  ;;  %v9357_v22 = vld [vmem:[#allocation74_spill] sm:$0xff] }
 0x535   :  { %v2245_v58 = vld.sshfl [vmem:[#allocation1 + $0x20] sm:$0xff pattern:$0x73625140]  ;;  %9354 = vst [vmem:[#allocation40_spill] sm:$0xff] %v6772_v55  ;;  %v6783_v55 = vpop.f32.mrf.mxu3  ;;  %2164 = vmatmul.f32.gmra.mxu2 %v6600_v28 }
 0x536   :  { %2250 = vst [vmem:[#allocation1 + $0x20] ss:$4 sm:$0xff] %v5405_v31  ;;  %v9364_v28 = vld [vmem:[#allocation8_spill] sm:$0xff] }
 0x537   :  { %2251 = vst [vmem:[#allocation1 + $0x21] ss:$4 sm:$0xff] %v5385_v47 }
 0x538   :  { %2252 = vst [vmem:[#allocation1 + $0x22] ss:$4 sm:$0xff] %v5419_v2 }
 0x539   :  { %2253 = vst [vmem:[#allocation1 + $0x23] ss:$4 sm:$0xff] %v9355_v32  ;;  %v2254_v52 = vld.sshfl [vmem:[#allocation1] sm:$0xff pattern:$0x73625140]  ;;  %v9374_v32 = vld [vmem:[#allocation105_spill] sm:$0xff] }
 0x53a   :  { %2256 = vst [vmem:[#allocation1] ss:$4 sm:$0xff] %v9356_v49  ;;  %v6787_v61 = vpop.f32.mrf.mxu2 }
 0x53b   :  { %2257 = vst [vmem:[#allocation1 + $0x1] ss:$4 sm:$0xff] %v9357_v22  ;;  %2341 = vmatmul.f32.gmra.mxu3 %v2235_v54  ;;  %v6798_v54 = vpop.f32.mrf.mxu1 }
 0x53c   :  { %2258 = vst [vmem:[#allocation1 + $0x2] ss:$4 sm:$0xff] %v9358_v19 }
 0x53d   :  { %2259 = vst [vmem:[#allocation1 + $0x3] ss:$4 sm:$0xff] %v9359_v11  ;;  %v9363_v11 = vld [vmem:[#allocation90_spill] sm:$0xff]  ;;  %2167 = vmatmul.f32.gmra.mxu2 %v6608_v60 }
 0x53e   :  { %9360 = vst [vmem:[#allocation41_spill] sm:$0xff] %v6781_v44  ;;  %v6801_v44 = vpop.f32.mrf.mxu3 }
 0x53f   :  { %9361 = vst [vmem:[#allocation50_spill] sm:$0xff] %v6783_v55 }
 0x540   :  { %v2255_v40 = vld.sshfl [vmem:[#allocation1 + $0x20] sm:$0xff pattern:$0x73625140]  ;;  %9362 = vst [vmem:[#allocation53_spill] sm:$0xff] %v6787_v61 }
 0x541   :  { %2260 = vst [vmem:[#allocation1 + $0x20] ss:$4 sm:$0xff] %v6283_v37 }
 0x542   :  { %2261 = vst [vmem:[#allocation1 + $0x21] ss:$4 sm:$0xff] %v6290_v42  ;;  %v6805_v55 = vpop.f32.mrf.mxu2 }
 0x543   :  { %2262 = vst [vmem:[#allocation1 + $0x22] ss:$4 sm:$0xff] %v6294_v6  ;;  %2344 = vmatmul.f32.gmra.mxu3 %v2244_v62  ;;  %v6817_v60 = vpop.f32.mrf.mxu1  ;;  %v9370_v62 = vld [vmem:[#allocation112_spill] sm:$0xff] }
 0x544   :  { %2263 = vst [vmem:[#allocation1 + $0x23] ss:$4 sm:$0xff] %v6504_v10  ;;  %v6792_v20 = vld.sshfl [vmem:[#allocation1] sm:$0xff pattern:$0x73625140] }
 0x545   :  { %2266 = vst [vmem:[#allocation1] ss:$4 sm:$0xff] %v9363_v11  ;;  %2170 = vmatmul.f32.gmra.mxu2 %v6620_v9  ;;  %v4387_v9 = vld [vmem:[%s8720_s3 + $0x378] sm:$0xff] }
 0x546   :  { %2267 = vst [vmem:[#allocation1 + $0x1] ss:$4 sm:$0xff] %v9169_v5  ;;  %v9367_v5 = vld [vmem:[#allocation102_spill] sm:$0xff]  ;;  %2523 = vmatpush.msrb.mxu1 %v4387_v9 }
 0x547   :  { %2268 = vst [vmem:[#allocation1 + $0x2] ss:$4 sm:$0xff] %v9170_v1  ;;  %v9368_v1 = vld [vmem:[#allocation16_spill] sm:$0xff] }
 0x548   :  { %2269 = vst [vmem:[#allocation1 + $0x3] ss:$4 sm:$0xff] %v9364_v28  ;;  %v6820_v28 = vpop.f32.mrf.mxu3 }
 0x549   :  { %9365 = vst [vmem:[#allocation14_spill] sm:$0xff] %v6801_v44 }
 0x54a   :  { %9366 = vst [vmem:[#allocation6_spill] sm:$0xff] %v6805_v55  ;;  %v6822_v55 = vpop.f32.mrf.mxu2 }
 0x54b   :  { %v6803_v61 = vld.sshfl [vmem:[#allocation1 + $0x20] sm:$0xff pattern:$0x73625140]  ;;  %2347 = vmatmul.f32.gmra.mxu3 %v2245_v58  ;;  %9369 = vst [vmem:[#allocation22_spill] sm:$0xff] %v6817_v60 }
 0x54c   :  { %2270 = vst [vmem:[#allocation1 + $0x20] ss:$4 sm:$0xff] %v9172_v53  ;;  %v9375_v58 = vld [vmem:[#allocation115_spill] sm:$0xff]  ;;  %v9376_v60 = vld [vmem:[#allocation120_spill] sm:$0xff] }
 0x54d   :  { %2271 = vst [vmem:[#allocation1 + $0x21] ss:$4 sm:$0xff] %v9173_v30  ;;  %2173 = vmatmul.f32.gmra.mxu2 %v6628_v24  ;;  %v9378_v24 = vld [vmem:[#allocation121_spill] sm:$0xff] }
 0x54e   :  { %2272 = vst [vmem:[#allocation1 + $0x22] ss:$4 sm:$0xff] %v9367_v5 }
 0x54f   :  { %2273 = vst [vmem:[#allocation1 + $0x23] ss:$4 sm:$0xff] %v9368_v1  ;;  %v6811_v11 = vld.sshfl [vmem:[#allocation1] sm:$0xff pattern:$0x73625140]  ;;  %v9373_v1 = vld [vmem:[#allocation113_spill] sm:$0xff] }
 0x550   :  { %2276 = vst [vmem:[#allocation1] ss:$4 sm:$0xff] %v5635_v56  ;;  %v6847_v9 = vpop.f32.mrf.mxu3 }
 0x551   :  { %2277 = vst [vmem:[#allocation1 + $0x1] ss:$4 sm:$0xff] %v9176_v57 }
 0x552   :  { %2278 = vst [vmem:[#allocation1 + $0x2] ss:$4 sm:$0xff] %v9177_v35  ;;  %v6853_v8 = vpop.f32.mrf.mxu2 }
 0x553   :  { %2279 = vst [vmem:[#allocation1 + $0x3] ss:$4 sm:$0xff] %v9370_v62  ;;  %2350 = vmatmul.f32.gmra.mxu3 %v2254_v52  ;;  %v4386_v62 = vld [vmem:[%s8720_s3 + $0x370] sm:$0xff]  ;;  %v4385_v52 = vld [vmem:[%s8720_s3 + $0x368] sm:$0xff] }
 0x554   :  { %9371 = vst [vmem:[#allocation49_spill] sm:$0xff] %v6820_v28  ;;  %2524 = vmatpush.msrb.mxu1 %v4386_v62  ;;  %v4383_v62 = vld [vmem:[%s8720_s3 + $0x358] sm:$0xff] }
 0x555   :  { %9372 = vst [vmem:[#allocation24_spill] sm:$0xff] %v6822_v55  ;;  %v6836_v55 = vpop.f32.mrf.mxu1  ;;  %2176 = vmatmul.f32.gmra.mxu2 %v6649_v21 }
 0x556   :  { %v6824_v44 = vld.sshfl [vmem:[#allocation1 + $0x20] sm:$0xff pattern:$0x73625140]  ;;  %9377 = vst [vmem:[#allocation9_spill] sm:$0xff] %v6836_v55  ;;  %2525 = vmatpush.msrb.mxu1 %v4385_v52  ;;  %v9382_v52 = vld [vmem:[#allocation126_spill] sm:$0xff] }
 0x557   :  { %2280 = vst [vmem:[#allocation1 + $0x20] ss:$4 sm:$0xff] %v9373_v1  ;;  %v4384_v55 = vld [vmem:[%s8720_s3 + $0x360] sm:$0xff] }
 0x558   :  { %2281 = vst [vmem:[#allocation1 + $0x21] ss:$4 sm:$0xff] %v9374_v32  ;;  %2526 = vmatpush.msrb.mxu1 %v4384_v55  ;;  %v9384_v55 = vld [vmem:[#allocation133_spill] sm:$0xff]  ;;  %v6880_v41 = vpop.f32.mrf.mxu3 }
 0x559   :  { %2282 = vst [vmem:[#allocation1 + $0x22] ss:$4 sm:$0xff] %v9375_v58 }
 0x55a   :  { %2283 = vst [vmem:[#allocation1 + $0x23] ss:$4 sm:$0xff] %v9376_v60  ;;  %v6834_v28 = vld.sshfl [vmem:[#allocation1] sm:$0xff pattern:$0x73625140]  ;;  %2527 = vmatpush.msrb.mxu1 %v4383_v62  ;;  %v6889_v4 = vpop.f32.mrf.mxu2 }
 0x55b   :  { %2286 = vst [vmem:[#allocation1] ss:$4 sm:$0xff] %v5712_v27  ;;  %v9380_v60 = vld [vmem:[#allocation132_spill] sm:$0xff]  ;;  %2353 = vmatmul.f32.gmra.mxu3 %v2255_v40 }
 0x55c   :  { %2287 = vst [vmem:[#allocation1 + $0x1] ss:$4 sm:$0xff] %v9378_v24  ;;  %v4381_v40 = vld [vmem:[%s8720_s3 + $0x348] sm:$0xff] }
 0x55d   :  { %2288 = vst [vmem:[#allocation1 + $0x2] ss:$4 sm:$0xff] %v9184_v13  ;;  %v6867_v21 = vpop.f32.mrf.mxu1  ;;  %2179 = vmatmul.f32.gmra.mxu2 %v6670_v26  ;;  %v4377_v26 = vld [vmem:[%s8720_s3 + $0x328] sm:$0xff] }
 0x55e   :  { %9379 = vst [vmem:[#allocation25_spill] sm:$0xff] %v6847_v9  ;;  %v4382_v9 = vld [vmem:[%s8720_s3 + $0x350] sm:$0xff] }
 0x55f   :  { %2289 = vst [vmem:[#allocation1 + $0x3] ss:$4 sm:$0xff] %v9380_v60  ;;  %v9383_v60 = vld [vmem:[#allocation128_spill] sm:$0xff]  ;;  %2528 = vmatpush.msrb.mxu1 %v4382_v9  ;;  %v9388_v9 = vld [vmem:[#allocation141_spill] sm:$0xff] }
 0x560   :  { %9381 = vst [vmem:[#allocation106_spill] sm:$0xff] %v6853_v8  ;;  %v9386_v8 = vld [vmem:[#allocation131_spill] sm:$0xff] }
 0x561   :  { %v6859_v17 = vld.sshfl [vmem:[#allocation1 + $0x20] sm:$0xff pattern:$0x73625140]  ;;  %9385 = vst [vmem:[#allocation43_spill] sm:$0xff] %v6867_v21  ;;  %2529 = vmatpush.msrb.mxu1 %v4381_v40  ;;  %v9390_v21 = vld [vmem:[#allocation138_spill] sm:$0xff] }
 0x562   :  { %2290 = vst [vmem:[#allocation1 + $0x20] ss:$4 sm:$0xff] %v9382_v52  ;;  %v4379_v40 = vld [vmem:[%s8720_s3 + $0x338] sm:$0xff] }
 0x563   :  { %2291 = vst [vmem:[#allocation1 + $0x21] ss:$4 sm:$0xff] %v9383_v60  ;;  %2530 = vmatpush.msrb.mxu1 %v4380_v50  ;;  %2356 = vmatmul.f32.gmra.mxu3 %v6792_v20 }
 0x564   :  { %2292 = vst [vmem:[#allocation1 + $0x22] ss:$4 sm:$0xff] %v9384_v55 }
 0x565   :  { %2293 = vst [vmem:[#allocation1 + $0x23] ss:$4 sm:$0xff] %v9386_v8  ;;  %v9391_v8 = vld [vmem:[#allocation145_spill] sm:$0xff]  ;;  %2531 = vmatpush.msrb.mxu1 %v4379_v40  ;;  %v6901_v20 = vpop.f32.mrf.mxu1  ;;  %v4376_v40 = vld [vmem:[%s8720_s3 + $0x320] sm:$0xff]  ;;  %2182 = vmatmul.f32.gmra.mxu2 %v6694_v23  ;;  %v6923_v23 = vpop.f32.mrf.mxu2 }
 0x566   :  { %v6873_v62 = vld.sshfl [vmem:[#allocation1] sm:$0xff pattern:$0x73625140]  ;;  %9389 = vst [vmem:[#allocation42_spill] sm:$0xff] %v6880_v41  ;;  %v4378_v41 = vld [vmem:[%s8720_s3 + $0x330] sm:$0xff] }
 0x567   :  { %2296 = vst [vmem:[#allocation1] ss:$4 sm:$0xff] %v9387_v59  ;;  %2532 = vmatpush.msrb.mxu1 %v4378_v41 }
 0x568   :  { %2297 = vst [vmem:[#allocation1 + $0x1] ss:$4 sm:$0xff] %v9388_v9 }
 0x569   :  { %2298 = vst [vmem:[#allocation1 + $0x2] ss:$4 sm:$0xff] %v9390_v21  ;;  %2533 = vmatpush.msrb.mxu1 %v4377_v26  ;;  %v4375_v26 = vld [vmem:[%s8720_s3 + $0x318] sm:$0xff] }
 0x56a   :  { %2299 = vst [vmem:[#allocation1 + $0x3] ss:$4 sm:$0xff] %v9391_v8  ;;  %v9393_v8 = vld [vmem:[#allocation44_spill] sm:$0xff] }
 0x56b   :  { %9392 = vst [vmem:[#allocation51_spill] sm:$0xff] %v6901_v20  ;;  %2534 = vmatpush.msrb.mxu1 %v4376_v40  ;;  %2359 = vmatmul.f32.gmra.mxu3 %v6803_v61  ;;  %v6916_v20 = vpop.f32.mrf.mxu3  ;;  %v4374_v40 = vld [vmem:[%s8720_s3 + $0x310] sm:$0xff]  ;;  %v4372_v61 = vld [vmem:[%s8720_s3 + $0x300] sm:$0xff] }
 0x56c   :  { %v6894_v50 = vld.sshfl [vmem:[#allocation1 + $0x20] sm:$0xff pattern:$0x73625140]  ;;  %9394 = vst [vmem:[#allocation59_spill] sm:$0xff] %v6916_v20 }
 0x56d   :  { %2300 = vst [vmem:[#allocation1 + $0x20] ss:$4 sm:$0xff] %v6409_v14  ;;  %2535 = vmatpush.msrb.mxu1 %v4375_v26  ;;  %v9396_v20 = vld [vmem:[#allocation52_spill] sm:$0xff] }
 0x56e   :  { %2301 = vst [vmem:[#allocation1 + $0x21] ss:$4 sm:$0xff] %v6403_v3 }
 0x56f   :  { %2302 = vst [vmem:[#allocation1 + $0x22] ss:$4 sm:$0xff] %v6415_v36  ;;  %2536 = vmatpush.msrb.mxu1 %v4374_v40 }
 0x570   :  { %2303 = vst [vmem:[#allocation1 + $0x23] ss:$4 sm:$0xff] %v6642_v48  ;;  %v6935_v48 = vpop.f32.mrf.mxu1 }
 0x571   :  { %v6908_v41 = vld.sshfl [vmem:[#allocation1] sm:$0xff pattern:$0x73625140]  ;;  %9395 = vst [vmem:[#allocation70_spill] sm:$0xff] %v6923_v23  ;;  %v6943_v23 = vpop.f32.mrf.mxu2 }
 0x572   :  { %2420 = vst [vmem:[#allocation1] ss:$4 sm:$0xff] %v9393_v8  ;;  %v4373_v8 = vld [vmem:[%s8720_s3 + $0x308] sm:$0xff] }
 0x573   :  { %2422 = vst [vmem:[#allocation1 + $0x1] ss:$4 sm:$0xff] %v5261_v39  ;;  %2537 = vmatpush.msrb.mxu1 %v4373_v8  ;;  %2362 = vmatmul.f32.gmra.mxu3 %v6811_v11  ;;  %v6941_v8 = vpop.f32.mrf.mxu3 }
 0x574   :  { %2424 = vst [vmem:[#allocation1 + $0x2] ss:$4 sm:$0xff] %v5153_v29 }
 0x575   :  { %2426 = vst [vmem:[#allocation1 + $0x3] ss:$4 sm:$0xff] %v5177_v38  ;;  %2538 = vmatpush.msrb.mxu1 %v4372_v61  ;;  %v9399_v38 = vld [vmem:[#allocation45_spill] sm:$0xff]  ;;  %v9401_v61 = vld [vmem:[#allocation64_spill] sm:$0xff] }
 0x576   :  { %9397 = vst [vmem:[#allocation74_spill] sm:$0xff] %v6935_v48 }
 0x577   :  { %v6932_v26 = vld.sshfl [vmem:[#allocation1 + $0x20] sm:$0xff pattern:$0x73625140]  ;;  %9398 = vst [vmem:[#allocation75_spill] sm:$0xff] %v6941_v8 }
 0x578   :  { %2428 = vst [vmem:[#allocation1 + $0x20] ss:$4 sm:$0xff] %v9396_v20  ;;  %v6950_v20 = vpop.f32.mrf.mxu1  ;;  %v9404_v8 = vld [vmem:[#allocation72_spill] sm:$0xff] }
 0x579   :  { %2430 = vst [vmem:[#allocation1 + $0x21] ss:$4 sm:$0xff] %v5214_v15  ;;  %v6953_v48 = vpop.f32.mrf.mxu2 }
 0x57a   :  { %2432 = vst [vmem:[#allocation1 + $0x22] ss:$4 sm:$0xff] %v9343_v18 }
 0x57b   :  { %2434 = vst [vmem:[#allocation1 + $0x23] ss:$4 sm:$0xff] %v9344_v25  ;;  %2365 = vmatmul.f32.gmra.mxu3 %v6824_v44 }
 0x57c   :  { %v2435_v40 = vld.sshfl [vmem:[#allocation1] sm:$0xff pattern:$0x73625140]  ;;  %9400 = vst [vmem:[#allocation90_spill] sm:$0xff] %v6950_v20 }
 0x57d   :  { %2437 = vst [vmem:[#allocation1] ss:$4 sm:$0xff] %v9399_v38  ;;  %2539 = vmatmul.f32.vlgmr.msrb.gmra.mxu1 %v2435_v40  ;;  %v6957_v38 = vpop.f32.mrf.mxu3 }
 0x57e   :  { %2438 = vst [vmem:[#allocation1 + $0x1] ss:$4 sm:$0xff] %v5304_v7 }
 0x57f   :  { %2439 = vst [vmem:[#allocation1 + $0x2] ss:$4 sm:$0xff] %v9163_v0 }
 0x580   :  { %2440 = vst [vmem:[#allocation1 + $0x3] ss:$4 sm:$0xff] %v9348_v51 }
 0x581   :  { %9402 = vst [vmem:[#allocation8_spill] sm:$0xff] %v6953_v48  ;;  %v6965_v44 = vpop.f32.mrf.mxu2 }
 0x582   :  { %v2436_v11 = vld.sshfl [vmem:[#allocation1 + $0x20] sm:$0xff pattern:$0x73625140]  ;;  %9403 = vst [vmem:[#allocation102_spill] sm:$0xff] %v6957_v38 }
 0x583   :  { %2441 = vst [vmem:[#allocation1 + $0x20] ss:$4 sm:$0xff] %v9401_v61  ;;  %2368 = vmatmul.f32.gmra.mxu3 %v6834_v28  ;;  %v9407_v38 = vld [vmem:[#allocation84_spill] sm:$0xff] }
 0x584   :  { %2442 = vst [vmem:[#allocation1 + $0x21] ss:$4 sm:$0xff] %v5353_v33 }
 0x585   :  { %2542 = vmatmul.f32.gmra.mxu1 %v2436_v11  ;;  %2443 = vst [vmem:[#allocation1 + $0x22] ss:$4 sm:$0xff] %v5377_v16  ;;  %v6967_v11 = vpop.f32.mrf.mxu1  ;;  %v6971_v48 = vpop.f32.mrf.mxu3 }
 0x586   :  { %2444 = vst [vmem:[#allocation1 + $0x23] ss:$4 sm:$0xff] %v5364_v34 }
 0x587   :  { %v2445_v40 = vld.sshfl [vmem:[#allocation1] sm:$0xff pattern:$0x73625140]  ;;  %9405 = vst [vmem:[#allocation113_spill] sm:$0xff] %v6965_v44 }
 0x588   :  { %2447 = vst [vmem:[#allocation1] ss:$4 sm:$0xff] %v9404_v8 }
 0x589   :  { %2448 = vst [vmem:[#allocation1 + $0x1] ss:$4 sm:$0xff] %v5405_v31  ;;  %v6978_v8 = vpop.f32.mrf.mxu2 }
 0x58a   :  { %2449 = vst [vmem:[#allocation1 + $0x2] ss:$4 sm:$0xff] %v5385_v47 }
 0x58b   :  { %2450 = vst [vmem:[#allocation1 + $0x3] ss:$4 sm:$0xff] %v5419_v2  ;;  %2371 = vmatmul.f32.gmra.mxu3 %v6859_v17  ;;  %v6986_v17 = vrot.slane %v6504_v10, 4 }
 0x58c   :  { %9406 = vst [vmem:[#allocation105_spill] sm:$0xff] %v6967_v11  ;;  %v9413_v11 = vld [vmem:[#allocation77_spill] sm:$0xff] }
 0x58d   :  { %2545 = vmatmul.f32.gmra.mxu1 %v2445_v40  ;;  %v2446_v61 = vld.sshfl [vmem:[#allocation1 + $0x20] sm:$0xff pattern:$0x73625140]  ;;  %9408 = vst [vmem:[#allocation115_spill] sm:$0xff] %v6971_v48  ;;  %v8966_v40 = vrot.slane %v6504_v10, 2 }
 0x58e   :  { %2451 = vst [vmem:[#allocation1 + $0x20] ss:$4 sm:$0xff] %v9407_v38  ;;  %v6982_v38 = vpop.f32.mrf.mxu1 }
 0x58f   :  { %2452 = vst [vmem:[#allocation1 + $0x21] ss:$4 sm:$0xff] %v9356_v49 }
 0x590   :  { %2453 = vst [vmem:[#allocation1 + $0x22] ss:$4 sm:$0xff] %v9357_v22 }
 0x591   :  { %2454 = vst [vmem:[#allocation1 + $0x23] ss:$4 sm:$0xff] %v9358_v19 }
 0x592   :  { %v2455_v28 = vld.sshfl [vmem:[#allocation1] sm:$0xff pattern:$0x73625140]  ;;  %9409 = vst [vmem:[#allocation126_spill] sm:$0xff] %v6978_v8  ;;  %v6993_v8 = vrot.slane %v6504_v10, 6 }
 0x593   :  { %2457 = vst [vmem:[#allocation1] ss:$4 sm:$0xff] %v6278_v63  ;;  %2374 = vmatmul.f32.gmra.mxu3 %v6873_v62  ;;  %v4405_v63 = vld [vmem:[%s8720_s3 + $0x3f8] sm:$0xff]  ;;  %v7004_v62 = vpop.f32.mrf.mxu2 }
 0x594   :  { %2458 = vst [vmem:[#allocation1 + $0x1] ss:$4 sm:$0xff] %v6283_v37  ;;  %2750 = vmatpush.msrb.mxu2 %v4405_v63  ;;  %v9414_v63 = vld [vmem:[#allocation94_spill] sm:$0xff] }
 0x595   :  { %2459 = vst [vmem:[#allocation1 + $0x2] ss:$4 sm:$0xff] %v6290_v42  ;;  %2548 = vmatmul.f32.gmra.mxu1 %v2446_v61  ;;  %v6997_v61 = vpop.f32.mrf.mxu3 }
 0x596   :  { %2460 = vst [vmem:[#allocation1 + $0x3] ss:$4 sm:$0xff] %v6294_v6 }
 0x597   :  { %9410 = vst [vmem:[#allocation128_spill] sm:$0xff] %v6982_v38  ;;  %v4404_v38 = vld [vmem:[%s8720_s3 + $0x3f0] sm:$0xff] }
 0x598   :  { %v2456_v48 = vld.sshfl [vmem:[#allocation1 + $0x20] sm:$0xff pattern:$0x73625140]  ;;  %9411 = vst [vmem:[#allocation133_spill] sm:$0xff] %v6997_v61  ;;  %2751 = vmatpush.msrb.mxu2 %v4404_v38  ;;  %v7017_v38 = vpop.f32.mrf.mxu1 }
 0x599   :  { %2461 = vst [vmem:[#allocation1 + $0x20] ss:$4 sm:$0xff] %v8966_v40  ;;  %v4403_v40 = vld [vmem:[%s8720_s3 + $0x3e8] sm:$0xff]  ;;  %v4402_v61 = vld [vmem:[%s8720_s3 + $0x3e0] sm:$0xff] }
 0x59a   :  { %2462 = vst [vmem:[#allocation1 + $0x21] ss:$4 sm:$0xff] %v6986_v17  ;;  %2752 = vmatpush.msrb.mxu2 %v4403_v40  ;;  %v4400_v40 = vld [vmem:[%s8720_s3 + $0x3d0] sm:$0xff] }
 0x59b   :  { %2463 = vst [vmem:[#allocation1 + $0x22] ss:$4 sm:$0xff] %v6993_v8  ;;  %2377 = vmatmul.f32.gmra.mxu3 %v6894_v50  ;;  %v7028_v44 = vpop.f32.mrf.mxu2  ;;  %v4399_v50 = vld [vmem:[%s8720_s3 + $0x3c8] sm:$0xff] }
 0x59c   :  { %9412 = vst [vmem:[#allocation135_spill] sm:$0xff] %v7004_v62  ;;  %2753 = vmatpush.msrb.mxu2 %v4402_v61  ;;  %v9418_v61 = vld [vmem:[#allocation107_spill] sm:$0xff] }
 0x59d   :  { %2464 = vst [vmem:[#allocation1 + $0x23] ss:$4 sm:$0xff] %v9413_v11  ;;  %v2465_v20 = vld.sshfl [vmem:[#allocation1] sm:$0xff pattern:$0x73625140]  ;;  %2551 = vmatmul.f32.gmra.mxu1 %v2455_v28  ;;  %v4401_v28 = vld [vmem:[%s8720_s3 + $0x3d8] sm:$0xff]  ;;  %v7026_v62 = vpop.f32.mrf.mxu3 }
 0x59e   :  { %2467 = vst [vmem:[#allocation1] ss:$4 sm:$0xff] %v9414_v63  ;;  %2754 = vmatpush.msrb.mxu2 %v4401_v28  ;;  %v4398_v28 = vld [vmem:[%s8720_s3 + $0x3c0] sm:$0xff] }
 0x59f   :  { %2468 = vst [vmem:[#allocation1 + $0x1] ss:$4 sm:$0xff] %v9172_v53 }
 0x5a0   :  { %2469 = vst [vmem:[#allocation1 + $0x2] ss:$4 sm:$0xff] %v9173_v30  ;;  %2755 = vmatpush.msrb.mxu2 %v4400_v40  ;;  %v9419_v40 = vld [vmem:[#allocation26_spill] sm:$0xff] }
 0x5a1   :  { %2470 = vst [vmem:[#allocation1 + $0x3] ss:$4 sm:$0xff] %v9367_v5 }
 0x5a2   :  { %9415 = vst [vmem:[#allocation44_spill] sm:$0xff] %v7017_v38  ;;  %2756 = vmatpush.msrb.mxu2 %v4399_v50  ;;  %v4396_v50 = vld [vmem:[%s8720_s3 + $0x3b0] sm:$0xff]  ;;  %v9422_v38 = vld [vmem:[#allocation123_spill] sm:$0xff] }
 0x5a3   :  { %9416 = vst [vmem:[#allocation52_spill] sm:$0xff] %v7026_v62  ;;  %2380 = vmatmul.f32.gmra.mxu3 %v6908_v41  ;;  %v4395_v41 = vld [vmem:[%s8720_s3 + $0x3a8] sm:$0xff] }
 0x5a4   :  { %v2466_v63 = vld.sshfl [vmem:[#allocation1 + $0x20] sm:$0xff pattern:$0x73625140]  ;;  %9417 = vst [vmem:[#allocation45_spill] sm:$0xff] %v7028_v44  ;;  %2757 = vmatpush.msrb.mxu2 %v4398_v28  ;;  %v7053_v28 = vpop.f32.mrf.mxu2  ;;  %v9425_v44 = vld [vmem:[#allocation117_spill] sm:$0xff] }
 0x5a5   :  { %2471 = vst [vmem:[#allocation1 + $0x20] ss:$4 sm:$0xff] %v9418_v61  ;;  %2554 = vmatmul.f32.gmra.mxu1 %v2456_v48  ;;  %v4397_v48 = vld [vmem:[%s8720_s3 + $0x3b8] sm:$0xff]  ;;  %v7047_v61 = vpop.f32.mrf.mxu1 }
 0x5a6   :  { %2472 = vst [vmem:[#allocation1 + $0x21] ss:$4 sm:$0xff] %v5635_v56  ;;  %2758 = vmatpush.msrb.mxu2 %v4397_v48 }
 0x5a7   :  { %2473 = vst [vmem:[#allocation1 + $0x22] ss:$4 sm:$0xff] %v9176_v57 }
 0x5a8   :  { %2474 = vst [vmem:[#allocation1 + $0x23] ss:$4 sm:$0xff] %v9177_v35  ;;  %v2475_v62 = vld.sshfl [vmem:[#allocation1] sm:$0xff pattern:$0x73625140]  ;;  %2759 = vmatpush.msrb.mxu2 %v4396_v50 }
 0x5a9   :  { %2477 = vst [vmem:[#allocation1] ss:$4 sm:$0xff] %v9419_v40  ;;  %v7058_v40 = vpop.f32.mrf.mxu3 }
 0x5aa   :  { %2478 = vst [vmem:[#allocation1 + $0x1] ss:$4 sm:$0xff] %v9373_v1  ;;  %2760 = vmatpush.msrb.mxu2 %v4395_v41  ;;  %v4392_v41 = vld [vmem:[%s8720_s3 + $0x390] sm:$0xff] }
 0x5ab   :  { %2479 = vst [vmem:[#allocation1 + $0x2] ss:$4 sm:$0xff] %v9374_v32  ;;  %2383 = vmatmul.f32.gmra.mxu3 %v6932_v26 }
 0x5ac   :  { %9420 = vst [vmem:[#allocation64_spill] sm:$0xff] %v7047_v61  ;;  %v4394_v61 = vld [vmem:[%s8720_s3 + $0x3a0] sm:$0xff]  ;;  %v7077_v26 = vpop.f32.mrf.mxu2 }
 0x5ad   :  { %2480 = vst [vmem:[#allocation1 + $0x3] ss:$4 sm:$0xff] %v9375_v58  ;;  %2557 = vmatmul.f32.gmra.mxu1 %v2465_v20  ;;  %2761 = vmatpush.msrb.mxu2 %v4394_v61  ;;  %v4393_v20 = vld [vmem:[%s8720_s3 + $0x398] sm:$0xff]  ;;  %v9424_v61 = vld [vmem:[#allocation12_spill] sm:$0xff] }
 0x5ae   :  { %9421 = vst [vmem:[#allocation72_spill] sm:$0xff] %v7053_v28 }
 0x5af   :  { %v2476_v48 = vld.sshfl [vmem:[#allocation1 + $0x20] sm:$0xff pattern:$0x73625140]  ;;  %2762 = vmatpush.msrb.mxu2 %v4393_v20  ;;  %9426 = vst [vmem:[#allocation84_spill] sm:$0xff] %v7077_v26  ;;  %v4391_v20 = vld [vmem:[%s8720_s3 + $0x388] sm:$0xff] }
 0x5b0   :  { %2481 = vst [vmem:[#allocation1 + $0x20] ss:$4 sm:$0xff] %v9422_v38  ;;  %v9423_v38 = vld [vmem:[#allocation20_spill] sm:$0xff] }
 0x5b1   :  { %2482 = vst [vmem:[#allocation1 + $0x21] ss:$4 sm:$0xff] %v5712_v27  ;;  %v832_v28 = vmax.f32 %v9424_v61, %v9423_v38  ;;  %2763 = vmatpush.msrb.mxu2 %v4392_v41  ;;  %v7080_v27 = vpop.f32.mrf.mxu1  ;;  %v7091_v41 = vpop.f32.mrf.mxu3  ;;  %v9430_v61 = vld [vmem:[#allocation140_spill] sm:$0xff] }
 0x5b2   :  { %2483 = vst [vmem:[#allocation1 + $0x22] ss:$4 sm:$0xff] %v9378_v24 }
 0x5b3   :  { %2484 = vst [vmem:[#allocation1 + $0x23] ss:$4 sm:$0xff] %v9184_v13  ;;  %v9428_v13 = vld [vmem:[#allocation29_spill] sm:$0xff]  ;;  %2764 = vmatpush.msrb.mxu2 %v4391_v20 }
 0x5b4   :  { %v2485_v50 = vld.sshfl [vmem:[#allocation1] sm:$0xff pattern:$0x73625140]  ;;  %9427 = vst [vmem:[#allocation77_spill] sm:$0xff] %v7080_v27  ;;  %v833_v24 = vmax.f32 %v832_v28, %v9428_v13  ;;  %v7096_v13 = vpop.f32.mrf.mxu2  ;;  %v4417_v27 = vld [vmem:[%s8720_s3 + $0x458] sm:$0xff] }
 0x5b5   :  { %2487 = vst [vmem:[#allocation1] ss:$4 sm:$0xff] %v9425_v44  ;;  %2560 = vmatmul.f32.gmra.mxu1 %v2466_v63  ;;  %v4390_v44 = vld [vmem:[%s8720_s3 + $0x380] sm:$0xff] }
 0x5b6   :  { %2488 = vst [vmem:[#allocation1 + $0x1] ss:$4 sm:$0xff] %v9382_v52  ;;  %2765 = vmatpush.msrb.mxu2 %v4390_v44  ;;  %v834_v63 = vmax.f32 %v833_v24, %v6677_v43  ;;  %v4443_v28 = vld [vmem:[%s8719_s2] ss:$0 sm:$0xff]  ;;  %v4421_v24 = vld [vmem:[%s8720_s3 + $0x478] sm:$0xff] }
 0x5b7   :  { %2489 = vst [vmem:[#allocation1 + $0x2] ss:$4 sm:$0xff] %v9383_v60  ;;  %2951 = vmatpush.msrb.mxu3 %v4421_v24 }
 0x5b8   :  { %2490 = vst [vmem:[#allocation1 + $0x3] ss:$4 sm:$0xff] %v9384_v55  ;;  %v863_v20 = vadd.f32 %v4443_v28, %v834_v63  ;;  %v4418_v28 = vld [vmem:[%s8720_s3 + $0x460] sm:$0xff] }
 0x5b9   :  { %9429 = vst [vmem:[#allocation94_spill] sm:$0xff] %v7091_v41  ;;  %v7104_v43 = vpop.f32.mrf.mxu1 }
 0x5ba   :  { %v2486_v38 = vld.sshfl [vmem:[#allocation1 + $0x20] sm:$0xff pattern:$0x73625140]  ;;  %9431 = vst [vmem:[#allocation107_spill] sm:$0xff] %v7096_v13  ;;  %v7119_v63 = vmax.f32 %v863_v20, 0.0  ;;  %v8970_v13 = vrot.slane %v6403_v3, 6 }
 0x5bb   :  { %2491 = vst [vmem:[#allocation1 + $0x20] ss:$4 sm:$0xff] %v9430_v61  ;;  %v7113_v61 = vpop.f32.mrf.mxu3 }
 0x5bc   :  { %2492 = vst [vmem:[#allocation1 + $0x21] ss:$4 sm:$0xff] %v9387_v59  ;;  %v7126_v24 = vpop.f32.mrf.mxu2  ;;  %v7132_v20 = vrot.slane %v7119_v63, 2 }
 0x5bd   :  { %2493 = vst [vmem:[#allocation1 + $0x22] ss:$4 sm:$0xff] %v9388_v9  ;;  %2563 = vmatmul.f32.gmra.mxu1 %v2475_v62  ;;  %v4420_v62 = vld [vmem:[%s8720_s3 + $0x470] sm:$0xff] }
 0x5be   :  { %2494 = vst [vmem:[#allocation1 + $0x23] ss:$4 sm:$0xff] %v9390_v21  ;;  %2952 = vmatpush.msrb.mxu3 %v4420_v62  ;;  %v7137_v62 = vrot.slane %v7119_v63, 4  ;;  %v9448_v21 = vld [vmem:[#allocation65_spill] sm:$0xff] }
 0x5bf   :  { %v2495_v44 = vld.sshfl [vmem:[#allocation1] sm:$0xff pattern:$0x73625140]  ;;  %9432 = vst [vmem:[#allocation26_spill] sm:$0xff] %v7104_v43 }
 0x5c0   :  { %2497 = vst [vmem:[#allocation1] ss:$4 sm:$0xff] %v6406_v46  ;;  %v4419_v46 = vld [vmem:[%s8720_s3 + $0x468] sm:$0xff] }
 0x5c1   :  { %2498 = vst [vmem:[#allocation1 + $0x1] ss:$4 sm:$0xff] %v6409_v14  ;;  %2953 = vmatpush.msrb.mxu3 %v4419_v46  ;;  %v7144_v46 = vpop.f32.mrf.mxu1 }
 0x5c2   :  { %2499 = vst [vmem:[#allocation1 + $0x2] ss:$4 sm:$0xff] %v6403_v3 }
 0x5c3   :  { %2500 = vst [vmem:[#allocation1 + $0x3] ss:$4 sm:$0xff] %v6415_v36  ;;  %2954 = vmatpush.msrb.mxu3 %v4418_v28  ;;  %v7147_v41 = vpop.f32.mrf.mxu3  ;;  %v9439_v28 = vld [vmem:[#allocation46_spill] sm:$0xff]  ;;  %v9441_v36 = vld [vmem:[#allocation47_spill] sm:$0xff] }
 0x5c4   :  { %9433 = vst [vmem:[#allocation123_spill] sm:$0xff] %v7126_v24  ;;  %v9436_v24 = vld [vmem:[#allocation55_spill] sm:$0xff]  ;;  %v7151_v26 = vpop.f32.mrf.mxu2 }
 0x5c5   :  { %v2496_v43 = vld.sshfl [vmem:[#allocation1 + $0x20] sm:$0xff pattern:$0x73625140]  ;;  %2566 = vmatmul.f32.gmra.mxu1 %v2476_v48  ;;  %9434 = vst [vmem:[#allocation20_spill] sm:$0xff] %v7137_v62  ;;  %2955 = vmatpush.msrb.mxu3 %v4417_v27  ;;  %v4416_v27 = vld [vmem:[%s8720_s3 + $0x450] sm:$0xff] }
 0x5c6   :  { %2501 = vst [vmem:[#allocation1 + $0x20] ss:$4 sm:$0xff] %v8970_v13  ;;  %v9438_v13 = vld [vmem:[#allocation58_spill] sm:$0xff] }
 0x5c7   :  { %2502 = vst [vmem:[#allocation1 + $0x21] ss:$4 sm:$0xff] %v7119_v63  ;;  %2956 = vmatpush.msrb.mxu3 %v4416_v27  ;;  %v9449_v27 = vld [vmem:[#allocation69_spill] sm:$0xff] }
 0x5c8   :  { %2503 = vst [vmem:[#allocation1 + $0x22] ss:$4 sm:$0xff] %v7132_v20 }
 0x5c9   :  { %2504 = vst [vmem:[#allocation1 + $0x23] ss:$4 sm:$0xff] %v7137_v62 }
 0x5ca   :  { %v7142_v48 = vld.sshfl [vmem:[#allocation1] sm:$0xff pattern:$0x73625140]  ;;  %9435 = vst [vmem:[#allocation12_spill] sm:$0xff] %v7144_v46 }
 0x5cb   :  { %2647 = vst [vmem:[#allocation1] ss:$4 sm:$0xff] %v9436_v24  ;;  %v9442_v46 = vld [vmem:[#allocation60_spill] sm:$0xff]  ;;  %v9443_v24 = vld [vmem:[#allocation61_spill] sm:$0xff] }
 0x5cc   :  { %9437 = vst [vmem:[#allocation117_spill] sm:$0xff] %v7147_v41  ;;  %v9444_v41 = vld [vmem:[#allocation62_spill] sm:$0xff] }
 0x5cd   :  { %2649 = vst [vmem:[#allocation1 + $0x1] ss:$4 sm:$0xff] %v9438_v13  ;;  %2569 = vmatmul.f32.gmra.mxu1 %v2485_v50  ;;  %v7162_v13 = vpop.f32.mrf.mxu1  ;;  %v7167_v50 = vpop.f32.mrf.mxu2 }
 0x5ce   :  { %2651 = vst [vmem:[#allocation1 + $0x2] ss:$4 sm:$0xff] %v9439_v28  ;;  %v9446_v28 = vld [vmem:[#allocation66_spill] sm:$0xff] }
 0x5cf   :  { %9440 = vst [vmem:[#allocation29_spill] sm:$0xff] %v7151_v26 }
 0x5d0   :  { %2653 = vst [vmem:[#allocation1 + $0x3] ss:$4 sm:$0xff] %v9441_v36  ;;  %v7157_v14 = vld.sshfl [vmem:[#allocation1 + $0x20] sm:$0xff pattern:$0x73625140]  ;;  %v7165_v36 = vpop.f32.mrf.mxu3 }
 0x5d1   :  { %2655 = vst [vmem:[#allocation1 + $0x20] ss:$4 sm:$0xff] %v9442_v46  ;;  %v4415_v46 = vld [vmem:[%s8720_s3 + $0x448] sm:$0xff] }
 0x5d2   :  { %2657 = vst [vmem:[#allocation1 + $0x21] ss:$4 sm:$0xff] %v9443_v24  ;;  %2957 = vmatpush.msrb.mxu3 %v4415_v46  ;;  %v9451_v24 = vld [vmem:[#allocation73_spill] sm:$0xff] }
 0x5d3   :  { %2659 = vst [vmem:[#allocation1 + $0x22] ss:$4 sm:$0xff] %v9444_v41  ;;  %v9450_v41 = vld [vmem:[#allocation71_spill] sm:$0xff] }
 0x5d4   :  { %9445 = vst [vmem:[#allocation140_spill] sm:$0xff] %v7162_v13  ;;  %v9452_v13 = vld [vmem:[#allocation76_spill] sm:$0xff] }
 0x5d5   :  { %2661 = vst [vmem:[#allocation1 + $0x23] ss:$4 sm:$0xff] %v9446_v28  ;;  %2572 = vmatmul.f32.gmra.mxu1 %v2486_v38  ;;  %v7177_v9 = vpop.f32.mrf.mxu2  ;;  %v7184_v38 = vpop.f32.mrf.mxu1 }
 0x5d6   :  { %9447 = vst [vmem:[#allocation55_spill] sm:$0xff] %v7167_v50  ;;  %v9454_v50 = vld [vmem:[#allocation78_spill] sm:$0xff] }
 0x5d7   :  { %v2662_v26 = vld.sshfl [vmem:[#allocation1] sm:$0xff pattern:$0x73625140]  ;;  %9453 = vst [vmem:[#allocation58_spill] sm:$0xff] %v7177_v9  ;;  %v9467_v9 = vld [vmem:[#allocation97_spill] sm:$0xff] }
 0x5d8   :  { %2664 = vst [vmem:[#allocation1] ss:$4 sm:$0xff] %v9448_v21  ;;  %2766 = vmatmul.f32.vlgmr.msrb.gmra.mxu2 %v2662_v26  ;;  %v4414_v21 = vld [vmem:[%s8720_s3 + $0x440] sm:$0xff]  ;;  %v7186_v46 = vpop.f32.mrf.mxu3 }
 0x5d9   :  { %2665 = vst [vmem:[#allocation1 + $0x1] ss:$4 sm:$0xff] %v9449_v27  ;;  %v9455_v26 = vld [vmem:[#allocation79_spill] sm:$0xff]  ;;  %2958 = vmatpush.msrb.mxu3 %v4414_v21  ;;  %v4412_v21 = vld [vmem:[%s8720_s3 + $0x430] sm:$0xff] }
 0x5da   :  { %2666 = vst [vmem:[#allocation1 + $0x2] ss:$4 sm:$0xff] %v9450_v41  ;;  %v9458_v27 = vld [vmem:[#allocation83_spill] sm:$0xff]  ;;  %v9459_v41 = vld [vmem:[#allocation85_spill] sm:$0xff] }
 0x5db   :  { %2667 = vst [vmem:[#allocation1 + $0x3] ss:$4 sm:$0xff] %v9451_v24  ;;  %v9460_v24 = vld [vmem:[#allocation86_spill] sm:$0xff] }
 0x5dc   :  { %v2663_v28 = vld.sshfl [vmem:[#allocation1 + $0x20] sm:$0xff pattern:$0x73625140]  ;;  %9456 = vst [vmem:[#allocation46_spill] sm:$0xff] %v7184_v38 }
 0x5dd   :  { %2668 = vst [vmem:[#allocation1 + $0x20] ss:$4 sm:$0xff] %v9452_v13  ;;  %2575 = vmatmul.f32.gmra.mxu1 %v2495_v44  ;;  %v9462_v44 = vld [vmem:[#allocation92_spill] sm:$0xff] }
 0x5de   :  { %2669 = vst [vmem:[#allocation1 + $0x21] ss:$4 sm:$0xff] %v9454_v50  ;;  %v9461_v50 = vld [vmem:[#allocation91_spill] sm:$0xff] }
 0x5df   :  { %2670 = vst [vmem:[#allocation1 + $0x22] ss:$4 sm:$0xff] %v9455_v26  ;;  %v4413_v26 = vld [vmem:[%s8720_s3 + $0x438] sm:$0xff] }
 0x5e0   :  { %2769 = vmatmul.f32.gmra.mxu2 %v2663_v28  ;;  %9457 = vst [vmem:[#allocation47_spill] sm:$0xff] %v7186_v46  ;;  %v7193_v28 = vpop.f32.mrf.mxu2  ;;  %2959 = vmatpush.msrb.mxu3 %v4413_v26  ;;  %v9468_v26 = vld [vmem:[#allocation23_spill] sm:$0xff]  ;;  %v2609_v46 = vrot.slane %v6993_v8, 7 }
 0x5e1   :  { %2671 = vst [vmem:[#allocation1 + $0x23] ss:$4 sm:$0xff] %v9458_v27 }
 0x5e2   :  { %v2672_v13 = vld.sshfl [vmem:[#allocation1] sm:$0xff pattern:$0x73625140]  ;;  %9463 = vst [vmem:[#allocation60_spill] sm:$0xff] %v7193_v28  ;;  %2960 = vmatpush.msrb.mxu3 %v4412_v21  ;;  %v2612_v21 = vrot.slane %v9413_v11, 7 }
 0x5e3   :  { %2674 = vst [vmem:[#allocation1] ss:$4 sm:$0xff] %v9459_v41  ;;  %v1568_v41 = vadd.f32 %v6889_v4, %v6798_v54  ;;  %v4410_v4 = vld [vmem:[%s8720_s3 + $0x420] sm:$0xff]  ;;  %v2606_v54 = vrot.slane %v6986_v17, 7 }
 0x5e4   :  { %2675 = vst [vmem:[#allocation1 + $0x1] ss:$4 sm:$0xff] %v9460_v24  ;;  %v9464_v24 = vld [vmem:[#allocation95_spill] sm:$0xff] }
 0x5e5   :  { %2676 = vst [vmem:[#allocation1 + $0x2] ss:$4 sm:$0xff] %v9461_v50  ;;  %2578 = vmatmul.f32.gmra.mxu1 %v2496_v43  ;;  %v1953_v43 = vpop.f32.mrf.mxu1  ;;  %v9465_v50 = vld [vmem:[#allocation96_spill] sm:$0xff]  ;;  %v1772_v28 = vadd.f32 %v7058_v40, %v1568_v41  ;;  %v9469_v40 = vrot.slane %v6504_v10, 2 }
 0x5e6   :  { %2677 = vst [vmem:[#allocation1 + $0x3] ss:$4 sm:$0xff] %v9462_v44  ;;  %v7208_v44 = vpop.f32.mrf.mxu3 }
 0x5e7   :  { %9466 = vst [vmem:[#allocation61_spill] sm:$0xff] %v7208_v44  ;;  %v1973_v38 = vadd.f32 %v1953_v43, %v1772_v28  ;;  %v4388_v41 = vrot.slane %v9469_v40, 9  ;;  %v9471_v43 = vld [vmem:[#allocation118_spill] sm:$0xff]  ;;  %v2611_v40 = vrot.slane %v2609_v46, 2  ;;  %v4406_v44 = vld [vmem:[%s8720_s3 + $0x400] sm:$0xff] }
 0x5e8   :  { %2772 = vmatmul.f32.gmra.mxu2 %v2672_v13  ;;  %v2673_v27 = vld.sshfl [vmem:[#allocation1 + $0x20] sm:$0xff pattern:$0x73625140]  ;;  %v4411_v13 = vld [vmem:[%s8720_s3 + $0x428] sm:$0xff] }
 0x5e9   :  { %2678 = vst [vmem:[#allocation1 + $0x20] ss:$4 sm:$0xff] %v9464_v24  ;;  %2961 = vmatpush.msrb.mxu3 %v4411_v13  ;;  %v2608_v13 = vrot.slane %v2606_v54, 2 }
 0x5ea   :  { %2679 = vst [vmem:[#allocation1 + $0x21] ss:$4 sm:$0xff] %v9465_v50  ;;  %v8975_v50 = vrot.slane %v9413_v11, 2 }
 0x5eb   :  { %2680 = vst [vmem:[#allocation1 + $0x22] ss:$4 sm:$0xff] %v9467_v9  ;;  %v2180_v9 = vpop.f32.mrf.mxu2  ;;  %2962 = vmatpush.msrb.mxu3 %v4410_v4  ;;  %v2614_v4 = vrot.slane %v2612_v21, 2 }
 0x5ec   :  { %2681 = vst [vmem:[#allocation1 + $0x23] ss:$4 sm:$0xff] %v9468_v26  ;;  %v9470_v26 = vld [vmem:[#allocation110_spill] sm:$0xff]  ;;  %v7226_v28 = vadd.f32 %v2180_v9, %v1973_v38  ;;  %v2607_v9 = vsel %vm5171_vm8, %v4388_v41, %v2606_v54 }
 0x5ed   :  { %v2682_v24 = vld.sshfl [vmem:[#allocation1] sm:$0xff pattern:$0x73625140]  ;;  %2581 = vmatmul.f32.gmra.mxu1 %v7142_v48  ;;  %v2615_v48 = vrot.slane %v8975_v50, 7  ;;  %v2613_v50 = vsel %vm5171_vm8, %v2611_v40, %v2612_v21  ;;  %v9484_v40 = vld [vmem:[#allocation125_spill] sm:$0xff] }
 0x5ee   :  { %2684 = vst [vmem:[#allocation1] ss:$4 sm:$0xff] %v6524_v12  ;;  %v4409_v12 = vld [vmem:[%s8720_s3 + $0x418] sm:$0xff] }
 0x5ef   :  { %2685 = vst [vmem:[#allocation1 + $0x1] ss:$4 sm:$0xff] %v6535_v45  ;;  %v4408_v45 = vld [vmem:[%s8720_s3 + $0x410] sm:$0xff]  ;;  %2963 = vmatpush.msrb.mxu3 %v4409_v12  ;;  %v2610_v12 = vsel %vm5171_vm8, %v2608_v13, %v2609_v46  ;;  %v2616_v54 = vsel %vm5171_vm8, %v2614_v4, %v2615_v48  ;;  %v9476_v13 = vld [vmem:[#allocation111_spill] sm:$0xff]  ;;  %v9483_v48 = vld [vmem:[#allocation124_spill] sm:$0xff] }
 0x5f0   :  { %2775 = vmatmul.f32.gmra.mxu2 %v2673_v27  ;;  %2686 = vst [vmem:[#allocation1 + $0x2] ss:$4 sm:$0xff] %v9470_v26  ;;  %v4407_v27 = vld [vmem:[%s8720_s3 + $0x408] sm:$0xff]  ;;  %v9479_v4 = vld [vmem:[#allocation18_spill] sm:$0xff] }
 0x5f1   :  { %2687 = vst [vmem:[#allocation1 + $0x3] ss:$4 sm:$0xff] %v9471_v43  ;;  %2964 = vmatpush.msrb.mxu3 %v4408_v45  ;;  %v7247_v43 = vpop.f32.mrf.mxu3  ;;  %v9474_v45 = vld [vmem:[#allocation108_spill] sm:$0xff]  ;;  %v9475_v46 = vld [vmem:[#allocation109_spill] sm:$0xff] }
 0x5f2   :  { %9473 = vst [vmem:[#allocation62_spill] sm:$0xff] %v7247_v43 }
 0x5f3   :  { %v2683_v26 = vld.sshfl [vmem:[#allocation1 + $0x20] sm:$0xff pattern:$0x73625140]  ;;  %2965 = vmatpush.msrb.mxu3 %v4407_v27  ;;  %v9477_v27 = vld [vmem:[#allocation114_spill] sm:$0xff] }
 0x5f4   :  { %2688 = vst [vmem:[#allocation1 + $0x20] ss:$4 sm:$0xff] %v2607_v9 }
 0x5f5   :  { %2689 = vst [vmem:[#allocation1 + $0x21] ss:$4 sm:$0xff] %v2610_v12  ;;  %2966 = vmatpush.msrb.mxu3 %v4406_v44  ;;  %2584 = vmatmul.f32.gmra.mxu1 %v7157_v14  ;;  %v9480_v44 = vld [vmem:[#allocation10_spill] sm:$0xff]  ;;  %v9485_v12 = vld [vmem:[#allocation129_spill] sm:$0xff] }
 0x5f6   :  { %2690 = vst [vmem:[#allocation1 + $0x22] ss:$4 sm:$0xff] %v2613_v50  ;;  %v9482_v50 = vld [vmem:[#allocation27_spill] sm:$0xff] }
 0x5f7   :  { %2691 = vst [vmem:[#allocation1 + $0x23] ss:$4 sm:$0xff] %v2616_v54  ;;  %v9486_v54 = vld [vmem:[#allocation130_spill] sm:$0xff] }
 0x5f8   :  { %2778 = vmatmul.f32.gmra.mxu2 %v2682_v24  ;;  %v2692_v41 = vld.sshfl [vmem:[#allocation1] sm:$0xff pattern:$0x73625140] }
 0x5f9   :  { %2694 = vst [vmem:[#allocation1] ss:$4 sm:$0xff] %v9474_v45  ;;  %v7258_v21 = vpop.f32.mrf.mxu3  ;;  %v9481_v24 = vld [vmem:[#allocation119_spill] sm:$0xff] }
 0x5fa   :  { %2695 = vst [vmem:[#allocation1 + $0x1] ss:$4 sm:$0xff] %v9475_v46  ;;  %v9488_v46 = vld [vmem:[#allocation134_spill] sm:$0xff] }
 0x5fb   :  { %2696 = vst [vmem:[#allocation1 + $0x2] ss:$4 sm:$0xff] %v9476_v13  ;;  %v9489_v13 = vld [vmem:[#allocation136_spill] sm:$0xff] }
 0x5fc   :  { %2697 = vst [vmem:[#allocation1 + $0x3] ss:$4 sm:$0xff] %v9477_v27  ;;  %v9490_v27 = vld [vmem:[#allocation137_spill] sm:$0xff] }
 0x5fd   :  { %9478 = vst [vmem:[#allocation66_spill] sm:$0xff] %v7258_v21 }
 0x5fe   :  { %v2693_v9 = vld.sshfl [vmem:[#allocation1 + $0x20] sm:$0xff pattern:$0x73625140] }
 0x5ff   :  { %2698 = vst [vmem:[#allocation1 + $0x20] ss:$4 sm:$0xff] %v9479_v4 }
 0x600   :  { %2781 = vmatmul.f32.gmra.mxu2 %v2683_v26  ;;  %2699 = vst [vmem:[#allocation1 + $0x21] ss:$4 sm:$0xff] %v9480_v44  ;;  %v9491_v44 = vld [vmem:[#allocation139_spill] sm:$0xff] }
 0x601   :  { %2700 = vst [vmem:[#allocation1 + $0x22] ss:$4 sm:$0xff] %v9481_v24  ;;  %v7268_v45 = vpop.f32.mrf.mxu3  ;;  %v9492_v24 = vld [vmem:[#allocation142_spill] sm:$0xff] }
 0x602   :  { %2701 = vst [vmem:[#allocation1 + $0x23] ss:$4 sm:$0xff] %v9482_v50  ;;  %v9493_v50 = vld [vmem:[#allocation143_spill] sm:$0xff] }
 0x603   :  { %v2702_v14 = vld.sshfl [vmem:[#allocation1] sm:$0xff pattern:$0x73625140]  ;;  %9487 = vst [vmem:[#allocation65_spill] sm:$0xff] %v7268_v45  ;;  %v9506_v45 = vrot.slane %v6403_v3, 6 }
 0x604   :  { %2704 = vst [vmem:[#allocation1] ss:$4 sm:$0xff] %v9483_v48  ;;  %v9494_v48 = vld [vmem:[#allocation144_spill] sm:$0xff] }
 0x605   :  { %2705 = vst [vmem:[#allocation1 + $0x1] ss:$4 sm:$0xff] %v9484_v40 }
 0x606   :  { %2706 = vst [vmem:[#allocation1 + $0x2] ss:$4 sm:$0xff] %v9485_v12 }
 0x607   :  { %2707 = vst [vmem:[#allocation1 + $0x3] ss:$4 sm:$0xff] %v9486_v54  ;;  %v9497_v54 = vld [vmem:[#allocation147_spill] sm:$0xff] }
 0x608   :  { %2784 = vmatmul.f32.gmra.mxu2 %v2692_v41  ;;  %v9495_v41 = vld [vmem:[#allocation146_spill] sm:$0xff] }
 0x609   :  { %v2703_v26 = vld.sshfl [vmem:[#allocation1 + $0x20] sm:$0xff pattern:$0x73625140]  ;;  %v7278_v40 = vpop.f32.mrf.mxu3 }
 0x60a   :  { %2708 = vst [vmem:[#allocation1 + $0x20] ss:$4 sm:$0xff] %v9488_v46  ;;  %v9498_v46 = vld [vmem:[#allocation148_spill] sm:$0xff] }
 0x60b   :  { %2709 = vst [vmem:[#allocation1 + $0x21] ss:$4 sm:$0xff] %v9489_v13  ;;  %v9499_v13 = vld [vmem:[#allocation149_spill] sm:$0xff] }
 0x60c   :  { %2710 = vst [vmem:[#allocation1 + $0x22] ss:$4 sm:$0xff] %v9490_v27  ;;  %v2619_v27 = vrot.slane %v7119_v63, 7 }
 0x60d   :  { %2711 = vst [vmem:[#allocation1 + $0x23] ss:$4 sm:$0xff] %v9491_v44 }
 0x60e   :  { %v2712_v4 = vld.sshfl [vmem:[#allocation1] sm:$0xff pattern:$0x73625140]  ;;  %9496 = vst [vmem:[#allocation69_spill] sm:$0xff] %v7278_v40 }
 0x60f   :  { %2714 = vst [vmem:[#allocation1] ss:$4 sm:$0xff] %v9492_v24  ;;  %v2622_v24 = vrot.slane %v7132_v20, 7 }
 0x610   :  { %2787 = vmatmul.f32.gmra.mxu2 %v2693_v9  ;;  %2715 = vst [vmem:[#allocation1 + $0x1] ss:$4 sm:$0xff] %v9493_v50  ;;  %v9500_v9 = vld [vmem:[#allocation150_spill] sm:$0xff] }
 0x611   :  { %2716 = vst [vmem:[#allocation1 + $0x2] ss:$4 sm:$0xff] %v9494_v48  ;;  %v9501_v50 = vld [vmem:[#allocation54_spill] sm:$0xff]  ;;  %v2625_v48 = vrot.slane %v7137_v62, 7  ;;  %v7289_v40 = vpop.f32.mrf.mxu3  ;;  %v2624_v21 = vrot.slane %v2622_v24, 2 }
 0x612   :  { %2717 = vst [vmem:[#allocation1 + $0x3] ss:$4 sm:$0xff] %v9495_v41  ;;  %v9502_v41 = vld [vmem:[#allocation38_spill] sm:$0xff] }
 0x613   :  { %9503 = vst [vmem:[#allocation71_spill] sm:$0xff] %v7289_v40  ;;  %v2627_v43 = vrot.slane %v2625_v48, 2 }
 0x614   :  { %v2713_v12 = vld.sshfl [vmem:[#allocation1 + $0x20] sm:$0xff pattern:$0x73625140] }
 0x615   :  { %2718 = vst [vmem:[#allocation1 + $0x20] ss:$4 sm:$0xff] %v9497_v54  ;;  %v9504_v54 = vld [vmem:[#allocation81_spill] sm:$0xff] }
 0x616   :  { %2719 = vst [vmem:[#allocation1 + $0x21] ss:$4 sm:$0xff] %v9498_v46  ;;  %v2621_v46 = vrot.slane %v2619_v27, 2 }
 0x617   :  { %2720 = vst [vmem:[#allocation1 + $0x22] ss:$4 sm:$0xff] %v9499_v13  ;;  %v9505_v13 = vld [vmem:[#allocation48_spill] sm:$0xff] }
 0x618   :  { %2790 = vmatmul.f32.gmra.mxu2 %v2702_v14  ;;  %2721 = vst [vmem:[#allocation1 + $0x23] ss:$4 sm:$0xff] %v9500_v9  ;;  %v988_v14 = vrot.slane %v7119_v63, 6  ;;  %v4389_v9 = vrot.slane %v9506_v45, 9 }
 0x619   :  { %v2722_v44 = vld.sshfl [vmem:[#allocation1] sm:$0xff pattern:$0x73625140]  ;;  %v7306_v40 = vpop.f32.mrf.mxu3 }
 0x61a   :  { %2724 = vst [vmem:[#allocation1] ss:$4 sm:$0xff] %v9501_v50  ;;  %v2620_v50 = vsel %vm5171_vm8, %v4389_v9, %v2619_v27 }
 0x61b   :  { %2725 = vst [vmem:[#allocation1 + $0x1] ss:$4 sm:$0xff] %v9502_v41  ;;  %v2623_v41 = vsel %vm5171_vm8, %v2621_v46, %v2622_v24  ;;  %v9508_v24 = vld [vmem:[#allocation39_spill] sm:$0xff] }
 0x61c   :  { %2726 = vst [vmem:[#allocation1 + $0x2] ss:$4 sm:$0xff] %v9504_v54  ;;  %v2628_v54 = vrot.slane %v988_v14, 7 }
 0x61d   :  { %2727 = vst [vmem:[#allocation1 + $0x3] ss:$4 sm:$0xff] %v9505_v13  ;;  %v2626_v13 = vsel %vm5171_vm8, %v2624_v21, %v2625_v48 }
 0x61e   :  { %v2629_v45 = vsel %vm5171_vm8, %v2627_v43, %v2628_v54  ;;  %v9509_v43 = vld [vmem:[#allocation56_spill] sm:$0xff] }
 0x61f   :  { %v2723_v62 = vld.sshfl [vmem:[#allocation1 + $0x20] sm:$0xff pattern:$0x73625140] }
 0x620   :  { %2793 = vmatmul.f32.gmra.mxu2 %v2703_v26  ;;  %2728 = vst [vmem:[#allocation1 + $0x20] ss:$4 sm:$0xff] %v2620_v50  ;;  %v9507_v26 = vld [vmem:[#allocation35_spill] sm:$0xff] }
 0x621   :  { %2729 = vst [vmem:[#allocation1 + $0x21] ss:$4 sm:$0xff] %v2623_v41  ;;  %v7312_v21 = vpop.f32.mrf.mxu3 }
 0x622   :  { %2730 = vst [vmem:[#allocation1 + $0x22] ss:$4 sm:$0xff] %v2626_v13 }
 0x623   :  { %2731 = vst [vmem:[#allocation1 + $0x23] ss:$4 sm:$0xff] %v2629_v45  ;;  %v9525_v45 = vld [vmem:[#allocation116_spill] sm:$0xff] }
 0x624   :  { %v2732_v27 = vld.sshfl [vmem:[#allocation1] sm:$0xff pattern:$0x73625140] }
 0x625   :  { %2848 = vst [vmem:[#allocation1] ss:$4 sm:$0xff] %v5261_v39 }
 0x626   :  { %2850 = vst [vmem:[#allocation1 + $0x1] ss:$4 sm:$0xff] %v5153_v29  ;;  %v9510_v29 = vld [vmem:[#allocation57_spill] sm:$0xff] }
 0x627   :  { %2852 = vst [vmem:[#allocation1 + $0x2] ss:$4 sm:$0xff] %v9507_v26 }
 0x628   :  { %2854 = vst [vmem:[#allocation1 + $0x3] ss:$4 sm:$0xff] %v9508_v24  ;;  %2796 = vmatmul.f32.gmra.mxu2 %v2712_v4  ;;  %v9527_v24 = vld [vmem:[#allocation121_spill] sm:$0xff] }
 0x629   :  { %v7322_v39 = vpop.f32.mrf.mxu3 }
 0x62a   :  { %v2733_v46 = vld.sshfl [vmem:[#allocation1 + $0x20] sm:$0xff pattern:$0x73625140] }
 0x62b   :  { %2856 = vst [vmem:[#allocation1 + $0x20] ss:$4 sm:$0xff] %v5214_v15 }
 0x62c   :  { %2858 = vst [vmem:[#allocation1 + $0x21] ss:$4 sm:$0xff] %v9343_v18  ;;  %v9511_v18 = vld [vmem:[#allocation68_spill] sm:$0xff] }
 0x62d   :  { %2860 = vst [vmem:[#allocation1 + $0x22] ss:$4 sm:$0xff] %v9344_v25  ;;  %v9512_v25 = vld [vmem:[#allocation82_spill] sm:$0xff] }
 0x62e   :  { %2862 = vst [vmem:[#allocation1 + $0x23] ss:$4 sm:$0xff] %v9509_v43 }
 0x62f   :  { %v2863_v38 = vld.sshfl [vmem:[#allocation1] sm:$0xff pattern:$0x73625140] }
 0x630   :  { %2967 = vmatmul.f32.vlgmr.msrb.gmra.mxu3 %v2863_v38  ;;  %2865 = vst [vmem:[#allocation1] ss:$4 sm:$0xff] %v5304_v7  ;;  %2799 = vmatmul.f32.gmra.mxu2 %v2713_v12  ;;  %v9519_v12 = vld [vmem:[#allocation16_spill] sm:$0xff] }
 0x631   :  { %2866 = vst [vmem:[#allocation1 + $0x1] ss:$4 sm:$0xff] %v9163_v0  ;;  %v7329_v0 = vpop.f32.mrf.mxu3  ;;  %v9530_v38 = vld [vmem:[#allocation132_spill] sm:$0xff] }
 0x632   :  { %2867 = vst [vmem:[#allocation1 + $0x2] ss:$4 sm:$0xff] %v9348_v51 }
 0x633   :  { %2868 = vst [vmem:[#allocation1 + $0x3] ss:$4 sm:$0xff] %v9510_v29 }
 0x635   :  { %v2864_v15 = vld.sshfl [vmem:[#allocation1 + $0x20] sm:$0xff pattern:$0x73625140] }
 0x636   :  { %2869 = vst [vmem:[#allocation1 + $0x20] ss:$4 sm:$0xff] %v5353_v33  ;;  %v7334_v33 = vpop.f32.mrf.mxu1 }
 0x637   :  { %2870 = vst [vmem:[#allocation1 + $0x21] ss:$4 sm:$0xff] %v5377_v16 }
 0x638   :  { %2970 = vmatmul.f32.gmra.mxu3 %v2864_v15  ;;  %2802 = vmatmul.f32.gmra.mxu2 %v2722_v44  ;;  %2871 = vst [vmem:[#allocation1 + $0x22] ss:$4 sm:$0xff] %v5364_v34 }
 0x639   :  { %2872 = vst [vmem:[#allocation1 + $0x23] ss:$4 sm:$0xff] %v9511_v18  ;;  %v2381_v34 = vpop.f32.mrf.mxu3 }
 0x63a   :  { %v2873_v7 = vld.sshfl [vmem:[#allocation1] sm:$0xff pattern:$0x73625140] }
 0x63b   :  { %2875 = vst [vmem:[#allocation1] ss:$4 sm:$0xff] %v5405_v31  ;;  %v7340_v31 = vadd.f32 %v2381_v34, %v7226_v28  ;;  %v9518_v28 = vld [vmem:[#allocation9_spill] sm:$0xff] }
 0x63c   :  { %2876 = vst [vmem:[#allocation1 + $0x1] ss:$4 sm:$0xff] %v5385_v47  ;;  %v9513_v47 = vld [vmem:[#allocation88_spill] sm:$0xff] }
 0x63d   :  { %2877 = vst [vmem:[#allocation1 + $0x2] ss:$4 sm:$0xff] %v5419_v2 }
 0x63e   :  { %2878 = vst [vmem:[#allocation1 + $0x3] ss:$4 sm:$0xff] %v9512_v25  ;;  %v2540_v51 = vpop.f32.mrf.mxu1 }
 0x640   :  { %2973 = vmatmul.f32.gmra.mxu3 %v2873_v7  ;;  %2805 = vmatmul.f32.gmra.mxu2 %v2723_v62  ;;  %v2874_v16 = vld.sshfl [vmem:[#allocation1 + $0x20] sm:$0xff pattern:$0x73625140] }
 0x641   :  { %2879 = vst [vmem:[#allocation1 + $0x20] ss:$4 sm:$0xff] %v9356_v49  ;;  %v9515_v49 = vld [vmem:[#allocation98_spill] sm:$0xff]  ;;  %v9531_v7 = vld [vmem:[#allocation131_spill] sm:$0xff] }
 0x642   :  { %2880 = vst [vmem:[#allocation1 + $0x21] ss:$4 sm:$0xff] %v9357_v22 }
 0x643   :  { %2881 = vst [vmem:[#allocation1 + $0x22] ss:$4 sm:$0xff] %v9358_v19  ;;  %v9514_v19 = vld [vmem:[#allocation67_spill] sm:$0xff] }
 0x644   :  { %2882 = vst [vmem:[#allocation1 + $0x23] ss:$4 sm:$0xff] %v9513_v47  ;;  %v1526_v62 = vadd.f32 %v9515_v49, %v9514_v19  ;;  %v9532_v47 = vld [vmem:[#allocation141_spill] sm:$0xff]  ;;  %v9537_v19 = vld [vmem:[#allocation14_spill] sm:$0xff] }
 0x645   :  { %v2883_v2 = vld.sshfl [vmem:[#allocation1] sm:$0xff pattern:$0x73625140] }
 0x646   :  { %2885 = vst [vmem:[#allocation1] ss:$4 sm:$0xff] %v6283_v37 }
 0x647   :  { %2886 = vst [vmem:[#allocation1 + $0x1] ss:$4 sm:$0xff] %v6290_v42  ;;  %v9516_v42 = vrot.slane %v9413_v11, 2 }
 0x648   :  { %2976 = vmatmul.f32.gmra.mxu3 %v2874_v16  ;;  %2887 = vst [vmem:[#allocation1 + $0x2] ss:$4 sm:$0xff] %v6294_v6  ;;  %2808 = vmatmul.f32.gmra.mxu2 %v2732_v27  ;;  %v9517_v6 = vld [vmem:[#allocation104_spill] sm:$0xff] }
 0x649   :  { %2888 = vst [vmem:[#allocation1 + $0x3] ss:$4 sm:$0xff] %v6504_v10  ;;  %v1758_v10 = vadd.f32 %v9517_v6, %v1526_v62  ;;  %v9538_v62 = vld [vmem:[#allocation103_spill] sm:$0xff] }
 0x64a   :  { %v9540_v6 = vld [vmem:[#allocation63_spill] sm:$0xff] }
 0x64b   :  { %v2884_v22 = vld.sshfl [vmem:[#allocation1 + $0x20] sm:$0xff pattern:$0x73625140]  ;;  %v1959_v4 = vadd.f32 %v9518_v28, %v1758_v10  ;;  %v9541_v10 = vld [vmem:[#allocation21_spill] sm:$0xff] }
 0x64c   :  { %2889 = vst [vmem:[#allocation1 + $0x20] ss:$4 sm:$0xff] %v6986_v17  ;;  %v7357_v17 = vpop.f32.mrf.mxu2  ;;  %v9542_v28 = vld [vmem:[#allocation135_spill] sm:$0xff] }
 0x64d   :  { %2890 = vst [vmem:[#allocation1 + $0x21] ss:$4 sm:$0xff] %v6993_v8  ;;  %v7359_v8 = vpop.f32.mrf.mxu1 }
 0x64e   :  { %2891 = vst [vmem:[#allocation1 + $0x22] ss:$4 sm:$0xff] %v9413_v11  ;;  %v2186_v11 = vadd.f32 %v6943_v23, %v1959_v4 }
 0x64f   :  { %2892 = vst [vmem:[#allocation1 + $0x23] ss:$4 sm:$0xff] %v9516_v42 }
 0x650   :  { %2979 = vmatmul.f32.gmra.mxu3 %v2883_v2  ;;  %v2893_v37 = vld.sshfl [vmem:[#allocation1] sm:$0xff pattern:$0x73625140]  ;;  %2811 = vmatmul.f32.gmra.mxu2 %v2733_v46  ;;  %v2387_v48 = vadd.f32 %v7113_v61, %v2186_v11  ;;  %v9544_v11 = vld [vmem:[#allocation5_spill] sm:$0xff] }
 0x651   :  { %2895 = vst [vmem:[#allocation1] ss:$4 sm:$0xff] %v9172_v53  ;;  %v9521_v61 = vld [vmem:[#allocation120_spill] sm:$0xff]  ;;  %v9533_v2 = vld [vmem:[#allocation7_spill] sm:$0xff] }
 0x652   :  { %2896 = vst [vmem:[#allocation1 + $0x1] ss:$4 sm:$0xff] %v9173_v30  ;;  %v2588_v53 = vadd.f32 %v2540_v51, %v2387_v48  ;;  %v9520_v30 = vld [vmem:[#allocation112_spill] sm:$0xff]  ;;  %v9545_v48 = vld [vmem:[#allocation61_spill] sm:$0xff] }
 0x653   :  { %2897 = vst [vmem:[#allocation1 + $0x2] ss:$4 sm:$0xff] %v9367_v5 }
 0x654   :  { %2898 = vst [vmem:[#allocation1 + $0x3] ss:$4 sm:$0xff] %v9519_v12  ;;  %v9543_v12 = vld [vmem:[#allocation127_spill] sm:$0xff] }
 0x655   :  { %v2546_v23 = vpop.f32.mrf.mxu1 }
 0x656   :  { %v2894_v44 = vld.sshfl [vmem:[#allocation1 + $0x20] sm:$0xff pattern:$0x73625140] }
 0x657   :  { %2899 = vst [vmem:[#allocation1 + $0x20] ss:$4 sm:$0xff] %v5635_v56  ;;  %v9522_v56 = vld [vmem:[#allocation36_spill] sm:$0xff] }
 0x658   :  { %2982 = vmatmul.f32.gmra.mxu3 %v2884_v22  ;;  %2900 = vst [vmem:[#allocation1 + $0x21] ss:$4 sm:$0xff] %v9176_v57  ;;  %v9523_v57 = vld [vmem:[#allocation31_spill] sm:$0xff]  ;;  %v9536_v22 = vld [vmem:[#allocation145_spill] sm:$0xff] }
 0x659   :  { %2901 = vst [vmem:[#allocation1 + $0x22] ss:$4 sm:$0xff] %v9177_v35  ;;  %v1532_v41 = vadd.f32 %v9523_v57, %v9522_v56  ;;  %v9524_v35 = vld [vmem:[#allocation15_spill] sm:$0xff]  ;;  %v9547_v56 = vld [vmem:[#allocation20_spill] sm:$0xff]  ;;  %v9548_v57 = vld [vmem:[#allocation105_spill] sm:$0xff] }
 0x65a   :  { %2902 = vst [vmem:[#allocation1 + $0x23] ss:$4 sm:$0xff] %v9520_v30 }
 0x65b   :  { %v2903_v5 = vld.sshfl [vmem:[#allocation1] sm:$0xff pattern:$0x73625140]  ;;  %v2767_v9 = vpop.f32.mrf.mxu2  ;;  %v1760_v54 = vadd.f32 %v9524_v35, %v1532_v41 }
 0x65c   :  { %2905 = vst [vmem:[#allocation1] ss:$4 sm:$0xff] %v9373_v1  ;;  %v7371_v50 = vadd.f32 %v2767_v9, %v2588_v53  ;;  %v9526_v1 = vld [vmem:[#allocation51_spill] sm:$0xff] }
 0x65d   :  { %2906 = vst [vmem:[#allocation1 + $0x1] ss:$4 sm:$0xff] %v9374_v32  ;;  %v1961_v26 = vadd.f32 %v9526_v1, %v1760_v54  ;;  %v9528_v32 = vld [vmem:[#allocation122_spill] sm:$0xff]  ;;  %v7387_v29 = vpop.f32.mrf.mxu1  ;;  %v9549_v54 = vld [vmem:[#allocation45_spill] sm:$0xff]  ;;  %v9551_v1 = vld [vmem:[#allocation99_spill] sm:$0xff] }
 0x65e   :  { %2907 = vst [vmem:[#allocation1 + $0x2] ss:$4 sm:$0xff] %v9375_v58  ;;  %v9529_v58 = vld [vmem:[#allocation113_spill] sm:$0xff] }
 0x65f   :  { %2908 = vst [vmem:[#allocation1 + $0x3] ss:$4 sm:$0xff] %v9521_v61  ;;  %v2188_v46 = vadd.f32 %v9529_v58, %v1961_v26 }
 0x660   :  { %2985 = vmatmul.f32.gmra.mxu3 %v2893_v37 }
 0x661   :  { %v2904_v13 = vld.sshfl [vmem:[#allocation1 + $0x20] sm:$0xff pattern:$0x73625140]  ;;  %v2389_v15 = vadd.f32 %v7165_v36, %v2188_v46  ;;  %v9535_v36 = vld [vmem:[#allocation138_spill] sm:$0xff] }
 0x662   :  { %2909 = vst [vmem:[#allocation1 + $0x20] ss:$4 sm:$0xff] %v9525_v45  ;;  %v9550_v45 = vld [vmem:[#allocation37_spill] sm:$0xff] }
 0x663   :  { %v7380_v27 = vpop.f32.mrf.mxu2  ;;  %2910 = vst [vmem:[#allocation1 + $0x21] ss:$4 sm:$0xff] %v9527_v24  ;;  %v2590_v18 = vadd.f32 %v2546_v23, %v2389_v15  ;;  %v1544_v26 = vadd.f32 %v9551_v1, %v9550_v45  ;;  %v9552_v24 = vld [vmem:[#allocation62_spill] sm:$0xff]  ;;  %v9554_v15 = vld [vmem:[#allocation128_spill] sm:$0xff] }
 0x664   :  { %2911 = vst [vmem:[#allocation1 + $0x22] ss:$4 sm:$0xff] %v9528_v32 }
 0x665   :  { %2912 = vst [vmem:[#allocation1 + $0x23] ss:$4 sm:$0xff] %v9530_v38 }
 0x666   :  { %v2913_v43 = vld.sshfl [vmem:[#allocation1] sm:$0xff pattern:$0x73625140] }
 0x667   :  { %2915 = vst [vmem:[#allocation1] ss:$4 sm:$0xff] %v9382_v52  ;;  %v9534_v52 = vld [vmem:[#allocation33_spill] sm:$0xff] }
 0x668   :  { %2988 = vmatmul.f32.gmra.mxu3 %v2894_v44  ;;  %2916 = vst [vmem:[#allocation1 + $0x1] ss:$4 sm:$0xff] %v9383_v60  ;;  %v1538_v51 = vadd.f32 %v9534_v52, %v9533_v2  ;;  %v2552_v60 = vpop.f32.mrf.mxu1  ;;  %v1541_v44 = vadd.f32 %v9544_v11, %v9543_v12  ;;  %v9557_v2 = vld [vmem:[#allocation100_spill] sm:$0xff] }
 0x669   :  { %2917 = vst [vmem:[#allocation1 + $0x2] ss:$4 sm:$0xff] %v9384_v55 }
 0x66a   :  { %2918 = vst [vmem:[#allocation1 + $0x3] ss:$4 sm:$0xff] %v9531_v7  ;;  %v1762_v49 = vadd.f32 %v9537_v19, %v1538_v51  ;;  %v9558_v51 = vld [vmem:[#allocation66_spill] sm:$0xff] }
 0x66b   :  { %v2773_v25 = vpop.f32.mrf.mxu2 }
 0x66c   :  { %v7394_v16 = vadd.f32 %v2773_v25, %v2590_v18  ;;  %v2914_v34 = vld.sshfl [vmem:[#allocation1 + $0x20] sm:$0xff pattern:$0x73625140] }
 0x66d   :  { %2919 = vst [vmem:[#allocation1 + $0x20] ss:$4 sm:$0xff] %v9387_v59  ;;  %v9539_v59 = vld [vmem:[#allocation90_spill] sm:$0xff] }
 0x66e   :  { %2920 = vst [vmem:[#allocation1 + $0x21] ss:$4 sm:$0xff] %v9532_v47  ;;  %v1963_v37 = vadd.f32 %v9539_v59, %v1762_v49  ;;  %v9555_v47 = vld [vmem:[#allocation72_spill] sm:$0xff] }
 0x66f   :  { %2921 = vst [vmem:[#allocation1 + $0x22] ss:$4 sm:$0xff] %v9535_v36  ;;  %v9560_v49 = vld [vmem:[#allocation44_spill] sm:$0xff] }
 0x670   :  { %2991 = vmatmul.f32.gmra.mxu3 %v2903_v5  ;;  %2922 = vst [vmem:[#allocation1 + $0x23] ss:$4 sm:$0xff] %v9536_v22  ;;  %v2190_v4 = vadd.f32 %v9542_v28, %v1963_v37  ;;  %v9546_v5 = vld [vmem:[#allocation49_spill] sm:$0xff]  ;;  %v2555_v23 = vpop.f32.mrf.mxu1  ;;  %v9561_v37 = vld [vmem:[#allocation84_spill] sm:$0xff] }
 0x671   :  { %v2923_v55 = vld.sshfl [vmem:[#allocation1] sm:$0xff pattern:$0x73625140]  ;;  %v1763_v9 = vadd.f32 %v9546_v5, %v1541_v44  ;;  %v9562_v28 = vld [vmem:[#allocation65_spill] sm:$0xff] }
 0x672   :  { %2925 = vst [vmem:[#allocation1] ss:$4 sm:$0xff] %v9538_v62  ;;  %v2391_v53 = vadd.f32 %v9545_v48, %v2190_v4 }
 0x673   :  { %v7404_v42 = vpop.f32.mrf.mxu2  ;;  %2926 = vst [vmem:[#allocation1 + $0x1] ss:$4 sm:$0xff] %v6403_v3  ;;  %v1964_v41 = vadd.f32 %v9548_v57, %v1763_v9  ;;  %v9563_v9 = vld [vmem:[#allocation80_spill] sm:$0xff] }
 0x674   :  { %2927 = vst [vmem:[#allocation1 + $0x2] ss:$4 sm:$0xff] %v9540_v6  ;;  %v2592_v3 = vadd.f32 %v2552_v60, %v2391_v53  ;;  %v9559_v60 = vld [vmem:[#allocation42_spill] sm:$0xff]  ;;  %v7443_v53 = vpop.f32.mrf.mxu3 }
 0x675   :  { %2928 = vst [vmem:[#allocation1 + $0x3] ss:$4 sm:$0xff] %v9541_v10 }
 0x677   :  { %v2924_v30 = vld.sshfl [vmem:[#allocation1 + $0x20] sm:$0xff pattern:$0x73625140] }
 0x678   :  { %2994 = vmatmul.f32.gmra.mxu3 %v2904_v13  ;;  %2929 = vst [vmem:[#allocation1 + $0x20] ss:$4 sm:$0xff] %v7119_v63  ;;  %v2191_v13 = vadd.f32 %v9549_v54, %v1964_v41  ;;  %v2558_v25 = vpop.f32.mrf.mxu1 }
 0x679   :  { %2930 = vst [vmem:[#allocation1 + $0x21] ss:$4 sm:$0xff] %v7132_v20  ;;  %v9553_v20 = vld [vmem:[#allocation25_spill] sm:$0xff] }
 0x67a   :  { %2931 = vst [vmem:[#allocation1 + $0x22] ss:$4 sm:$0xff] %v9547_v56  ;;  %v2392_v32 = vadd.f32 %v9552_v24, %v2191_v13  ;;  %v1764_v58 = vadd.f32 %v9553_v20, %v1544_v26  ;;  %v9567_v13 = vld [vmem:[#allocation8_spill] sm:$0xff]  ;;  %v9568_v26 = vld [vmem:[#allocation117_spill] sm:$0xff] }
 0x67b   :  { %v2779_v61 = vpop.f32.mrf.mxu2  ;;  %2932 = vst [vmem:[#allocation1 + $0x23] ss:$4 sm:$0xff] %v988_v14  ;;  %v9556_v14 = vld [vmem:[#allocation32_spill] sm:$0xff] }
 0x67c   :  { %v7419_v35 = vadd.f32 %v2779_v61, %v2592_v3  ;;  %v2593_v46 = vadd.f32 %v2555_v23, %v2392_v32  ;;  %v1965_v18 = vadd.f32 %v9554_v15, %v1764_v58  ;;  %v1547_v52 = vadd.f32 %v9557_v2, %v9556_v14  ;;  %v9564_v3 = vld [vmem:[#allocation17_spill] sm:$0xff]  ;;  %v9565_v61 = vld [vmem:[#allocation19_spill] sm:$0xff]  ;;  %v9571_v14 = vld [vmem:[#allocation50_spill] sm:$0xff] }
 0x67d   :  { %v1529_v23 = vadd.f32 %v9564_v3, %v9563_v9  ;;  %v9569_v15 = vld [vmem:[#allocation87_spill] sm:$0xff] }
 0x67e   :  { %v2192_v63 = vadd.f32 %v9555_v47, %v1965_v18  ;;  %v1765_v22 = vadd.f32 %v9559_v60, %v1547_v52  ;;  %v9570_v18 = vld [vmem:[#allocation30_spill] sm:$0xff] }
 0x67f   :  { %v1759_v56 = vadd.f32 %v9565_v61, %v1529_v23  ;;  %v9572_v52 = vld [vmem:[#allocation74_spill] sm:$0xff] }
 0x680   :  { %2997 = vmatmul.f32.gmra.mxu3 %v2913_v43  ;;  %v2393_v36 = vadd.f32 %v9558_v51, %v2192_v63  ;;  %v1966_v62 = vadd.f32 %v9560_v49, %v1765_v22  ;;  %v2561_v10 = vpop.f32.mrf.mxu1  ;;  %v9573_v60 = vld [vmem:[#allocation126_spill] sm:$0xff] }
 0x681   :  { %v3550_v49 = vld [vmem:[%s8722_s5 + $0x78] sm:$0xff] }
 0x682   :  { %v2594_v43 = vadd.f32 %v2558_v25, %v2393_v36  ;;  %v2193_v6 = vadd.f32 %v9561_v37, %v1966_v62  ;;  %v2934_v48 = vld.sshfl [vmem:[#allocation1 + $0x20] sm:$0xff pattern:$0x73625140]  ;;  %v1535_v25 = vadd.f32 %v9570_v18, %v9569_v15  ;;  %v3582_v62 = vld [vmem:[%s8722_s5 + $0x178] sm:$0xff]  ;;  %3795 = vmatpush.msra.mxu1 %v3550_v49  ;;  %v9579_v15 = vld [vmem:[#allocation93_spill] sm:$0xff] }
 0x683   :  { %v2782_v38 = vpop.f32.mrf.mxu2  ;;  %3835 = vmatpush.msra.mxu3 %v3582_v62  ;;  %v9580_v18 = vld [vmem:[#allocation53_spill] sm:$0xff] }
 0x684   :  { %v7429_v7 = vadd.f32 %v2782_v38, %v2593_v46  ;;  %v2394_v4 = vadd.f32 %v9562_v28, %v2193_v6  ;;  %v3581_v28 = vld [vmem:[%s8722_s5 + $0x170] sm:$0xff] }
 0x685   :  { %3836 = vmatpush.msra.mxu3 %v3581_v28 }
 0x686   :  { %v2595_v12 = vadd.f32 %v2561_v10, %v2394_v4  ;;  %v3549_v10 = vld [vmem:[%s8722_s5 + $0x70] sm:$0xff]  ;;  %v9574_v4 = vld [vmem:[#allocation47_spill] sm:$0xff] }
 0x687   :  { %3796 = vmatpush.msra.mxu1 %v3549_v10  ;;  %v9588_v10 = vld [vmem:[#allocation70_spill] sm:$0xff] }
 0x688   :  { %3000 = vmatmul.f32.gmra.mxu3 %v2914_v34  ;;  %v2933_v34 = vld.sshfl [vmem:[#allocation1] sm:$0xff pattern:$0x73625140]  ;;  %v7445_v5 = vpop.f32.mrf.mxu1 }
 0x68b   :  { %v2785_v19 = vpop.f32.mrf.mxu2 }
 0x68c   :  { %v7437_v59 = vadd.f32 %v2785_v19, %v2594_v43  ;;  %v3566_v19 = vld [vmem:[%s8722_s5 + $0xf8] sm:$0xff] }
 0x68d   :  { %3815 = vmatpush.msra.mxu2 %v3566_v19  ;;  %v9586_v19 = vld [vmem:[#allocation106_spill] sm:$0xff] }
 0x690   :  { %3003 = vmatmul.f32.gmra.mxu3 %v2923_v55  ;;  %v9566_v55 = vld [vmem:[#allocation43_spill] sm:$0xff]  ;;  %v7455_v1 = vpop.f32.mrf.mxu1 }
 0x691   :  { %v1960_v41 = vadd.f32 %v9566_v55, %v1759_v56 }
 0x693   :  { %v2788_v11 = vpop.f32.mrf.mxu2 }
 0x694   :  { %v7441_v44 = vadd.f32 %v2788_v11, %v2595_v12 }
 0x698   :  { %3006 = vmatmul.f32.gmra.mxu3 %v2924_v30  ;;  %v2187_v30 = vadd.f32 %v9567_v13, %v1960_v41  ;;  %v7464_v63 = vpop.f32.mrf.mxu1 }
 0x69a   :  { %v2388_v24 = vadd.f32 %v9568_v26, %v2187_v30  ;;  %v9575_v26 = vld [vmem:[#allocation13_spill] sm:$0xff] }
 0x69b   :  { %v7450_v57 = vpop.f32.mrf.mxu2 }
 0x69c   :  { %v2589_v32 = vadd.f32 %v7359_v8, %v2388_v24  ;;  %v9576_v24 = vld [vmem:[#allocation11_spill] sm:$0xff] }
 0x69e   :  { %v2816_v20 = vadd.f32 %v7380_v27, %v2589_v32 }
 0x6a0   :  { %3009 = vmatmul.f32.gmra.mxu3 %v2933_v34  ;;  %v7494_v9 = vpop.f32.mrf.mxu1 }
 0x6a3   :  { %v7460_v58 = vpop.f32.mrf.mxu2 }
 0x6a8   :  { %3012 = vmatmul.f32.gmra.mxu3 %v2934_v48 }
 0x6ab   :  { %v7480_v6 = vpop.f32.mrf.mxu2 }
 0x6b3   :  { %v2968_v54 = vpop.f32.mrf.mxu3 }
 0x6b4   :  { %v3016_v45 = vadd.f32 %v2968_v54, %v7371_v50  ;;  %v1761_v50 = vadd.f32 %v9571_v14, %v1535_v25  ;;  %v1556_v25 = vadd.f32 %v9580_v18, %v9579_v15  ;;  %v9582_v14 = vld [vmem:[#allocation6_spill] sm:$0xff] }
 0x6b6   :  { %v1962_v51 = vadd.f32 %v9572_v52, %v1761_v50 }
 0x6b8   :  { %v2189_v22 = vadd.f32 %v9573_v60, %v1962_v51  ;;  %v9584_v60 = vld [vmem:[#allocation24_spill] sm:$0xff] }
 0x6ba   :  { %v2390_v12 = vadd.f32 %v9574_v4, %v2189_v22 }
 0x6bb   :  { %v2971_v46 = vpop.f32.mrf.mxu3 }
 0x6bc   :  { %v3017_v38 = vadd.f32 %v2971_v46, %v2816_v20  ;;  %v2591_v34 = vadd.f32 %v7387_v29, %v2390_v12  ;;  %v1550_v29 = vadd.f32 %v9576_v24, %v9575_v26  ;;  %v9577_v20 = vld [vmem:[#allocation89_spill] sm:$0xff]  ;;  %v9578_v46 = vld [vmem:[#allocation40_spill] sm:$0xff]  ;;  %v9590_v26 = vld [vmem:[#allocation75_spill] sm:$0xff] }
 0x6be   :  { %v3032_v47 = vmax.f32 %v3016_v45, %v3017_v38  ;;  %v2818_v56 = vadd.f32 %v7404_v42, %v2591_v34  ;;  %v1553_v38 = vadd.f32 %v9578_v46, %v9577_v20  ;;  %v9589_v34 = vld [vmem:[#allocation59_spill] sm:$0xff] }
 0x6bf   :  { %v3563_v20 = vld [vmem:[%s8722_s5 + $0xe0] sm:$0xff] }
 0x6c0   :  { %v3048_v2 = vrot.slane %v3032_v47, 2  ;;  %v3049_v36 = vrot.slane %v3032_v47, 4  ;;  %v3050_v48 = vrot.slane %v3032_v47, 6  ;;  %v3097_v3 = vsel %vm3096_vm9, %v3032_v47, -inf  ;;  %v9581_v47 = vld [vmem:[#allocation101_spill] sm:$0xff]  ;;  %v3547_v46 = vld [vmem:[%s8722_s5 + $0x60] sm:$0xff] }
 0x6c1   :  { %v3098_v41 = vrot.slane %v3097_v3, 4  ;;  %v1559_v42 = vadd.f32 %v9582_v14, %v9581_v47  ;;  %v1767_v24 = vadd.f32 %v9590_v26, %v1553_v38  ;;  %v3579_v38 = vld [vmem:[%s8722_s5 + $0x160] sm:$0xff] }
 0x6c2   :  { %v3104_v8 = vsel %vm3096_vm9, %v3048_v2, -inf  ;;  %v3111_v11 = vsel %vm3096_vm9, %v3049_v36, -inf  ;;  %v3118_v54 = vsel %vm3096_vm9, %v3050_v48, -inf  ;;  %v7507_v2 = vpop.f32.mrf.mxu2  ;;  %v1766_v48 = vadd.f32 %v9589_v34, %v1550_v29 }
 0x6c3   :  { %v2974_v27 = vpop.f32.mrf.mxu3  ;;  %v3105_v37 = vrot.slane %v3104_v8, 4  ;;  %v3112_v61 = vrot.slane %v3111_v11, 4  ;;  %v3119_v50 = vrot.slane %v3118_v54, 4  ;;  %v3099_v52 = vmax.f32 %v3097_v3, %v3098_v41  ;;  %v7519_v3 = vpop.f32.mrf.mxu1 }
 0x6c4   :  { %v3018_v43 = vadd.f32 %v2974_v27, %v7394_v16  ;;  %v3565_v16 = vld [vmem:[%s8722_s5 + $0xf0] sm:$0xff]  ;;  %v9583_v27 = vld [vmem:[#allocation28_spill] sm:$0xff] }
 0x6c5   :  { %3816 = vmatpush.msra.mxu2 %v3565_v16  ;;  %v3106_v23 = vmax.f32 %v3104_v8, %v3105_v37  ;;  %v3113_v45 = vmax.f32 %v3111_v11, %v3112_v61  ;;  %v1562_v22 = vadd.f32 %v9584_v60, %v9583_v27  ;;  %v9587_v16 = vld [vmem:[#allocation22_spill] sm:$0xff]  ;;  %v3120_v61 = vmax.f32 %v3118_v54, %v3119_v50 }
 0x6c6   :  { %v1571_v28 = vadd.f32 %v9588_v10, %v9587_v16  ;;  %v3100_v29 = vrot.slane %v3099_v52, 2  ;;  %v3546_v50 = vld [vmem:[%s8722_s5 + $0x58] sm:$0xff]  ;;  %v9594_v16 = vld [vmem:[#allocation52_spill] sm:$0xff] }
 0x6c7   :  { %v3107_v30 = vrot.slane %v3106_v23, 2  ;;  %v3114_v37 = vrot.slane %v3113_v45, 2 }
 0x6c9   :  { %v3108_v62 = vmax.f32 %v3106_v23, %v3107_v30  ;;  %v3564_v23 = vld [vmem:[%s8722_s5 + $0xe8] sm:$0xff]  ;;  %v3115_v18 = vmax.f32 %v3113_v45, %v3114_v37 }
 0x6ca   :  { %v3580_v30 = vld [vmem:[%s8722_s5 + $0x168] sm:$0xff]  ;;  %3817 = vmatpush.msra.mxu2 %v3564_v23 }
 0x6cb   :  { %v2977_v55 = vpop.f32.mrf.mxu3  ;;  %v3109_v15 = vrot.slane %v3108_v62, 1  ;;  %3837 = vmatpush.msra.mxu3 %v3580_v30 }
 0x6cc   :  { %v3019_v13 = vadd.f32 %v2977_v55, %v2818_v56  ;;  %3818 = vmatpush.msra.mxu2 %v3563_v20 }
 0x6cd   :  { %3838 = vmatpush.msra.mxu3 %v3579_v38  ;;  %v3110_v26 = vmax.f32 %v3108_v62, %v3109_v15  ;;  %v3576_v62 = vld [vmem:[%s8722_s5 + $0x148] sm:$0xff] }
 0x6ce   :  { %v3033_v32 = vmax.f32 %v3018_v43, %v3019_v13  ;;  %v9585_v43 = vld [vmem:[#allocation41_spill] sm:$0xff] }
 0x6cf   :  { %v1565_v49 = vadd.f32 %v9586_v19, %v9585_v43  ;;  %v3548_v13 = vld [vmem:[%s8722_s5 + $0x68] sm:$0xff]  ;;  %v3578_v43 = vld [vmem:[%s8722_s5 + $0x158] sm:$0xff] }
 0x6d0   :  { %v3051_v51 = vrot.slane %v3033_v32, 2  ;;  %v3052_v36 = vrot.slane %v3033_v32, 4  ;;  %v3053_v8 = vrot.slane %v3033_v32, 6  ;;  %v3125_v4 = vsel %vm3096_vm9, %v3033_v32, -inf  ;;  %3797 = vmatpush.msra.mxu1 %v3548_v13  ;;  %v9593_v19 = vld [vmem:[#allocation133_spill] sm:$0xff]  ;;  %3839 = vmatpush.msra.mxu3 %v3578_v43 }
 0x6d1   :  { %v3126_v47 = vrot.slane %v3125_v4, 4  ;;  %v1770_v37 = vadd.f32 %v9593_v19, %v1562_v22  ;;  %v1771_v10 = vadd.f32 %v9594_v16, %v1565_v49  ;;  %v3101_v13 = vmax.f32 %v3099_v52, %v3100_v29  ;;  %v3577_v22 = vld [vmem:[%s8722_s5 + $0x150] sm:$0xff]  ;;  %v3544_v52 = vld [vmem:[%s8722_s5 + $0x48] sm:$0xff]  ;;  %v7587_v43 = vld [vmem:[%s8721_s4] ss:$0 sm:$0xff] }
 0x6d2   :  { %v3132_v12 = vsel %vm3096_vm9, %v3051_v51, -inf  ;;  %v3139_v11 = vsel %vm3096_vm9, %v3052_v36, -inf  ;;  %v3146_v55 = vsel %vm3096_vm9, %v3053_v8, -inf  ;;  %v9591_v51 = vld [vmem:[#allocation102_spill] sm:$0xff]  ;;  %v9592_v8 = vld [vmem:[#allocation115_spill] sm:$0xff]  ;;  %3798 = vmatpush.msra.mxu1 %v3547_v46  ;;  %v9597_v49 = vld [vmem:[#allocation77_spill] sm:$0xff]  ;;  %v7569_v46 = vpop.f32.mrf.mxu2  ;;  %3840 = vmatpush.msra.mxu3 %v3577_v22 }
 0x6d3   :  { %v3133_v56 = vrot.slane %v3132_v12, 4  ;;  %v2980_v41 = vpop.f32.mrf.mxu3  ;;  %v3140_v54 = vrot.slane %v3139_v11, 4  ;;  %v1768_v36 = vadd.f32 %v9591_v51, %v1556_v25  ;;  %v1769_v27 = vadd.f32 %v9592_v8, %v1559_v42  ;;  %v3561_v25 = vld [vmem:[%s8722_s5 + $0xd0] sm:$0xff]  ;;  %v9602_v19 = vld [vmem:[#allocation107_spill] sm:$0xff] }
 0x6d4   :  { %v7533_v32 = vadd.f32 %v2980_v41, %v7419_v35  ;;  %v3562_v35 = vld [vmem:[%s8722_s5 + $0xd8] sm:$0xff]  ;;  %v3147_v60 = vrot.slane %v3146_v55, 4  ;;  %v3545_v42 = vld [vmem:[%s8722_s5 + $0x50] sm:$0xff]  ;;  %v9596_v41 = vld [vmem:[#allocation64_spill] sm:$0xff]  ;;  %3799 = vmatpush.msra.mxu1 %v3546_v50  ;;  %v1968_v30 = vadd.f32 %v9597_v49, %v1767_v24  ;;  %v3127_v20 = vmax.f32 %v3125_v4, %v3126_v47  ;;  %3841 = vmatpush.msra.mxu3 %v3576_v62 }
 0x6d5   :  { %v3134_v14 = vmax.f32 %v3132_v12, %v3133_v56  ;;  %v3141_v45 = vmax.f32 %v3139_v11, %v3140_v54  ;;  %v3121_v12 = vrot.slane %v3120_v61, 2  ;;  %v9595_v11 = vld [vmem:[#allocation94_spill] sm:$0xff]  ;;  %v1967_v23 = vadd.f32 %v9596_v41, %v1766_v48  ;;  %3819 = vmatpush.msra.mxu2 %v3562_v35  ;;  %v9599_v35 = vld [vmem:[#allocation12_spill] sm:$0xff] }
 0x6d6   :  { %v1773_v56 = vadd.f32 %v9595_v11, %v1571_v28  ;;  %v3116_v54 = vrot.slane %v3115_v18, 1  ;;  %v3560_v28 = vld [vmem:[%s8722_s5 + $0xc8] sm:$0xff]  ;;  %v9598_v48 = vld [vmem:[#allocation26_spill] sm:$0xff]  ;;  %v1970_v38 = vadd.f32 %v9599_v35, %v1769_v27  ;;  %v3148_v24 = vmax.f32 %v3146_v55, %v3147_v60  ;;  %3800 = vmatpush.msra.mxu1 %v3545_v42  ;;  %v3559_v55 = vld [vmem:[%s8722_s5 + $0xc0] sm:$0xff] }
 0x6d7   :  { %v3135_v34 = vrot.slane %v3134_v14, 2  ;;  %v1969_v29 = vadd.f32 %v9598_v48, %v1768_v36  ;;  %v3142_v50 = vrot.slane %v3141_v45, 2  ;;  %3820 = vmatpush.msra.mxu2 %v3561_v25  ;;  %v9600_v4 = vld [vmem:[#allocation140_spill] sm:$0xff]  ;;  %v9601_v47 = vld [vmem:[#allocation46_spill] sm:$0xff]  ;;  %v3122_v8 = vmax.f32 %v3120_v61, %v3121_v12  ;;  %v9604_v11 = vld [vmem:[#allocation29_spill] sm:$0xff] }
 0x6d8   :  { %v1971_v15 = vadd.f32 %v9600_v4, %v1770_v37  ;;  %v1972_v51 = vadd.f32 %v9601_v47, %v1771_v10  ;;  %v1974_v60 = vadd.f32 %v7334_v33, %v1773_v56  ;;  %v7594_v16 = vadd.f32 %v9602_v19, %v1967_v23  ;;  %3801 = vmatpush.msra.mxu1 %v3544_v52  ;;  %v9603_v10 = vld [vmem:[#allocation123_spill] sm:$0xff]  ;;  %v9606_v49 = vld [vmem:[#allocation58_spill] sm:$0xff]  ;;  %v9607_v35 = vld [vmem:[#allocation60_spill] sm:$0xff] }
 0x6d9   :  { %v3136_v36 = vmax.f32 %v3134_v14, %v3135_v34  ;;  %v3102_v37 = vrot.slane %v3101_v13, 1  ;;  %3821 = vmatpush.msra.mxu2 %v3560_v28  ;;  %v7598_v12 = vadd.f32 %v9603_v10, %v1968_v30  ;;  %v7600_v14 = vpop.f32.mrf.mxu1  ;;  %v3117_v34 = vmax.f32 %v3115_v18, %v3116_v54 }
 0x6da   :  { %v3326_v25 = vadd.f32 %v7587_v43, %v3110_v26  ;;  %v3128_v42 = vrot.slane %v3127_v20, 2  ;;  %v7604_v33 = vadd.f32 %v9604_v11, %v1969_v29  ;;  %v3143_v56 = vmax.f32 %v3141_v45, %v3142_v50  ;;  %v3543_v45 = vld [vmem:[%s8722_s5 + $0x40] sm:$0xff] }
 0x6db   :  { %v2983_v27 = vpop.f32.mrf.mxu3  ;;  %v3149_v41 = vrot.slane %v3148_v24, 2  ;;  %3822 = vmatpush.msra.mxu2 %v3559_v55  ;;  %v7611_v30 = vadd.f32 %v9606_v49, %v1971_v15  ;;  %v3123_v28 = vrot.slane %v3122_v8, 1  ;;  %v3137_v18 = vrot.slane %v3136_v36, 1  ;;  %v3575_v29 = vld [vmem:[%s8722_s5 + $0x140] sm:$0xff]  ;;  %3802 = vmatpush.msra.mxu1 %v3543_v45  ;;  %v3542_v55 = vld [vmem:[%s8722_s5 + $0x38] sm:$0xff]  ;;  %v3540_v49 = vld [vmem:[%s8722_s5 + $0x28] sm:$0xff] }
 0x6dc   :  { %v3021_v61 = vadd.f32 %v2983_v27, %v7429_v7  ;;  %v9605_v7 = vld [vmem:[#allocation55_spill] sm:$0xff]  ;;  %v3103_v54 = vmax.f32 %v3101_v13, %v3102_v37  ;;  %v7626_v13 = vadd.f32 %v7587_v43, %v3117_v34  ;;  %v3358_v50 = vmax.f32 %v3326_v25, 0.0  ;;  %3842 = vmatpush.msra.mxu3 %v3575_v29  ;;  %v3541_v25 = vld [vmem:[%s8722_s5 + $0x30] sm:$0xff] }
 0x6dd   :  { %v7608_v22 = vadd.f32 %v9605_v7, %v1970_v38  ;;  %v7623_v38 = vadd.f32 %v9607_v35, %v1972_v51  ;;  %v3129_v62 = vmax.f32 %v3127_v20, %v3128_v42  ;;  %v3144_v4 = vrot.slane %v3143_v56, 1  ;;  %v3557_v51 = vld [vmem:[%s8722_s5 + $0xb0] sm:$0xff]  ;;  %v7636_v20 = vpop.f32.mrf.mxu2  ;;  %3803 = vmatpush.msra.mxu1 %v3542_v55  ;;  %v3574_v34 = vld [vmem:[%s8722_s5 + $0x138] sm:$0xff] }
 0x6de   :  { %v3034_v23 = vmax.f32 %v7533_v32, %v3021_v61  ;;  %v3558_v32 = vld [vmem:[%s8722_s5 + $0xb8] sm:$0xff]  ;;  %v3150_v15 = vmax.f32 %v3148_v24, %v3149_v41  ;;  %v3124_v19 = vmax.f32 %v3122_v8, %v3123_v28  ;;  %v3138_v37 = vmax.f32 %v3136_v36, %v3137_v18  ;;  %3843 = vmatpush.msra.mxu3 %v3574_v34  ;;  %v3556_v41 = vld [vmem:[%s8722_s5 + $0xa8] sm:$0xff]  ;;  %v3573_v7 = vld [vmem:[%s8722_s5 + $0x130] sm:$0xff] }
 0x6df   :  { %3823 = vmatpush.msra.mxu2 %v3558_v32  ;;  %v3325_v42 = vadd.f32 %v7587_v43, %v3103_v54  ;;  %v3130_v28 = vrot.slane %v3129_v62, 1  ;;  %3804 = vmatpush.msra.mxu1 %v3541_v25  ;;  %v3572_v54 = vld [vmem:[%s8722_s5 + $0x128] sm:$0xff]  ;;  %v3570_v25 = vld [vmem:[%s8722_s5 + $0x118] sm:$0xff] }
 0x6e0   :  { %v3054_v26 = vrot.slane %v3034_v23, 2  ;;  %v3055_v52 = vrot.slane %v3034_v23, 4  ;;  %v3056_v48 = vrot.slane %v3034_v23, 6  ;;  %v3153_v8 = vsel %vm3096_vm9, %v3034_v23, -inf  ;;  %3844 = vmatpush.msra.mxu3 %v3573_v7 }
 0x6e1   :  { %3824 = vmatpush.msra.mxu2 %v3557_v51  ;;  %v2201_v23 = vadd.f32 %v7357_v17, %v1974_v60  ;;  %v3151_v45 = vrot.slane %v3150_v15, 1  ;;  %v3539_v17 = vld [vmem:[%s8722_s5 + $0x20] sm:$0xff]  ;;  %v3554_v60 = vld [vmem:[%s8722_s5 + $0x98] sm:$0xff]  ;;  %v7673_v32 = vpop.f32.mrf.mxu1  ;;  %v3330_v29 = vadd.f32 %v7587_v43, %v3138_v37  ;;  %v3154_v35 = vrot.slane %v3153_v8, 4  ;;  %3805 = vmatpush.msra.mxu1 %v3540_v49 }
 0x6e2   :  { %v3160_v47 = vsel %vm3096_vm9, %v3054_v26, -inf  ;;  %v3167_v27 = vsel %vm3096_vm9, %v3055_v52, -inf  ;;  %v3174_v36 = vsel %vm3096_vm9, %v3056_v48, -inf  ;;  %v3359_v26 = vmax.f32 %v7626_v13, 0.0  ;;  %v9608_v13 = vld [vmem:[#allocation69_spill] sm:$0xff]  ;;  %3845 = vmatpush.msra.mxu3 %v3572_v54  ;;  %v3538_v37 = vld [vmem:[%s8722_s5 + $0x18] sm:$0xff] }
 0x6e3   :  { %v3161_v61 = vrot.slane %v3160_v47, 4  ;;  %v3168_v10 = vrot.slane %v3167_v27, 4  ;;  %v2986_v24 = vpop.f32.mrf.mxu3  ;;  %3825 = vmatpush.msra.mxu2 %v3556_v41  ;;  %v3421_v52 = vrot.slane %v3358_v50, 7  ;;  %v3145_v48 = vmax.f32 %v3143_v56, %v3144_v4  ;;  %v3571_v56 = vld [vmem:[%s8722_s5 + $0x120] sm:$0xff]  ;;  %3806 = vmatpush.msra.mxu1 %v3539_v17 }
 0x6e4   :  { %v7648_v11 = vadd.f32 %v2986_v24, %v7437_v59  ;;  %v3555_v59 = vld [vmem:[%s8722_s5 + $0xa0] sm:$0xff]  ;;  %v3175_v55 = vrot.slane %v3174_v36, 4  ;;  %v2395_v50 = vadd.f32 %v9608_v13, %v7594_v16  ;;  %v2397_v24 = vadd.f32 %v7306_v40, %v7604_v33  ;;  %3846 = vmatpush.msra.mxu3 %v3571_v56  ;;  %v3537_v40 = vld [vmem:[%s8722_s5 + $0x10] sm:$0xff] }
 0x6e5   :  { %v3162_v18 = vmax.f32 %v3160_v47, %v3161_v61  ;;  %v3169_v47 = vmax.f32 %v3167_v27, %v3168_v10  ;;  %3826 = vmatpush.msra.mxu2 %v3555_v59  ;;  %v9609_v4 = vld [vmem:[#allocation71_spill] sm:$0xff]  ;;  %v3357_v61 = vmax.f32 %v3325_v42, 0.0  ;;  %v3553_v27 = vld [vmem:[%s8722_s5 + $0x90] sm:$0xff]  ;;  %v3328_v10 = vadd.f32 %v7587_v43, %v3124_v19  ;;  %3807 = vmatpush.msra.mxu1 %v3538_v37 }
 0x6e6   :  { %v2396_v51 = vadd.f32 %v9609_v4, %v7598_v12  ;;  %v2398_v16 = vadd.f32 %v7312_v21, %v7608_v22  ;;  %v3131_v34 = vmax.f32 %v3129_v62, %v3130_v28  ;;  %v3424_v42 = vrot.slane %v3359_v26, 6  ;;  %v3552_v21 = vld [vmem:[%s8722_s5 + $0x88] sm:$0xff]  ;;  %3847 = vmatpush.msra.mxu3 %v3570_v25  ;;  %v3567_v4 = vld [vmem:[%s8722_s5 + $0x100] sm:$0xff] }
 0x6e7   :  { %v3163_v12 = vrot.slane %v3162_v18, 2  ;;  %3827 = vmatpush.msra.mxu2 %v3554_v60  ;;  %v3152_v41 = vmax.f32 %v3150_v15, %v3151_v45  ;;  %v3331_v7 = vadd.f32 %v7587_v43, %v3145_v48  ;;  %v3423_v33 = vsel %vm3422_vm10, %v3421_v52, %v3357_v61  ;;  %v3569_v15 = vld [vmem:[%s8722_s5 + $0x110] sm:$0xff]  ;;  %3808 = vmatpush.msra.mxu1 %v3537_v40 }
 0x6e8   :  { %v3362_v22 = vmax.f32 %v3330_v29, 0.0  ;;  %v3155_v62 = vmax.f32 %v3153_v8, %v3154_v35  ;;  %v3170_v19 = vrot.slane %v3169_v47, 2  ;;  %v3176_v49 = vmax.f32 %v3174_v36, %v3175_v55  ;;  %v3536_v8 = vld [vmem:[%s8722_s5 + $0x8] sm:$0xff]  ;;  %v3551_v36 = vld [vmem:[%s8722_s5 + $0x80] sm:$0xff]  ;;  %3848 = vmatpush.msra.mxu3 %v3569_v15 }
 0x6e9   :  { %3828 = vmatpush.msra.mxu2 %v3553_v27  ;;  %v2399_v59 = vadd.f32 %v7322_v39, %v7611_v30  ;;  %v2400_v54 = vadd.f32 %v7329_v0, %v7623_v38  ;;  %v3360_v52 = vmax.f32 %v3328_v10, 0.0  ;;  %v2402_v48 = vadd.f32 %v7443_v53, %v2201_v23  ;;  %v7721_v30 = vpop.f32.mrf.mxu2  ;;  %v3568_v0 = vld [vmem:[%s8722_s5 + $0x108] sm:$0xff]  ;;  %3809 = vmatpush.msra.mxu1 %v3536_v8  ;;  %v3630_v27 = vld [vmem:[%s8722_s5 + $0x2f8] sm:$0xff] }
 0x6ea   :  { %v3329_v45 = vadd.f32 %v7587_v43, %v3131_v34  ;;  %v3164_v39 = vmax.f32 %v3162_v18, %v3163_v12  ;;  %v3363_v38 = vmax.f32 %v3331_v7, 0.0  ;;  %v3425_v53 = vsel %vm1006_vm3, %v3424_v42, %v3423_v33  ;;  %3849 = vmatpush.msra.mxu3 %v3568_v0  ;;  %v3596_v7 = vld [vmem:[%s8722_s5 + $0x1e8] sm:$0xff] }
 0x6eb   :  { %v2989_v28 = vpop.f32.mrf.mxu3  ;;  %3829 = vmatpush.msra.mxu2 %v3552_v21  ;;  %v7734_v23 = vadd.f32 %v7587_v43, %v3152_v41  ;;  %v3429_v18 = vrot.slane %v3362_v22, 7  ;;  %v3156_v60 = vrot.slane %v3155_v62, 2  ;;  %v3171_v29 = vmax.f32 %v3169_v47, %v3170_v19  ;;  %v3629_v41 = vld [vmem:[%s8722_s5 + $0x2f0] sm:$0xff]  ;;  %v3611_v19 = vld [vmem:[%s8722_s5 + $0x260] sm:$0xff] }
 0x6ec   :  { %v3023_v26 = vadd.f32 %v2989_v28, %v7441_v44  ;;  %v3614_v44 = vld [vmem:[%s8722_s5 + $0x278] sm:$0xff]  ;;  %v3177_v35 = vrot.slane %v3176_v49, 2  ;;  %v2596_v55 = vadd.f32 %v7445_v5, %v2395_v50  ;;  %v2597_v56 = vadd.f32 %v7455_v1, %v2396_v51  ;;  %v2585_v5 = vpop.f32.mrf.mxu1  ;;  %v3613_v51 = vld [vmem:[%s8722_s5 + $0x270] sm:$0xff]  ;;  %3850 = vmatpush.msra.mxu3 %v3567_v4 }
 0x6ed   :  { %3830 = vmatpush.msra.mxu2 %v3551_v36  ;;  %v2598_v13 = vadd.f32 %v7464_v63, %v2397_v24  ;;  %v3426_v47 = vrot.slane %v3360_v52, 5  ;;  %v2599_v61 = vadd.f32 %v7494_v9, %v2398_v16  ;;  %v2600_v37 = vadd.f32 %v7519_v3, %v2399_v59  ;;  %v3598_v63 = vld [vmem:[%s8722_s5 + $0x1f8] sm:$0xff]  ;;  %v3597_v3 = vld [vmem:[%s8722_s5 + $0x1f0] sm:$0xff]  ;;  %v3612_v24 = vld [vmem:[%s8722_s5 + $0x268] sm:$0xff] }
 0x6ee   :  { %v7730_v17 = vmax.f32 %v7648_v11, %v3023_v26  ;;  %v3535_v11 = vld [vmem:[%s8722_s5] sm:$0xff]  ;;  %v3361_v50 = vmax.f32 %v3329_v45, 0.0  ;;  %v3165_v1 = vrot.slane %v3164_v39, 1  ;;  %v2601_v9 = vadd.f32 %v7600_v14, %v2400_v54  ;;  %3895 = vmatpush.msrb.mxu3 %v3630_v27 }
 0x6ef   :  { %3875 = vmatpush.msrb.mxu2 %v3614_v44  ;;  %3810 = vmatpush.msra.mxu1 %v3535_v11  ;;  %v3431_v10 = vrot.slane %v3363_v38, 6  ;;  %v7764_v16 = vsel %vm3427_vm11, %v3426_v47, %v3425_v53  ;;  %v3364_v34 = vmax.f32 %v7734_v23, 0.0  ;;  %v3157_v12 = vmax.f32 %v3155_v62, %v3156_v60  ;;  %v3609_v38 = vld [vmem:[%s8722_s5 + $0x250] sm:$0xff]  ;;  %v3626_v53 = vld [vmem:[%s8722_s5 + $0x2d8] sm:$0xff]  ;;  %v3607_v27 = vld [vmem:[%s8722_s5 + $0x240] sm:$0xff] }
 0x6f0   :  { %v3172_v25 = vrot.slane %v3171_v29, 1  ;;  %v3178_v42 = vmax.f32 %v3176_v49, %v3177_v35  ;;  %v3430_v40 = vsel %vm3422_vm10, %v3429_v18, %v3361_v50  ;;  %v2602_v21 = vadd.f32 %v7673_v32, %v7340_v31  ;;  %v3628_v49 = vld [vmem:[%s8722_s5 + $0x2e8] sm:$0xff]  ;;  %3896 = vmatpush.msrb.mxu3 %v3629_v41  ;;  %v3593_v18 = vld [vmem:[%s8722_s5 + $0x1d0] sm:$0xff]  ;;  %v3623_v41 = vld [vmem:[%s8722_s5 + $0x2c0] sm:$0xff] }
 0x6f1   :  { %3855 = vmatpush.msrb.mxu1 %v3598_v63  ;;  %3876 = vmatpush.msrb.mxu2 %v3613_v51  ;;  %v2603_v33 = vadd.f32 %v2585_v5, %v2402_v48  ;;  %v2823_v22 = vadd.f32 %v7450_v57, %v2596_v55  ;;  %v2824_v62 = vadd.f32 %v7460_v58, %v2597_v56  ;;  %v3595_v57 = vld [vmem:[%s8722_s5 + $0x1e0] sm:$0xff]  ;;  %v3482_v58 = vrot.slane %v7764_v16, 1  ;;  %v3594_v48 = vld [vmem:[%s8722_s5 + $0x1d8] sm:$0xff]  ;;  %v3625_v11 = vld [vmem:[%s8722_s5 + $0x2d0] sm:$0xff] }
 0x6f2   :  { %v7787_v28 = vadd.f32 %v7480_v6, %v2598_v13  ;;  %v7790_v15 = vadd.f32 %v7507_v2, %v2599_v61  ;;  %v3166_v31 = vmax.f32 %v3164_v39, %v3165_v1  ;;  %v7797_v32 = vadd.f32 %v7569_v46, %v2600_v37  ;;  %v3610_v6 = vld [vmem:[%s8722_s5 + $0x258] sm:$0xff]  ;;  %v3627_v2 = vld [vmem:[%s8722_s5 + $0x2e0] sm:$0xff]  ;;  %v2812_v46 = vpop.f32.mrf.mxu2  ;;  %3897 = vmatpush.msrb.mxu3 %v3628_v49  ;;  %v3608_v13 = vld [vmem:[%s8722_s5 + $0x248] sm:$0xff] }
 0x6f3   :  { %v7767_v14 = vpop.f32.mrf.mxu3  ;;  %3856 = vmatpush.msrb.mxu1 %v3597_v3  ;;  %3877 = vmatpush.msrb.mxu2 %v3612_v24  ;;  %v3485_v59 = vrot.slane %v7764_v16, 2  ;;  %v3489_v54 = vrot.slane %v7764_v16, 3  ;;  %v3432_v26 = vsel %vm1006_vm3, %v3431_v10, %v3430_v40  ;;  %v3158_v8 = vrot.slane %v3157_v12, 1 }
 0x6f4   :  { %v3173_v36 = vmax.f32 %v3171_v29, %v3172_v25  ;;  %v3179_v52 = vrot.slane %v3178_v42, 1  ;;  %v3433_v45 = vrot.slane %v3364_v34, 5  ;;  %v7812_v39 = vadd.f32 %v7636_v20, %v2601_v9  ;;  %3898 = vmatpush.msrb.mxu3 %v3627_v2  ;;  %v3624_v9 = vld [vmem:[%s8722_s5 + $0x2c8] sm:$0xff]  ;;  %v3591_v34 = vld [vmem:[%s8722_s5 + $0x1c0] sm:$0xff] }
 0x6f5   :  { %3857 = vmatpush.msrb.mxu1 %v3596_v7  ;;  %3878 = vmatpush.msrb.mxu2 %v3611_v19  ;;  %v7815_v0 = vadd.f32 %v7721_v30, %v2602_v21  ;;  %v3057_v44 = vrot.slane %v7730_v17, 2  ;;  %v7826_v23 = vsel %vm1005_vm2, %v7764_v16, 0.0  ;;  %v3334_v20 = vadd.f32 %v7587_v43, %v3166_v31 }
 0x6f6   :  { %v3058_v30 = vrot.slane %v7730_v17, 4  ;;  %v7834_v60 = vsel %vm1005_vm2, %v3482_v58, 0.0  ;;  %v7837_v29 = vsel %vm3427_vm11, %v3433_v45, %v3432_v26  ;;  %v7839_v35 = vadd.f32 %v2812_v46, %v2603_v33  ;;  %3899 = vmatpush.msrb.mxu3 %v3626_v53  ;;  %v3590_v58 = vld [vmem:[%s8722_s5 + $0x1b8] sm:$0xff] }
 0x6f7   :  { %3858 = vmatpush.msrb.mxu1 %v3595_v57  ;;  %3879 = vmatpush.msrb.mxu2 %v3610_v6  ;;  %v3059_v55 = vrot.slane %v7730_v17, 6  ;;  %v3181_v56 = vsel %vm3096_vm9, %v7730_v17, -inf  ;;  %v7851_v4 = vsel %vm1005_vm2, %v3485_v59, 0.0  ;;  %v3159_v47 = vmax.f32 %v3157_v12, %v3158_v8  ;;  %v3592_v17 = vld [vmem:[%s8722_s5 + $0x1c8] sm:$0xff]  ;;  %v3605_v6 = vld [vmem:[%s8722_s5 + $0x230] sm:$0xff]  ;;  %v3622_v8 = vld [vmem:[%s8722_s5 + $0x2b8] sm:$0xff] }
 0x6f8   :  { %v3180_v61 = vmax.f32 %v3178_v42, %v3179_v52  ;;  %v7854_v37 = vadd.f32 %v7587_v43, %v3173_v36  ;;  %v7860_v50 = vsel %vm1005_vm2, %v3489_v54, 0.0  ;;  %v3188_v1 = vsel %vm3096_vm9, %v3057_v44, -inf  ;;  %3900 = vmatpush.msrb.mxu3 %v3625_v11  ;;  %v3589_v36 = vld [vmem:[%s8722_s5 + $0x1b0] sm:$0xff]  ;;  %v3604_v44 = vld [vmem:[%s8722_s5 + $0x228] sm:$0xff] }
 0x6f9   :  { %3859 = vmatpush.msrb.mxu1 %v3594_v48  ;;  %3880 = vmatpush.msrb.mxu2 %v3609_v38  ;;  %v3024_v63 = vadd.f32 %v7767_v14, %v2823_v22  ;;  %v3496_v10 = vrot.slane %v7837_v29, 1  ;;  %v3366_v3 = vmax.f32 %v3334_v20, 0.0  ;;  %v3182_v24 = vrot.slane %v3181_v56, 4  ;;  %v3606_v14 = vld [vmem:[%s8722_s5 + $0x238] sm:$0xff]  ;;  %v3621_v38 = vld [vmem:[%s8722_s5 + $0x2b0] sm:$0xff] }
 0x6fa   :  { %v3195_v16 = vsel %vm3096_vm9, %v3058_v30, -inf  ;;  %v7877_v12 = vsel %vm1005_vm2, %v7837_v29, 0.0  ;;  %v3202_v25 = vsel %vm3096_vm9, %v3059_v55, -inf  ;;  %v3503_v7 = vrot.slane %v7837_v29, 3  ;;  %3901 = vmatpush.msrb.mxu3 %v3624_v9 }
 0x6fb   :  { %v2995_v5 = vpop.f32.mrf.mxu3  ;;  %3860 = vmatpush.msrb.mxu1 %v3593_v18  ;;  %3881 = vmatpush.msrb.mxu2 %v3608_v13  ;;  %v3499_v40 = vrot.slane %v7837_v29, 2  ;;  %v3333_v21 = vadd.f32 %v7587_v43, %v3159_v47  ;;  %v3189_v33 = vrot.slane %v3188_v1, 4  ;;  %v7890_v22 = vadd.f32 %v7587_v43, %v3180_v61  ;;  %v3603_v61 = vld [vmem:[%s8722_s5 + $0x220] sm:$0xff] }
 0x6fc   :  { %v3025_v51 = vadd.f32 %v2995_v5, %v2824_v62  ;;  %v3367_v62 = vmax.f32 %v7854_v37, 0.0  ;;  %v3196_v19 = vrot.slane %v3195_v16, 4  ;;  %v3435_v2 = vrot.slane %v3366_v3, 7  ;;  %3902 = vmatpush.msrb.mxu3 %v3623_v41  ;;  %v3620_v37 = vld [vmem:[%s8722_s5 + $0x2a8] sm:$0xff] }
 0x6fd   :  { %3861 = vmatpush.msrb.mxu1 %v3592_v17  ;;  %3882 = vmatpush.msrb.mxu2 %v3607_v27  ;;  %v7899_v59 = vmax.f32 %v3181_v56, %v3182_v24  ;;  %v3203_v54 = vrot.slane %v3202_v25, 4  ;;  %v3365_v53 = vmax.f32 %v3333_v21, 0.0  ;;  %v3190_v20 = vmax.f32 %v3188_v1, %v3189_v33  ;;  %v3588_v56 = vld [vmem:[%s8722_s5 + $0x1a8] sm:$0xff] }
 0x6fe   :  { %v3036_v42 = vmax.f32 %v3024_v63, %v3025_v51  ;;  %3903 = vmatpush.msrb.mxu3 %v3622_v8  ;;  %v7922_v13 = vmax.f32 %v3195_v16, %v3196_v19  ;;  %v3437_v5 = vrot.slane %v3367_v62, 6  ;;  %v3587_v63 = vld [vmem:[%s8722_s5 + $0x1a0] sm:$0xff]  ;;  %v3368_v51 = vmax.f32 %v7890_v22, 0.0  ;;  %v3601_v19 = vld [vmem:[%s8722_s5 + $0x210] sm:$0xff] }
 0x6ff   :  { %3862 = vmatpush.msrb.mxu1 %v3591_v34  ;;  %3883 = vmatpush.msrb.mxu2 %v3606_v14  ;;  %v3436_v27 = vsel %vm3422_vm10, %v3435_v2, %v3365_v53  ;;  %v3184_v9 = vrot.slane %v7899_v59, 2  ;;  %v3204_v3 = vmax.f32 %v3202_v25, %v3203_v54  ;;  %v3602_v34 = vld [vmem:[%s8722_s5 + $0x218] sm:$0xff]  ;;  %v3191_v14 = vrot.slane %v3190_v20, 2  ;;  %v3585_v2 = vld [vmem:[%s8722_s5 + $0x190] sm:$0xff] }
 0x700   :  { %v3060_v49 = vrot.slane %v3036_v42, 2  ;;  %v3061_v31 = vrot.slane %v3036_v42, 4  ;;  %v3062_v57 = vrot.slane %v3036_v42, 6  ;;  %v3209_v26 = vsel %vm3096_vm9, %v3036_v42, -inf  ;;  %3904 = vmatpush.msrb.mxu3 %v3621_v38  ;;  %v3619_v42 = vld [vmem:[%s8722_s5 + $0x2a0] sm:$0xff]  ;;  %v3586_v25 = vld [vmem:[%s8722_s5 + $0x198] sm:$0xff] }
 0x701   :  { %v3210_v52 = vrot.slane %v3209_v26, 4  ;;  %3863 = vmatpush.msrb.mxu1 %v3590_v58  ;;  %3884 = vmatpush.msrb.mxu2 %v3605_v6  ;;  %v7948_v33 = vsel %vm1005_vm2, %v3496_v10, 0.0  ;;  %v3198_v10 = vrot.slane %v7922_v13, 2  ;;  %v3439_v54 = vrot.slane %v3368_v51, 5 }
 0x702   :  { %v3216_v46 = vsel %vm3096_vm9, %v3060_v49, -inf  ;;  %v3223_v48 = vsel %vm3096_vm9, %v3061_v31, -inf  ;;  %v3230_v45 = vsel %vm3096_vm9, %v3062_v57, -inf  ;;  %3905 = vmatpush.msrb.mxu3 %v3620_v37  ;;  %v3618_v49 = vld [vmem:[%s8722_s5 + $0x298] sm:$0xff]  ;;  %v7959_v31 = vsel %vm1005_vm2, %v3503_v7, 0.0 }
 0x703   :  { %v3217_v30 = vrot.slane %v3216_v46, 4  ;;  %v3224_v18 = vrot.slane %v3223_v48, 4  ;;  %v7917_v55 = vpop.f32.mrf.mxu3  ;;  %v3211_v11 = vmax.f32 %v3209_v26, %v3210_v52  ;;  %v3231_v47 = vrot.slane %v3230_v45, 4  ;;  %3864 = vmatpush.msrb.mxu1 %v3589_v36  ;;  %3885 = vmatpush.msrb.mxu2 %v3604_v44  ;;  %v3600_v52 = vld [vmem:[%s8722_s5 + $0x208] sm:$0xff] }
 0x704   :  { %v3438_v57 = vsel %vm1006_vm3, %v3437_v5, %v3436_v27  ;;  %3906 = vmatpush.msrb.mxu3 %v3619_v42  ;;  %v7967_v26 = vmax.f32 %v7899_v59, %v3184_v9  ;;  %v3205_v8 = vrot.slane %v3204_v3, 2  ;;  %v3584_v59 = vld [vmem:[%s8722_s5 + $0x188] sm:$0xff] }
 0x705   :  { %v3218_v17 = vmax.f32 %v3216_v46, %v3217_v30  ;;  %v3225_v1 = vmax.f32 %v3223_v48, %v3224_v18  ;;  %v3212_v24 = vrot.slane %v3211_v11, 2  ;;  %v3232_v16 = vmax.f32 %v3230_v45, %v3231_v47  ;;  %3865 = vmatpush.msrb.mxu1 %v3588_v56  ;;  %3886 = vmatpush.msrb.mxu2 %v3603_v61  ;;  %v3617_v46 = vld [vmem:[%s8722_s5 + $0x290] sm:$0xff]  ;;  %v3616_v47 = vld [vmem:[%s8722_s5 + $0x288] sm:$0xff] }
 0x706   :  { %v7975_v48 = vmax.f32 %v3190_v20, %v3191_v14  ;;  %3907 = vmatpush.msrb.mxu3 %v3618_v49  ;;  %v7981_v53 = vsel %vm3427_vm11, %v3439_v54, %v3438_v57  ;;  %v3026_v56 = vadd.f32 %v7917_v55, %v7787_v28  ;;  %v7993_v61 = vmax.f32 %v7922_v13, %v3198_v10  ;;  %v3583_v28 = vld [vmem:[%s8722_s5 + $0x180] sm:$0xff] }
 0x707   :  { %v3219_v41 = vrot.slane %v3218_v17, 2  ;;  %v3226_v21 = vrot.slane %v3225_v1, 2  ;;  %v3213_v22 = vmax.f32 %v3211_v11, %v3212_v24  ;;  %v3233_v62 = vrot.slane %v3232_v16, 2  ;;  %3866 = vmatpush.msrb.mxu1 %v3587_v63  ;;  %3887 = vmatpush.msrb.mxu2 %v3602_v34  ;;  %v3599_v11 = vld [vmem:[%s8722_s5 + $0x200] sm:$0xff] }
 0x708   :  { %3908 = vmatpush.msrb.mxu3 %v3617_v46  ;;  %v8003_v55 = vmax.f32 %v3204_v3, %v3205_v8  ;;  %v3615_v13 = vld [vmem:[%s8722_s5 + $0x280] sm:$0xff]  ;;  %v8010_v63 = vsel %vm1005_vm2, %v7981_v53, 0.0  ;;  %v3186_v51 = vrot.slane %v7967_v26, 1  ;;  %v3193_v29 = vrot.slane %v7975_v48, 1 }
 0x709   :  { %v3220_v58 = vmax.f32 %v3218_v17, %v3219_v41  ;;  %v3227_v6 = vmax.f32 %v3225_v1, %v3226_v21  ;;  %v3214_v36 = vrot.slane %v3213_v22, 1  ;;  %v3234_v7 = vmax.f32 %v3232_v16, %v3233_v62  ;;  %3867 = vmatpush.msrb.mxu1 %v3586_v25  ;;  %3888 = vmatpush.msrb.mxu2 %v3601_v19 }
 0x70a   :  { %3909 = vmatpush.msrb.mxu3 %v3616_v47  ;;  %v3194_v47 = vmax.f32 %v7975_v48, %v3193_v29 }
 0x70b   :  { %v3221_v45 = vrot.slane %v3220_v58, 1  ;;  %v3228_v44 = vrot.slane %v3227_v6, 1  ;;  %v3001_v38 = vpop.f32.mrf.mxu3  ;;  %v3215_v30 = vmax.f32 %v3213_v22, %v3214_v36  ;;  %v3235_v18 = vrot.slane %v3234_v7, 1  ;;  %3868 = vmatpush.msrb.mxu1 %v3585_v2  ;;  %3889 = vmatpush.msrb.mxu2 %v3600_v52 }
 0x70c   :  { %v3027_v20 = vadd.f32 %v3001_v38, %v7790_v15  ;;  %v8001_v15 = vsel %vm1005_vm2, %v3499_v40, 0.0  ;;  %3910 = vmatpush.msrb.mxu3 %v3615_v13  ;;  %v3200_v36 = vrot.slane %v7993_v61, 1 }
 0x70d   :  { %v3222_v37 = vmax.f32 %v3220_v58, %v3221_v45  ;;  %v3229_v5 = vmax.f32 %v3227_v6, %v3228_v44  ;;  %3869 = vmatpush.msrb.mxu1 %v3584_v59  ;;  %v3236_v1 = vmax.f32 %v3234_v7, %v3235_v18  ;;  %3890 = vmatpush.msrb.mxu2 %v3599_v11  ;;  %v3207_v45 = vrot.slane %v8003_v55, 1 }
 0x70e   :  { %v3037_v17 = vmax.f32 %v3026_v56, %v3027_v20  ;;  %v3341_v9 = vadd.f32 %v7587_v43, %v3215_v30  ;;  %v8027_v11 = vmax.f32 %v7967_v26, %v3186_v51 }
 0x70f   :  { %v3342_v40 = vadd.f32 %v7587_v43, %v3222_v37  ;;  %v3343_v27 = vadd.f32 %v7587_v43, %v3229_v5  ;;  %3870 = vmatpush.msrb.mxu1 %v3583_v28  ;;  %v3344_v42 = vadd.f32 %v7587_v43, %v3236_v1  ;;  %v3662_v28 = vld [vmem:[%s8722_s5 + $0x3f8] sm:$0xff] }
 0x710   :  { %v3063_v3 = vrot.slane %v3037_v17, 2  ;;  %v3064_v24 = vrot.slane %v3037_v17, 4  ;;  %v3065_v16 = vrot.slane %v3037_v17, 6  ;;  %v3237_v34 = vsel %vm3096_vm9, %v3037_v17, -inf }
 0x711   :  { %v3374_v14 = vmax.f32 %v3342_v40, 0.0  ;;  %v3375_v41 = vmax.f32 %v3343_v27, 0.0  ;;  %v3238_v21 = vrot.slane %v3237_v34, 4  ;;  %v3376_v58 = vmax.f32 %v3344_v42, 0.0 }
 0x712   :  { %v3244_v25 = vsel %vm3096_vm9, %v3063_v3, -inf  ;;  %v3251_v22 = vsel %vm3096_vm9, %v3064_v24, -inf  ;;  %v3258_v62 = vsel %vm3096_vm9, %v3065_v16, -inf  ;;  %v3373_v6 = vmax.f32 %v3341_v9, 0.0  ;;  %v3646_v16 = vld [vmem:[%s8722_s5 + $0x378] sm:$0xff] }
 0x713   :  { %v3245_v19 = vrot.slane %v3244_v25, 4  ;;  %v3252_v49 = vrot.slane %v3251_v22, 4  ;;  %v3259_v57 = vrot.slane %v3258_v62, 4  ;;  %v3004_v10 = vpop.f32.mrf.mxu3  ;;  %v3239_v2 = vmax.f32 %v3237_v34, %v3238_v21  ;;  %v3661_v34 = vld [vmem:[%s8722_s5 + $0x3f0] sm:$0xff]  ;;  %v3678_v21 = vld [vmem:[%s8722_s5 + $0x478] sm:$0xff] }
 0x714   :  { %v3447_v54 = vrot.slane %v3374_v14, 7  ;;  %v3449_v8 = vrot.slane %v3375_v41, 6  ;;  %v3451_v59 = vrot.slane %v3376_v58, 5  ;;  %v3028_v9 = vadd.f32 %v3004_v10, %v7797_v32 }
 0x715   :  { %v3246_v7 = vmax.f32 %v3244_v25, %v3245_v19  ;;  %v3253_v52 = vmax.f32 %v3251_v22, %v3252_v49  ;;  %v3260_v46 = vmax.f32 %v3258_v62, %v3259_v57  ;;  %v3240_v44 = vrot.slane %v3239_v2, 2 }
 0x716   :  { %v3448_v38 = vsel %vm3422_vm10, %v3447_v54, %v3373_v6  ;;  %v8052_v25 = vmax.f32 %v7993_v61, %v3200_v36  ;;  %v8062_v19 = vmax.f32 %v8003_v55, %v3207_v45  ;;  %v3677_v61 = vld [vmem:[%s8722_s5 + $0x470] sm:$0xff]  ;;  %v3510_v10 = vrot.slane %v7981_v53, 1  ;;  %v3644_v55 = vld [vmem:[%s8722_s5 + $0x368] sm:$0xff] }
 0x717   :  { %v3247_v30 = vrot.slane %v3246_v7, 2  ;;  %v3254_v18 = vrot.slane %v3253_v52, 2  ;;  %v3261_v56 = vrot.slane %v3260_v46, 2  ;;  %v3450_v20 = vsel %vm1006_vm3, %v3449_v8, %v3448_v38  ;;  %v3676_v45 = vld [vmem:[%s8722_s5 + $0x468] sm:$0xff]  ;;  %v3658_v38 = vld [vmem:[%s8722_s5 + $0x3d8] sm:$0xff] }
 0x718   :  { %v3241_v37 = vmax.f32 %v3239_v2, %v3240_v44  ;;  %v3452_v5 = vsel %vm3427_vm11, %v3451_v59, %v3450_v20  ;;  %v8069_v58 = vadd.f32 %v7587_v43, %v3194_v47  ;;  %v3659_v2 = vld [vmem:[%s8722_s5 + $0x3e0] sm:$0xff] }
 0x719   :  { %v3248_v17 = vmax.f32 %v3246_v7, %v3247_v30  ;;  %v3255_v1 = vmax.f32 %v3253_v52, %v3254_v18  ;;  %v3262_v13 = vmax.f32 %v3260_v46, %v3261_v56  ;;  %v3484_v40 = vsel %vm3422_vm10, %v3452_v5, %v7834_v60 }
 0x71a   :  { %v3242_v27 = vrot.slane %v3241_v37, 1  ;;  %3831 = vmatmul.f32.vlgmr.msra.gmra.mxu2 %v3484_v40  ;;  %v3480_v26 = vrot.slane %v3452_v5, 7  ;;  %v3487_v51 = vrot.slane %v3452_v5, 1  ;;  %v3491_v60 = vrot.slane %v3452_v5, 2  ;;  %v3675_v5 = vld [vmem:[%s8722_s5 + $0x460] sm:$0xff]  ;;  %v3642_v40 = vld [vmem:[%s8722_s5 + $0x358] sm:$0xff] }
 0x71b   :  { %v3249_v48 = vrot.slane %v3248_v17, 1  ;;  %v3256_v29 = vrot.slane %v3255_v1, 1  ;;  %v3263_v3 = vrot.slane %v3262_v13, 1  ;;  %3935 = vmatpush.msra.mxu2 %v3662_v28  ;;  %v3007_v24 = vpop.f32.mrf.mxu3 }
 0x71c   :  { %v3243_v42 = vmax.f32 %v3241_v37, %v3242_v27  ;;  %v3029_v32 = vadd.f32 %v3007_v24, %v7812_v39  ;;  %v3481_v14 = vsel %vm3422_vm10, %v3480_v26, %v7826_v23  ;;  %v3488_v41 = vsel %vm3422_vm10, %v3487_v51, %v7851_v4  ;;  %v3645_v39 = vld [vmem:[%s8722_s5 + $0x370] sm:$0xff]  ;;  %v3660_v23 = vld [vmem:[%s8722_s5 + $0x3e8] sm:$0xff] }
 0x71d   :  { %v3250_v22 = vmax.f32 %v3248_v17, %v3249_v48  ;;  %v3257_v62 = vmax.f32 %v3255_v1, %v3256_v29  ;;  %3811 = vmatmul.f32.vlgmr.msra.gmra.mxu1 %v3481_v14  ;;  %3851 = vmatmul.f32.vlgmr.msra.gmra.mxu3 %v3488_v41  ;;  %v3513_v4 = vrot.slane %v7981_v53, 2  ;;  %v3264_v57 = vmax.f32 %v3262_v13, %v3263_v3  ;;  %v3657_v27 = vld [vmem:[%s8722_s5 + $0x3d0] sm:$0xff]  ;;  %v3674_v48 = vld [vmem:[%s8722_s5 + $0x458] sm:$0xff] }
 0x71e   :  { %v3038_v49 = vmax.f32 %v3028_v9, %v3029_v32  ;;  %3915 = vmatpush.msra.mxu1 %v3646_v16  ;;  %3936 = vmatpush.msra.mxu2 %v3661_v34  ;;  %v3492_v54 = vsel %vm3422_vm10, %v3491_v60, %v7860_v50  ;;  %v3345_v36 = vadd.f32 %v7587_v43, %v3243_v42  ;;  %v3643_v50 = vld [vmem:[%s8722_s5 + $0x360] sm:$0xff]  ;;  %v3641_v60 = vld [vmem:[%s8722_s5 + $0x350] sm:$0xff]  ;;  %v3656_v42 = vld [vmem:[%s8722_s5 + $0x3c8] sm:$0xff]  ;;  %v3517_v32 = vrot.slane %v7981_v53, 3 }
 0x71f   :  { %v3346_v6 = vadd.f32 %v7587_v43, %v3250_v22  ;;  %3955 = vmatpush.msra.mxu3 %v3678_v21  ;;  %v3347_v8 = vadd.f32 %v7587_v43, %v3257_v62  ;;  %v3348_v59 = vadd.f32 %v7587_v43, %v3264_v57  ;;  %v8117_v14 = vadd.f32 %v7587_v43, %v8052_v25  ;;  %v3673_v21 = vld [vmem:[%s8722_s5 + $0x450] sm:$0xff]  ;;  %v3655_v43 = vld [vmem:[%s8722_s5 + $0x3c0] sm:$0xff] }
 0x720   :  { %v3066_v7 = vrot.slane %v3038_v49, 2  ;;  %v3067_v52 = vrot.slane %v3038_v49, 4  ;;  %v3068_v46 = vrot.slane %v3038_v49, 6  ;;  %3916 = vmatpush.msra.mxu1 %v3645_v39  ;;  %3937 = vmatpush.msra.mxu2 %v3660_v23  ;;  %v3265_v44 = vsel %vm3096_vm9, %v3038_v49, -inf  ;;  %v8133_v57 = vld [vmem:[%s8721_s4] ss:$0 sm:$0xff] }
 0x721   :  { %3956 = vmatpush.msra.mxu3 %v3677_v61  ;;  %v3378_v30 = vmax.f32 %v3346_v6, 0.0  ;;  %v3379_v18 = vmax.f32 %v3347_v8, 0.0  ;;  %v3266_v56 = vrot.slane %v3265_v44, 4  ;;  %v3380_v9 = vmax.f32 %v3348_v59, 0.0  ;;  %v3640_v61 = vld [vmem:[%s8722_s5 + $0x348] sm:$0xff]  ;;  %s4164_s4 = sshll.u32 %s8726_s9, 4  ;;  %s4165_s4 = int_to_ptr.hbm [resolvable:$true] %s4164_s4 }
 0x722   :  { %v3272_v20 = vsel %vm3096_vm9, %v3066_v7, -inf  ;;  %v3279_v47 = vsel %vm3096_vm9, %v3067_v52, -inf  ;;  %v3286_v37 = vsel %vm3096_vm9, %v3068_v46, -inf  ;;  %3917 = vmatpush.msra.mxu1 %v3644_v55  ;;  %3938 = vmatpush.msra.mxu2 %v3659_v2  ;;  %v3377_v26 = vmax.f32 %v3345_v36, 0.0  ;;  %v3672_v2 = vld [vmem:[%s8722_s5 + $0x448] sm:$0xff]  ;;  %v3639_v46 = vld [vmem:[%s8722_s5 + $0x340] sm:$0xff] }
 0x723   :  { %v3273_v28 = vrot.slane %v3272_v20, 4  ;;  %v3280_v17 = vrot.slane %v3279_v47, 4  ;;  %v3287_v1 = vrot.slane %v3286_v37, 4  ;;  %3957 = vmatpush.msra.mxu3 %v3676_v45  ;;  %v3010_v13 = vpop.f32.mrf.mxu3  ;;  %v3267_v51 = vmax.f32 %v3265_v44, %v3266_v56 }
 0x724   :  { %3918 = vmatpush.msra.mxu1 %v3643_v50  ;;  %3939 = vmatpush.msra.mxu2 %v3658_v38  ;;  %v3453_v29 = vrot.slane %v3378_v30, 7  ;;  %v3455_v3 = vrot.slane %v3379_v18, 6  ;;  %v3457_v62 = vrot.slane %v3380_v9, 5  ;;  %v8137_v6 = vadd.f32 %v8133_v57, %v8027_v11  ;;  %v3671_v38 = vld [vmem:[%s8722_s5 + $0x440] sm:$0xff] }
 0x725   :  { %v3274_v24 = vmax.f32 %v3272_v20, %v3273_v28  ;;  %v3281_v16 = vmax.f32 %v3279_v47, %v3280_v17  ;;  %v3288_v34 = vmax.f32 %v3286_v37, %v3287_v1  ;;  %3958 = vmatpush.msra.mxu3 %v3675_v5  ;;  %3871 = vmatmul.f32.vlgmr.msrb.gmra.mxu1 %v3492_v54  ;;  %v3268_v41 = vrot.slane %v3267_v51, 2  ;;  %v3638_v20 = vld [vmem:[%s8722_s5 + $0x338] sm:$0xff]  ;;  %v3653_v28 = vld [vmem:[%s8722_s5 + $0x3b0] sm:$0xff] }
 0x726   :  { %3919 = vmatpush.msra.mxu1 %v3642_v40  ;;  %3940 = vmatpush.msra.mxu2 %v3657_v27  ;;  %v3454_v22 = vsel %vm3422_vm10, %v3453_v29, %v3377_v26  ;;  %v8148_v8 = vsel %vm1005_vm2, %v3513_v4, 0.0  ;;  %v3370_v45 = vmax.f32 %v8069_v58, 0.0  ;;  %v3371_v44 = vmax.f32 %v8117_v14, 0.0  ;;  %v3654_v4 = vld [vmem:[%s8722_s5 + $0x3b8] sm:$0xff]  ;;  %v3669_v26 = vld [vmem:[%s8722_s5 + $0x430] sm:$0xff]  ;;  %v3668_v14 = vld [vmem:[%s8722_s5 + $0x428] sm:$0xff] }
 0x727   :  { %v3275_v39 = vrot.slane %v3274_v24, 2  ;;  %v3282_v23 = vrot.slane %v3281_v16, 2  ;;  %v3289_v49 = vrot.slane %v3288_v34, 2  ;;  %3959 = vmatpush.msra.mxu3 %v3674_v48  ;;  %v3456_v25 = vsel %vm1006_vm3, %v3455_v3, %v3454_v22 }
 0x728   :  { %v3269_v55 = vmax.f32 %v3267_v51, %v3268_v41  ;;  %3920 = vmatpush.msra.mxu1 %v3641_v60  ;;  %3941 = vmatpush.msra.mxu2 %v3656_v42  ;;  %v8143_v54 = vsel %vm3427_vm11, %v3457_v62, %v3456_v25  ;;  %v3030_v58 = vadd.f32 %v3010_v13, %v7815_v0  ;;  %v3670_v0 = vld [vmem:[%s8722_s5 + $0x438] sm:$0xff]  ;;  %v8181_v17 = vsel %vm1005_vm2, %v3510_v10, 0.0  ;;  %v3652_v10 = vld [vmem:[%s8722_s5 + $0x3a8] sm:$0xff] }
 0x729   :  { %v3276_v36 = vmax.f32 %v3274_v24, %v3275_v39  ;;  %v3283_v7 = vmax.f32 %v3281_v16, %v3282_v23  ;;  %v3290_v52 = vmax.f32 %v3288_v34, %v3289_v49  ;;  %3960 = vmatpush.msra.mxu3 %v3673_v21  ;;  %v3498_v11 = vsel %vm3422_vm10, %v8143_v54, %v7948_v33  ;;  %v3636_v16 = vld [vmem:[%s8722_s5 + $0x328] sm:$0xff]  ;;  %v3635_v39 = vld [vmem:[%s8722_s5 + $0x320] sm:$0xff]  ;;  %v3650_v25 = vld [vmem:[%s8722_s5 + $0x398] sm:$0xff] }
 0x72a   :  { %v3270_v50 = vrot.slane %v3269_v55, 1  ;;  %3921 = vmatpush.msra.mxu1 %v3640_v61  ;;  %3942 = vmatpush.msra.mxu2 %v3655_v43  ;;  %v3494_v33 = vrot.slane %v8143_v54, 7  ;;  %v3369_v27 = vmax.f32 %v8137_v6, 0.0  ;;  %v8199_v51 = vadd.f32 %v8133_v57, %v8062_v19 }
 0x72b   :  { %v3277_v59 = vrot.slane %v3276_v36, 1  ;;  %v3284_v30 = vrot.slane %v3283_v7, 1  ;;  %v3291_v18 = vrot.slane %v3290_v52, 1  ;;  %3961 = vmatpush.msra.mxu3 %v3672_v2  ;;  %v3013_v56 = vpop.f32.mrf.mxu3  ;;  %v8201_v48 = vrot.slane %v3370_v45, 7 }
 0x72c   :  { %v3271_v47 = vmax.f32 %v3269_v55, %v3270_v50  ;;  %3911 = vmatmul.f32.vlgmr.msrb.gmra.mxu3 %v3498_v11  ;;  %3922 = vmatpush.msra.mxu1 %v3639_v46  ;;  %v3031_v37 = vadd.f32 %v3013_v56, %v7839_v35  ;;  %v3495_v5 = vsel %vm3422_vm10, %v3494_v33, %v7877_v12  ;;  %v3637_v35 = vld [vmem:[%s8722_s5 + $0x330] sm:$0xff]  ;;  %v8187_v12 = vsel %vm1005_vm2, %v3517_v32, 0.0  ;;  %v3651_v32 = vld [vmem:[%s8722_s5 + $0x3a0] sm:$0xff]  ;;  %v3634_v11 = vld [vmem:[%s8722_s5 + $0x318] sm:$0xff] }
 0x72d   :  { %v3278_v1 = vmax.f32 %v3276_v36, %v3277_v59  ;;  %v3285_v13 = vmax.f32 %v3283_v7, %v3284_v30  ;;  %v3292_v40 = vmax.f32 %v3290_v52, %v3291_v18  ;;  %3943 = vmatpush.msra.mxu2 %v3654_v4  ;;  %3962 = vmatpush.msra.mxu3 %v3671_v38  ;;  %v8203_v29 = vrot.slane %v3371_v44, 6  ;;  %v3667_v55 = vld [vmem:[%s8722_s5 + $0x420] sm:$0xff]  ;;  %v3649_v44 = vld [vmem:[%s8722_s5 + $0x390] sm:$0xff]  ;;  %v3666_v50 = vld [vmem:[%s8722_s5 + $0x418] sm:$0xff] }
 0x72e   :  { %v3349_v9 = vadd.f32 %v8133_v57, %v3271_v47  ;;  %v3039_v53 = vmax.f32 %v3030_v58, %v3031_v37  ;;  %3891 = vmatmul.f32.vlgmr.msrb.gmra.mxu2 %v3495_v5  ;;  %3923 = vmatpush.msra.mxu1 %v3638_v20  ;;  %v3505_v4 = vrot.slane %v8143_v54, 2  ;;  %v3633_v30 = vld [vmem:[%s8722_s5 + $0x310] sm:$0xff]  ;;  %v3372_v58 = vmax.f32 %v8199_v51, 0.0  ;;  %v3648_v47 = vld [vmem:[%s8722_s5 + $0x388] sm:$0xff] }
 0x72f   :  { %v3350_v3 = vadd.f32 %v8133_v57, %v3278_v1  ;;  %v3351_v24 = vadd.f32 %v8133_v57, %v3285_v13  ;;  %3944 = vmatpush.msra.mxu2 %v3653_v28  ;;  %3963 = vmatpush.msra.mxu3 %v3670_v0  ;;  %v3352_v34 = vadd.f32 %v8133_v57, %v3292_v40  ;;  %v3665_v37 = vld [vmem:[%s8722_s5 + $0x410] sm:$0xff]  ;;  %v3632_v13 = vld [vmem:[%s8722_s5 + $0x308] sm:$0xff]  ;;  %v3501_v40 = vrot.slane %v8143_v54, 1 }
 0x730   :  { %v3069_v60 = vrot.slane %v3039_v53, 2  ;;  %v3070_v42 = vrot.slane %v3039_v53, 4  ;;  %v3071_v19 = vrot.slane %v3039_v53, 6  ;;  %3924 = vmatpush.msra.mxu1 %v3637_v35  ;;  %v3381_v41 = vmax.f32 %v3349_v9, 0.0 }
 0x731   :  { %v3382_v21 = vmax.f32 %v3350_v3, 0.0  ;;  %v3383_v22 = vmax.f32 %v3351_v24, 0.0  ;;  %v3293_v62 = vsel %vm3096_vm9, %v3039_v53, -inf  ;;  %3945 = vmatpush.msra.mxu2 %v3652_v10  ;;  %3964 = vmatpush.msra.mxu3 %v3669_v26  ;;  %v3384_v38 = vmax.f32 %v3352_v34, 0.0  ;;  %v3647_v10 = vld [vmem:[%s8722_s5 + $0x380] sm:$0xff]  ;;  %v3664_v26 = vld [vmem:[%s8722_s5 + $0x408] sm:$0xff] }
 0x732   :  { %v3294_v23 = vrot.slane %v3293_v62, 4  ;;  %v3300_v49 = vsel %vm3096_vm9, %v3069_v60, -inf  ;;  %v3307_v61 = vsel %vm3096_vm9, %v3070_v42, -inf  ;;  %v3314_v43 = vsel %vm3096_vm9, %v3071_v19, -inf  ;;  %3925 = vmatpush.msra.mxu1 %v3636_v16  ;;  %v3710_v60 = vld [vmem:[%s8722_s5 + $0x578] sm:$0xff] }
 0x733   :  { %v3459_v2 = vrot.slane %v3382_v21, 7  ;;  %v3461_v36 = vrot.slane %v3383_v22, 6  ;;  %v3301_v7 = vrot.slane %v3300_v49, 4  ;;  %v3308_v52 = vrot.slane %v3307_v61, 4  ;;  %3946 = vmatpush.msra.mxu2 %v3651_v32  ;;  %3965 = vmatpush.msra.mxu3 %v3668_v14 }
 0x734   :  { %v3295_v46 = vmax.f32 %v3293_v62, %v3294_v23  ;;  %v3315_v45 = vrot.slane %v3314_v43, 4  ;;  %3926 = vmatpush.msra.mxu1 %v3635_v39  ;;  %v3463_v28 = vrot.slane %v3384_v38, 5  ;;  %v3442_v35 = vsel %vm3422_vm10, %v8201_v48, %v3369_v27  ;;  %v3631_v27 = vld [vmem:[%s8722_s5 + $0x300] sm:$0xff]  ;;  %v3709_v23 = vld [vmem:[%s8722_s5 + $0x570] sm:$0xff] }
 0x735   :  { %v3302_v33 = vmax.f32 %v3300_v49, %v3301_v7  ;;  %v3309_v59 = vmax.f32 %v3307_v61, %v3308_v52  ;;  %3947 = vmatpush.msra.mxu2 %v3650_v25  ;;  %3966 = vmatpush.msra.mxu3 %v3667_v55  ;;  %v3460_v18 = vsel %vm3422_vm10, %v3459_v2, %v3381_v41  ;;  %v3726_v41 = vld [vmem:[%s8722_s5 + $0x5f8] sm:$0xff]  ;;  %v3693_v25 = vld [vmem:[%s8722_s5 + $0x4f0] sm:$0xff]  ;;  %v3445_v2 = vrot.slane %v3372_v58, 5  ;;  %v3692_v52 = vld [vmem:[%s8722_s5 + $0x4e8] sm:$0xff] }
 0x736   :  { %v3296_v56 = vrot.slane %v3295_v46, 2  ;;  %v3316_v20 = vmax.f32 %v3314_v43, %v3315_v45  ;;  %3927 = vmatpush.msra.mxu1 %v3634_v11  ;;  %v3462_v5 = vsel %vm1006_vm3, %v3461_v36, %v3460_v18  ;;  %v3506_v51 = vsel %vm3422_vm10, %v3505_v4, %v7959_v31  ;;  %v3663_v31 = vld [vmem:[%s8722_s5 + $0x400] sm:$0xff] }
 0x737   :  { %v3303_v0 = vrot.slane %v3302_v33, 2  ;;  %v3310_v1 = vrot.slane %v3309_v59, 2  ;;  %3948 = vmatpush.msra.mxu2 %v3649_v44  ;;  %3967 = vmatpush.msra.mxu3 %v3666_v50  ;;  %v3464_v54 = vsel %vm3427_vm11, %v3463_v28, %v3462_v5  ;;  %v3502_v43 = vsel %vm3422_vm10, %v3501_v40, %v8001_v15  ;;  %v3725_v15 = vld [vmem:[%s8722_s5 + $0x5f0] sm:$0xff]  ;;  %v3707_v11 = vld [vmem:[%s8722_s5 + $0x560] sm:$0xff]  ;;  %v3724_v44 = vld [vmem:[%s8722_s5 + $0x5e8] sm:$0xff] }
 0x738   :  { %v3297_v9 = vmax.f32 %v3295_v46, %v3296_v56  ;;  %v3317_v53 = vrot.slane %v3316_v20, 2  ;;  %3928 = vmatpush.msra.mxu1 %v3633_v30  ;;  %v3508_v48 = vrot.slane %v3464_v54, 7  ;;  %v3515_v24 = vrot.slane %v3464_v54, 1  ;;  %v3691_v38 = vld [vmem:[%s8722_s5 + $0x4e0] sm:$0xff]  ;;  %v3704_v40 = vld [vmem:[%s8722_s5 + $0x548] sm:$0xff] }
 0x739   :  { %v3304_v6 = vmax.f32 %v3302_v33, %v3303_v0  ;;  %v3311_v3 = vmax.f32 %v3309_v59, %v3310_v1  ;;  %3949 = vmatpush.msra.mxu2 %v3648_v47  ;;  %3968 = vmatpush.msra.mxu3 %v3665_v37  ;;  %v8280_v42 = vsel %vm3422_vm10, %v3464_v54, %v8181_v17  ;;  %v3519_v19 = vrot.slane %v3464_v54, 2  ;;  %v3694_v17 = vld [vmem:[%s8722_s5 + $0x4f8] sm:$0xff]  ;;  %v3723_v30 = vld [vmem:[%s8722_s5 + $0x5e0] sm:$0xff]  ;;  %v3705_v47 = vld [vmem:[%s8722_s5 + $0x550] sm:$0xff] }
 0x73a   :  { %v3298_v16 = vrot.slane %v3297_v9, 1  ;;  %v3318_v34 = vmax.f32 %v3316_v20, %v3317_v53  ;;  %3929 = vmatpush.msra.mxu1 %v3632_v13  ;;  %v3509_v21 = vsel %vm3422_vm10, %v3508_v48, %v8010_v63  ;;  %v8289_v22 = vsel %vm3422_vm10, %v3515_v24, %v8148_v8  ;;  %v3706_v33 = vld [vmem:[%s8722_s5 + $0x558] sm:$0xff]  ;;  %v3689_v13 = vld [vmem:[%s8722_s5 + $0x4d0] sm:$0xff]  ;;  %v3720_v48 = vld [vmem:[%s8722_s5 + $0x5c8] sm:$0xff] }
 0x73b   :  { %v3305_v32 = vrot.slane %v3304_v6, 1  ;;  %v3312_v14 = vrot.slane %v3311_v3, 1  ;;  %3950 = vmatpush.msra.mxu2 %v3647_v10  ;;  %3969 = vmatpush.msra.mxu3 %v3664_v26  ;;  %v8299_v49 = vsel %vm3422_vm10, %v3519_v19, %v8187_v12  ;;  %v3444_v63 = vsel %vm1006_vm3, %v8203_v29, %v3442_v35  ;;  %v3708_v12 = vld [vmem:[%s8722_s5 + $0x568] sm:$0xff]  ;;  %v3690_v20 = vld [vmem:[%s8722_s5 + $0x4d8] sm:$0xff] }
 0x73c   :  { %v3299_v62 = vmax.f32 %v3297_v9, %v3298_v16  ;;  %v3319_v39 = vrot.slane %v3318_v34, 1  ;;  %3951 = vmatmul.f32.vlgmr.msra.gmra.mxu2 %v3506_v51  ;;  %3930 = vmatpush.msra.mxu1 %v3631_v27  ;;  %v3446_v45 = vsel %vm3427_vm11, %v3445_v2, %v3444_v63  ;;  %v3722_v37 = vld [vmem:[%s8722_s5 + $0x5d8] sm:$0xff]  ;;  %v3721_v9 = vld [vmem:[%s8722_s5 + $0x5d0] sm:$0xff]  ;;  %v3688_v26 = vld [vmem:[%s8722_s5 + $0x4c8] sm:$0xff] }
 0x73d   :  { %v3306_v8 = vmax.f32 %v3304_v6, %v3305_v32  ;;  %v3313_v61 = vmax.f32 %v3311_v3, %v3312_v14  ;;  %3995 = vmatpush.msrb.mxu2 %v3710_v60  ;;  %3970 = vmatpush.msra.mxu3 %v3663_v31  ;;  %v3524_v56 = vrot.slane %v3446_v45, 1  ;;  %v3527_v0 = vrot.slane %v3446_v45, 2  ;;  %v3703_v51 = vld [vmem:[%s8722_s5 + $0x540] sm:$0xff]  ;;  %v3702_v31 = vld [vmem:[%s8722_s5 + $0x538] sm:$0xff]  ;;  %v3717_v63 = vld [vmem:[%s8722_s5 + $0x5b0] sm:$0xff] }
 0x73e   :  { %3931 = vmatmul.f32.vlgmr.msra.gmra.mxu1 %v3502_v43  ;;  %v3320_v55 = vmax.f32 %v3318_v34, %v3319_v39  ;;  %v3353_v29 = vadd.f32 %v8133_v57, %v3299_v62  ;;  %3971 = vmatmul.f32.vlgmr.msra.gmra.mxu3 %v3509_v21  ;;  %v3531_v1 = vrot.slane %v3446_v45, 3  ;;  %v3521_v24 = vsel %vm1005_vm2, %v3446_v45, 0.0  ;;  %v3687_v60 = vld [vmem:[%s8722_s5 + $0x4c0] sm:$0xff]  ;;  %v3686_v21 = vld [vmem:[%s8722_s5 + $0x4b8] sm:$0xff]  ;;  %v3701_v62 = vld [vmem:[%s8722_s5 + $0x530] sm:$0xff] }
 0x73f   :  { %4015 = vmatpush.msrb.mxu3 %v3726_v41  ;;  %v3354_v36 = vadd.f32 %v8133_v57, %v3306_v8  ;;  %3975 = vmatpush.msrb.mxu1 %v3694_v17  ;;  %v3355_v7 = vadd.f32 %v8133_v57, %v3313_v61  ;;  %v3525_v10 = vsel %vm1005_vm2, %v3524_v56, 0.0  ;;  %v3528_v16 = vsel %vm1005_vm2, %v3527_v0, 0.0  ;;  %v3719_v41 = vld [vmem:[%s8722_s5 + $0x5c0] sm:$0xff]  ;;  %v3718_v39 = vld [vmem:[%s8722_s5 + $0x5b8] sm:$0xff]  ;;  %v3685_v17 = vld [vmem:[%s8722_s5 + $0x4b0] sm:$0xff] }
 0x740   :  { %3996 = vmatpush.msrb.mxu2 %v3709_v23  ;;  %v3356_v46 = vadd.f32 %v8133_v57, %v3320_v55  ;;  %v3385_v59 = vmax.f32 %v3353_v29, 0.0  ;;  %v3532_v34 = vsel %vm1005_vm2, %v3531_v1, 0.0  ;;  %v3700_v23 = vld [vmem:[%s8722_s5 + $0x528] sm:$0xff]  ;;  %v3699_v61 = vld [vmem:[%s8722_s5 + $0x520] sm:$0xff]  ;;  %v3682_v2 = vld [vmem:[%s8722_s5 + $0x498] sm:$0xff] }
 0x741   :  { %3976 = vmatpush.msrb.mxu1 %v3693_v25  ;;  %v3386_v50 = vmax.f32 %v3354_v36, 0.0  ;;  %v3387_v4 = vmax.f32 %v3355_v7, 0.0  ;;  %4016 = vmatpush.msrb.mxu3 %v3725_v15  ;;  %v3684_v8 = vld [vmem:[%s8722_s5 + $0x4a8] sm:$0xff]  ;;  %v3683_v25 = vld [vmem:[%s8722_s5 + $0x4a0] sm:$0xff]  ;;  %v3697_v29 = vld [vmem:[%s8722_s5 + $0x510] sm:$0xff] }
 0x742   :  { %3997 = vmatpush.msrb.mxu2 %v3708_v12  ;;  %v3388_v57 = vmax.f32 %v3356_v46, 0.0  ;;  %v3716_v43 = vld [vmem:[%s8722_s5 + $0x5a8] sm:$0xff]  ;;  %v3698_v12 = vld [vmem:[%s8722_s5 + $0x518] sm:$0xff]  ;;  %v3715_v55 = vld [vmem:[%s8722_s5 + $0x5a0] sm:$0xff] }
 0x743   :  { %3977 = vmatpush.msrb.mxu1 %v3692_v52  ;;  %v3465_v18 = vrot.slane %v3386_v50, 7  ;;  %v3467_v58 = vrot.slane %v3387_v4, 6  ;;  %4017 = vmatpush.msrb.mxu3 %v3724_v44  ;;  %v3714_v36 = vld [vmem:[%s8722_s5 + $0x598] sm:$0xff]  ;;  %v3681_v15 = vld [vmem:[%s8722_s5 + $0x490] sm:$0xff]  ;;  %v3696_v7 = vld [vmem:[%s8722_s5 + $0x508] sm:$0xff] }
 0x744   :  { %3998 = vmatpush.msrb.mxu2 %v3707_v11  ;;  %v3469_v28 = vrot.slane %v3388_v57, 5  ;;  %v3713_v52 = vld [vmem:[%s8722_s5 + $0x590] sm:$0xff]  ;;  %v3680_v11 = vld [vmem:[%s8722_s5 + $0x488] sm:$0xff]  ;;  %v3695_v46 = vld [vmem:[%s8722_s5 + $0x500] sm:$0xff] }
 0x745   :  { %3978 = vmatpush.msrb.mxu1 %v3691_v38  ;;  %v3466_v5 = vsel %vm3422_vm10, %v3465_v18, %v3385_v59  ;;  %4018 = vmatpush.msrb.mxu3 %v3723_v30  ;;  %v3712_v45 = vld [vmem:[%s8722_s5 + $0x588] sm:$0xff]  ;;  %v3758_v44 = vld [vmem:[%s8722_s5 + $0x6f8] sm:$0xff]  ;;  %v3679_v50 = vld [vmem:[%s8722_s5 + $0x480] sm:$0xff] }
 0x746   :  { %3999 = vmatpush.msrb.mxu2 %v3706_v33  ;;  %v3468_v35 = vsel %vm1006_vm3, %v3467_v58, %v3466_v5  ;;  %v3711_v4 = vld [vmem:[%s8722_s5 + $0x580] sm:$0xff]  ;;  %v3742_v38 = vld [vmem:[%s8722_s5 + $0x678] sm:$0xff]  ;;  %v3757_v33 = vld [vmem:[%s8722_s5 + $0x6f0] sm:$0xff] }
 0x747   :  { %3979 = vmatpush.msrb.mxu1 %v3690_v20  ;;  %v3470_v53 = vsel %vm3427_vm11, %v3469_v28, %v3468_v35  ;;  %4019 = vmatpush.msrb.mxu3 %v3722_v37  ;;  %v3774_v57 = vld [vmem:[%s8722_s5 + $0x778] sm:$0xff]  ;;  %v3756_v59 = vld [vmem:[%s8722_s5 + $0x6e8] sm:$0xff]  ;;  %v3773_v30 = vld [vmem:[%s8722_s5 + $0x770] sm:$0xff] }
 0x748   :  { %4000 = vmatpush.msrb.mxu2 %v3705_v47  ;;  %v8366_v54 = vsel %vm3422_vm10, %v3470_v53, %v3525_v10  ;;  %v3522_v6 = vrot.slane %v3470_v53, 7  ;;  %v3529_v3 = vrot.slane %v3470_v53, 1  ;;  %v3533_v27 = vrot.slane %v3470_v53, 2  ;;  %v3772_v18 = vld [vmem:[%s8722_s5 + $0x768] sm:$0xff]  ;;  %v3739_v58 = vld [vmem:[%s8722_s5 + $0x660] sm:$0xff]  ;;  %v3754_v56 = vld [vmem:[%s8722_s5 + $0x6d8] sm:$0xff] }
 0x749   :  { %3980 = vmatpush.msrb.mxu1 %v3689_v13  ;;  %4020 = vmatpush.msrb.mxu3 %v3721_v9  ;;  %v3771_v20 = vld [vmem:[%s8722_s5 + $0x760] sm:$0xff]  ;;  %v3738_v47 = vld [vmem:[%s8722_s5 + $0x658] sm:$0xff]  ;;  %v3753_v37 = vld [vmem:[%s8722_s5 + $0x6d0] sm:$0xff] }
 0x74a   :  { %4001 = vmatpush.msrb.mxu2 %v3704_v40  ;;  %v8381_v19 = vsel %vm3422_vm10, %v3522_v6, %v3521_v24  ;;  %v8384_v32 = vsel %vm3422_vm10, %v3529_v3, %v3528_v16  ;;  %v8387_v14 = vsel %vm3422_vm10, %v3533_v27, %v3532_v34  ;;  %v3770_v5 = vld [vmem:[%s8722_s5 + $0x758] sm:$0xff]  ;;  %v3737_v28 = vld [vmem:[%s8722_s5 + $0x650] sm:$0xff]  ;;  %v3752_v0 = vld [vmem:[%s8722_s5 + $0x6c8] sm:$0xff] }
 0x74b   :  { %3981 = vmatpush.msrb.mxu1 %v3688_v26  ;;  %4021 = vmatpush.msrb.mxu3 %v3720_v48  ;;  %v3769_v1 = vld [vmem:[%s8722_s5 + $0x750] sm:$0xff]  ;;  %v3736_v13 = vld [vmem:[%s8722_s5 + $0x648] sm:$0xff]  ;;  %v3751_v40 = vld [vmem:[%s8722_s5 + $0x6c0] sm:$0xff] }
 0x74c   :  { %4002 = vmatpush.msrb.mxu2 %v3703_v51  ;;  %v3768_v35 = vld [vmem:[%s8722_s5 + $0x748] sm:$0xff]  ;;  %v3735_v9 = vld [vmem:[%s8722_s5 + $0x640] sm:$0xff]  ;;  %v3750_v53 = vld [vmem:[%s8722_s5 + $0x6b8] sm:$0xff] }
 0x74d   :  { %3982 = vmatpush.msrb.mxu1 %v3687_v60  ;;  %4022 = vmatpush.msrb.mxu3 %v3719_v41  ;;  %v3767_v10 = vld [vmem:[%s8722_s5 + $0x740] sm:$0xff]  ;;  %v3734_v26 = vld [vmem:[%s8722_s5 + $0x638] sm:$0xff]  ;;  %v3749_v51 = vld [vmem:[%s8722_s5 + $0x6b0] sm:$0xff] }
 0x74e   :  { %4003 = vmatpush.msrb.mxu2 %v3702_v31  ;;  %v3766_v6 = vld [vmem:[%s8722_s5 + $0x738] sm:$0xff]  ;;  %v3733_v3 = vld [vmem:[%s8722_s5 + $0x630] sm:$0xff]  ;;  %v3748_v27 = vld [vmem:[%s8722_s5 + $0x6a8] sm:$0xff] }
 0x74f   :  { %3983 = vmatpush.msrb.mxu1 %v3686_v21  ;;  %4023 = vmatpush.msrb.mxu3 %v3718_v39  ;;  %v3765_v48 = vld [vmem:[%s8722_s5 + $0x730] sm:$0xff]  ;;  %v3732_v24 = vld [vmem:[%s8722_s5 + $0x628] sm:$0xff]  ;;  %v3747_v16 = vld [vmem:[%s8722_s5 + $0x6a0] sm:$0xff] }
 0x750   :  { %4004 = vmatpush.msrb.mxu2 %v3701_v62  ;;  %v3764_v34 = vld [vmem:[%s8722_s5 + $0x728] sm:$0xff]  ;;  %v3731_v60 = vld [vmem:[%s8722_s5 + $0x620] sm:$0xff]  ;;  %v3746_v31 = vld [vmem:[%s8722_s5 + $0x698] sm:$0xff] }
 0x751   :  { %3984 = vmatpush.msrb.mxu1 %v3685_v17  ;;  %4024 = vmatpush.msrb.mxu3 %v3717_v63  ;;  %v3763_v41 = vld [vmem:[%s8722_s5 + $0x720] sm:$0xff]  ;;  %v3730_v21 = vld [vmem:[%s8722_s5 + $0x618] sm:$0xff]  ;;  %v3745_v62 = vld [vmem:[%s8722_s5 + $0x690] sm:$0xff] }
 0x752   :  { %4005 = vmatpush.msrb.mxu2 %v3700_v23  ;;  %v3762_v39 = vld [vmem:[%s8722_s5 + $0x718] sm:$0xff]  ;;  %v3729_v17 = vld [vmem:[%s8722_s5 + $0x610] sm:$0xff]  ;;  %v3744_v23 = vld [vmem:[%s8722_s5 + $0x688] sm:$0xff] }
 0x753   :  { %3985 = vmatpush.msrb.mxu1 %v3684_v8  ;;  %4025 = vmatpush.msrb.mxu3 %v3716_v43  ;;  %v3761_v63 = vld [vmem:[%s8722_s5 + $0x710] sm:$0xff]  ;;  %v3728_v8 = vld [vmem:[%s8722_s5 + $0x608] sm:$0xff] }
 0x754   :  { %4006 = vmatpush.msrb.mxu2 %v3699_v61  ;;  %v3743_v61 = vld [vmem:[%s8722_s5 + $0x680] sm:$0xff]  ;;  %v3760_v43 = vld [vmem:[%s8722_s5 + $0x708] sm:$0xff] }
 0x755   :  { %3986 = vmatpush.msrb.mxu1 %v3683_v25  ;;  %4026 = vmatpush.msrb.mxu3 %v3715_v55  ;;  %v3727_v25 = vld [vmem:[%s8722_s5 + $0x600] sm:$0xff]  ;;  %v3790_v55 = vld [vmem:[%s8722_s5 + $0x7f8] sm:$0xff] }
 0x756   :  { %4007 = vmatpush.msrb.mxu2 %v3698_v12  ;;  %v3759_v12 = vld [vmem:[%s8722_s5 + $0x700] sm:$0xff] }
 0x757   :  { %3987 = vmatpush.msrb.mxu1 %v3682_v2  ;;  %4027 = vmatpush.msrb.mxu3 %v3714_v36  ;;  %v3789_v2 = vld [vmem:[%s8722_s5 + $0x7f0] sm:$0xff]  ;;  %v3784_v36 = vld [vmem:[%s8722_s5 + $0x7c8] sm:$0xff] }
 0x758   :  { %4008 = vmatpush.msrb.mxu2 %v3697_v29  ;;  %v3788_v29 = vld [vmem:[%s8722_s5 + $0x7e8] sm:$0xff] }
 0x759   :  { %3988 = vmatpush.msrb.mxu1 %v3681_v15  ;;  %4028 = vmatpush.msrb.mxu3 %v3713_v52  ;;  %v3783_v15 = vld [vmem:[%s8722_s5 + $0x7c0] sm:$0xff]  ;;  %v3781_v52 = vld [vmem:[%s8722_s5 + $0x7b0] sm:$0xff] }
 0x75a   :  { %4009 = vmatpush.msrb.mxu2 %v3696_v7  ;;  %v3782_v7 = vld [vmem:[%s8722_s5 + $0x7b8] sm:$0xff] }
 0x75b   :  { %3989 = vmatpush.msrb.mxu1 %v3680_v11  ;;  %4029 = vmatpush.msrb.mxu3 %v3712_v45  ;;  %v3780_v11 = vld [vmem:[%s8722_s5 + $0x7a8] sm:$0xff]  ;;  %v3778_v45 = vld [vmem:[%s8722_s5 + $0x798] sm:$0xff] }
 0x75c   :  { %4010 = vmatpush.msrb.mxu2 %v3695_v46  ;;  %v3779_v46 = vld [vmem:[%s8722_s5 + $0x7a0] sm:$0xff] }
 0x75d   :  { %4011 = vmatmul.f32.vlgmr.msrb.gmra.mxu2 %v8289_v22  ;;  %3990 = vmatpush.msrb.mxu1 %v3679_v50  ;;  %v3741_v22 = vld [vmem:[%s8722_s5 + $0x670] sm:$0xff]  ;;  %v3776_v50 = vld [vmem:[%s8722_s5 + $0x788] sm:$0xff] }
 0x75e   :  { %4055 = vmatpush.msra.mxu2 %v3758_v44  ;;  %4030 = vmatpush.msrb.mxu3 %v3711_v4  ;;  %v3777_v44 = vld [vmem:[%s8722_s5 + $0x790] sm:$0xff]  ;;  %v3775_v4 = vld [vmem:[%s8722_s5 + $0x780] sm:$0xff] }
 0x75f   :  { %3991 = vmatmul.f32.vlgmr.msrb.gmra.mxu1 %v8280_v42  ;;  %4031 = vmatmul.f32.vlgmr.msrb.gmra.mxu3 %v8299_v49  ;;  %v3740_v42 = vld [vmem:[%s8722_s5 + $0x668] sm:$0xff]  ;;  %v3755_v49 = vld [vmem:[%s8722_s5 + $0x6e0] sm:$0xff] }
 0x760   :  { %4035 = vmatpush.msra.mxu1 %v3742_v38  ;;  %4056 = vmatpush.msra.mxu2 %v3757_v33  ;;  %v4131_v38 = vld [vmem:[%s8724_s7 + $0x78] sm:$0xff]  ;;  %v4130_v33 = vld [vmem:[%s8724_s7 + $0x70] sm:$0xff] }
 0x761   :  { %4075 = vmatpush.msra.mxu3 %v3774_v57  ;;  %v4129_v57 = vld [vmem:[%s8724_s7 + $0x68] sm:$0xff] }
 0x762   :  { %4036 = vmatpush.msra.mxu1 %v3741_v22  ;;  %4057 = vmatpush.msra.mxu2 %v3756_v59  ;;  %v4128_v22 = vld [vmem:[%s8724_s7 + $0x60] sm:$0xff]  ;;  %v4126_v59 = vld [vmem:[%s8724_s7 + $0x50] sm:$0xff] }
 0x763   :  { %4076 = vmatpush.msra.mxu3 %v3773_v30  ;;  %v4125_v30 = vld [vmem:[%s8724_s7 + $0x48] sm:$0xff] }
 0x764   :  { %4037 = vmatpush.msra.mxu1 %v3740_v42  ;;  %4058 = vmatpush.msra.mxu2 %v3755_v49  ;;  %v4124_v42 = vld [vmem:[%s8724_s7 + $0x40] sm:$0xff] }
 0x765   :  { %4077 = vmatpush.msra.mxu3 %v3772_v18  ;;  %v4440_v49 = vld [vmem:[%s8723_s6] ss:$0 sm:$0xff] }
 0x766   :  { %4038 = vmatpush.msra.mxu1 %v3739_v58  ;;  %4059 = vmatpush.msra.mxu2 %v3754_v56  ;;  %v4123_v58 = vld [vmem:[%s8724_s7 + $0x38] sm:$0xff] }
 0x767   :  { %4078 = vmatpush.msra.mxu3 %v3771_v20  ;;  %v4122_v20 = vld [vmem:[%s8724_s7 + $0x30] sm:$0xff] }
 0x768   :  { %4039 = vmatpush.msra.mxu1 %v3738_v47  ;;  %4060 = vmatpush.msra.mxu2 %v3753_v37  ;;  %v4121_v37 = vld [vmem:[%s8724_s7 + $0x28] sm:$0xff] }
 0x769   :  { %4079 = vmatpush.msra.mxu3 %v3770_v5 }
 0x76a   :  { %4040 = vmatpush.msra.mxu1 %v3737_v28  ;;  %4061 = vmatpush.msra.mxu2 %v3752_v0  ;;  %v4120_v0 = vld [vmem:[%s8724_s7 + $0x20] sm:$0xff] }
 0x76b   :  { %4080 = vmatpush.msra.mxu3 %v3769_v1  ;;  %v4119_v1 = vld [vmem:[%s8724_s7 + $0x18] sm:$0xff] }
 0x76c   :  { %4041 = vmatpush.msra.mxu1 %v3736_v13  ;;  %4062 = vmatpush.msra.mxu2 %v3751_v40 }
 0x76d   :  { %4081 = vmatpush.msra.mxu3 %v3768_v35 }
 0x76e   :  { %4042 = vmatpush.msra.mxu1 %v3735_v9  ;;  %4063 = vmatpush.msra.mxu2 %v3750_v53 }
 0x76f   :  { %4082 = vmatpush.msra.mxu3 %v3767_v10  ;;  %v4118_v10 = vld [vmem:[%s8724_s7 + $0x10] sm:$0xff] }
 0x770   :  { %4043 = vmatpush.msra.mxu1 %v3734_v26  ;;  %4064 = vmatpush.msra.mxu2 %v3749_v51  ;;  %v4117_v26 = vld [vmem:[%s8724_s7 + $0x8] sm:$0xff] }
 0x771   :  { %4083 = vmatpush.msra.mxu3 %v3766_v6  ;;  %v4116_v6 = vld [vmem:[%s8724_s7] sm:$0xff] }
 0x772   :  { %4044 = vmatpush.msra.mxu1 %v3733_v3  ;;  %4065 = vmatpush.msra.mxu2 %v3748_v27 }
 0x773   :  { %4084 = vmatpush.msra.mxu3 %v3765_v48 }
 0x774   :  { %4045 = vmatpush.msra.mxu1 %v3732_v24  ;;  %4066 = vmatpush.msra.mxu2 %v3747_v16 }
 0x775   :  { %4085 = vmatpush.msra.mxu3 %v3764_v34 }
 0x776   :  { %4046 = vmatpush.msra.mxu1 %v3731_v60  ;;  %4067 = vmatpush.msra.mxu2 %v3746_v31 }
 0x777   :  { %4086 = vmatpush.msra.mxu3 %v3763_v41 }
 0x778   :  { %4047 = vmatpush.msra.mxu1 %v3730_v21  ;;  %4068 = vmatpush.msra.mxu2 %v3745_v62 }
 0x779   :  { %4087 = vmatpush.msra.mxu3 %v3762_v39 }
 0x77a   :  { %4048 = vmatpush.msra.mxu1 %v3729_v17  ;;  %4069 = vmatpush.msra.mxu2 %v3744_v23 }
 0x77b   :  { %4088 = vmatpush.msra.mxu3 %v3761_v63 }
 0x77c   :  { %4049 = vmatpush.msra.mxu1 %v3728_v8  ;;  %4070 = vmatpush.msra.mxu2 %v3743_v61 }
 0x77d   :  { %4089 = vmatpush.msra.mxu3 %v3760_v43  ;;  %4071 = vmatmul.f32.vlgmr.msra.gmra.mxu2 %v8366_v54  ;;  %v3787_v54 = vld [vmem:[%s8722_s5 + $0x7e0] sm:$0xff] }
 0x77e   :  { %4050 = vmatpush.msra.mxu1 %v3727_v25  ;;  %4136 = vmatpush.msrb.mxu2 %v4131_v38 }
 0x77f   :  { %4090 = vmatpush.msra.mxu3 %v3759_v12  ;;  %4051 = vmatmul.f32.vlgmr.msra.gmra.mxu1 %v8381_v19  ;;  %v3786_v19 = vld [vmem:[%s8722_s5 + $0x7d8] sm:$0xff] }
 0x780   :  { %4091 = vmatmul.f32.vlgmr.msra.gmra.mxu3 %v8384_v32  ;;  %4095 = vmatpush.msrb.mxu1 %v3790_v55  ;;  %v3785_v32 = vld [vmem:[%s8722_s5 + $0x7d0] sm:$0xff]  ;;  %s4471_s5 = smov [#allocation2]  }
 0x781   :  { %4137 = vmatpush.msrb.mxu2 %v4130_v33  ;;  %s4162_s23 = sshll.u32 %s4471_s5, 4  ;;  %s4163_s23 = int_to_ptr.vmem [resolvable:$true] %s4162_s23 }
 0x782   :  { %4096 = vmatpush.msrb.mxu1 %v3789_v2 }
 0x783   :  { %4138 = vmatpush.msrb.mxu2 %v4129_v57 }
 0x784   :  { %4097 = vmatpush.msrb.mxu1 %v3788_v29  ;;  %v4441_v29 = vld [vmem:[%s8725_s8] ss:$0 sm:$0xff] }
 0x785   :  { %4139 = vmatpush.msrb.mxu2 %v4128_v22 }
 0x786   :  { %4098 = vmatpush.msrb.mxu1 %v3787_v54 }
 0x788   :  { %4099 = vmatpush.msrb.mxu1 %v3786_v19 }
 0x78a   :  { %4100 = vmatpush.msrb.mxu1 %v3785_v32 }
 0x78c   :  { %4101 = vmatpush.msrb.mxu1 %v3784_v36 }
 0x78e   :  { %4102 = vmatpush.msrb.mxu1 %v3783_v15 }
 0x790   :  { %4103 = vmatpush.msrb.mxu1 %v3782_v7 }
 0x792   :  { %4104 = vmatpush.msrb.mxu1 %v3781_v52 }
 0x794   :  { %4105 = vmatpush.msrb.mxu1 %v3780_v11 }
 0x796   :  { %4106 = vmatpush.msrb.mxu1 %v3779_v46 }
 0x798   :  { %4107 = vmatpush.msrb.mxu1 %v3778_v45 }
 0x79a   :  { %4108 = vmatpush.msrb.mxu1 %v3777_v44  ;;  %v3812_v18 = vpop.f32.mrf.mxu1 }
 0x79b   :  { %v3813_v47 = vadd.f32 %v4440_v49, %v3812_v18 }
 0x79c   :  { %4109 = vmatpush.msrb.mxu1 %v3776_v50 }
 0x79d   :  { %v3832_v56 = vpop.f32.mrf.mxu2 }
 0x79e   :  { %4110 = vmatpush.msrb.mxu1 %v3775_v4  ;;  %v3833_v5 = vadd.f32 %v3832_v56, %v3813_v47 }
 0x79f   :  { %4111 = vmatmul.f32.vlgmr.msrb.gmra.mxu1 %v8387_v14  ;;  %v4127_v14 = vld [vmem:[%s8724_s7 + $0x58] sm:$0xff] }
 0x7a0   :  { %4140 = vmatpush.msrb.mxu2 %v4127_v14  ;;  %v3852_v28 = vpop.f32.mrf.mxu3 }
 0x7a1   :  { %v3853_v13 = vadd.f32 %v3852_v28, %v3833_v5 }
 0x7a2   :  { %4141 = vmatpush.msrb.mxu2 %v4126_v59  ;;  %v3872_v40 = vpop.f32.mrf.mxu1 }
 0x7a3   :  { %v3873_v9 = vadd.f32 %v3872_v40, %v3853_v13 }
 0x7a4   :  { %4142 = vmatpush.msrb.mxu2 %v4125_v30 }
 0x7a6   :  { %4143 = vmatpush.msrb.mxu2 %v4124_v42 }
 0x7a8   :  { %4144 = vmatpush.msrb.mxu2 %v4123_v58 }
 0x7aa   :  { %4145 = vmatpush.msrb.mxu2 %v4122_v20 }
 0x7ac   :  { %4146 = vmatpush.msrb.mxu2 %v4121_v37 }
 0x7ae   :  { %4147 = vmatpush.msrb.mxu2 %v4120_v0 }
 0x7af   :  { %v3912_v51 = vpop.f32.mrf.mxu3 }
 0x7b0   :  { %4148 = vmatpush.msrb.mxu2 %v4119_v1 }
 0x7b1   :  { %v3892_v35 = vpop.f32.mrf.mxu2 }
 0x7b2   :  { %v3893_v53 = vadd.f32 %v3892_v35, %v3873_v9  ;;  %4149 = vmatpush.msrb.mxu2 %v4118_v10 }
 0x7b4   :  { %4150 = vmatpush.msrb.mxu2 %v4117_v26  ;;  %v3913_v27 = vadd.f32 %v3912_v51, %v3893_v53 }
 0x7b6   :  { %4151 = vmatpush.msrb.mxu2 %v4116_v6 }
 0x7bb   :  { %v3932_v3 = vpop.f32.mrf.mxu1 }
 0x7bc   :  { %v3933_v24 = vadd.f32 %v3932_v3, %v3913_v27 }
 0x7bf   :  { %v3952_v48 = vpop.f32.mrf.mxu2 }
 0x7c0   :  { %v3953_v16 = vadd.f32 %v3952_v48, %v3933_v24 }
 0x7c1   :  { %v3972_v34 = vpop.f32.mrf.mxu3 }
 0x7c2   :  { %v3973_v31 = vadd.f32 %v3972_v34, %v3953_v16 }
 0x7dc   :  { %v3992_v60 = vpop.f32.mrf.mxu1 }
 0x7dd   :  { %v3993_v21 = vadd.f32 %v3992_v60, %v3973_v31 }
 0x7e0   :  { %v4012_v41 = vpop.f32.mrf.mxu2 }
 0x7e1   :  { %v4013_v62 = vadd.f32 %v4012_v41, %v3993_v21 }
 0x7e2   :  { %v4032_v39 = vpop.f32.mrf.mxu3 }
 0x7e3   :  { %v4033_v23 = vadd.f32 %v4032_v39, %v4013_v62 }
 0x7fc   :  { %v4052_v17 = vpop.f32.mrf.mxu1 }
 0x7fd   :  { %v4053_v8 = vadd.f32 %v4052_v17, %v4033_v23 }
 0x800   :  { %v4072_v63 = vpop.f32.mrf.mxu2 }
 0x801   :  { %v4073_v61 = vadd.f32 %v4072_v63, %v4053_v8 }
 0x803   :  { %v4092_v43 = vpop.f32.mrf.mxu3 }
 0x804   :  { %v4093_v25 = vadd.f32 %v4092_v43, %v4073_v61 }
 0x81c   :  { %v4112_v12 = vpop.f32.mrf.mxu1 }
 0x81d   :  { %v4113_v55 = vadd.f32 %v4112_v12, %v4093_v25 }
 0x81f   :  { %v4115_v2 = vmax.f32 %v4113_v55, 0.0 }
 0x821   :  { %4152 = vmatmul.f32.vlgmr.msrb.gmra.mxu2 %v4115_v2 }
 0x8a4   :  { %v4153_v54 = vpop.f32.mrf.mxu2 }
 0x8a5   :  { %v4154_v19 = vadd.f32 %v4441_v29, %v4153_v54 }
 0x8a7   :  { %4156 = vst [vmem:[#allocation2] sm:$0x3] %v4154_v19 }
 0x8a8   :  { %4167 = dma.vmem_to_hbm [thread:$0]  %s4163_s23, 32, %s4165_s4, [#allocation3]  }
 0x8a9   :  { %4469 = dma.done.wait [#allocation3], 32  }
 0x8aa   :  { %4470 = vsyncadd [#allocation3], 4294967264 }
 0x8ab   :  { %4172 = vsyncpa [#allocation3], 1 }

</bundles_post_ra>
